<compile_context>
chip_gen: v7x
topology: tpu7x:2x2x1
jax: 0.10.0
libtpu: 0.0.40
codegen_flags: <defaults>
</compile_context>

<pallas_src>
import jax
import jax.numpy as jnp
from jax import lax
from jax.experimental import pallas as pl
from jax.experimental.pallas import tpu as pltpu

# ---- shapes implied by the forward pass (x.resize_((32, 1, 30, 6))) ----------
N, C_IN, H, W = 32, 1, 30, 6
C_OUT = 32
HP, WP = H + 2, W + 2                  # 32, 8  (zero pad 1 on each side)
PH, PW = 14, 2                         # MaxPool2d(3, stride=2) on 30x6
FLAT = C_OUT * PH * PW                 # 896
FC1_OUT, FC2_OUT = 50, 30

ROWS = N * H                           # 960  conv rows, r = h*N + n
LANES = W * C_OUT                      # 192  conv lanes, l = w*C_OUT + c
RBLK = 120                             # conv row-block (8 blocks of 120 rows)


# ---- the single fused kernel --------------------------------------------------
def convnet_fused_kernel(xp_ref, wd_ref, bc_ref, w1a_ref, w1b_ref, b1_ref,
                         w2_ref, b2_ref, o_ref, conv_ref):
    # --- Conv2d(1, 32, 3, stride=1, padding=1) + bias + ReLU -------------------
    # conv_ref[h*N + n, w*C_OUT + c] = relu(conv[n, c, h, w] + b[c])
    # Each kernel row di contributes A_di @ Wd[di] with A_di a shifted, aligned
    # slice of the padded input (rows hp = h + di), Wd[di] an (8, 192) banded
    # matrix encoding the 3 width taps of that row.
    for blk in range(ROWS // RBLK):
        r = blk * RBLK
        acc = jnp.dot(xp_ref[r:r + RBLK, :], wd_ref[0],
                      preferred_element_type=jnp.float32)
        acc = acc + jnp.dot(xp_ref[r + N:r + N + RBLK, :], wd_ref[1],
                            preferred_element_type=jnp.float32)
        acc = acc + jnp.dot(xp_ref[r + 2 * N:r + 2 * N + RBLK, :], wd_ref[2],
                            preferred_element_type=jnp.float32)
        conv_ref[r:r + RBLK, :] = jnp.maximum(acc + bc_ref[...], 0.0)

    # --- MaxPool2d(3, stride=2) + flatten (folded into fc1 weights) + fc1 -----
    # For each pooled row ph: max over 3 contiguous 32-row blocks (h window),
    # then max over lane windows (w window), then accumulate into fc1 via two
    # small matmuls against the pre-permuted fc1 weight slabs.
    h1 = jnp.zeros((N, FC1_OUT), jnp.float32)
    for ph in range(PH):
        r0 = (2 * ph) * N
        row0 = conv_ref[r0:r0 + N, :]
        row1 = conv_ref[r0 + N:r0 + 2 * N, :]
        row2 = conv_ref[r0 + 2 * N:r0 + 3 * N, :]
        hmax = jnp.maximum(jnp.maximum(row0, row1), row2)            # (N, 192)
        # width windows: pw=0 -> w in {0,1,2}, pw=1 -> w in {2,3,4}
        p0 = jnp.maximum(jnp.maximum(hmax[:, 0:32], hmax[:, 32:64]),
                         hmax[:, 64:96])                              # (N, 32)
        p1 = jnp.maximum(jnp.maximum(hmax[:, 64:96], hmax[:, 96:128]),
                         hmax[:, 128:160])                            # (N, 32)
        h1 = h1 + jnp.dot(p0, w1a_ref[ph], preferred_element_type=jnp.float32)
        h1 = h1 + jnp.dot(p1, w1b_ref[ph], preferred_element_type=jnp.float32)
    h1 = h1 + b1_ref[...]

    # --- drop_out: identity (eval mode); fc2 ----------------------------------
    out = jnp.dot(h1, w2_ref[...], preferred_element_type=jnp.float32) + b2_ref[...]
    o_ref[...] = out


# ---- parameter preparation (trace-time-cheap weight reshuffles) ---------------
def _prepare_params(params):
    # Conv weights -> 3 banded (8, 192) matrices, one per kernel row di:
    #   wd[di, j, w*32 + c] = k[c, di, j - w]  if 0 <= j - w <= 2 else 0
    kw = params["conv_w"].reshape(C_OUT, 3, 3)                 # [c, di, dj]
    j = jnp.arange(WP)[:, None]                                # (8, 1) padded col
    w = jnp.arange(W)[None, :]                                 # (1, 6) output col
    dj = j - w                                                 # (8, 6)
    valid = (dj >= 0) & (dj <= 2)
    djc = jnp.clip(dj, 0, 2)
    wd = kw[:, :, djc]                                         # (32, 3, 8, 6)
    wd = jnp.where(valid[None, None, :, :], wd, 0.0)
    wd = jnp.transpose(wd, (1, 2, 3, 0)).reshape(3, WP, LANES) # (3, 8, 192)

    bc = jnp.tile(params["conv_b"], W).reshape(1, LANES)       # (1, 192)

    # fc1 weights permuted so they consume the kernel's pooled (n, c) tiles
    # directly: pooled feature (c, ph, pw) maps to PyTorch flat index
    # c*PH*PW + ph*PW + pw.  This folds the NHWC->NCHW flatten transpose into
    # a one-time weight permutation (zero runtime activation cost).
    w1r = params["fc1_w"].reshape(FC1_OUT, C_OUT, PH, PW)      # [f, c, ph, pw]
    w1a = jnp.transpose(w1r[:, :, :, 0], (2, 1, 0))            # (14, 32, 50)
    w1b = jnp.transpose(w1r[:, :, :, 1], (2, 1, 0))            # (14, 32, 50)
    b1 = params["fc1_b"].reshape(1, FC1_OUT)
    w2 = params["fc2_w"].T                                     # (50, 30)
    b2 = params["fc2_b"].reshape(1, FC2_OUT)
    return wd, bc, w1a, w1b, b1, w2, b2


# ---- full forward: one fused pallas_call --------------------------------------
def convnet_one_forward(x, params):
    # mirrors x.resize_((32, 1, 30, 6))
    x = jnp.reshape(x, (N, C_IN, H, W)).astype(jnp.float32)[:, 0]   # (32, 30, 6)
    # zero-pad (padding=1) and lay out rows h-major / batch-minor so every
    # in-kernel slice is a contiguous, 8-aligned block: xp[hp*N + n, j]
    xp = jnp.pad(x, ((0, 0), (1, 1), (1, 1)))                 # (32, 32, 8)
    xp = jnp.transpose(xp, (1, 0, 2)).reshape(HP * N, WP)     # (1024, 8)

    wd, bc, w1a, w1b, b1, w2, b2 = _prepare_params(params)

    return pl.pallas_call(
        convnet_fused_kernel,
        out_shape=jax.ShapeDtypeStruct((N, FC2_OUT), jnp.float32),
        grid=(1,),
        in_specs=[
            pl.BlockSpec((HP * N, WP), lambda i: (0, 0)),             # padded x
            pl.BlockSpec((3, WP, LANES), lambda i: (0, 0, 0)),        # conv weights
            pl.BlockSpec((1, LANES), lambda i: (0, 0)),               # conv bias
            pl.BlockSpec((PH, C_OUT, FC1_OUT), lambda i: (0, 0, 0)),  # fc1 (pw=0)
            pl.BlockSpec((PH, C_OUT, FC1_OUT), lambda i: (0, 0, 0)),  # fc1 (pw=1)
            pl.BlockSpec((1, FC1_OUT), lambda i: (0, 0)),             # fc1 bias
            pl.BlockSpec((FC1_OUT, FC2_OUT), lambda i: (0, 0)),       # fc2 weights
            pl.BlockSpec((1, FC2_OUT), lambda i: (0, 0)),             # fc2 bias
        ],
        out_specs=pl.BlockSpec((N, FC2_OUT), lambda i: (0, 0)),
        scratch_shapes=[pltpu.VMEM((ROWS, LANES), jnp.float32)],      # conv buffer
        compiler_params=pltpu.CompilerParams(
            dimension_semantics=("arbitrary",)),
    )(xp, wd, bc, w1a, w1b, b1, w2, b2)


# ---- pure-JAX reference (for correctness check) -------------------------------
def convnet_one_reference(x, params):
    x = jnp.reshape(x, (N, C_IN, H, W)).astype(jnp.float32)
    conv = lax.conv_general_dilated(
        x, params["conv_w"], (1, 1), "SAME",
        dimension_numbers=("NCHW", "OIHW", "NCHW"),
        precision=lax.Precision.HIGHEST,
    ) + params["conv_b"].reshape(1, C_OUT, 1, 1)
    conv = jnp.maximum(conv, 0.0)
    pooled = lax.reduce_window(conv, -jnp.inf, lax.max,
                               (1, 1, 3, 3), (1, 1, 2, 2), "VALID")
    flat = pooled.reshape(N, -1)
    h = jnp.dot(flat, params["fc1_w"].T, precision=lax.Precision.HIGHEST) + params["fc1_b"]
    return jnp.dot(h, params["fc2_w"].T, precision=lax.Precision.HIGHEST) + params["fc2_b"]


# ---- main ----------------------------------------------------------------------
if __name__ == "__main__":
    key = jax.random.PRNGKey(0)
    k1, k2, k3, k4, kx = jax.random.split(key, 5)
    params = {
        "conv_w": 0.1 * jax.random.normal(k1, (C_OUT, C_IN, 3, 3), jnp.float32),
        "conv_b": 0.1 * jax.random.normal(k2, (C_OUT,), jnp.float32),
        "fc1_w": 0.05 * jax.random.normal(k3, (FC1_OUT, FLAT), jnp.float32),
        "fc1_b": jnp.zeros((FC1_OUT,), jnp.float32),
        "fc2_w": 0.05 * jax.random.normal(k4, (FC2_OUT, FC1_OUT), jnp.float32),
        "fc2_b": jnp.zeros((FC2_OUT,), jnp.float32),
    }

    # the forward hard-codes the batch to 32 via resize_((32, 1, 30, 6))
    x = jax.random.normal(kx, (N, C_IN, H, W), jnp.float32)

    fwd = jax.jit(convnet_one_forward)
    out = fwd(x, params)
    out = jax.block_until_ready(out)
    assert out.shape == (N, FC2_OUT), out.shape

    ref = convnet_one_reference(x, params)
    if not jnp.allclose(out, ref, rtol=1e-3, atol=1e-3):
        raise RuntimeError("Pallas result does not match JAX reference")

    print("KERNEL_OK")
</pallas_src>

<mosaic_0001>
module attributes {stable_mosaic.version = 11 : i64} {
  func.func @convnet_fused_kernel(%arg0: i32, %arg1: memref<1024x8xf32, #tpu.memory_space<vmem>>, %arg2: memref<3x8x192xf32, #tpu.memory_space<vmem>>, %arg3: memref<1x192xf32, #tpu.memory_space<vmem>>, %arg4: memref<14x32x50xf32, #tpu.memory_space<vmem>>, %arg5: memref<14x32x50xf32, #tpu.memory_space<vmem>>, %arg6: memref<1x50xf32, #tpu.memory_space<vmem>>, %arg7: memref<50x30xf32, #tpu.memory_space<vmem>>, %arg8: memref<1x30xf32, #tpu.memory_space<vmem>>, %arg9: memref<32x30xf32, #tpu.memory_space<vmem>>, %arg10: memref<960x192xf32, #tpu.memory_space<vmem>>) attributes {dimension_semantics = [#tpu.dimension_semantics<arbitrary>], iteration_bounds = array<i64: 1>, scalar_prefetch = 0 : i64, scratch_operands = 1 : i64, tpu.core_type = #tpu.core_type<tc>, window_params = [{pipeline_mode = #tpu.pipeline_mode<synchronous>, transform_indices = @transform_0, window_bounds = array<i64: 1024, 8>}, {pipeline_mode = #tpu.pipeline_mode<synchronous>, transform_indices = @transform_1, window_bounds = array<i64: 3, 8, 192>}, {pipeline_mode = #tpu.pipeline_mode<synchronous>, transform_indices = @transform_2, window_bounds = array<i64: 1, 192>}, {pipeline_mode = #tpu.pipeline_mode<synchronous>, transform_indices = @transform_3, window_bounds = array<i64: 14, 32, 50>}, {pipeline_mode = #tpu.pipeline_mode<synchronous>, transform_indices = @transform_4, window_bounds = array<i64: 14, 32, 50>}, {pipeline_mode = #tpu.pipeline_mode<synchronous>, transform_indices = @transform_5, window_bounds = array<i64: 1, 50>}, {pipeline_mode = #tpu.pipeline_mode<synchronous>, transform_indices = @transform_6, window_bounds = array<i64: 50, 30>}, {pipeline_mode = #tpu.pipeline_mode<synchronous>, transform_indices = @transform_7, window_bounds = array<i64: 1, 30>}, {pipeline_mode = #tpu.pipeline_mode<synchronous>, transform_indices = @transform_8, window_bounds = array<i64: 32, 30>}]} {
    %c0 = arith.constant 0 : index
    %c0_0 = arith.constant 0 : index
    %0 = vector.load %arg1[%c0, %c0_0] : memref<1024x8xf32, #tpu.memory_space<vmem>>, vector<120x8xf32>
    %c0_1 = arith.constant 0 : index
    %c0_2 = arith.constant 0 : index
    %c0_3 = arith.constant 0 : index
    %1 = vector.load %arg2[%c0_1, %c0_2, %c0_3] : memref<3x8x192xf32, #tpu.memory_space<vmem>>, vector<1x8x192xf32>
    %2 = vector.shape_cast %1 : vector<1x8x192xf32> to vector<8x192xf32>
    %cst = arith.constant dense<0.000000e+00> : vector<120x192xf32>
    %3 = tpu.matmul %0, %2, %cst {dimension_numbers = #tpu.dot_dimension_numbers<[1], [0], [0], [1], [0, 0, 1, 1], [], []>} : vector<120x8xf32>, vector<8x192xf32>, vector<120x192xf32> -> vector<120x192xf32>
    %c32 = arith.constant 32 : index
    %c0_4 = arith.constant 0 : index
    %4 = vector.load %arg1[%c32, %c0_4] : memref<1024x8xf32, #tpu.memory_space<vmem>>, vector<120x8xf32>
    %c1 = arith.constant 1 : index
    %c0_5 = arith.constant 0 : index
    %c0_6 = arith.constant 0 : index
    %5 = vector.load %arg2[%c1, %c0_5, %c0_6] : memref<3x8x192xf32, #tpu.memory_space<vmem>>, vector<1x8x192xf32>
    %6 = vector.shape_cast %5 : vector<1x8x192xf32> to vector<8x192xf32>
    %cst_7 = arith.constant dense<0.000000e+00> : vector<120x192xf32>
    %7 = tpu.matmul %4, %6, %cst_7 {dimension_numbers = #tpu.dot_dimension_numbers<[1], [0], [0], [1], [0, 0, 1, 1], [], []>} : vector<120x8xf32>, vector<8x192xf32>, vector<120x192xf32> -> vector<120x192xf32>
    %8 = arith.addf %3, %7 : vector<120x192xf32>
    %c64 = arith.constant 64 : index
    %c0_8 = arith.constant 0 : index
    %9 = vector.load %arg1[%c64, %c0_8] : memref<1024x8xf32, #tpu.memory_space<vmem>>, vector<120x8xf32>
    %c2 = arith.constant 2 : index
    %c0_9 = arith.constant 0 : index
    %c0_10 = arith.constant 0 : index
    %10 = vector.load %arg2[%c2, %c0_9, %c0_10] : memref<3x8x192xf32, #tpu.memory_space<vmem>>, vector<1x8x192xf32>
    %11 = vector.shape_cast %10 : vector<1x8x192xf32> to vector<8x192xf32>
    %cst_11 = arith.constant dense<0.000000e+00> : vector<120x192xf32>
    %12 = tpu.matmul %9, %11, %cst_11 {dimension_numbers = #tpu.dot_dimension_numbers<[1], [0], [0], [1], [0, 0, 1, 1], [], []>} : vector<120x8xf32>, vector<8x192xf32>, vector<120x192xf32> -> vector<120x192xf32>
    %13 = arith.addf %8, %12 : vector<120x192xf32>
    %c0_12 = arith.constant 0 : index
    %c0_13 = arith.constant 0 : index
    %14 = vector.load %arg3[%c0_12, %c0_13] : memref<1x192xf32, #tpu.memory_space<vmem>>, vector<1x192xf32>
    %15 = vector.broadcast %14 : vector<1x192xf32> to vector<120x192xf32>
    %16 = arith.addf %13, %15 : vector<120x192xf32>
    %cst_14 = arith.constant 0.000000e+00 : f32
    %17 = vector.broadcast %cst_14 : f32 to vector<120x192xf32>
    %18 = arith.maximumf %16, %17 : vector<120x192xf32>
    %c0_15 = arith.constant 0 : index
    %c0_16 = arith.constant 0 : index
    %19 = vector.load %arg10[%c0_15, %c0_16] : memref<960x192xf32, #tpu.memory_space<vmem>>, vector<120x192xf32>
    tpu.vector_store %arg10[%c0_15, %c0_16], %18 {strides = array<i32>} : memref<960x192xf32, #tpu.memory_space<vmem>>, vector<120x192xf32>,
    %c120 = arith.constant 120 : index
    %c0_17 = arith.constant 0 : index
    %20 = vector.load %arg1[%c120, %c0_17] : memref<1024x8xf32, #tpu.memory_space<vmem>>, vector<120x8xf32>
    %c0_18 = arith.constant 0 : index
    %c0_19 = arith.constant 0 : index
    %c0_20 = arith.constant 0 : index
    %21 = vector.load %arg2[%c0_18, %c0_19, %c0_20] : memref<3x8x192xf32, #tpu.memory_space<vmem>>, vector<1x8x192xf32>
    %22 = vector.shape_cast %21 : vector<1x8x192xf32> to vector<8x192xf32>
    %cst_21 = arith.constant dense<0.000000e+00> : vector<120x192xf32>
    %23 = tpu.matmul %20, %22, %cst_21 {dimension_numbers = #tpu.dot_dimension_numbers<[1], [0], [0], [1], [0, 0, 1, 1], [], []>} : vector<120x8xf32>, vector<8x192xf32>, vector<120x192xf32> -> vector<120x192xf32>
    %c152 = arith.constant 152 : index
    %c0_22 = arith.constant 0 : index
    %24 = vector.load %arg1[%c152, %c0_22] : memref<1024x8xf32, #tpu.memory_space<vmem>>, vector<120x8xf32>
    %c1_23 = arith.constant 1 : index
    %c0_24 = arith.constant 0 : index
    %c0_25 = arith.constant 0 : index
    %25 = vector.load %arg2[%c1_23, %c0_24, %c0_25] : memref<3x8x192xf32, #tpu.memory_space<vmem>>, vector<1x8x192xf32>
    %26 = vector.shape_cast %25 : vector<1x8x192xf32> to vector<8x192xf32>
    %cst_26 = arith.constant dense<0.000000e+00> : vector<120x192xf32>
    %27 = tpu.matmul %24, %26, %cst_26 {dimension_numbers = #tpu.dot_dimension_numbers<[1], [0], [0], [1], [0, 0, 1, 1], [], []>} : vector<120x8xf32>, vector<8x192xf32>, vector<120x192xf32> -> vector<120x192xf32>
    %28 = arith.addf %23, %27 : vector<120x192xf32>
    %c184 = arith.constant 184 : index
    %c0_27 = arith.constant 0 : index
    %29 = vector.load %arg1[%c184, %c0_27] : memref<1024x8xf32, #tpu.memory_space<vmem>>, vector<120x8xf32>
    %c2_28 = arith.constant 2 : index
    %c0_29 = arith.constant 0 : index
    %c0_30 = arith.constant 0 : index
    %30 = vector.load %arg2[%c2_28, %c0_29, %c0_30] : memref<3x8x192xf32, #tpu.memory_space<vmem>>, vector<1x8x192xf32>
    %31 = vector.shape_cast %30 : vector<1x8x192xf32> to vector<8x192xf32>
    %cst_31 = arith.constant dense<0.000000e+00> : vector<120x192xf32>
    %32 = tpu.matmul %29, %31, %cst_31 {dimension_numbers = #tpu.dot_dimension_numbers<[1], [0], [0], [1], [0, 0, 1, 1], [], []>} : vector<120x8xf32>, vector<8x192xf32>, vector<120x192xf32> -> vector<120x192xf32>
    %33 = arith.addf %28, %32 : vector<120x192xf32>
    %c0_32 = arith.constant 0 : index
    %c0_33 = arith.constant 0 : index
    %34 = vector.load %arg3[%c0_32, %c0_33] : memref<1x192xf32, #tpu.memory_space<vmem>>, vector<1x192xf32>
    %35 = vector.broadcast %34 : vector<1x192xf32> to vector<120x192xf32>
    %36 = arith.addf %33, %35 : vector<120x192xf32>
    %cst_34 = arith.constant 0.000000e+00 : f32
    %37 = vector.broadcast %cst_34 : f32 to vector<120x192xf32>
    %38 = arith.maximumf %36, %37 : vector<120x192xf32>
    %c120_35 = arith.constant 120 : index
    %c0_36 = arith.constant 0 : index
    %39 = vector.load %arg10[%c120_35, %c0_36] : memref<960x192xf32, #tpu.memory_space<vmem>>, vector<120x192xf32>
    tpu.vector_store %arg10[%c120_35, %c0_36], %38 {strides = array<i32>} : memref<960x192xf32, #tpu.memory_space<vmem>>, vector<120x192xf32>,
    %c240 = arith.constant 240 : index
    %c0_37 = arith.constant 0 : index
    %40 = vector.load %arg1[%c240, %c0_37] : memref<1024x8xf32, #tpu.memory_space<vmem>>, vector<120x8xf32>
    %c0_38 = arith.constant 0 : index
    %c0_39 = arith.constant 0 : index
    %c0_40 = arith.constant 0 : index
    %41 = vector.load %arg2[%c0_38, %c0_39, %c0_40] : memref<3x8x192xf32, #tpu.memory_space<vmem>>, vector<1x8x192xf32>
    %42 = vector.shape_cast %41 : vector<1x8x192xf32> to vector<8x192xf32>
    %cst_41 = arith.constant dense<0.000000e+00> : vector<120x192xf32>
    %43 = tpu.matmul %40, %42, %cst_41 {dimension_numbers = #tpu.dot_dimension_numbers<[1], [0], [0], [1], [0, 0, 1, 1], [], []>} : vector<120x8xf32>, vector<8x192xf32>, vector<120x192xf32> -> vector<120x192xf32>
    %c272 = arith.constant 272 : index
    %c0_42 = arith.constant 0 : index
    %44 = vector.load %arg1[%c272, %c0_42] : memref<1024x8xf32, #tpu.memory_space<vmem>>, vector<120x8xf32>
    %c1_43 = arith.constant 1 : index
    %c0_44 = arith.constant 0 : index
    %c0_45 = arith.constant 0 : index
    %45 = vector.load %arg2[%c1_43, %c0_44, %c0_45] : memref<3x8x192xf32, #tpu.memory_space<vmem>>, vector<1x8x192xf32>
    %46 = vector.shape_cast %45 : vector<1x8x192xf32> to vector<8x192xf32>
    %cst_46 = arith.constant dense<0.000000e+00> : vector<120x192xf32>
    %47 = tpu.matmul %44, %46, %cst_46 {dimension_numbers = #tpu.dot_dimension_numbers<[1], [0], [0], [1], [0, 0, 1, 1], [], []>} : vector<120x8xf32>, vector<8x192xf32>, vector<120x192xf32> -> vector<120x192xf32>
    %48 = arith.addf %43, %47 : vector<120x192xf32>
    %c304 = arith.constant 304 : index
    %c0_47 = arith.constant 0 : index
    %49 = vector.load %arg1[%c304, %c0_47] : memref<1024x8xf32, #tpu.memory_space<vmem>>, vector<120x8xf32>
    %c2_48 = arith.constant 2 : index
    %c0_49 = arith.constant 0 : index
    %c0_50 = arith.constant 0 : index
    %50 = vector.load %arg2[%c2_48, %c0_49, %c0_50] : memref<3x8x192xf32, #tpu.memory_space<vmem>>, vector<1x8x192xf32>
    %51 = vector.shape_cast %50 : vector<1x8x192xf32> to vector<8x192xf32>
    %cst_51 = arith.constant dense<0.000000e+00> : vector<120x192xf32>
    %52 = tpu.matmul %49, %51, %cst_51 {dimension_numbers = #tpu.dot_dimension_numbers<[1], [0], [0], [1], [0, 0, 1, 1], [], []>} : vector<120x8xf32>, vector<8x192xf32>, vector<120x192xf32> -> vector<120x192xf32>
    %53 = arith.addf %48, %52 : vector<120x192xf32>
    %c0_52 = arith.constant 0 : index
    %c0_53 = arith.constant 0 : index
    %54 = vector.load %arg3[%c0_52, %c0_53] : memref<1x192xf32, #tpu.memory_space<vmem>>, vector<1x192xf32>
    %55 = vector.broadcast %54 : vector<1x192xf32> to vector<120x192xf32>
    %56 = arith.addf %53, %55 : vector<120x192xf32>
    %cst_54 = arith.constant 0.000000e+00 : f32
    %57 = vector.broadcast %cst_54 : f32 to vector<120x192xf32>
    %58 = arith.maximumf %56, %57 : vector<120x192xf32>
    %c240_55 = arith.constant 240 : index
    %c0_56 = arith.constant 0 : index
    %59 = vector.load %arg10[%c240_55, %c0_56] : memref<960x192xf32, #tpu.memory_space<vmem>>, vector<120x192xf32>
    tpu.vector_store %arg10[%c240_55, %c0_56], %58 {strides = array<i32>} : memref<960x192xf32, #tpu.memory_space<vmem>>, vector<120x192xf32>,
    %c360 = arith.constant 360 : index
    %c0_57 = arith.constant 0 : index
    %60 = vector.load %arg1[%c360, %c0_57] : memref<1024x8xf32, #tpu.memory_space<vmem>>, vector<120x8xf32>
    %c0_58 = arith.constant 0 : index
    %c0_59 = arith.constant 0 : index
    %c0_60 = arith.constant 0 : index
    %61 = vector.load %arg2[%c0_58, %c0_59, %c0_60] : memref<3x8x192xf32, #tpu.memory_space<vmem>>, vector<1x8x192xf32>
    %62 = vector.shape_cast %61 : vector<1x8x192xf32> to vector<8x192xf32>
    %cst_61 = arith.constant dense<0.000000e+00> : vector<120x192xf32>
    %63 = tpu.matmul %60, %62, %cst_61 {dimension_numbers = #tpu.dot_dimension_numbers<[1], [0], [0], [1], [0, 0, 1, 1], [], []>} : vector<120x8xf32>, vector<8x192xf32>, vector<120x192xf32> -> vector<120x192xf32>
    %c392 = arith.constant 392 : index
    %c0_62 = arith.constant 0 : index
    %64 = vector.load %arg1[%c392, %c0_62] : memref<1024x8xf32, #tpu.memory_space<vmem>>, vector<120x8xf32>
    %c1_63 = arith.constant 1 : index
    %c0_64 = arith.constant 0 : index
    %c0_65 = arith.constant 0 : index
    %65 = vector.load %arg2[%c1_63, %c0_64, %c0_65] : memref<3x8x192xf32, #tpu.memory_space<vmem>>, vector<1x8x192xf32>
    %66 = vector.shape_cast %65 : vector<1x8x192xf32> to vector<8x192xf32>
    %cst_66 = arith.constant dense<0.000000e+00> : vector<120x192xf32>
    %67 = tpu.matmul %64, %66, %cst_66 {dimension_numbers = #tpu.dot_dimension_numbers<[1], [0], [0], [1], [0, 0, 1, 1], [], []>} : vector<120x8xf32>, vector<8x192xf32>, vector<120x192xf32> -> vector<120x192xf32>
    %68 = arith.addf %63, %67 : vector<120x192xf32>
    %c424 = arith.constant 424 : index
    %c0_67 = arith.constant 0 : index
    %69 = vector.load %arg1[%c424, %c0_67] : memref<1024x8xf32, #tpu.memory_space<vmem>>, vector<120x8xf32>
    %c2_68 = arith.constant 2 : index
    %c0_69 = arith.constant 0 : index
    %c0_70 = arith.constant 0 : index
    %70 = vector.load %arg2[%c2_68, %c0_69, %c0_70] : memref<3x8x192xf32, #tpu.memory_space<vmem>>, vector<1x8x192xf32>
    %71 = vector.shape_cast %70 : vector<1x8x192xf32> to vector<8x192xf32>
    %cst_71 = arith.constant dense<0.000000e+00> : vector<120x192xf32>
    %72 = tpu.matmul %69, %71, %cst_71 {dimension_numbers = #tpu.dot_dimension_numbers<[1], [0], [0], [1], [0, 0, 1, 1], [], []>} : vector<120x8xf32>, vector<8x192xf32>, vector<120x192xf32> -> vector<120x192xf32>
    %73 = arith.addf %68, %72 : vector<120x192xf32>
    %c0_72 = arith.constant 0 : index
    %c0_73 = arith.constant 0 : index
    %74 = vector.load %arg3[%c0_72, %c0_73] : memref<1x192xf32, #tpu.memory_space<vmem>>, vector<1x192xf32>
    %75 = vector.broadcast %74 : vector<1x192xf32> to vector<120x192xf32>
    %76 = arith.addf %73, %75 : vector<120x192xf32>
    %cst_74 = arith.constant 0.000000e+00 : f32
    %77 = vector.broadcast %cst_74 : f32 to vector<120x192xf32>
    %78 = arith.maximumf %76, %77 : vector<120x192xf32>
    %c360_75 = arith.constant 360 : index
    %c0_76 = arith.constant 0 : index
    %79 = vector.load %arg10[%c360_75, %c0_76] : memref<960x192xf32, #tpu.memory_space<vmem>>, vector<120x192xf32>
    tpu.vector_store %arg10[%c360_75, %c0_76], %78 {strides = array<i32>} : memref<960x192xf32, #tpu.memory_space<vmem>>, vector<120x192xf32>,
    %c480 = arith.constant 480 : index
    %c0_77 = arith.constant 0 : index
    %80 = vector.load %arg1[%c480, %c0_77] : memref<1024x8xf32, #tpu.memory_space<vmem>>, vector<120x8xf32>
    %c0_78 = arith.constant 0 : index
    %c0_79 = arith.constant 0 : index
    %c0_80 = arith.constant 0 : index
    %81 = vector.load %arg2[%c0_78, %c0_79, %c0_80] : memref<3x8x192xf32, #tpu.memory_space<vmem>>, vector<1x8x192xf32>
    %82 = vector.shape_cast %81 : vector<1x8x192xf32> to vector<8x192xf32>
    %cst_81 = arith.constant dense<0.000000e+00> : vector<120x192xf32>
    %83 = tpu.matmul %80, %82, %cst_81 {dimension_numbers = #tpu.dot_dimension_numbers<[1], [0], [0], [1], [0, 0, 1, 1], [], []>} : vector<120x8xf32>, vector<8x192xf32>, vector<120x192xf32> -> vector<120x192xf32>
    %c512 = arith.constant 512 : index
    %c0_82 = arith.constant 0 : index
    %84 = vector.load %arg1[%c512, %c0_82] : memref<1024x8xf32, #tpu.memory_space<vmem>>, vector<120x8xf32>
    %c1_83 = arith.constant 1 : index
    %c0_84 = arith.constant 0 : index
    %c0_85 = arith.constant 0 : index
    %85 = vector.load %arg2[%c1_83, %c0_84, %c0_85] : memref<3x8x192xf32, #tpu.memory_space<vmem>>, vector<1x8x192xf32>
    %86 = vector.shape_cast %85 : vector<1x8x192xf32> to vector<8x192xf32>
    %cst_86 = arith.constant dense<0.000000e+00> : vector<120x192xf32>
    %87 = tpu.matmul %84, %86, %cst_86 {dimension_numbers = #tpu.dot_dimension_numbers<[1], [0], [0], [1], [0, 0, 1, 1], [], []>} : vector<120x8xf32>, vector<8x192xf32>, vector<120x192xf32> -> vector<120x192xf32>
    %88 = arith.addf %83, %87 : vector<120x192xf32>
    %c544 = arith.constant 544 : index
    %c0_87 = arith.constant 0 : index
    %89 = vector.load %arg1[%c544, %c0_87] : memref<1024x8xf32, #tpu.memory_space<vmem>>, vector<120x8xf32>
    %c2_88 = arith.constant 2 : index
    %c0_89 = arith.constant 0 : index
    %c0_90 = arith.constant 0 : index
    %90 = vector.load %arg2[%c2_88, %c0_89, %c0_90] : memref<3x8x192xf32, #tpu.memory_space<vmem>>, vector<1x8x192xf32>
    %91 = vector.shape_cast %90 : vector<1x8x192xf32> to vector<8x192xf32>
    %cst_91 = arith.constant dense<0.000000e+00> : vector<120x192xf32>
    %92 = tpu.matmul %89, %91, %cst_91 {dimension_numbers = #tpu.dot_dimension_numbers<[1], [0], [0], [1], [0, 0, 1, 1], [], []>} : vector<120x8xf32>, vector<8x192xf32>, vector<120x192xf32> -> vector<120x192xf32>
    %93 = arith.addf %88, %92 : vector<120x192xf32>
    %c0_92 = arith.constant 0 : index
    %c0_93 = arith.constant 0 : index
    %94 = vector.load %arg3[%c0_92, %c0_93] : memref<1x192xf32, #tpu.memory_space<vmem>>, vector<1x192xf32>
    %95 = vector.broadcast %94 : vector<1x192xf32> to vector<120x192xf32>
    %96 = arith.addf %93, %95 : vector<120x192xf32>
    %cst_94 = arith.constant 0.000000e+00 : f32
    %97 = vector.broadcast %cst_94 : f32 to vector<120x192xf32>
    %98 = arith.maximumf %96, %97 : vector<120x192xf32>
    %c480_95 = arith.constant 480 : index
    %c0_96 = arith.constant 0 : index
    %99 = vector.load %arg10[%c480_95, %c0_96] : memref<960x192xf32, #tpu.memory_space<vmem>>, vector<120x192xf32>
    tpu.vector_store %arg10[%c480_95, %c0_96], %98 {strides = array<i32>} : memref<960x192xf32, #tpu.memory_space<vmem>>, vector<120x192xf32>,
    %c600 = arith.constant 600 : index
    %c0_97 = arith.constant 0 : index
    %100 = vector.load %arg1[%c600, %c0_97] : memref<1024x8xf32, #tpu.memory_space<vmem>>, vector<120x8xf32>
    %c0_98 = arith.constant 0 : index
    %c0_99 = arith.constant 0 : index
    %c0_100 = arith.constant 0 : index
    %101 = vector.load %arg2[%c0_98, %c0_99, %c0_100] : memref<3x8x192xf32, #tpu.memory_space<vmem>>, vector<1x8x192xf32>
    %102 = vector.shape_cast %101 : vector<1x8x192xf32> to vector<8x192xf32>
    %cst_101 = arith.constant dense<0.000000e+00> : vector<120x192xf32>
    %103 = tpu.matmul %100, %102, %cst_101 {dimension_numbers = #tpu.dot_dimension_numbers<[1], [0], [0], [1], [0, 0, 1, 1], [], []>} : vector<120x8xf32>, vector<8x192xf32>, vector<120x192xf32> -> vector<120x192xf32>
    %c632 = arith.constant 632 : index
    %c0_102 = arith.constant 0 : index
    %104 = vector.load %arg1[%c632, %c0_102] : memref<1024x8xf32, #tpu.memory_space<vmem>>, vector<120x8xf32>
    %c1_103 = arith.constant 1 : index
    %c0_104 = arith.constant 0 : index
    %c0_105 = arith.constant 0 : index
    %105 = vector.load %arg2[%c1_103, %c0_104, %c0_105] : memref<3x8x192xf32, #tpu.memory_space<vmem>>, vector<1x8x192xf32>
    %106 = vector.shape_cast %105 : vector<1x8x192xf32> to vector<8x192xf32>
    %cst_106 = arith.constant dense<0.000000e+00> : vector<120x192xf32>
    %107 = tpu.matmul %104, %106, %cst_106 {dimension_numbers = #tpu.dot_dimension_numbers<[1], [0], [0], [1], [0, 0, 1, 1], [], []>} : vector<120x8xf32>, vector<8x192xf32>, vector<120x192xf32> -> vector<120x192xf32>
    %108 = arith.addf %103, %107 : vector<120x192xf32>
    %c664 = arith.constant 664 : index
    %c0_107 = arith.constant 0 : index
    %109 = vector.load %arg1[%c664, %c0_107] : memref<1024x8xf32, #tpu.memory_space<vmem>>, vector<120x8xf32>
    %c2_108 = arith.constant 2 : index
    %c0_109 = arith.constant 0 : index
    %c0_110 = arith.constant 0 : index
    %110 = vector.load %arg2[%c2_108, %c0_109, %c0_110] : memref<3x8x192xf32, #tpu.memory_space<vmem>>, vector<1x8x192xf32>
    %111 = vector.shape_cast %110 : vector<1x8x192xf32> to vector<8x192xf32>
    %cst_111 = arith.constant dense<0.000000e+00> : vector<120x192xf32>
    %112 = tpu.matmul %109, %111, %cst_111 {dimension_numbers = #tpu.dot_dimension_numbers<[1], [0], [0], [1], [0, 0, 1, 1], [], []>} : vector<120x8xf32>, vector<8x192xf32>, vector<120x192xf32> -> vector<120x192xf32>
    %113 = arith.addf %108, %112 : vector<120x192xf32>
    %c0_112 = arith.constant 0 : index
    %c0_113 = arith.constant 0 : index
    %114 = vector.load %arg3[%c0_112, %c0_113] : memref<1x192xf32, #tpu.memory_space<vmem>>, vector<1x192xf32>
    %115 = vector.broadcast %114 : vector<1x192xf32> to vector<120x192xf32>
    %116 = arith.addf %113, %115 : vector<120x192xf32>
    %cst_114 = arith.constant 0.000000e+00 : f32
    %117 = vector.broadcast %cst_114 : f32 to vector<120x192xf32>
    %118 = arith.maximumf %116, %117 : vector<120x192xf32>
    %c600_115 = arith.constant 600 : index
    %c0_116 = arith.constant 0 : index
    %119 = vector.load %arg10[%c600_115, %c0_116] : memref<960x192xf32, #tpu.memory_space<vmem>>, vector<120x192xf32>
    tpu.vector_store %arg10[%c600_115, %c0_116], %118 {strides = array<i32>} : memref<960x192xf32, #tpu.memory_space<vmem>>, vector<120x192xf32>,
    %c720 = arith.constant 720 : index
    %c0_117 = arith.constant 0 : index
    %120 = vector.load %arg1[%c720, %c0_117] : memref<1024x8xf32, #tpu.memory_space<vmem>>, vector<120x8xf32>
    %c0_118 = arith.constant 0 : index
    %c0_119 = arith.constant 0 : index
    %c0_120 = arith.constant 0 : index
    %121 = vector.load %arg2[%c0_118, %c0_119, %c0_120] : memref<3x8x192xf32, #tpu.memory_space<vmem>>, vector<1x8x192xf32>
    %122 = vector.shape_cast %121 : vector<1x8x192xf32> to vector<8x192xf32>
    %cst_121 = arith.constant dense<0.000000e+00> : vector<120x192xf32>
    %123 = tpu.matmul %120, %122, %cst_121 {dimension_numbers = #tpu.dot_dimension_numbers<[1], [0], [0], [1], [0, 0, 1, 1], [], []>} : vector<120x8xf32>, vector<8x192xf32>, vector<120x192xf32> -> vector<120x192xf32>
    %c752 = arith.constant 752 : index
    %c0_122 = arith.constant 0 : index
    %124 = vector.load %arg1[%c752, %c0_122] : memref<1024x8xf32, #tpu.memory_space<vmem>>, vector<120x8xf32>
    %c1_123 = arith.constant 1 : index
    %c0_124 = arith.constant 0 : index
    %c0_125 = arith.constant 0 : index
    %125 = vector.load %arg2[%c1_123, %c0_124, %c0_125] : memref<3x8x192xf32, #tpu.memory_space<vmem>>, vector<1x8x192xf32>
    %126 = vector.shape_cast %125 : vector<1x8x192xf32> to vector<8x192xf32>
    %cst_126 = arith.constant dense<0.000000e+00> : vector<120x192xf32>
    %127 = tpu.matmul %124, %126, %cst_126 {dimension_numbers = #tpu.dot_dimension_numbers<[1], [0], [0], [1], [0, 0, 1, 1], [], []>} : vector<120x8xf32>, vector<8x192xf32>, vector<120x192xf32> -> vector<120x192xf32>
    %128 = arith.addf %123, %127 : vector<120x192xf32>
    %c784 = arith.constant 784 : index
    %c0_127 = arith.constant 0 : index
    %129 = vector.load %arg1[%c784, %c0_127] : memref<1024x8xf32, #tpu.memory_space<vmem>>, vector<120x8xf32>
    %c2_128 = arith.constant 2 : index
    %c0_129 = arith.constant 0 : index
    %c0_130 = arith.constant 0 : index
    %130 = vector.load %arg2[%c2_128, %c0_129, %c0_130] : memref<3x8x192xf32, #tpu.memory_space<vmem>>, vector<1x8x192xf32>
    %131 = vector.shape_cast %130 : vector<1x8x192xf32> to vector<8x192xf32>
    %cst_131 = arith.constant dense<0.000000e+00> : vector<120x192xf32>
    %132 = tpu.matmul %129, %131, %cst_131 {dimension_numbers = #tpu.dot_dimension_numbers<[1], [0], [0], [1], [0, 0, 1, 1], [], []>} : vector<120x8xf32>, vector<8x192xf32>, vector<120x192xf32> -> vector<120x192xf32>
    %133 = arith.addf %128, %132 : vector<120x192xf32>
    %c0_132 = arith.constant 0 : index
    %c0_133 = arith.constant 0 : index
    %134 = vector.load %arg3[%c0_132, %c0_133] : memref<1x192xf32, #tpu.memory_space<vmem>>, vector<1x192xf32>
    %135 = vector.broadcast %134 : vector<1x192xf32> to vector<120x192xf32>
    %136 = arith.addf %133, %135 : vector<120x192xf32>
    %cst_134 = arith.constant 0.000000e+00 : f32
    %137 = vector.broadcast %cst_134 : f32 to vector<120x192xf32>
    %138 = arith.maximumf %136, %137 : vector<120x192xf32>
    %c720_135 = arith.constant 720 : index
    %c0_136 = arith.constant 0 : index
    %139 = vector.load %arg10[%c720_135, %c0_136] : memref<960x192xf32, #tpu.memory_space<vmem>>, vector<120x192xf32>
    tpu.vector_store %arg10[%c720_135, %c0_136], %138 {strides = array<i32>} : memref<960x192xf32, #tpu.memory_space<vmem>>, vector<120x192xf32>,
    %c840 = arith.constant 840 : index
    %c0_137 = arith.constant 0 : index
    %140 = vector.load %arg1[%c840, %c0_137] : memref<1024x8xf32, #tpu.memory_space<vmem>>, vector<120x8xf32>
    %c0_138 = arith.constant 0 : index
    %c0_139 = arith.constant 0 : index
    %c0_140 = arith.constant 0 : index
    %141 = vector.load %arg2[%c0_138, %c0_139, %c0_140] : memref<3x8x192xf32, #tpu.memory_space<vmem>>, vector<1x8x192xf32>
    %142 = vector.shape_cast %141 : vector<1x8x192xf32> to vector<8x192xf32>
    %cst_141 = arith.constant dense<0.000000e+00> : vector<120x192xf32>
    %143 = tpu.matmul %140, %142, %cst_141 {dimension_numbers = #tpu.dot_dimension_numbers<[1], [0], [0], [1], [0, 0, 1, 1], [], []>} : vector<120x8xf32>, vector<8x192xf32>, vector<120x192xf32> -> vector<120x192xf32>
    %c872 = arith.constant 872 : index
    %c0_142 = arith.constant 0 : index
    %144 = vector.load %arg1[%c872, %c0_142] : memref<1024x8xf32, #tpu.memory_space<vmem>>, vector<120x8xf32>
    %c1_143 = arith.constant 1 : index
    %c0_144 = arith.constant 0 : index
    %c0_145 = arith.constant 0 : index
    %145 = vector.load %arg2[%c1_143, %c0_144, %c0_145] : memref<3x8x192xf32, #tpu.memory_space<vmem>>, vector<1x8x192xf32>
    %146 = vector.shape_cast %145 : vector<1x8x192xf32> to vector<8x192xf32>
    %cst_146 = arith.constant dense<0.000000e+00> : vector<120x192xf32>
    %147 = tpu.matmul %144, %146, %cst_146 {dimension_numbers = #tpu.dot_dimension_numbers<[1], [0], [0], [1], [0, 0, 1, 1], [], []>} : vector<120x8xf32>, vector<8x192xf32>, vector<120x192xf32> -> vector<120x192xf32>
    %148 = arith.addf %143, %147 : vector<120x192xf32>
    %c904 = arith.constant 904 : index
    %c0_147 = arith.constant 0 : index
    %149 = vector.load %arg1[%c904, %c0_147] : memref<1024x8xf32, #tpu.memory_space<vmem>>, vector<120x8xf32>
    %c2_148 = arith.constant 2 : index
    %c0_149 = arith.constant 0 : index
    %c0_150 = arith.constant 0 : index
    %150 = vector.load %arg2[%c2_148, %c0_149, %c0_150] : memref<3x8x192xf32, #tpu.memory_space<vmem>>, vector<1x8x192xf32>
    %151 = vector.shape_cast %150 : vector<1x8x192xf32> to vector<8x192xf32>
    %cst_151 = arith.constant dense<0.000000e+00> : vector<120x192xf32>
    %152 = tpu.matmul %149, %151, %cst_151 {dimension_numbers = #tpu.dot_dimension_numbers<[1], [0], [0], [1], [0, 0, 1, 1], [], []>} : vector<120x8xf32>, vector<8x192xf32>, vector<120x192xf32> -> vector<120x192xf32>
    %153 = arith.addf %148, %152 : vector<120x192xf32>
    %c0_152 = arith.constant 0 : index
    %c0_153 = arith.constant 0 : index
    %154 = vector.load %arg3[%c0_152, %c0_153] : memref<1x192xf32, #tpu.memory_space<vmem>>, vector<1x192xf32>
    %155 = vector.broadcast %154 : vector<1x192xf32> to vector<120x192xf32>
    %156 = arith.addf %153, %155 : vector<120x192xf32>
    %cst_154 = arith.constant 0.000000e+00 : f32
    %157 = vector.broadcast %cst_154 : f32 to vector<120x192xf32>
    %158 = arith.maximumf %156, %157 : vector<120x192xf32>
    %c840_155 = arith.constant 840 : index
    %c0_156 = arith.constant 0 : index
    %159 = vector.load %arg10[%c840_155, %c0_156] : memref<960x192xf32, #tpu.memory_space<vmem>>, vector<120x192xf32>
    tpu.vector_store %arg10[%c840_155, %c0_156], %158 {strides = array<i32>} : memref<960x192xf32, #tpu.memory_space<vmem>>, vector<120x192xf32>,
    %cst_157 = arith.constant 0.000000e+00 : f32
    %160 = vector.broadcast %cst_157 : f32 to vector<32x50xf32>
    %c0_158 = arith.constant 0 : index
    %c0_159 = arith.constant 0 : index
    %161 = vector.load %arg10[%c0_158, %c0_159] : memref<960x192xf32, #tpu.memory_space<vmem>>, vector<32x192xf32>
    %c32_160 = arith.constant 32 : index
    %c0_161 = arith.constant 0 : index
    %162 = vector.load %arg10[%c32_160, %c0_161] : memref<960x192xf32, #tpu.memory_space<vmem>>, vector<32x192xf32>
    %c64_162 = arith.constant 64 : index
    %c0_163 = arith.constant 0 : index
    %163 = vector.load %arg10[%c64_162, %c0_163] : memref<960x192xf32, #tpu.memory_space<vmem>>, vector<32x192xf32>
    %164 = arith.maximumf %161, %162 : vector<32x192xf32>
    %165 = arith.maximumf %164, %163 : vector<32x192xf32>
    %166 = vector.extract_strided_slice %165 {offsets = [0, 0], sizes = [32, 32], strides = [1, 1]} : vector<32x192xf32> to vector<32x32xf32>
    %167 = vector.extract_strided_slice %165 {offsets = [0, 32], sizes = [32, 32], strides = [1, 1]} : vector<32x192xf32> to vector<32x32xf32>
    %168 = arith.maximumf %166, %167 : vector<32x32xf32>
    %169 = vector.extract_strided_slice %165 {offsets = [0, 64], sizes = [32, 32], strides = [1, 1]} : vector<32x192xf32> to vector<32x32xf32>
    %170 = arith.maximumf %168, %169 : vector<32x32xf32>
    %171 = vector.extract_strided_slice %165 {offsets = [0, 64], sizes = [32, 32], strides = [1, 1]} : vector<32x192xf32> to vector<32x32xf32>
    %172 = vector.extract_strided_slice %165 {offsets = [0, 96], sizes = [32, 32], strides = [1, 1]} : vector<32x192xf32> to vector<32x32xf32>
    %173 = arith.maximumf %171, %172 : vector<32x32xf32>
    %174 = vector.extract_strided_slice %165 {offsets = [0, 128], sizes = [32, 32], strides = [1, 1]} : vector<32x192xf32> to vector<32x32xf32>
    %175 = arith.maximumf %173, %174 : vector<32x32xf32>
    %c0_164 = arith.constant 0 : index
    %c0_165 = arith.constant 0 : index
    %c0_166 = arith.constant 0 : index
    %176 = vector.load %arg4[%c0_164, %c0_165, %c0_166] : memref<14x32x50xf32, #tpu.memory_space<vmem>>, vector<1x32x50xf32>
    %177 = vector.shape_cast %176 : vector<1x32x50xf32> to vector<32x50xf32>
    %cst_167 = arith.constant dense<0.000000e+00> : vector<32x50xf32>
    %178 = tpu.matmul %170, %177, %cst_167 {dimension_numbers = #tpu.dot_dimension_numbers<[1], [0], [0], [1], [0, 0, 1, 1], [], []>} : vector<32x32xf32>, vector<32x50xf32>, vector<32x50xf32> -> vector<32x50xf32>
    %179 = arith.addf %160, %178 : vector<32x50xf32>
    %c0_168 = arith.constant 0 : index
    %c0_169 = arith.constant 0 : index
    %c0_170 = arith.constant 0 : index
    %180 = vector.load %arg5[%c0_168, %c0_169, %c0_170] : memref<14x32x50xf32, #tpu.memory_space<vmem>>, vector<1x32x50xf32>
    %181 = vector.shape_cast %180 : vector<1x32x50xf32> to vector<32x50xf32>
    %cst_171 = arith.constant dense<0.000000e+00> : vector<32x50xf32>
    %182 = tpu.matmul %175, %181, %cst_171 {dimension_numbers = #tpu.dot_dimension_numbers<[1], [0], [0], [1], [0, 0, 1, 1], [], []>} : vector<32x32xf32>, vector<32x50xf32>, vector<32x50xf32> -> vector<32x50xf32>
    %183 = arith.addf %179, %182 : vector<32x50xf32>
    %c64_172 = arith.constant 64 : index
    %c0_173 = arith.constant 0 : index
    %184 = vector.load %arg10[%c64_172, %c0_173] : memref<960x192xf32, #tpu.memory_space<vmem>>, vector<32x192xf32>
    %c96 = arith.constant 96 : index
    %c0_174 = arith.constant 0 : index
    %185 = vector.load %arg10[%c96, %c0_174] : memref<960x192xf32, #tpu.memory_space<vmem>>, vector<32x192xf32>
    %c128 = arith.constant 128 : index
    %c0_175 = arith.constant 0 : index
    %186 = vector.load %arg10[%c128, %c0_175] : memref<960x192xf32, #tpu.memory_space<vmem>>, vector<32x192xf32>
    %187 = arith.maximumf %184, %185 : vector<32x192xf32>
    %188 = arith.maximumf %187, %186 : vector<32x192xf32>
    %189 = vector.extract_strided_slice %188 {offsets = [0, 0], sizes = [32, 32], strides = [1, 1]} : vector<32x192xf32> to vector<32x32xf32>
    %190 = vector.extract_strided_slice %188 {offsets = [0, 32], sizes = [32, 32], strides = [1, 1]} : vector<32x192xf32> to vector<32x32xf32>
    %191 = arith.maximumf %189, %190 : vector<32x32xf32>
    %192 = vector.extract_strided_slice %188 {offsets = [0, 64], sizes = [32, 32], strides = [1, 1]} : vector<32x192xf32> to vector<32x32xf32>
    %193 = arith.maximumf %191, %192 : vector<32x32xf32>
    %194 = vector.extract_strided_slice %188 {offsets = [0, 64], sizes = [32, 32], strides = [1, 1]} : vector<32x192xf32> to vector<32x32xf32>
    %195 = vector.extract_strided_slice %188 {offsets = [0, 96], sizes = [32, 32], strides = [1, 1]} : vector<32x192xf32> to vector<32x32xf32>
    %196 = arith.maximumf %194, %195 : vector<32x32xf32>
    %197 = vector.extract_strided_slice %188 {offsets = [0, 128], sizes = [32, 32], strides = [1, 1]} : vector<32x192xf32> to vector<32x32xf32>
    %198 = arith.maximumf %196, %197 : vector<32x32xf32>
    %c1_176 = arith.constant 1 : index
    %c0_177 = arith.constant 0 : index
    %c0_178 = arith.constant 0 : index
    %199 = vector.load %arg4[%c1_176, %c0_177, %c0_178] : memref<14x32x50xf32, #tpu.memory_space<vmem>>, vector<1x32x50xf32>
    %200 = vector.shape_cast %199 : vector<1x32x50xf32> to vector<32x50xf32>
    %cst_179 = arith.constant dense<0.000000e+00> : vector<32x50xf32>
    %201 = tpu.matmul %193, %200, %cst_179 {dimension_numbers = #tpu.dot_dimension_numbers<[1], [0], [0], [1], [0, 0, 1, 1], [], []>} : vector<32x32xf32>, vector<32x50xf32>, vector<32x50xf32> -> vector<32x50xf32>
    %202 = arith.addf %183, %201 : vector<32x50xf32>
    %c1_180 = arith.constant 1 : index
    %c0_181 = arith.constant 0 : index
    %c0_182 = arith.constant 0 : index
    %203 = vector.load %arg5[%c1_180, %c0_181, %c0_182] : memref<14x32x50xf32, #tpu.memory_space<vmem>>, vector<1x32x50xf32>
    %204 = vector.shape_cast %203 : vector<1x32x50xf32> to vector<32x50xf32>
    %cst_183 = arith.constant dense<0.000000e+00> : vector<32x50xf32>
    %205 = tpu.matmul %198, %204, %cst_183 {dimension_numbers = #tpu.dot_dimension_numbers<[1], [0], [0], [1], [0, 0, 1, 1], [], []>} : vector<32x32xf32>, vector<32x50xf32>, vector<32x50xf32> -> vector<32x50xf32>
    %206 = arith.addf %202, %205 : vector<32x50xf32>
    %c128_184 = arith.constant 128 : index
    %c0_185 = arith.constant 0 : index
    %207 = vector.load %arg10[%c128_184, %c0_185] : memref<960x192xf32, #tpu.memory_space<vmem>>, vector<32x192xf32>
    %c160 = arith.constant 160 : index
    %c0_186 = arith.constant 0 : index
    %208 = vector.load %arg10[%c160, %c0_186] : memref<960x192xf32, #tpu.memory_space<vmem>>, vector<32x192xf32>
    %c192 = arith.constant 192 : index
    %c0_187 = arith.constant 0 : index
    %209 = vector.load %arg10[%c192, %c0_187] : memref<960x192xf32, #tpu.memory_space<vmem>>, vector<32x192xf32>
    %210 = arith.maximumf %207, %208 : vector<32x192xf32>
    %211 = arith.maximumf %210, %209 : vector<32x192xf32>
    %212 = vector.extract_strided_slice %211 {offsets = [0, 0], sizes = [32, 32], strides = [1, 1]} : vector<32x192xf32> to vector<32x32xf32>
    %213 = vector.extract_strided_slice %211 {offsets = [0, 32], sizes = [32, 32], strides = [1, 1]} : vector<32x192xf32> to vector<32x32xf32>
    %214 = arith.maximumf %212, %213 : vector<32x32xf32>
    %215 = vector.extract_strided_slice %211 {offsets = [0, 64], sizes = [32, 32], strides = [1, 1]} : vector<32x192xf32> to vector<32x32xf32>
    %216 = arith.maximumf %214, %215 : vector<32x32xf32>
    %217 = vector.extract_strided_slice %211 {offsets = [0, 64], sizes = [32, 32], strides = [1, 1]} : vector<32x192xf32> to vector<32x32xf32>
    %218 = vector.extract_strided_slice %211 {offsets = [0, 96], sizes = [32, 32], strides = [1, 1]} : vector<32x192xf32> to vector<32x32xf32>
    %219 = arith.maximumf %217, %218 : vector<32x32xf32>
    %220 = vector.extract_strided_slice %211 {offsets = [0, 128], sizes = [32, 32], strides = [1, 1]} : vector<32x192xf32> to vector<32x32xf32>
    %221 = arith.maximumf %219, %220 : vector<32x32xf32>
    %c2_188 = arith.constant 2 : index
    %c0_189 = arith.constant 0 : index
    %c0_190 = arith.constant 0 : index
    %222 = vector.load %arg4[%c2_188, %c0_189, %c0_190] : memref<14x32x50xf32, #tpu.memory_space<vmem>>, vector<1x32x50xf32>
    %223 = vector.shape_cast %222 : vector<1x32x50xf32> to vector<32x50xf32>
    %cst_191 = arith.constant dense<0.000000e+00> : vector<32x50xf32>
    %224 = tpu.matmul %216, %223, %cst_191 {dimension_numbers = #tpu.dot_dimension_numbers<[1], [0], [0], [1], [0, 0, 1, 1], [], []>} : vector<32x32xf32>, vector<32x50xf32>, vector<32x50xf32> -> vector<32x50xf32>
    %225 = arith.addf %206, %224 : vector<32x50xf32>
    %c2_192 = arith.constant 2 : index
    %c0_193 = arith.constant 0 : index
    %c0_194 = arith.constant 0 : index
    %226 = vector.load %arg5[%c2_192, %c0_193, %c0_194] : memref<14x32x50xf32, #tpu.memory_space<vmem>>, vector<1x32x50xf32>
    %227 = vector.shape_cast %226 : vector<1x32x50xf32> to vector<32x50xf32>
    %cst_195 = arith.constant dense<0.000000e+00> : vector<32x50xf32>
    %228 = tpu.matmul %221, %227, %cst_195 {dimension_numbers = #tpu.dot_dimension_numbers<[1], [0], [0], [1], [0, 0, 1, 1], [], []>} : vector<32x32xf32>, vector<32x50xf32>, vector<32x50xf32> -> vector<32x50xf32>
    %229 = arith.addf %225, %228 : vector<32x50xf32>
    %c192_196 = arith.constant 192 : index
    %c0_197 = arith.constant 0 : index
    %230 = vector.load %arg10[%c192_196, %c0_197] : memref<960x192xf32, #tpu.memory_space<vmem>>, vector<32x192xf32>
    %c224 = arith.constant 224 : index
    %c0_198 = arith.constant 0 : index
    %231 = vector.load %arg10[%c224, %c0_198] : memref<960x192xf32, #tpu.memory_space<vmem>>, vector<32x192xf32>
    %c256 = arith.constant 256 : index
    %c0_199 = arith.constant 0 : index
    %232 = vector.load %arg10[%c256, %c0_199] : memref<960x192xf32, #tpu.memory_space<vmem>>, vector<32x192xf32>
    %233 = arith.maximumf %230, %231 : vector<32x192xf32>
    %234 = arith.maximumf %233, %232 : vector<32x192xf32>
    %235 = vector.extract_strided_slice %234 {offsets = [0, 0], sizes = [32, 32], strides = [1, 1]} : vector<32x192xf32> to vector<32x32xf32>
    %236 = vector.extract_strided_slice %234 {offsets = [0, 32], sizes = [32, 32], strides = [1, 1]} : vector<32x192xf32> to vector<32x32xf32>
    %237 = arith.maximumf %235, %236 : vector<32x32xf32>
    %238 = vector.extract_strided_slice %234 {offsets = [0, 64], sizes = [32, 32], strides = [1, 1]} : vector<32x192xf32> to vector<32x32xf32>
    %239 = arith.maximumf %237, %238 : vector<32x32xf32>
    %240 = vector.extract_strided_slice %234 {offsets = [0, 64], sizes = [32, 32], strides = [1, 1]} : vector<32x192xf32> to vector<32x32xf32>
    %241 = vector.extract_strided_slice %234 {offsets = [0, 96], sizes = [32, 32], strides = [1, 1]} : vector<32x192xf32> to vector<32x32xf32>
    %242 = arith.maximumf %240, %241 : vector<32x32xf32>
    %243 = vector.extract_strided_slice %234 {offsets = [0, 128], sizes = [32, 32], strides = [1, 1]} : vector<32x192xf32> to vector<32x32xf32>
    %244 = arith.maximumf %242, %243 : vector<32x32xf32>
    %c3 = arith.constant 3 : index
    %c0_200 = arith.constant 0 : index
    %c0_201 = arith.constant 0 : index
    %245 = vector.load %arg4[%c3, %c0_200, %c0_201] : memref<14x32x50xf32, #tpu.memory_space<vmem>>, vector<1x32x50xf32>
    %246 = vector.shape_cast %245 : vector<1x32x50xf32> to vector<32x50xf32>
    %cst_202 = arith.constant dense<0.000000e+00> : vector<32x50xf32>
    %247 = tpu.matmul %239, %246, %cst_202 {dimension_numbers = #tpu.dot_dimension_numbers<[1], [0], [0], [1], [0, 0, 1, 1], [], []>} : vector<32x32xf32>, vector<32x50xf32>, vector<32x50xf32> -> vector<32x50xf32>
    %248 = arith.addf %229, %247 : vector<32x50xf32>
    %c3_203 = arith.constant 3 : index
    %c0_204 = arith.constant 0 : index
    %c0_205 = arith.constant 0 : index
    %249 = vector.load %arg5[%c3_203, %c0_204, %c0_205] : memref<14x32x50xf32, #tpu.memory_space<vmem>>, vector<1x32x50xf32>
    %250 = vector.shape_cast %249 : vector<1x32x50xf32> to vector<32x50xf32>
    %cst_206 = arith.constant dense<0.000000e+00> : vector<32x50xf32>
    %251 = tpu.matmul %244, %250, %cst_206 {dimension_numbers = #tpu.dot_dimension_numbers<[1], [0], [0], [1], [0, 0, 1, 1], [], []>} : vector<32x32xf32>, vector<32x50xf32>, vector<32x50xf32> -> vector<32x50xf32>
    %252 = arith.addf %248, %251 : vector<32x50xf32>
    %c256_207 = arith.constant 256 : index
    %c0_208 = arith.constant 0 : index
    %253 = vector.load %arg10[%c256_207, %c0_208] : memref<960x192xf32, #tpu.memory_space<vmem>>, vector<32x192xf32>
    %c288 = arith.constant 288 : index
    %c0_209 = arith.constant 0 : index
    %254 = vector.load %arg10[%c288, %c0_209] : memref<960x192xf32, #tpu.memory_space<vmem>>, vector<32x192xf32>
    %c320 = arith.constant 320 : index
    %c0_210 = arith.constant 0 : index
    %255 = vector.load %arg10[%c320, %c0_210] : memref<960x192xf32, #tpu.memory_space<vmem>>, vector<32x192xf32>
    %256 = arith.maximumf %253, %254 : vector<32x192xf32>
    %257 = arith.maximumf %256, %255 : vector<32x192xf32>
    %258 = vector.extract_strided_slice %257 {offsets = [0, 0], sizes = [32, 32], strides = [1, 1]} : vector<32x192xf32> to vector<32x32xf32>
    %259 = vector.extract_strided_slice %257 {offsets = [0, 32], sizes = [32, 32], strides = [1, 1]} : vector<32x192xf32> to vector<32x32xf32>
    %260 = arith.maximumf %258, %259 : vector<32x32xf32>
    %261 = vector.extract_strided_slice %257 {offsets = [0, 64], sizes = [32, 32], strides = [1, 1]} : vector<32x192xf32> to vector<32x32xf32>
    %262 = arith.maximumf %260, %261 : vector<32x32xf32>
    %263 = vector.extract_strided_slice %257 {offsets = [0, 64], sizes = [32, 32], strides = [1, 1]} : vector<32x192xf32> to vector<32x32xf32>
    %264 = vector.extract_strided_slice %257 {offsets = [0, 96], sizes = [32, 32], strides = [1, 1]} : vector<32x192xf32> to vector<32x32xf32>
    %265 = arith.maximumf %263, %264 : vector<32x32xf32>
    %266 = vector.extract_strided_slice %257 {offsets = [0, 128], sizes = [32, 32], strides = [1, 1]} : vector<32x192xf32> to vector<32x32xf32>
    %267 = arith.maximumf %265, %266 : vector<32x32xf32>
    %c4 = arith.constant 4 : index
    %c0_211 = arith.constant 0 : index
    %c0_212 = arith.constant 0 : index
    %268 = vector.load %arg4[%c4, %c0_211, %c0_212] : memref<14x32x50xf32, #tpu.memory_space<vmem>>, vector<1x32x50xf32>
    %269 = vector.shape_cast %268 : vector<1x32x50xf32> to vector<32x50xf32>
    %cst_213 = arith.constant dense<0.000000e+00> : vector<32x50xf32>
    %270 = tpu.matmul %262, %269, %cst_213 {dimension_numbers = #tpu.dot_dimension_numbers<[1], [0], [0], [1], [0, 0, 1, 1], [], []>} : vector<32x32xf32>, vector<32x50xf32>, vector<32x50xf32> -> vector<32x50xf32>
    %271 = arith.addf %252, %270 : vector<32x50xf32>
    %c4_214 = arith.constant 4 : index
    %c0_215 = arith.constant 0 : index
    %c0_216 = arith.constant 0 : index
    %272 = vector.load %arg5[%c4_214, %c0_215, %c0_216] : memref<14x32x50xf32, #tpu.memory_space<vmem>>, vector<1x32x50xf32>
    %273 = vector.shape_cast %272 : vector<1x32x50xf32> to vector<32x50xf32>
    %cst_217 = arith.constant dense<0.000000e+00> : vector<32x50xf32>
    %274 = tpu.matmul %267, %273, %cst_217 {dimension_numbers = #tpu.dot_dimension_numbers<[1], [0], [0], [1], [0, 0, 1, 1], [], []>} : vector<32x32xf32>, vector<32x50xf32>, vector<32x50xf32> -> vector<32x50xf32>
    %275 = arith.addf %271, %274 : vector<32x50xf32>
    %c320_218 = arith.constant 320 : index
    %c0_219 = arith.constant 0 : index
    %276 = vector.load %arg10[%c320_218, %c0_219] : memref<960x192xf32, #tpu.memory_space<vmem>>, vector<32x192xf32>
    %c352 = arith.constant 352 : index
    %c0_220 = arith.constant 0 : index
    %277 = vector.load %arg10[%c352, %c0_220] : memref<960x192xf32, #tpu.memory_space<vmem>>, vector<32x192xf32>
    %c384 = arith.constant 384 : index
    %c0_221 = arith.constant 0 : index
    %278 = vector.load %arg10[%c384, %c0_221] : memref<960x192xf32, #tpu.memory_space<vmem>>, vector<32x192xf32>
    %279 = arith.maximumf %276, %277 : vector<32x192xf32>
    %280 = arith.maximumf %279, %278 : vector<32x192xf32>
    %281 = vector.extract_strided_slice %280 {offsets = [0, 0], sizes = [32, 32], strides = [1, 1]} : vector<32x192xf32> to vector<32x32xf32>
    %282 = vector.extract_strided_slice %280 {offsets = [0, 32], sizes = [32, 32], strides = [1, 1]} : vector<32x192xf32> to vector<32x32xf32>
    %283 = arith.maximumf %281, %282 : vector<32x32xf32>
    %284 = vector.extract_strided_slice %280 {offsets = [0, 64], sizes = [32, 32], strides = [1, 1]} : vector<32x192xf32> to vector<32x32xf32>
    %285 = arith.maximumf %283, %284 : vector<32x32xf32>
    %286 = vector.extract_strided_slice %280 {offsets = [0, 64], sizes = [32, 32], strides = [1, 1]} : vector<32x192xf32> to vector<32x32xf32>
    %287 = vector.extract_strided_slice %280 {offsets = [0, 96], sizes = [32, 32], strides = [1, 1]} : vector<32x192xf32> to vector<32x32xf32>
    %288 = arith.maximumf %286, %287 : vector<32x32xf32>
    %289 = vector.extract_strided_slice %280 {offsets = [0, 128], sizes = [32, 32], strides = [1, 1]} : vector<32x192xf32> to vector<32x32xf32>
    %290 = arith.maximumf %288, %289 : vector<32x32xf32>
    %c5 = arith.constant 5 : index
    %c0_222 = arith.constant 0 : index
    %c0_223 = arith.constant 0 : index
    %291 = vector.load %arg4[%c5, %c0_222, %c0_223] : memref<14x32x50xf32, #tpu.memory_space<vmem>>, vector<1x32x50xf32>
    %292 = vector.shape_cast %291 : vector<1x32x50xf32> to vector<32x50xf32>
    %cst_224 = arith.constant dense<0.000000e+00> : vector<32x50xf32>
    %293 = tpu.matmul %285, %292, %cst_224 {dimension_numbers = #tpu.dot_dimension_numbers<[1], [0], [0], [1], [0, 0, 1, 1], [], []>} : vector<32x32xf32>, vector<32x50xf32>, vector<32x50xf32> -> vector<32x50xf32>
    %294 = arith.addf %275, %293 : vector<32x50xf32>
    %c5_225 = arith.constant 5 : index
    %c0_226 = arith.constant 0 : index
    %c0_227 = arith.constant 0 : index
    %295 = vector.load %arg5[%c5_225, %c0_226, %c0_227] : memref<14x32x50xf32, #tpu.memory_space<vmem>>, vector<1x32x50xf32>
    %296 = vector.shape_cast %295 : vector<1x32x50xf32> to vector<32x50xf32>
    %cst_228 = arith.constant dense<0.000000e+00> : vector<32x50xf32>
    %297 = tpu.matmul %290, %296, %cst_228 {dimension_numbers = #tpu.dot_dimension_numbers<[1], [0], [0], [1], [0, 0, 1, 1], [], []>} : vector<32x32xf32>, vector<32x50xf32>, vector<32x50xf32> -> vector<32x50xf32>
    %298 = arith.addf %294, %297 : vector<32x50xf32>
    %c384_229 = arith.constant 384 : index
    %c0_230 = arith.constant 0 : index
    %299 = vector.load %arg10[%c384_229, %c0_230] : memref<960x192xf32, #tpu.memory_space<vmem>>, vector<32x192xf32>
    %c416 = arith.constant 416 : index
    %c0_231 = arith.constant 0 : index
    %300 = vector.load %arg10[%c416, %c0_231] : memref<960x192xf32, #tpu.memory_space<vmem>>, vector<32x192xf32>
    %c448 = arith.constant 448 : index
    %c0_232 = arith.constant 0 : index
    %301 = vector.load %arg10[%c448, %c0_232] : memref<960x192xf32, #tpu.memory_space<vmem>>, vector<32x192xf32>
    %302 = arith.maximumf %299, %300 : vector<32x192xf32>
    %303 = arith.maximumf %302, %301 : vector<32x192xf32>
    %304 = vector.extract_strided_slice %303 {offsets = [0, 0], sizes = [32, 32], strides = [1, 1]} : vector<32x192xf32> to vector<32x32xf32>
    %305 = vector.extract_strided_slice %303 {offsets = [0, 32], sizes = [32, 32], strides = [1, 1]} : vector<32x192xf32> to vector<32x32xf32>
    %306 = arith.maximumf %304, %305 : vector<32x32xf32>
    %307 = vector.extract_strided_slice %303 {offsets = [0, 64], sizes = [32, 32], strides = [1, 1]} : vector<32x192xf32> to vector<32x32xf32>
    %308 = arith.maximumf %306, %307 : vector<32x32xf32>
    %309 = vector.extract_strided_slice %303 {offsets = [0, 64], sizes = [32, 32], strides = [1, 1]} : vector<32x192xf32> to vector<32x32xf32>
    %310 = vector.extract_strided_slice %303 {offsets = [0, 96], sizes = [32, 32], strides = [1, 1]} : vector<32x192xf32> to vector<32x32xf32>
    %311 = arith.maximumf %309, %310 : vector<32x32xf32>
    %312 = vector.extract_strided_slice %303 {offsets = [0, 128], sizes = [32, 32], strides = [1, 1]} : vector<32x192xf32> to vector<32x32xf32>
    %313 = arith.maximumf %311, %312 : vector<32x32xf32>
    %c6 = arith.constant 6 : index
    %c0_233 = arith.constant 0 : index
    %c0_234 = arith.constant 0 : index
    %314 = vector.load %arg4[%c6, %c0_233, %c0_234] : memref<14x32x50xf32, #tpu.memory_space<vmem>>, vector<1x32x50xf32>
    %315 = vector.shape_cast %314 : vector<1x32x50xf32> to vector<32x50xf32>
    %cst_235 = arith.constant dense<0.000000e+00> : vector<32x50xf32>
    %316 = tpu.matmul %308, %315, %cst_235 {dimension_numbers = #tpu.dot_dimension_numbers<[1], [0], [0], [1], [0, 0, 1, 1], [], []>} : vector<32x32xf32>, vector<32x50xf32>, vector<32x50xf32> -> vector<32x50xf32>
    %317 = arith.addf %298, %316 : vector<32x50xf32>
    %c6_236 = arith.constant 6 : index
    %c0_237 = arith.constant 0 : index
    %c0_238 = arith.constant 0 : index
    %318 = vector.load %arg5[%c6_236, %c0_237, %c0_238] : memref<14x32x50xf32, #tpu.memory_space<vmem>>, vector<1x32x50xf32>
    %319 = vector.shape_cast %318 : vector<1x32x50xf32> to vector<32x50xf32>
    %cst_239 = arith.constant dense<0.000000e+00> : vector<32x50xf32>
    %320 = tpu.matmul %313, %319, %cst_239 {dimension_numbers = #tpu.dot_dimension_numbers<[1], [0], [0], [1], [0, 0, 1, 1], [], []>} : vector<32x32xf32>, vector<32x50xf32>, vector<32x50xf32> -> vector<32x50xf32>
    %321 = arith.addf %317, %320 : vector<32x50xf32>
    %c448_240 = arith.constant 448 : index
    %c0_241 = arith.constant 0 : index
    %322 = vector.load %arg10[%c448_240, %c0_241] : memref<960x192xf32, #tpu.memory_space<vmem>>, vector<32x192xf32>
    %c480_242 = arith.constant 480 : index
    %c0_243 = arith.constant 0 : index
    %323 = vector.load %arg10[%c480_242, %c0_243] : memref<960x192xf32, #tpu.memory_space<vmem>>, vector<32x192xf32>
    %c512_244 = arith.constant 512 : index
    %c0_245 = arith.constant 0 : index
    %324 = vector.load %arg10[%c512_244, %c0_245] : memref<960x192xf32, #tpu.memory_space<vmem>>, vector<32x192xf32>
    %325 = arith.maximumf %322, %323 : vector<32x192xf32>
    %326 = arith.maximumf %325, %324 : vector<32x192xf32>
    %327 = vector.extract_strided_slice %326 {offsets = [0, 0], sizes = [32, 32], strides = [1, 1]} : vector<32x192xf32> to vector<32x32xf32>
    %328 = vector.extract_strided_slice %326 {offsets = [0, 32], sizes = [32, 32], strides = [1, 1]} : vector<32x192xf32> to vector<32x32xf32>
    %329 = arith.maximumf %327, %328 : vector<32x32xf32>
    %330 = vector.extract_strided_slice %326 {offsets = [0, 64], sizes = [32, 32], strides = [1, 1]} : vector<32x192xf32> to vector<32x32xf32>
    %331 = arith.maximumf %329, %330 : vector<32x32xf32>
    %332 = vector.extract_strided_slice %326 {offsets = [0, 64], sizes = [32, 32], strides = [1, 1]} : vector<32x192xf32> to vector<32x32xf32>
    %333 = vector.extract_strided_slice %326 {offsets = [0, 96], sizes = [32, 32], strides = [1, 1]} : vector<32x192xf32> to vector<32x32xf32>
    %334 = arith.maximumf %332, %333 : vector<32x32xf32>
    %335 = vector.extract_strided_slice %326 {offsets = [0, 128], sizes = [32, 32], strides = [1, 1]} : vector<32x192xf32> to vector<32x32xf32>
    %336 = arith.maximumf %334, %335 : vector<32x32xf32>
    %c7 = arith.constant 7 : index
    %c0_246 = arith.constant 0 : index
    %c0_247 = arith.constant 0 : index
    %337 = vector.load %arg4[%c7, %c0_246, %c0_247] : memref<14x32x50xf32, #tpu.memory_space<vmem>>, vector<1x32x50xf32>
    %338 = vector.shape_cast %337 : vector<1x32x50xf32> to vector<32x50xf32>
    %cst_248 = arith.constant dense<0.000000e+00> : vector<32x50xf32>
    %339 = tpu.matmul %331, %338, %cst_248 {dimension_numbers = #tpu.dot_dimension_numbers<[1], [0], [0], [1], [0, 0, 1, 1], [], []>} : vector<32x32xf32>, vector<32x50xf32>, vector<32x50xf32> -> vector<32x50xf32>
    %340 = arith.addf %321, %339 : vector<32x50xf32>
    %c7_249 = arith.constant 7 : index
    %c0_250 = arith.constant 0 : index
    %c0_251 = arith.constant 0 : index
    %341 = vector.load %arg5[%c7_249, %c0_250, %c0_251] : memref<14x32x50xf32, #tpu.memory_space<vmem>>, vector<1x32x50xf32>
    %342 = vector.shape_cast %341 : vector<1x32x50xf32> to vector<32x50xf32>
    %cst_252 = arith.constant dense<0.000000e+00> : vector<32x50xf32>
    %343 = tpu.matmul %336, %342, %cst_252 {dimension_numbers = #tpu.dot_dimension_numbers<[1], [0], [0], [1], [0, 0, 1, 1], [], []>} : vector<32x32xf32>, vector<32x50xf32>, vector<32x50xf32> -> vector<32x50xf32>
    %344 = arith.addf %340, %343 : vector<32x50xf32>
    %c512_253 = arith.constant 512 : index
    %c0_254 = arith.constant 0 : index
    %345 = vector.load %arg10[%c512_253, %c0_254] : memref<960x192xf32, #tpu.memory_space<vmem>>, vector<32x192xf32>
    %c544_255 = arith.constant 544 : index
    %c0_256 = arith.constant 0 : index
    %346 = vector.load %arg10[%c544_255, %c0_256] : memref<960x192xf32, #tpu.memory_space<vmem>>, vector<32x192xf32>
    %c576 = arith.constant 576 : index
    %c0_257 = arith.constant 0 : index
    %347 = vector.load %arg10[%c576, %c0_257] : memref<960x192xf32, #tpu.memory_space<vmem>>, vector<32x192xf32>
    %348 = arith.maximumf %345, %346 : vector<32x192xf32>
    %349 = arith.maximumf %348, %347 : vector<32x192xf32>
    %350 = vector.extract_strided_slice %349 {offsets = [0, 0], sizes = [32, 32], strides = [1, 1]} : vector<32x192xf32> to vector<32x32xf32>
    %351 = vector.extract_strided_slice %349 {offsets = [0, 32], sizes = [32, 32], strides = [1, 1]} : vector<32x192xf32> to vector<32x32xf32>
    %352 = arith.maximumf %350, %351 : vector<32x32xf32>
    %353 = vector.extract_strided_slice %349 {offsets = [0, 64], sizes = [32, 32], strides = [1, 1]} : vector<32x192xf32> to vector<32x32xf32>
    %354 = arith.maximumf %352, %353 : vector<32x32xf32>
    %355 = vector.extract_strided_slice %349 {offsets = [0, 64], sizes = [32, 32], strides = [1, 1]} : vector<32x192xf32> to vector<32x32xf32>
    %356 = vector.extract_strided_slice %349 {offsets = [0, 96], sizes = [32, 32], strides = [1, 1]} : vector<32x192xf32> to vector<32x32xf32>
    %357 = arith.maximumf %355, %356 : vector<32x32xf32>
    %358 = vector.extract_strided_slice %349 {offsets = [0, 128], sizes = [32, 32], strides = [1, 1]} : vector<32x192xf32> to vector<32x32xf32>
    %359 = arith.maximumf %357, %358 : vector<32x32xf32>
    %c8 = arith.constant 8 : index
    %c0_258 = arith.constant 0 : index
    %c0_259 = arith.constant 0 : index
    %360 = vector.load %arg4[%c8, %c0_258, %c0_259] : memref<14x32x50xf32, #tpu.memory_space<vmem>>, vector<1x32x50xf32>
    %361 = vector.shape_cast %360 : vector<1x32x50xf32> to vector<32x50xf32>
    %cst_260 = arith.constant dense<0.000000e+00> : vector<32x50xf32>
    %362 = tpu.matmul %354, %361, %cst_260 {dimension_numbers = #tpu.dot_dimension_numbers<[1], [0], [0], [1], [0, 0, 1, 1], [], []>} : vector<32x32xf32>, vector<32x50xf32>, vector<32x50xf32> -> vector<32x50xf32>
    %363 = arith.addf %344, %362 : vector<32x50xf32>
    %c8_261 = arith.constant 8 : index
    %c0_262 = arith.constant 0 : index
    %c0_263 = arith.constant 0 : index
    %364 = vector.load %arg5[%c8_261, %c0_262, %c0_263] : memref<14x32x50xf32, #tpu.memory_space<vmem>>, vector<1x32x50xf32>
    %365 = vector.shape_cast %364 : vector<1x32x50xf32> to vector<32x50xf32>
    %cst_264 = arith.constant dense<0.000000e+00> : vector<32x50xf32>
    %366 = tpu.matmul %359, %365, %cst_264 {dimension_numbers = #tpu.dot_dimension_numbers<[1], [0], [0], [1], [0, 0, 1, 1], [], []>} : vector<32x32xf32>, vector<32x50xf32>, vector<32x50xf32> -> vector<32x50xf32>
    %367 = arith.addf %363, %366 : vector<32x50xf32>
    %c576_265 = arith.constant 576 : index
    %c0_266 = arith.constant 0 : index
    %368 = vector.load %arg10[%c576_265, %c0_266] : memref<960x192xf32, #tpu.memory_space<vmem>>, vector<32x192xf32>
    %c608 = arith.constant 608 : index
    %c0_267 = arith.constant 0 : index
    %369 = vector.load %arg10[%c608, %c0_267] : memref<960x192xf32, #tpu.memory_space<vmem>>, vector<32x192xf32>
    %c640 = arith.constant 640 : index
    %c0_268 = arith.constant 0 : index
    %370 = vector.load %arg10[%c640, %c0_268] : memref<960x192xf32, #tpu.memory_space<vmem>>, vector<32x192xf32>
    %371 = arith.maximumf %368, %369 : vector<32x192xf32>
    %372 = arith.maximumf %371, %370 : vector<32x192xf32>
    %373 = vector.extract_strided_slice %372 {offsets = [0, 0], sizes = [32, 32], strides = [1, 1]} : vector<32x192xf32> to vector<32x32xf32>
    %374 = vector.extract_strided_slice %372 {offsets = [0, 32], sizes = [32, 32], strides = [1, 1]} : vector<32x192xf32> to vector<32x32xf32>
    %375 = arith.maximumf %373, %374 : vector<32x32xf32>
    %376 = vector.extract_strided_slice %372 {offsets = [0, 64], sizes = [32, 32], strides = [1, 1]} : vector<32x192xf32> to vector<32x32xf32>
    %377 = arith.maximumf %375, %376 : vector<32x32xf32>
    %378 = vector.extract_strided_slice %372 {offsets = [0, 64], sizes = [32, 32], strides = [1, 1]} : vector<32x192xf32> to vector<32x32xf32>
    %379 = vector.extract_strided_slice %372 {offsets = [0, 96], sizes = [32, 32], strides = [1, 1]} : vector<32x192xf32> to vector<32x32xf32>
    %380 = arith.maximumf %378, %379 : vector<32x32xf32>
    %381 = vector.extract_strided_slice %372 {offsets = [0, 128], sizes = [32, 32], strides = [1, 1]} : vector<32x192xf32> to vector<32x32xf32>
    %382 = arith.maximumf %380, %381 : vector<32x32xf32>
    %c9 = arith.constant 9 : index
    %c0_269 = arith.constant 0 : index
    %c0_270 = arith.constant 0 : index
    %383 = vector.load %arg4[%c9, %c0_269, %c0_270] : memref<14x32x50xf32, #tpu.memory_space<vmem>>, vector<1x32x50xf32>
    %384 = vector.shape_cast %383 : vector<1x32x50xf32> to vector<32x50xf32>
    %cst_271 = arith.constant dense<0.000000e+00> : vector<32x50xf32>
    %385 = tpu.matmul %377, %384, %cst_271 {dimension_numbers = #tpu.dot_dimension_numbers<[1], [0], [0], [1], [0, 0, 1, 1], [], []>} : vector<32x32xf32>, vector<32x50xf32>, vector<32x50xf32> -> vector<32x50xf32>
    %386 = arith.addf %367, %385 : vector<32x50xf32>
    %c9_272 = arith.constant 9 : index
    %c0_273 = arith.constant 0 : index
    %c0_274 = arith.constant 0 : index
    %387 = vector.load %arg5[%c9_272, %c0_273, %c0_274] : memref<14x32x50xf32, #tpu.memory_space<vmem>>, vector<1x32x50xf32>
    %388 = vector.shape_cast %387 : vector<1x32x50xf32> to vector<32x50xf32>
    %cst_275 = arith.constant dense<0.000000e+00> : vector<32x50xf32>
    %389 = tpu.matmul %382, %388, %cst_275 {dimension_numbers = #tpu.dot_dimension_numbers<[1], [0], [0], [1], [0, 0, 1, 1], [], []>} : vector<32x32xf32>, vector<32x50xf32>, vector<32x50xf32> -> vector<32x50xf32>
    %390 = arith.addf %386, %389 : vector<32x50xf32>
    %c640_276 = arith.constant 640 : index
    %c0_277 = arith.constant 0 : index
    %391 = vector.load %arg10[%c640_276, %c0_277] : memref<960x192xf32, #tpu.memory_space<vmem>>, vector<32x192xf32>
    %c672 = arith.constant 672 : index
    %c0_278 = arith.constant 0 : index
    %392 = vector.load %arg10[%c672, %c0_278] : memref<960x192xf32, #tpu.memory_space<vmem>>, vector<32x192xf32>
    %c704 = arith.constant 704 : index
    %c0_279 = arith.constant 0 : index
    %393 = vector.load %arg10[%c704, %c0_279] : memref<960x192xf32, #tpu.memory_space<vmem>>, vector<32x192xf32>
    %394 = arith.maximumf %391, %392 : vector<32x192xf32>
    %395 = arith.maximumf %394, %393 : vector<32x192xf32>
    %396 = vector.extract_strided_slice %395 {offsets = [0, 0], sizes = [32, 32], strides = [1, 1]} : vector<32x192xf32> to vector<32x32xf32>
    %397 = vector.extract_strided_slice %395 {offsets = [0, 32], sizes = [32, 32], strides = [1, 1]} : vector<32x192xf32> to vector<32x32xf32>
    %398 = arith.maximumf %396, %397 : vector<32x32xf32>
    %399 = vector.extract_strided_slice %395 {offsets = [0, 64], sizes = [32, 32], strides = [1, 1]} : vector<32x192xf32> to vector<32x32xf32>
    %400 = arith.maximumf %398, %399 : vector<32x32xf32>
    %401 = vector.extract_strided_slice %395 {offsets = [0, 64], sizes = [32, 32], strides = [1, 1]} : vector<32x192xf32> to vector<32x32xf32>
    %402 = vector.extract_strided_slice %395 {offsets = [0, 96], sizes = [32, 32], strides = [1, 1]} : vector<32x192xf32> to vector<32x32xf32>
    %403 = arith.maximumf %401, %402 : vector<32x32xf32>
    %404 = vector.extract_strided_slice %395 {offsets = [0, 128], sizes = [32, 32], strides = [1, 1]} : vector<32x192xf32> to vector<32x32xf32>
    %405 = arith.maximumf %403, %404 : vector<32x32xf32>
    %c10 = arith.constant 10 : index
    %c0_280 = arith.constant 0 : index
    %c0_281 = arith.constant 0 : index
    %406 = vector.load %arg4[%c10, %c0_280, %c0_281] : memref<14x32x50xf32, #tpu.memory_space<vmem>>, vector<1x32x50xf32>
    %407 = vector.shape_cast %406 : vector<1x32x50xf32> to vector<32x50xf32>
    %cst_282 = arith.constant dense<0.000000e+00> : vector<32x50xf32>
    %408 = tpu.matmul %400, %407, %cst_282 {dimension_numbers = #tpu.dot_dimension_numbers<[1], [0], [0], [1], [0, 0, 1, 1], [], []>} : vector<32x32xf32>, vector<32x50xf32>, vector<32x50xf32> -> vector<32x50xf32>
    %409 = arith.addf %390, %408 : vector<32x50xf32>
    %c10_283 = arith.constant 10 : index
    %c0_284 = arith.constant 0 : index
    %c0_285 = arith.constant 0 : index
    %410 = vector.load %arg5[%c10_283, %c0_284, %c0_285] : memref<14x32x50xf32, #tpu.memory_space<vmem>>, vector<1x32x50xf32>
    %411 = vector.shape_cast %410 : vector<1x32x50xf32> to vector<32x50xf32>
    %cst_286 = arith.constant dense<0.000000e+00> : vector<32x50xf32>
    %412 = tpu.matmul %405, %411, %cst_286 {dimension_numbers = #tpu.dot_dimension_numbers<[1], [0], [0], [1], [0, 0, 1, 1], [], []>} : vector<32x32xf32>, vector<32x50xf32>, vector<32x50xf32> -> vector<32x50xf32>
    %413 = arith.addf %409, %412 : vector<32x50xf32>
    %c704_287 = arith.constant 704 : index
    %c0_288 = arith.constant 0 : index
    %414 = vector.load %arg10[%c704_287, %c0_288] : memref<960x192xf32, #tpu.memory_space<vmem>>, vector<32x192xf32>
    %c736 = arith.constant 736 : index
    %c0_289 = arith.constant 0 : index
    %415 = vector.load %arg10[%c736, %c0_289] : memref<960x192xf32, #tpu.memory_space<vmem>>, vector<32x192xf32>
    %c768 = arith.constant 768 : index
    %c0_290 = arith.constant 0 : index
    %416 = vector.load %arg10[%c768, %c0_290] : memref<960x192xf32, #tpu.memory_space<vmem>>, vector<32x192xf32>
    %417 = arith.maximumf %414, %415 : vector<32x192xf32>
    %418 = arith.maximumf %417, %416 : vector<32x192xf32>
    %419 = vector.extract_strided_slice %418 {offsets = [0, 0], sizes = [32, 32], strides = [1, 1]} : vector<32x192xf32> to vector<32x32xf32>
    %420 = vector.extract_strided_slice %418 {offsets = [0, 32], sizes = [32, 32], strides = [1, 1]} : vector<32x192xf32> to vector<32x32xf32>
    %421 = arith.maximumf %419, %420 : vector<32x32xf32>
    %422 = vector.extract_strided_slice %418 {offsets = [0, 64], sizes = [32, 32], strides = [1, 1]} : vector<32x192xf32> to vector<32x32xf32>
    %423 = arith.maximumf %421, %422 : vector<32x32xf32>
    %424 = vector.extract_strided_slice %418 {offsets = [0, 64], sizes = [32, 32], strides = [1, 1]} : vector<32x192xf32> to vector<32x32xf32>
    %425 = vector.extract_strided_slice %418 {offsets = [0, 96], sizes = [32, 32], strides = [1, 1]} : vector<32x192xf32> to vector<32x32xf32>
    %426 = arith.maximumf %424, %425 : vector<32x32xf32>
    %427 = vector.extract_strided_slice %418 {offsets = [0, 128], sizes = [32, 32], strides = [1, 1]} : vector<32x192xf32> to vector<32x32xf32>
    %428 = arith.maximumf %426, %427 : vector<32x32xf32>
    %c11 = arith.constant 11 : index
    %c0_291 = arith.constant 0 : index
    %c0_292 = arith.constant 0 : index
    %429 = vector.load %arg4[%c11, %c0_291, %c0_292] : memref<14x32x50xf32, #tpu.memory_space<vmem>>, vector<1x32x50xf32>
    %430 = vector.shape_cast %429 : vector<1x32x50xf32> to vector<32x50xf32>
    %cst_293 = arith.constant dense<0.000000e+00> : vector<32x50xf32>
    %431 = tpu.matmul %423, %430, %cst_293 {dimension_numbers = #tpu.dot_dimension_numbers<[1], [0], [0], [1], [0, 0, 1, 1], [], []>} : vector<32x32xf32>, vector<32x50xf32>, vector<32x50xf32> -> vector<32x50xf32>
    %432 = arith.addf %413, %431 : vector<32x50xf32>
    %c11_294 = arith.constant 11 : index
    %c0_295 = arith.constant 0 : index
    %c0_296 = arith.constant 0 : index
    %433 = vector.load %arg5[%c11_294, %c0_295, %c0_296] : memref<14x32x50xf32, #tpu.memory_space<vmem>>, vector<1x32x50xf32>
    %434 = vector.shape_cast %433 : vector<1x32x50xf32> to vector<32x50xf32>
    %cst_297 = arith.constant dense<0.000000e+00> : vector<32x50xf32>
    %435 = tpu.matmul %428, %434, %cst_297 {dimension_numbers = #tpu.dot_dimension_numbers<[1], [0], [0], [1], [0, 0, 1, 1], [], []>} : vector<32x32xf32>, vector<32x50xf32>, vector<32x50xf32> -> vector<32x50xf32>
    %436 = arith.addf %432, %435 : vector<32x50xf32>
    %c768_298 = arith.constant 768 : index
    %c0_299 = arith.constant 0 : index
    %437 = vector.load %arg10[%c768_298, %c0_299] : memref<960x192xf32, #tpu.memory_space<vmem>>, vector<32x192xf32>
    %c800 = arith.constant 800 : index
    %c0_300 = arith.constant 0 : index
    %438 = vector.load %arg10[%c800, %c0_300] : memref<960x192xf32, #tpu.memory_space<vmem>>, vector<32x192xf32>
    %c832 = arith.constant 832 : index
    %c0_301 = arith.constant 0 : index
    %439 = vector.load %arg10[%c832, %c0_301] : memref<960x192xf32, #tpu.memory_space<vmem>>, vector<32x192xf32>
    %440 = arith.maximumf %437, %438 : vector<32x192xf32>
    %441 = arith.maximumf %440, %439 : vector<32x192xf32>
    %442 = vector.extract_strided_slice %441 {offsets = [0, 0], sizes = [32, 32], strides = [1, 1]} : vector<32x192xf32> to vector<32x32xf32>
    %443 = vector.extract_strided_slice %441 {offsets = [0, 32], sizes = [32, 32], strides = [1, 1]} : vector<32x192xf32> to vector<32x32xf32>
    %444 = arith.maximumf %442, %443 : vector<32x32xf32>
    %445 = vector.extract_strided_slice %441 {offsets = [0, 64], sizes = [32, 32], strides = [1, 1]} : vector<32x192xf32> to vector<32x32xf32>
    %446 = arith.maximumf %444, %445 : vector<32x32xf32>
    %447 = vector.extract_strided_slice %441 {offsets = [0, 64], sizes = [32, 32], strides = [1, 1]} : vector<32x192xf32> to vector<32x32xf32>
    %448 = vector.extract_strided_slice %441 {offsets = [0, 96], sizes = [32, 32], strides = [1, 1]} : vector<32x192xf32> to vector<32x32xf32>
    %449 = arith.maximumf %447, %448 : vector<32x32xf32>
    %450 = vector.extract_strided_slice %441 {offsets = [0, 128], sizes = [32, 32], strides = [1, 1]} : vector<32x192xf32> to vector<32x32xf32>
    %451 = arith.maximumf %449, %450 : vector<32x32xf32>
    %c12 = arith.constant 12 : index
    %c0_302 = arith.constant 0 : index
    %c0_303 = arith.constant 0 : index
    %452 = vector.load %arg4[%c12, %c0_302, %c0_303] : memref<14x32x50xf32, #tpu.memory_space<vmem>>, vector<1x32x50xf32>
    %453 = vector.shape_cast %452 : vector<1x32x50xf32> to vector<32x50xf32>
    %cst_304 = arith.constant dense<0.000000e+00> : vector<32x50xf32>
    %454 = tpu.matmul %446, %453, %cst_304 {dimension_numbers = #tpu.dot_dimension_numbers<[1], [0], [0], [1], [0, 0, 1, 1], [], []>} : vector<32x32xf32>, vector<32x50xf32>, vector<32x50xf32> -> vector<32x50xf32>
    %455 = arith.addf %436, %454 : vector<32x50xf32>
    %c12_305 = arith.constant 12 : index
    %c0_306 = arith.constant 0 : index
    %c0_307 = arith.constant 0 : index
    %456 = vector.load %arg5[%c12_305, %c0_306, %c0_307] : memref<14x32x50xf32, #tpu.memory_space<vmem>>, vector<1x32x50xf32>
    %457 = vector.shape_cast %456 : vector<1x32x50xf32> to vector<32x50xf32>
    %cst_308 = arith.constant dense<0.000000e+00> : vector<32x50xf32>
    %458 = tpu.matmul %451, %457, %cst_308 {dimension_numbers = #tpu.dot_dimension_numbers<[1], [0], [0], [1], [0, 0, 1, 1], [], []>} : vector<32x32xf32>, vector<32x50xf32>, vector<32x50xf32> -> vector<32x50xf32>
    %459 = arith.addf %455, %458 : vector<32x50xf32>
    %c832_309 = arith.constant 832 : index
    %c0_310 = arith.constant 0 : index
    %460 = vector.load %arg10[%c832_309, %c0_310] : memref<960x192xf32, #tpu.memory_space<vmem>>, vector<32x192xf32>
    %c864 = arith.constant 864 : index
    %c0_311 = arith.constant 0 : index
    %461 = vector.load %arg10[%c864, %c0_311] : memref<960x192xf32, #tpu.memory_space<vmem>>, vector<32x192xf32>
    %c896 = arith.constant 896 : index
    %c0_312 = arith.constant 0 : index
    %462 = vector.load %arg10[%c896, %c0_312] : memref<960x192xf32, #tpu.memory_space<vmem>>, vector<32x192xf32>
    %463 = arith.maximumf %460, %461 : vector<32x192xf32>
    %464 = arith.maximumf %463, %462 : vector<32x192xf32>
    %465 = vector.extract_strided_slice %464 {offsets = [0, 0], sizes = [32, 32], strides = [1, 1]} : vector<32x192xf32> to vector<32x32xf32>
    %466 = vector.extract_strided_slice %464 {offsets = [0, 32], sizes = [32, 32], strides = [1, 1]} : vector<32x192xf32> to vector<32x32xf32>
    %467 = arith.maximumf %465, %466 : vector<32x32xf32>
    %468 = vector.extract_strided_slice %464 {offsets = [0, 64], sizes = [32, 32], strides = [1, 1]} : vector<32x192xf32> to vector<32x32xf32>
    %469 = arith.maximumf %467, %468 : vector<32x32xf32>
    %470 = vector.extract_strided_slice %464 {offsets = [0, 64], sizes = [32, 32], strides = [1, 1]} : vector<32x192xf32> to vector<32x32xf32>
    %471 = vector.extract_strided_slice %464 {offsets = [0, 96], sizes = [32, 32], strides = [1, 1]} : vector<32x192xf32> to vector<32x32xf32>
    %472 = arith.maximumf %470, %471 : vector<32x32xf32>
    %473 = vector.extract_strided_slice %464 {offsets = [0, 128], sizes = [32, 32], strides = [1, 1]} : vector<32x192xf32> to vector<32x32xf32>
    %474 = arith.maximumf %472, %473 : vector<32x32xf32>
    %c13 = arith.constant 13 : index
    %c0_313 = arith.constant 0 : index
    %c0_314 = arith.constant 0 : index
    %475 = vector.load %arg4[%c13, %c0_313, %c0_314] : memref<14x32x50xf32, #tpu.memory_space<vmem>>, vector<1x32x50xf32>
    %476 = vector.shape_cast %475 : vector<1x32x50xf32> to vector<32x50xf32>
    %cst_315 = arith.constant dense<0.000000e+00> : vector<32x50xf32>
    %477 = tpu.matmul %469, %476, %cst_315 {dimension_numbers = #tpu.dot_dimension_numbers<[1], [0], [0], [1], [0, 0, 1, 1], [], []>} : vector<32x32xf32>, vector<32x50xf32>, vector<32x50xf32> -> vector<32x50xf32>
    %478 = arith.addf %459, %477 : vector<32x50xf32>
    %c13_316 = arith.constant 13 : index
    %c0_317 = arith.constant 0 : index
    %c0_318 = arith.constant 0 : index
    %479 = vector.load %arg5[%c13_316, %c0_317, %c0_318] : memref<14x32x50xf32, #tpu.memory_space<vmem>>, vector<1x32x50xf32>
    %480 = vector.shape_cast %479 : vector<1x32x50xf32> to vector<32x50xf32>
    %cst_319 = arith.constant dense<0.000000e+00> : vector<32x50xf32>
    %481 = tpu.matmul %474, %480, %cst_319 {dimension_numbers = #tpu.dot_dimension_numbers<[1], [0], [0], [1], [0, 0, 1, 1], [], []>} : vector<32x32xf32>, vector<32x50xf32>, vector<32x50xf32> -> vector<32x50xf32>
    %482 = arith.addf %478, %481 : vector<32x50xf32>
    %c0_320 = arith.constant 0 : index
    %c0_321 = arith.constant 0 : index
    %483 = vector.load %arg6[%c0_320, %c0_321] : memref<1x50xf32, #tpu.memory_space<vmem>>, vector<1x50xf32>
    %484 = vector.broadcast %483 : vector<1x50xf32> to vector<32x50xf32>
    %485 = arith.addf %482, %484 : vector<32x50xf32>
    %c0_322 = arith.constant 0 : index
    %c0_323 = arith.constant 0 : index
    %486 = vector.load %arg7[%c0_322, %c0_323] : memref<50x30xf32, #tpu.memory_space<vmem>>, vector<50x30xf32>
    %cst_324 = arith.constant dense<0.000000e+00> : vector<32x30xf32>
    %487 = tpu.matmul %485, %486, %cst_324 {dimension_numbers = #tpu.dot_dimension_numbers<[1], [0], [0], [1], [0, 0, 1, 1], [], []>} : vector<32x50xf32>, vector<50x30xf32>, vector<32x30xf32> -> vector<32x30xf32>
    %c0_325 = arith.constant 0 : index
    %c0_326 = arith.constant 0 : index
    %488 = vector.load %arg8[%c0_325, %c0_326] : memref<1x30xf32, #tpu.memory_space<vmem>>, vector<1x30xf32>
    %489 = vector.broadcast %488 : vector<1x30xf32> to vector<32x30xf32>
    %490 = arith.addf %487, %489 : vector<32x30xf32>
    %c0_327 = arith.constant 0 : index
    %c0_328 = arith.constant 0 : index
    %491 = vector.load %arg9[%c0_327, %c0_328] : memref<32x30xf32, #tpu.memory_space<vmem>>, vector<32x30xf32>
    tpu.vector_store %arg9[%c0_327, %c0_328], %490 {strides = array<i32>} : memref<32x30xf32, #tpu.memory_space<vmem>>, vector<32x30xf32>,
    return
  }
  func.func @transform_0(%arg0: i32) -> (i32, i32) {
    %c0_i32 = arith.constant 0 : i32
    %c0_i32_0 = arith.constant 0 : i32
    %c0_i32_1 = arith.constant 0 : i32
    return %c0_i32, %c0_i32_0 : i32, i32
  }
  func.func @transform_1(%arg0: i32) -> (i32, i32, i32) {
    %c0_i32 = arith.constant 0 : i32
    %c0_i32_0 = arith.constant 0 : i32
    %c0_i32_1 = arith.constant 0 : i32
    %c0_i32_2 = arith.constant 0 : i32
    return %c0_i32, %c0_i32_0, %c0_i32_1 : i32, i32, i32
  }
  func.func @transform_2(%arg0: i32) -> (i32, i32) {
    %c0_i32 = arith.constant 0 : i32
    %c0_i32_0 = arith.constant 0 : i32
    %c0_i32_1 = arith.constant 0 : i32
    return %c0_i32, %c0_i32_0 : i32, i32
  }
  func.func @transform_3(%arg0: i32) -> (i32, i32, i32) {
    %c0_i32 = arith.constant 0 : i32
    %c0_i32_0 = arith.constant 0 : i32
    %c0_i32_1 = arith.constant 0 : i32
    %c0_i32_2 = arith.constant 0 : i32
    return %c0_i32, %c0_i32_0, %c0_i32_1 : i32, i32, i32
  }
  func.func @transform_4(%arg0: i32) -> (i32, i32, i32) {
    %c0_i32 = arith.constant 0 : i32
    %c0_i32_0 = arith.constant 0 : i32
    %c0_i32_1 = arith.constant 0 : i32
    %c0_i32_2 = arith.constant 0 : i32
    return %c0_i32, %c0_i32_0, %c0_i32_1 : i32, i32, i32
  }
  func.func @transform_5(%arg0: i32) -> (i32, i32) {
    %c0_i32 = arith.constant 0 : i32
    %c0_i32_0 = arith.constant 0 : i32
    %c0_i32_1 = arith.constant 0 : i32
    return %c0_i32, %c0_i32_0 : i32, i32
  }
  func.func @transform_6(%arg0: i32) -> (i32, i32) {
    %c0_i32 = arith.constant 0 : i32
    %c0_i32_0 = arith.constant 0 : i32
    %c0_i32_1 = arith.constant 0 : i32
    return %c0_i32, %c0_i32_0 : i32, i32
  }
  func.func @transform_7(%arg0: i32) -> (i32, i32) {
    %c0_i32 = arith.constant 0 : i32
    %c0_i32_0 = arith.constant 0 : i32
    %c0_i32_1 = arith.constant 0 : i32
    return %c0_i32, %c0_i32_0 : i32, i32
  }
  func.func @transform_8(%arg0: i32) -> (i32, i32) {
    %c0_i32 = arith.constant 0 : i32
    %c0_i32_0 = arith.constant 0 : i32
    %c0_i32_1 = arith.constant 0 : i32
    return %c0_i32, %c0_i32_0 : i32, i32
  }
}

</mosaic_0001>

<bundles_post_ra>
// kernel: tile.8
= control target key start
LH: loop header
LB: loop body
LE: loop exit
PB: predicated region body
PF: predicated region fallthrough
CT: control target
= control target key end

     0   :  { %s22_s0 = inlined_call_operand.vmem [shape: f32[32], index: 0, kind: input, shape index: {}]   ;;  %s23_s1 = inlined_call_operand.vmem [shape: f32[6,32], index: 1, kind: output, shape index: {}]  }
   0x1   :  { %v4_v0 = vld [vmem:[%s22_s0] ss:$0 sm:$0xff] }
   0x2   :  { %5 = vst [vmem:[%s23_s1] sm:$0xff] %v4_v0 }

// kernel: tile.9
= control target key start
LH: loop header
LB: loop body
LE: loop exit
PB: predicated region body
PF: predicated region fallthrough
CT: control target
= control target key end

     0   :  { %s43_s8 = smov 96   ;;  %s19_s9 = smov 3  ;;  %vm4_vm0 = vcmask 261120   ;;  %vm10_vm1 = vcmask 1048320   ;;  %vm16_vm2 = vcmask 785920   ;;  %vm23_vm3 = vcmask 523520   ;;  %s74_s0 = inlined_call_operand.vmem [shape: f32[6,32], index: 0, kind: input, shape index: {}]   ;;  %s75_s1 = inlined_call_operand.vmem [shape: f32[1,192], index: 1, kind: output, shape index: {}]  }
   0x1   :  { %v36_v0 = vld [vmem:[%s74_s0 + $0x3] sm:$0x1]   ;;  %v37_v1 = vld [vmem:[%s74_s0 + $0x2] sm:$0x1]   ;;  %v38_v2 = vld [vmem:[%s74_s0 + $0x1] ss:$4 sm:%s19_s9]  }
   0x2   :  { %8 = vrot.lane.b32.xlu0 %v36_v0, %s43_s8  ;;  %s2_s14 = smov 3  ;;  %s44_s15 = smov 32  }
   0x3   :  { %21 = vrot.lane.b32.xlu1 %v38_v2, %s44_s15  ;;  %v3_v3 = vld [vmem:[%s74_s0] ss:$4 sm:%s2_s14]   ;;  %s45_s0 = smov 64  }
   0x4   :  { %5 = vst.msk [vmem:[#allocation0] ss:$8 sm:$0x3] %vm4_vm0, %v3_v3  }
   0x6   :  { %14 = vrot.lane.b32.xlu0 %v37_v1, %s45_s0 }
  0x74   :  { %v9_v4 = vpop.permute.xlu0 %8  }
  0x75   :  { %11 = vst.msk [vmem:[#allocation0] sm:$0x1] %vm10_vm1, %v9_v4   ;;  %v22_v5 = vpop.permute.xlu1 %21  }
  0x78   :  { %v15_v6 = vpop.permute.xlu0 %14  }
  0x79   :  { %17 = vst.msk [vmem:[#allocation0] sm:$0x1] %vm16_vm2, %v15_v6  }
  0x7a   :  { %24 = vst.msk [vmem:[#allocation0] ss:$8 sm:$0x3] %vm23_vm3, %v22_v5  }
  0x81   :  { %v28_v7 = vld [vmem:[#allocation0] sm:$0x1]  ;;  %v32_v8 = vld [vmem:[#allocation0 + $0x8] sm:$0x1] }
  0x82   :  { %30 = vst [vmem:[%s75_s1] sm:$0x1] %v28_v7  ;;  %39 = vst [vmem:[%s75_s1 + $0x1] sm:$0x1] %v32_v8 }

// kernel: convnet_one_forward.1
= control target key start
LH: loop header
LB: loop body
LE: loop exit
PB: predicated region body
PF: predicated region fallthrough
CT: control target
= control target key end

     0   :  { %vm54_vm0 = vcmask 64512   ;;  %v17079_v5 = vmov 0.0   ;;  %s17065_s0 = inlined_call_operand.vmem [shape: f32[1024,8], index: 0, kind: input, shape index: {}]   ;;  %s17066_s1 = inlined_call_operand.vmem [shape: f32[3,8,192], index: 1, kind: input, shape index: {}]   ;;  %s17067_s2 = inlined_call_operand.vmem [shape: f32[1,192], index: 2, kind: input, shape index: {}]   ;;  %s17068_s3 = inlined_call_operand.vmem [shape: f32[14,32,50], index: 3, kind: input, shape index: {}]   ;;  %s17069_s4 = inlined_call_operand.vmem [shape: f32[14,32,50], index: 4, kind: input, shape index: {}]   ;;  %s17070_s5 = inlined_call_operand.vmem [shape: f32[1,50], index: 5, kind: input, shape index: {}]   ;;  %s17071_s6 = inlined_call_operand.vmem [shape: f32[50,30], index: 6, kind: input, shape index: {}]   ;;  %s17072_s7 = inlined_call_operand.vmem [shape: f32[1,30], index: 7, kind: input, shape index: {}]   ;;  %s17073_s8 = inlined_call_operand.hbm [shape: f32[32,30], index: 8, kind: output, shape index: {}]  }
   0x1   :  { %v12605_v0 = vld [vmem:[%s17066_s1 + $0x18] sm:$0xff]  ;;  %v12610_v1 = vld [vmem:[%s17066_s1 + $0x8] sm:$0xff]  ;;  %v12615_v2 = vld [vmem:[%s17066_s1 + $0x10] sm:$0xff]  ;;  %164 = vmatprep.mubr.f32.mxu1 %v17079_v5  ;;  %331 = vmatprep.mubr.f32.mxu0 %v17079_v5 }
   0x2   :  { %100 = vmatprep.subr.mxu1 %v12605_v0  ;;  %267 = vmatprep.subr.mxu0 %v12610_v1  ;;  %v12622_v3 = vld [vmem:[%s17066_s1] sm:$0xff]  ;;  %v12637_v7 = vld [vmem:[%s17066_s1 + $0x28] sm:$0xff]  ;;  %v12671_v11 = vld [vmem:[%s17065_s0 + $0x30] sm:$0xff] }
   0x3   :  { %v12627_v4 = vld [vmem:[%s17065_s0 + $0x20] sm:$0xff]  ;;  %101 = vmatpush1.msra.mxu1 %v12615_v2  ;;  %268 = vmatpush1.msra.mxu0 %v12622_v3  ;;  %v12654_v9 = vld [vmem:[%s17065_s0 + $0x28] sm:$0xff]  ;;  %v32_v12 = vld [vmem:[%s17065_s0 + $0x10] sm:$0xff] }
   0x4   :  { %v30_v6 = vld [vmem:[%s17065_s0] sm:$0xff]  ;;  %10407 = vmatmul.mubr.msk.f32.vlgmr.msra.gmra.mrb[0].mxu1 %vm54_vm0, %v12627_v4  ;;  %11903 = vmatprep.subr.mxu1 %v12610_v1  ;;  %v31_v10 = vld [vmem:[%s17065_s0 + $0x8] sm:$0xff]  ;;  %v12685_v13 = vld [vmem:[%s17065_s0 + $0x38] sm:$0xff] }
   0x5   :  { %v12644_v8 = vld [vmem:[%s17066_s1 + $0x20] sm:$0xff]  ;;  %10422 = vmatmul.mubr.msk.f32.vlgmr.msra.gmra.mrb[0].mxu0 %vm54_vm0, %v30_v6  ;;  %485 = vmatprep.subr.mxu0 %v12637_v7 }
   0x6   :  { %11904 = vmatpush1.msra.mxu1 %v12622_v3  ;;  %486 = vmatpush1.msra.mxu0 %v12644_v8  ;;  %v12691_v14 = vld [vmem:[%s17065_s0 + $0x40] sm:$0xff] }
   0x7   :  { %170 = vmatprep.mubr.f32.mxu1 %v17079_v5  ;;  %337 = vmatprep.mubr.f32.mxu0 %v17079_v5 }
   0x8   :  { %10408 = vmatmul.mubr.msk.f32.gmra.mrb[2].mxu1 %vm54_vm0, %v12654_v9  ;;  %1580 = vmatprep.subr.mxu0 %v12605_v0 }
   0x9   :  { %10423 = vmatmul.mubr.msk.f32.gmra.mrb[2].mxu0 %vm54_vm0, %v31_v10  ;;  %176 = vmatprep.mubr.f32.mxu1 %v17079_v5 }
   0xa   :  { %343 = vmatprep.mubr.f32.mxu0 %v17079_v5  ;;  %841 = vmatprep.subr.mxu1 %v12605_v0 }
   0xc   :  { %10409 = vmatmul.mubr.msk.f32.gmra.mrb[4].mxu1 %vm54_vm0, %v12671_v11 }
   0xd   :  { %10424 = vmatmul.mubr.msk.f32.gmra.mrb[4].mxu0 %vm54_vm0, %v32_v12  ;;  %182 = vmatprep.mubr.f32.mxu1 %v17079_v5 }
   0xe   :  { %549 = vmatprep.mubr.f32.mxu0 %v17079_v5 }
  0x10   :  { %10410 = vmatmul.mubr.msk.f32.gmra.mrb[6].mxu1 %vm54_vm0, %v12685_v13 }
  0x11   :  { %10439 = vmatmul.mubr.msk.f32.vlgmr.msra.gmra.mrb[0].mxu0 %vm54_vm0, %v12691_v14  ;;  %188 = vmatprep.mubr.f32.mxu1 %v17079_v5 }
  0x12   :  { %13 = vsyncpa [#allocation4], 0  ;;  %1581 = vmatpush1.msra.mxu0 %v12615_v2  ;;  %555 = vmatprep.mubr.f32.mxu0 %v17079_v5  ;;  %v12703_v15 = vld [vmem:[%s17065_s0 + $0x48] sm:$0xff]  ;;  %v12715_v16 = vld [vmem:[%s17065_s0 + $0x50] sm:$0xff]  ;;  %v672_v58 = vlaneseq  ;;  %vm743_vm1 = vcmask 523264   ;;  %s12552_s25 = smov 96  }
  0x13   :  { %1747 = vmatprep.subr.mxu0 %v12610_v1  ;;  %v12726_v17 = vld [vmem:[%s17065_s0 + $0x58] sm:$0xff]  ;;  %v12737_v18 = vld [vmem:[%s17065_s0 + $0x60] sm:$0xff]  ;;  %v12748_v19 = vld [vmem:[%s17065_s0 + $0x68] sm:$0xff]  ;;  %s12553_s30 = smov 64   ;;  %vm6062_vm2 = vcmask 261120   ;;  %vm10295_vm3 = vcmask 1041408  }
  0x14   :  { %10411 = vmatmul.mubr.msk.f32.gmra.mrb[8].mxu1 %vm54_vm0, %v12691_v14  ;;  %v12759_v20 = vld [vmem:[%s17065_s0 + $0x70] sm:$0xff]  ;;  %v12770_v21 = vld [vmem:[%s17065_s0 + $0x78] sm:$0xff]  ;;  %v12781_v22 = vld [vmem:[%s17065_s0 + $0x80] sm:$0xff]  ;;  %v673_v61 = vshrl.u32 %v672_v58, 7  ;;  %vm10282_vm4 = vcmask 408576   ;;  %vm10384_vm5 = vcmask 244736  }
  0x15   :  { %10440 = vmatmul.mubr.msk.f32.gmra.mrb[2].mxu0 %vm54_vm0, %v12703_v15  ;;  %194 = vmatprep.mubr.f32.mxu1 %v17079_v5  ;;  %v12792_v23 = vld [vmem:[%s17065_s0 + $0x88] sm:$0xff]  ;;  %v12803_v24 = vld [vmem:[%s17065_s0 + $0x90] sm:$0xff]  ;;  %v12814_v25 = vld [vmem:[%s17065_s0 + $0x98] sm:$0xff] }
  0x16   :  { %561 = vmatprep.mubr.f32.mxu0 %v17079_v5  ;;  %v33_v26 = vld [vmem:[%s17065_s0 + $0x18] sm:$0xff]  ;;  %v12828_v27 = vld [vmem:[%s17065_s0 + $0xa0] sm:$0xff]  ;;  %v12839_v28 = vld [vmem:[%s17065_s0 + $0xa8] sm:$0xff] }
  0x17   :  { %v12851_v29 = vld [vmem:[%s17065_s0 + $0xb0] sm:$0xff]  ;;  %v12874_v31 = vld [vmem:[%s17065_s0 + $0x118] sm:$0xff]  ;;  %v12886_v32 = vld [vmem:[%s17065_s0 + $0x120] sm:$0xff] }
  0x18   :  { %10412 = vmatmul.mubr.msk.f32.gmra.mrb[10].mxu1 %vm54_vm0, %v12703_v15  ;;  %v12862_v30 = vld [vmem:[%s17065_s0 + $0x110] sm:$0xff]  ;;  %v12897_v33 = vld [vmem:[%s17065_s0 + $0x128] sm:$0xff]  ;;  %v12919_v35 = vld [vmem:[%s17065_s0 + $0x138] sm:$0xff] }
  0x19   :  { %10441 = vmatmul.mubr.msk.f32.gmra.mrb[4].mxu0 %vm54_vm0, %v12715_v16  ;;  %200 = vmatprep.mubr.f32.mxu1 %v17079_v5  ;;  %v12908_v34 = vld [vmem:[%s17065_s0 + $0x130] sm:$0xff]  ;;  %v12930_v36 = vld [vmem:[%s17065_s0 + $0x140] sm:$0xff]  ;;  %v12941_v37 = vld [vmem:[%s17065_s0 + $0x148] sm:$0xff] }
  0x1a   :  { %567 = vmatprep.mubr.f32.mxu0 %v17079_v5  ;;  %v12952_v38 = vld [vmem:[%s17065_s0 + $0x150] sm:$0xff]  ;;  %v12963_v39 = vld [vmem:[%s17065_s0 + $0x158] sm:$0xff]  ;;  %v12975_v40 = vld [vmem:[%s17065_s0 + $0x160] sm:$0xff] }
  0x1b   :  { %v12987_v41 = vld [vmem:[%s17065_s0 + $0x168] sm:$0xff]  ;;  %v12998_v42 = vld [vmem:[%s17065_s0 + $0x170] sm:$0xff]  ;;  %v13008_v43 = vld [vmem:[%s17065_s0 + $0xb8] sm:$0xff] }
  0x1c   :  { %10413 = vmatmul.mubr.msk.f32.gmra.mrb[12].mxu1 %vm54_vm0, %v12715_v16  ;;  %v13014_v44 = vld [vmem:[%s17065_s0 + $0x178] sm:$0xff]  ;;  %v13024_v45 = vld [vmem:[%s17065_s0 + $0xc0] sm:$0xff]  ;;  %v13040_v47 = vld [vmem:[%s17065_s0 + $0xc8] sm:$0xff] }
  0x1d   :  { %10442 = vmatmul.mubr.msk.f32.gmra.mrb[6].mxu0 %vm54_vm0, %v12726_v17  ;;  %206 = vmatprep.mubr.f32.mxu1 %v17079_v5  ;;  %v13030_v46 = vld [vmem:[%s17065_s0 + $0x180] sm:$0xff]  ;;  %v13046_v48 = vld [vmem:[%s17065_s0 + $0xf0] sm:$0xff]  ;;  %v13063_v50 = vld [vmem:[%s17065_s0 + $0xf8] sm:$0xff] }
  0x1e   :  { %573 = vmatprep.mubr.f32.mxu0 %v17079_v5  ;;  %v13056_v49 = vld [vmem:[%s17065_s0 + $0xd0] sm:$0xff]  ;;  %v13074_v51 = vld [vmem:[%s17065_s0 + $0xd8] sm:$0xff]  ;;  %v13080_v52 = vld [vmem:[%s17065_s0 + $0x100] sm:$0xff] }
  0x1f   :  { %v13090_v53 = vld [vmem:[%s17065_s0 + $0xe0] sm:$0xff]  ;;  %v13096_v54 = vld [vmem:[%s17065_s0 + $0x108] sm:$0xff] }
  0x20   :  { %10414 = vmatmul.mubr.msk.f32.gmra.mrb[14].mxu1 %vm54_vm0, %v12726_v17  ;;  %v13106_v55 = vld [vmem:[%s17065_s0 + $0xe8] sm:$0xff] }
  0x21   :  { %10443 = vmatmul.mubr.msk.f32.gmra.mrb[8].mxu0 %vm54_vm0, %v12737_v18  ;;  %212 = vmatprep.mubr.f32.mxu1 %v17079_v5  ;;  %v13182_v56 = vld [vmem:[%s17066_s1 + $0x8] sm:$0xff] }
  0x22   :  { %579 = vmatprep.mubr.f32.mxu0 %v17079_v5 }
  0x24   :  { %10415 = vmatmul.mubr.msk.f32.gmra.mrb[16].mxu1 %vm54_vm0, %v12737_v18 }
  0x25   :  { %10444 = vmatmul.mubr.msk.f32.gmra.mrb[10].mxu0 %vm54_vm0, %v12748_v19  ;;  %218 = vmatprep.mubr.f32.mxu1 %v17079_v5 }
  0x26   :  { %585 = vmatprep.mubr.f32.mxu0 %v17079_v5 }
  0x28   :  { %10416 = vmatmul.mubr.msk.f32.gmra.mrb[18].mxu1 %vm54_vm0, %v12748_v19 }
  0x29   :  { %10445 = vmatmul.mubr.msk.f32.gmra.mrb[12].mxu0 %vm54_vm0, %v12759_v20  ;;  %224 = vmatprep.mubr.f32.mxu1 %v17079_v5 }
  0x2a   :  { %591 = vmatprep.mubr.f32.mxu0 %v17079_v5 }
  0x2c   :  { %10417 = vmatmul.mubr.msk.f32.gmra.mrb[20].mxu1 %vm54_vm0, %v12759_v20 }
  0x2d   :  { %10446 = vmatmul.mubr.msk.f32.gmra.mrb[14].mxu0 %vm54_vm0, %v12770_v21  ;;  %230 = vmatprep.mubr.f32.mxu1 %v17079_v5 }
  0x2e   :  { %597 = vmatprep.mubr.f32.mxu0 %v17079_v5 }
  0x30   :  { %10418 = vmatmul.mubr.msk.f32.gmra.mrb[22].mxu1 %vm54_vm0, %v12770_v21 }
  0x31   :  { %10447 = vmatmul.mubr.msk.f32.gmra.mrb[16].mxu0 %vm54_vm0, %v12781_v22  ;;  %236 = vmatprep.mubr.f32.mxu1 %v17079_v5 }
  0x32   :  { %603 = vmatprep.mubr.f32.mxu0 %v17079_v5 }
  0x34   :  { %10419 = vmatmul.mubr.msk.f32.gmra.mrb[24].mxu1 %vm54_vm0, %v12781_v22 }
  0x35   :  { %10448 = vmatmul.mubr.msk.f32.gmra.mrb[18].mxu0 %vm54_vm0, %v12792_v23  ;;  %242 = vmatprep.mubr.f32.mxu1 %v17079_v5 }
  0x36   :  { %609 = vmatprep.mubr.f32.mxu0 %v17079_v5 }
  0x38   :  { %10420 = vmatmul.mubr.msk.f32.gmra.mrb[26].mxu1 %vm54_vm0, %v12792_v23 }
  0x39   :  { %10449 = vmatmul.mubr.msk.f32.gmra.mrb[20].mxu0 %vm54_vm0, %v12803_v24  ;;  %248 = vmatprep.mubr.f32.mxu1 %v17079_v5 }
  0x3a   :  { %615 = vmatprep.mubr.f32.mxu0 %v17079_v5 }
  0x3c   :  { %10421 = vmatmul.mubr.msk.f32.gmra.mrb[28].mxu1 %vm54_vm0, %v12803_v24 }
  0x3d   :  { %10450 = vmatmul.mubr.msk.f32.gmra.mrb[22].mxu0 %vm54_vm0, %v12814_v25  ;;  %349 = vmatprep.mubr.f32.mxu1 %v17079_v5 }
  0x3e   :  { %621 = vmatprep.mubr.f32.mxu0 %v17079_v5 }
  0x40   :  { %10425 = vmatmul.mubr.msk.f32.vlgmr.msra.gmra.mrb[6].mxu1 %vm54_vm0, %v33_v26 }
  0x41   :  { %10451 = vmatmul.mubr.msk.f32.gmra.mrb[24].mxu0 %vm54_vm0, %v12828_v27  ;;  %842 = vmatpush1.msra.mxu1 %v12615_v2 }
  0x42   :  { %355 = vmatprep.mubr.f32.mxu1 %v17079_v5  ;;  %627 = vmatprep.mubr.f32.mxu0 %v17079_v5 }
  0x43   :  { %1008 = vmatprep.subr.mxu1 %v12610_v1 }
  0x44   :  { %10426 = vmatmul.mubr.msk.f32.gmra.mrb[8].mxu1 %vm54_vm0, %v12627_v4  ;;  %v13233_v4 = vsub.s32 1, %v673_v61 }
  0x45   :  { %10452 = vmatmul.mubr.msk.f32.gmra.mrb[26].mxu0 %vm54_vm0, %v12839_v28  ;;  %361 = vmatprep.mubr.f32.mxu1 %v17079_v5 }
  0x46   :  { %633 = vmatprep.mubr.f32.mxu0 %v17079_v5 }
  0x48   :  { %10427 = vmatmul.mubr.msk.f32.gmra.mrb[10].mxu1 %vm54_vm0, %v12654_v9 }
  0x49   :  { %10453 = vmatmul.mubr.msk.f32.gmra.mrb[28].mxu0 %vm54_vm0, %v12851_v29  ;;  %367 = vmatprep.mubr.f32.mxu1 %v17079_v5 }
  0x4a   :  { %1644 = vmatprep.mubr.f32.mxu0 %v17079_v5 }
  0x4c   :  { %10428 = vmatmul.mubr.msk.f32.gmra.mrb[12].mxu1 %vm54_vm0, %v12671_v11 }
  0x4d   :  { %10505 = vmatmul.mubr.msk.f32.vlgmr.msra.gmra.mrb[30].mxu0 %vm54_vm0, %v12862_v30  ;;  %373 = vmatprep.mubr.f32.mxu1 %v17079_v5 }
  0x4e   :  { %1748 = vmatpush1.msra.mxu0 %v12622_v3  ;;  %1650 = vmatprep.mubr.f32.mxu0 %v17079_v5 }
  0x4f   :  { %1964 = vmatprep.subr.mxu0 %v12637_v7 }
  0x50   :  { %10429 = vmatmul.mubr.msk.f32.gmra.mrb[14].mxu1 %vm54_vm0, %v12685_v13 }
  0x51   :  { %10506 = vmatmul.mubr.msk.f32.gmra.mrb[32].mxu0 %vm54_vm0, %v12874_v31  ;;  %379 = vmatprep.mubr.f32.mxu1 %v17079_v5 }
  0x52   :  { %1656 = vmatprep.mubr.f32.mxu0 %v17079_v5 }
  0x54   :  { %10430 = vmatmul.mubr.msk.f32.gmra.mrb[16].mxu1 %vm54_vm0, %v12691_v14 }
  0x55   :  { %10507 = vmatmul.mubr.msk.f32.gmra.mrb[34].mxu0 %vm54_vm0, %v12886_v32  ;;  %385 = vmatprep.mubr.f32.mxu1 %v17079_v5 }
  0x56   :  { %1662 = vmatprep.mubr.f32.mxu0 %v17079_v5 }
  0x58   :  { %10431 = vmatmul.mubr.msk.f32.gmra.mrb[18].mxu1 %vm54_vm0, %v12703_v15 }
  0x59   :  { %10508 = vmatmul.mubr.msk.f32.gmra.mrb[36].mxu0 %vm54_vm0, %v12897_v33  ;;  %391 = vmatprep.mubr.f32.mxu1 %v17079_v5 }
  0x5a   :  { %1668 = vmatprep.mubr.f32.mxu0 %v17079_v5 }
  0x5c   :  { %10432 = vmatmul.mubr.msk.f32.gmra.mrb[20].mxu1 %vm54_vm0, %v12715_v16 }
  0x5d   :  { %10509 = vmatmul.mubr.msk.f32.gmra.mrb[38].mxu0 %vm54_vm0, %v12908_v34  ;;  %397 = vmatprep.mubr.f32.mxu1 %v17079_v5 }
  0x5e   :  { %1674 = vmatprep.mubr.f32.mxu0 %v17079_v5 }
  0x60   :  { %10433 = vmatmul.mubr.msk.f32.gmra.mrb[22].mxu1 %vm54_vm0, %v12726_v17 }
  0x61   :  { %10510 = vmatmul.mubr.msk.f32.gmra.mrb[40].mxu0 %vm54_vm0, %v12919_v35  ;;  %403 = vmatprep.mubr.f32.mxu1 %v17079_v5 }
  0x62   :  { %1680 = vmatprep.mubr.f32.mxu0 %v17079_v5 }
  0x64   :  { %10434 = vmatmul.mubr.msk.f32.gmra.mrb[24].mxu1 %vm54_vm0, %v12737_v18 }
  0x65   :  { %10511 = vmatmul.mubr.msk.f32.gmra.mrb[42].mxu0 %vm54_vm0, %v12930_v36  ;;  %409 = vmatprep.mubr.f32.mxu1 %v17079_v5 }
  0x66   :  { %1686 = vmatprep.mubr.f32.mxu0 %v17079_v5 }
  0x68   :  { %10435 = vmatmul.mubr.msk.f32.gmra.mrb[26].mxu1 %vm54_vm0, %v12748_v19 }
  0x69   :  { %10512 = vmatmul.mubr.msk.f32.gmra.mrb[44].mxu0 %vm54_vm0, %v12941_v37  ;;  %415 = vmatprep.mubr.f32.mxu1 %v17079_v5 }
  0x6a   :  { %1692 = vmatprep.mubr.f32.mxu0 %v17079_v5 }
  0x6c   :  { %10436 = vmatmul.mubr.msk.f32.gmra.mrb[28].mxu1 %vm54_vm0, %v12759_v20 }
  0x6d   :  { %10513 = vmatmul.mubr.msk.f32.gmra.mrb[46].mxu0 %vm54_vm0, %v12952_v38  ;;  %905 = vmatprep.mubr.f32.mxu1 %v17079_v5 }
  0x6e   :  { %1698 = vmatprep.mubr.f32.mxu0 %v17079_v5 }
  0x70   :  { %10456 = vmatmul.mubr.msk.f32.vlgmr.msra.gmra.mrb[30].mxu1 %vm54_vm0, %v12814_v25 }
  0x71   :  { %10514 = vmatmul.mubr.msk.f32.gmra.mrb[48].mxu0 %vm54_vm0, %v12963_v39  ;;  %1009 = vmatpush1.msra.mxu1 %v12622_v3  ;;  %v670_v3 = vld [vmem:[%s17067_s2] sm:$0x3] }
  0x72   :  { %911 = vmatprep.mubr.f32.mxu1 %v17079_v5  ;;  %1704 = vmatprep.mubr.f32.mxu0 %v17079_v5 }
  0x73   :  { %1225 = vmatprep.subr.mxu1 %v12637_v7 }
  0x74   :  { %10457 = vmatmul.mubr.msk.f32.gmra.mrb[32].mxu1 %vm54_vm0, %v12828_v27 }
  0x75   :  { %10515 = vmatmul.mubr.msk.f32.gmra.mrb[50].mxu0 %vm54_vm0, %v12975_v40  ;;  %917 = vmatprep.mubr.f32.mxu1 %v17079_v5 }
  0x76   :  { %1710 = vmatprep.mubr.f32.mxu0 %v17079_v5 }
  0x78   :  { %10458 = vmatmul.mubr.msk.f32.gmra.mrb[34].mxu1 %vm54_vm0, %v12839_v28 }
  0x79   :  { %10516 = vmatmul.mubr.msk.f32.gmra.mrb[52].mxu0 %vm54_vm0, %v12987_v41  ;;  %923 = vmatprep.mubr.f32.mxu1 %v17079_v5 }
  0x7a   :  { %1716 = vmatprep.mubr.f32.mxu0 %v17079_v5 }
  0x7c   :  { %10459 = vmatmul.mubr.msk.f32.gmra.mrb[36].mxu1 %vm54_vm0, %v12851_v29 }
  0x7d   :  { %10517 = vmatmul.mubr.msk.f32.gmra.mrb[54].mxu0 %vm54_vm0, %v12998_v42  ;;  %929 = vmatprep.mubr.f32.mxu1 %v17079_v5 }
  0x7e   :  { %1722 = vmatprep.mubr.f32.mxu0 %v17079_v5 }
  0x80   :  { %10460 = vmatmul.mubr.msk.f32.gmra.mrb[38].mxu1 %vm54_vm0, %v13008_v43 }
  0x81   :  { %10518 = vmatmul.mubr.msk.f32.gmra.mrb[56].mxu0 %vm54_vm0, %v13014_v44  ;;  %935 = vmatprep.mubr.f32.mxu1 %v17079_v5 }
  0x82   :  { %1728 = vmatprep.mubr.f32.mxu0 %v17079_v5 }
  0x84   :  { %10461 = vmatmul.mubr.msk.f32.gmra.mrb[40].mxu1 %vm54_vm0, %v13024_v45 }
  0x85   :  { %10519 = vmatmul.mubr.msk.f32.gmra.mrb[58].mxu0 %vm54_vm0, %v13030_v46  ;;  %941 = vmatprep.mubr.f32.mxu1 %v17079_v5 }
  0x86   :  { %1811 = vmatprep.mubr.f32.mxu0 %v17079_v5 }
  0x88   :  { %10462 = vmatmul.mubr.msk.f32.gmra.mrb[42].mxu1 %vm54_vm0, %v13040_v47 }
  0x89   :  { %10520 = vmatmul.mubr.msk.f32.vlgmr.msra.gmra.mrb[30].mxu0 %vm54_vm0, %v13046_v48  ;;  %947 = vmatprep.mubr.f32.mxu1 %v17079_v5 }
  0x8a   :  { %1965 = vmatpush1.msra.mxu0 %v12644_v8  ;;  %1817 = vmatprep.mubr.f32.mxu0 %v17079_v5 }
  0x8b   :  { %3058 = vmatprep.subr.mxu0 %v12605_v0 }
  0x8c   :  { %10463 = vmatmul.mubr.msk.f32.gmra.mrb[44].mxu1 %vm54_vm0, %v13056_v49 }
  0x8d   :  { %10521 = vmatmul.mubr.msk.f32.gmra.mrb[32].mxu0 %vm54_vm0, %v13063_v50  ;;  %953 = vmatprep.mubr.f32.mxu1 %v17079_v5 }
  0x8e   :  { %1823 = vmatprep.mubr.f32.mxu0 %v17079_v5 }
  0x90   :  { %10464 = vmatmul.mubr.msk.f32.gmra.mrb[46].mxu1 %vm54_vm0, %v13074_v51 }
  0x91   :  { %10522 = vmatmul.mubr.msk.f32.gmra.mrb[34].mxu0 %vm54_vm0, %v13080_v52  ;;  %959 = vmatprep.mubr.f32.mxu1 %v17079_v5 }
  0x92   :  { %1829 = vmatprep.mubr.f32.mxu0 %v17079_v5 }
  0x94   :  { %10465 = vmatmul.mubr.msk.f32.gmra.mrb[48].mxu1 %vm54_vm0, %v13090_v53 }
  0x95   :  { %10523 = vmatmul.mubr.msk.f32.gmra.mrb[36].mxu0 %vm54_vm0, %v13096_v54  ;;  %965 = vmatprep.mubr.f32.mxu1 %v17079_v5 }
  0x96   :  { %1835 = vmatprep.mubr.f32.mxu0 %v17079_v5 }
  0x98   :  { %10466 = vmatmul.mubr.msk.f32.gmra.mrb[50].mxu1 %vm54_vm0, %v13106_v55 }
  0x99   :  { %10524 = vmatmul.mubr.msk.f32.gmra.mrb[38].mxu0 %vm54_vm0, %v12862_v30  ;;  %971 = vmatprep.mubr.f32.mxu1 %v17079_v5 }
  0x9a   :  { %1841 = vmatprep.mubr.f32.mxu0 %v17079_v5 }
  0x9c   :  { %10467 = vmatmul.mubr.msk.f32.gmra.mrb[52].mxu1 %vm54_vm0, %v13046_v48 }
  0x9d   :  { %10525 = vmatmul.mubr.msk.f32.gmra.mrb[40].mxu0 %vm54_vm0, %v12874_v31  ;;  %977 = vmatprep.mubr.f32.mxu1 %v17079_v5 }
  0x9e   :  { %1847 = vmatprep.mubr.f32.mxu0 %v17079_v5 }
  0xa0   :  { %10468 = vmatmul.mubr.msk.f32.gmra.mrb[54].mxu1 %vm54_vm0, %v13063_v50 }
  0xa1   :  { %10526 = vmatmul.mubr.msk.f32.gmra.mrb[42].mxu0 %vm54_vm0, %v12886_v32  ;;  %983 = vmatprep.mubr.f32.mxu1 %v17079_v5 }
  0xa2   :  { %1853 = vmatprep.mubr.f32.mxu0 %v17079_v5 }
  0xa4   :  { %10469 = vmatmul.mubr.msk.f32.gmra.mrb[56].mxu1 %vm54_vm0, %v13080_v52 }
  0xa5   :  { %10527 = vmatmul.mubr.msk.f32.gmra.mrb[44].mxu0 %vm54_vm0, %v12897_v33  ;;  %989 = vmatprep.mubr.f32.mxu1 %v17079_v5 }
  0xa6   :  { %1859 = vmatprep.mubr.f32.mxu0 %v17079_v5 }
  0xa8   :  { %10470 = vmatmul.mubr.msk.f32.gmra.mrb[58].mxu1 %vm54_vm0, %v13096_v54 }
  0xa9   :  { %10528 = vmatmul.mubr.msk.f32.gmra.mrb[46].mxu0 %vm54_vm0, %v12908_v34  ;;  %1072 = vmatprep.mubr.f32.mxu1 %v17079_v5 }
  0xaa   :  { %1865 = vmatprep.mubr.f32.mxu0 %v17079_v5 }
  0xac   :  { %10471 = vmatmul.mubr.msk.f32.vlgmr.msra.gmra.mrb[30].mxu1 %vm54_vm0, %v12770_v21 }
  0xad   :  { %10529 = vmatmul.mubr.msk.f32.gmra.mrb[48].mxu0 %vm54_vm0, %v12919_v35  ;;  %1226 = vmatpush1.msra.mxu1 %v12644_v8  ;;  %v13243_v8 = vrot.slane %v670_v3, %v13233_v4 }
  0xae   :  { %1078 = vmatprep.mubr.f32.mxu1 %v17079_v5  ;;  %1871 = vmatprep.mubr.f32.mxu0 %v17079_v5 }
  0xaf   :  { %2319 = vmatprep.subr.mxu1 %v12605_v0  ;;  %v13226_v0 = vsub.s32 0, %v673_v61  ;;  %v13403_v61 = vld [vmem:[%s17065_s0 + $0x218] sm:$0xff] }
  0xb0   :  { %10472 = vmatmul.mubr.msk.f32.gmra.mrb[32].mxu1 %vm54_vm0, %v12781_v22 }
  0xb1   :  { %10530 = vmatmul.mubr.msk.f32.gmra.mrb[50].mxu0 %vm54_vm0, %v12930_v36  ;;  %1084 = vmatprep.mubr.f32.mxu1 %v17079_v5  ;;  %v13240_v6 = vrot.slane %v670_v3, %v13226_v0  ;;  %v13433_v3 = vld [vmem:[%s17065_s0 + $0x228] sm:$0xff] }
  0xb2   :  { %1877 = vmatprep.mubr.f32.mxu0 %v17079_v5 }
  0xb4   :  { %10473 = vmatmul.mubr.msk.f32.gmra.mrb[34].mxu1 %vm54_vm0, %v12792_v23 }
  0xb5   :  { %10531 = vmatmul.mubr.msk.f32.gmra.mrb[52].mxu0 %vm54_vm0, %v12941_v37  ;;  %1090 = vmatprep.mubr.f32.mxu1 %v17079_v5 }
  0xb6   :  { %1883 = vmatprep.mubr.f32.mxu0 %v17079_v5 }
  0xb8   :  { %10474 = vmatmul.mubr.msk.f32.gmra.mrb[36].mxu1 %vm54_vm0, %v12803_v24 }
  0xb9   :  { %10532 = vmatmul.mubr.msk.f32.gmra.mrb[54].mxu0 %vm54_vm0, %v12952_v38  ;;  %1096 = vmatprep.mubr.f32.mxu1 %v17079_v5 }
  0xba   :  { %1889 = vmatprep.mubr.f32.mxu0 %v17079_v5 }
  0xbc   :  { %10475 = vmatmul.mubr.msk.f32.gmra.mrb[38].mxu1 %vm54_vm0, %v12814_v25 }
  0xbd   :  { %10533 = vmatmul.mubr.msk.f32.gmra.mrb[56].mxu0 %vm54_vm0, %v12963_v39  ;;  %1102 = vmatprep.mubr.f32.mxu1 %v17079_v5 }
  0xbe   :  { %1895 = vmatprep.mubr.f32.mxu0 %v17079_v5 }
  0xc0   :  { %10476 = vmatmul.mubr.msk.f32.gmra.mrb[40].mxu1 %vm54_vm0, %v12828_v27  ;;  %v13279_v27 = vld [vmem:[%s17065_s0 + $0x188] sm:$0xff] }
  0xc1   :  { %10534 = vmatmul.mubr.msk.f32.gmra.mrb[58].mxu0 %vm54_vm0, %v12975_v40  ;;  %1108 = vmatprep.mubr.f32.mxu1 %v17079_v5 }
  0xc2   :  { %2028 = vmatprep.mubr.f32.mxu0 %v17079_v5 }
  0xc4   :  { %10477 = vmatmul.mubr.msk.f32.gmra.mrb[42].mxu1 %vm54_vm0, %v12839_v28 }
  0xc5   :  { %10537 = vmatmul.mubr.msk.f32.vlgmr.msra.gmra.mrb[30].mxu0 %vm54_vm0, %v12908_v34  ;;  %1114 = vmatprep.mubr.f32.mxu1 %v17079_v5 }
  0xc6   :  { %2034 = vmatprep.mubr.f32.mxu0 %v17079_v5  ;;  %3059 = vmatpush1.msra.mxu0 %v12615_v2 }
  0xc7   :  { %3225 = vmatprep.subr.mxu0 %v13182_v56 }
  0xc8   :  { %10478 = vmatmul.mubr.msk.f32.gmra.mrb[44].mxu1 %vm54_vm0, %v12851_v29 }
  0xc9   :  { %10538 = vmatmul.mubr.msk.f32.gmra.mrb[32].mxu0 %vm54_vm0, %v12919_v35  ;;  %1120 = vmatprep.mubr.f32.mxu1 %v17079_v5 }
  0xca   :  { %2040 = vmatprep.mubr.f32.mxu0 %v17079_v5 }
  0xcc   :  { %10479 = vmatmul.mubr.msk.f32.gmra.mrb[46].mxu1 %vm54_vm0, %v13008_v43 }
  0xcd   :  { %10539 = vmatmul.mubr.msk.f32.gmra.mrb[34].mxu0 %vm54_vm0, %v12930_v36  ;;  %1126 = vmatprep.mubr.f32.mxu1 %v17079_v5 }
  0xce   :  { %2046 = vmatprep.mubr.f32.mxu0 %v17079_v5 }
  0xd0   :  { %10480 = vmatmul.mubr.msk.f32.gmra.mrb[48].mxu1 %vm54_vm0, %v13024_v45 }
  0xd1   :  { %10540 = vmatmul.mubr.msk.f32.gmra.mrb[36].mxu0 %vm54_vm0, %v12941_v37  ;;  %1132 = vmatprep.mubr.f32.mxu1 %v17079_v5 }
  0xd2   :  { %2052 = vmatprep.mubr.f32.mxu0 %v17079_v5 }
  0xd4   :  { %10481 = vmatmul.mubr.msk.f32.gmra.mrb[50].mxu1 %vm54_vm0, %v13040_v47 }
  0xd5   :  { %10541 = vmatmul.mubr.msk.f32.gmra.mrb[38].mxu0 %vm54_vm0, %v12952_v38  ;;  %1138 = vmatprep.mubr.f32.mxu1 %v17079_v5  ;;  %v13300_v38 = vld [vmem:[%s17065_s0 + $0x190] sm:$0xff] }
  0xd6   :  { %2058 = vmatprep.mubr.f32.mxu0 %v17079_v5 }
  0xd7   :  { %v166_v57 = vpop.f32.mrb[0].mxu1 }
  0xd8   :  { %v168_v59 = vpop.f32.mrb[1].mxu1  ;;  %10482 = vmatmul.mubr.msk.f32.gmra.mrb[52].mxu1 %vm54_vm0, %v13056_v49 }
  0xd9   :  { %10542 = vmatmul.mubr.msk.f32.gmra.mrb[40].mxu0 %vm54_vm0, %v12963_v39  ;;  %1144 = vmatprep.mubr.f32.mxu1 %v17079_v5 }
  0xda   :  { %2064 = vmatprep.mubr.f32.mxu0 %v17079_v5 }
  0xdb   :  { %v172_v60 = vpop.f32.mrb[2].mxu1 }
  0xdc   :  { %v174_v62 = vpop.f32.mrb[3].mxu1  ;;  %10483 = vmatmul.mubr.msk.f32.gmra.mrb[54].mxu1 %vm54_vm0, %v13074_v51 }
  0xdd   :  { %10543 = vmatmul.mubr.msk.f32.gmra.mrb[42].mxu0 %vm54_vm0, %v12975_v40  ;;  %1150 = vmatprep.mubr.f32.mxu1 %v17079_v5 }
  0xde   :  { %2070 = vmatprep.mubr.f32.mxu0 %v17079_v5 }
  0xdf   :  { %v178_v63 = vpop.f32.mrb[4].mxu1 }
  0xe0   :  { %v180_v1 = vpop.f32.mrb[5].mxu1  ;;  %10484 = vmatmul.mubr.msk.f32.gmra.mrb[56].mxu1 %vm54_vm0, %v13090_v53 }
  0xe1   :  { %10544 = vmatmul.mubr.msk.f32.gmra.mrb[44].mxu0 %vm54_vm0, %v12987_v41  ;;  %1156 = vmatprep.mubr.f32.mxu1 %v17079_v5  ;;  %v13316_v41 = vld [vmem:[%s17065_s0 + $0x198] sm:$0xff] }
  0xe2   :  { %2076 = vmatprep.mubr.f32.mxu0 %v17079_v5 }
  0xe4   :  { %v551_v7 = vpop.f32.mrb[0].mxu0  ;;  %10485 = vmatmul.mubr.msk.f32.gmra.mrb[58].mxu1 %vm54_vm0, %v13106_v55 }
  0xe5   :  { %v11905_v9 = vadd.f32 %v551_v7, %v166_v57  ;;  %v553_v10 = vpop.f32.mrb[1].mxu0  ;;  %10545 = vmatmul.mubr.msk.f32.gmra.mrb[46].mxu0 %vm54_vm0, %v12998_v42  ;;  %1289 = vmatprep.mubr.f32.mxu1 %v17079_v5  ;;  %v13371_v57 = vld [vmem:[%s17065_s0 + $0x208] sm:$0xff] }
  0xe6   :  { %v11906_v11 = vadd.f32 %v553_v10, %v168_v59  ;;  %2082 = vmatprep.mubr.f32.mxu0 %v17079_v5  ;;  %v13388_v59 = vld [vmem:[%s17065_s0 + $0x210] sm:$0xff] }
  0xe7   :  { %v13252_v12 = vadd.f32 %v11905_v9, %v13240_v6 }
  0xe8   :  { %v683_v13 = vadd.f32 %v11906_v11, %v13243_v8  ;;  %v557_v14 = vpop.f32.mrb[2].mxu0  ;;  %10488 = vmatmul.mubr.msk.f32.vlgmr.msra.gmra.mrb[30].mxu1 %vm54_vm0, %v13008_v43 }
  0xe9   :  { %v712_v15 = vmax.f32 %v13252_v12, 0.0  ;;  %v11907_v16 = vadd.f32 %v557_v14, %v172_v60  ;;  %v559_v17 = vpop.f32.mrb[3].mxu0  ;;  %10546 = vmatmul.mubr.msk.f32.gmra.mrb[48].mxu0 %vm54_vm0, %v13014_v44  ;;  %1295 = vmatprep.mubr.f32.mxu1 %v17079_v5  ;;  %v13331_v44 = vld [vmem:[%s17065_s0 + $0x1a0] sm:$0xff] }
  0xea   :  { %v713_v18 = vmax.f32 %v683_v13, 0.0  ;;  %v11908_v19 = vadd.f32 %v559_v17, %v174_v62  ;;  %2088 = vmatprep.mubr.f32.mxu0 %v17079_v5  ;;  %2320 = vmatpush1.msra.mxu1 %v12615_v2 }
  0xeb   :  { %v13264_v20 = vadd.f32 %v11907_v16, %v13240_v6  ;;  %2486 = vmatprep.subr.mxu1 %v13182_v56  ;;  %v13453_v16 = vld [vmem:[%s17065_s0 + $0x230] sm:$0xff] }
  0xec   :  { %744 = vst.msk [vmem:[#allocation2 + $0x8] sm:$0xff] %vm743_vm1, %v713_v18  ;;  %v685_v21 = vadd.f32 %v11908_v19, %v13243_v8  ;;  %v563_v22 = vpop.f32.mrb[4].mxu0  ;;  %10489 = vmatmul.mubr.msk.f32.gmra.mrb[32].mxu1 %vm54_vm0, %v13024_v45 }
  0xed   :  { %v714_v23 = vmax.f32 %v13264_v20, 0.0  ;;  %v11909_v24 = vadd.f32 %v563_v22, %v178_v63  ;;  %v565_v25 = vpop.f32.mrb[5].mxu0  ;;  %10547 = vmatmul.mubr.msk.f32.gmra.mrb[50].mxu0 %vm54_vm0, %v13030_v46  ;;  %1301 = vmatprep.mubr.f32.mxu1 %v17079_v5  ;;  %v13418_v63 = vld [vmem:[%s17065_s0 + $0x220] sm:$0xff] }
  0xee   :  { %v715_v2 = vmax.f32 %v685_v21, 0.0  ;;  %v11910_v26 = vadd.f32 %v565_v25, %v180_v1  ;;  %2094 = vmatprep.mubr.f32.mxu0 %v17079_v5 }
  0xef   :  { %v13282_v28 = vadd.f32 %v11909_v24, %v13240_v6 }
  0xf0   :  { %746 = vst.msk [vmem:[#allocation2 + $0x18] sm:$0xff] %vm743_vm1, %v715_v2  ;;  %v687_v29 = vadd.f32 %v11910_v26, %v13243_v8  ;;  %v13286_v34 = vpop.f32.mrb[6].mxu0  ;;  %10490 = vmatmul.mubr.msk.f32.gmra.mrb[34].mxu1 %vm54_vm0, %v13040_v47  ;;  %v13346_v47 = vld [vmem:[%s17065_s0 + $0x200] sm:$0xff] }
  0xf1   :  { %v716_v35 = vmax.f32 %v13282_v28, 0.0  ;;  %v13291_v36 = vpop.f32.mrb[7].mxu0  ;;  %10548 = vmatmul.mubr.msk.f32.gmra.mrb[52].mxu0 %vm54_vm0, %v13279_v27  ;;  %1307 = vmatprep.mubr.f32.mxu1 %v17079_v5 }
  0xf2   :  { %v717_v37 = vmax.f32 %v687_v29, 0.0  ;;  %2100 = vmatprep.mubr.f32.mxu0 %v17079_v5  ;;  %v13473_v29 = vld [vmem:[%s17065_s0 + $0x238] sm:$0xff] }
  0xf4   :  { %748 = vst.msk [vmem:[#allocation2 + $0x28] sm:$0xff] %vm743_vm1, %v717_v37  ;;  %v13303_v39 = vpop.f32.mrb[8].mxu0  ;;  %10491 = vmatmul.mubr.msk.f32.gmra.mrb[36].mxu1 %vm54_vm0, %v13056_v49  ;;  %v13351_v49 = vld [vmem:[%s17066_s1] sm:$0xff] }
  0xf5   :  { %v13307_v40 = vpop.f32.mrb[9].mxu0  ;;  %10549 = vmatmul.mubr.msk.f32.gmra.mrb[54].mxu0 %vm54_vm0, %v13300_v38  ;;  %1313 = vmatprep.mubr.f32.mxu1 %v17079_v5 }
  0xf6   :  { %2106 = vmatprep.mubr.f32.mxu0 %v17079_v5 }
  0xf8   :  { %v13318_v42 = vpop.f32.mrb[10].mxu0  ;;  %10492 = vmatmul.mubr.msk.f32.gmra.mrb[38].mxu1 %vm54_vm0, %v13074_v51 }
  0xf9   :  { %v13322_v43 = vpop.f32.mrb[11].mxu0  ;;  %10550 = vmatmul.mubr.msk.f32.gmra.mrb[56].mxu0 %vm54_vm0, %v13316_v41  ;;  %1319 = vmatprep.mubr.f32.mxu1 %v17079_v5 }
  0xfa   :  { %2112 = vmatprep.mubr.f32.mxu0 %v17079_v5 }
  0xfc   :  { %v13333_v45 = vpop.f32.mrb[12].mxu0  ;;  %10493 = vmatmul.mubr.msk.f32.gmra.mrb[40].mxu1 %vm54_vm0, %v13090_v53  ;;  %v13360_v53 = vld [vmem:[%s17066_s1 + $0x28] sm:$0xff] }
  0xfd   :  { %v13337_v46 = vpop.f32.mrb[13].mxu0  ;;  %10551 = vmatmul.mubr.msk.f32.gmra.mrb[58].mxu0 %vm54_vm0, %v13331_v44  ;;  %1325 = vmatprep.mubr.f32.mxu1 %v17079_v5 }
  0xfe   :  { %3122 = vmatprep.mubr.f32.mxu0 %v17079_v5 }
 0x100   :  { %v13353_v51 = vpop.f32.mrb[14].mxu0  ;;  %10494 = vmatmul.mubr.msk.f32.gmra.mrb[42].mxu1 %vm54_vm0, %v13106_v55 }
 0x101   :  { %v13362_v56 = vpop.f32.mrb[15].mxu0  ;;  %10603 = vmatmul.mubr.msk.f32.vlgmr.msra.gmra.mrb[60].mxu0 %vm54_vm0, %v13346_v47  ;;  %1331 = vmatprep.mubr.f32.mxu1 %v17079_v5 }
 0x102   :  { %3128 = vmatprep.mubr.f32.mxu0 %v17079_v5  ;;  %3226 = vmatpush1.msra.mxu0 %v13351_v49 }
 0x103   :  { %3442 = vmatprep.subr.mxu0 %v13360_v53 }
 0x104   :  { %v13375_v55 = vpop.f32.mrb[16].mxu0  ;;  %10495 = vmatmul.mubr.msk.f32.gmra.mrb[44].mxu1 %vm54_vm0, %v13046_v48 }
 0x105   :  { %v13379_v58 = vpop.f32.mrb[17].mxu0  ;;  %10604 = vmatmul.mubr.msk.f32.gmra.mrb[62].mxu0 %vm54_vm0, %v13371_v57  ;;  %1337 = vmatprep.mubr.f32.mxu1 %v17079_v5 }
 0x106   :  { %3134 = vmatprep.mubr.f32.mxu0 %v17079_v5 }
 0x108   :  { %v13390_v60 = vpop.f32.mrb[18].mxu0  ;;  %10496 = vmatmul.mubr.msk.f32.gmra.mrb[46].mxu1 %vm54_vm0, %v13063_v50 }
 0x109   :  { %v13394_v48 = vpop.f32.mrb[19].mxu0  ;;  %10605 = vmatmul.mubr.msk.f32.gmra.mrb[64].mxu0 %vm54_vm0, %v13388_v59  ;;  %1343 = vmatprep.mubr.f32.mxu1 %v17079_v5 }
 0x10a   :  { %3140 = vmatprep.mubr.f32.mxu0 %v17079_v5 }
 0x10c   :  { %v13405_v62 = vpop.f32.mrb[20].mxu0  ;;  %10497 = vmatmul.mubr.msk.f32.gmra.mrb[48].mxu1 %vm54_vm0, %v13080_v52 }
 0x10d   :  { %v13409_v50 = vpop.f32.mrb[21].mxu0  ;;  %10606 = vmatmul.mubr.msk.f32.gmra.mrb[66].mxu0 %vm54_vm0, %v13403_v61  ;;  %1349 = vmatprep.mubr.f32.mxu1 %v17079_v5 }
 0x10e   :  { %3146 = vmatprep.mubr.f32.mxu0 %v17079_v5 }
 0x110   :  { %v13420_v1 = vpop.f32.mrb[22].mxu0  ;;  %10498 = vmatmul.mubr.msk.f32.gmra.mrb[50].mxu1 %vm54_vm0, %v13096_v54 }
 0x111   :  { %v13424_v52 = vpop.f32.mrb[23].mxu0  ;;  %10607 = vmatmul.mubr.msk.f32.gmra.mrb[68].mxu0 %vm54_vm0, %v13418_v63  ;;  %1355 = vmatprep.mubr.f32.mxu1 %v17079_v5 }
 0x112   :  { %3152 = vmatprep.mubr.f32.mxu0 %v17079_v5 }
 0x113   :  { %v351_v7 = vpop.f32.mrb[6].mxu1 }
 0x114   :  { %v11911_v9 = vadd.f32 %v13286_v34, %v351_v7  ;;  %v13436_v10 = vpop.f32.mrb[24].mxu0  ;;  %v353_v54 = vpop.f32.mrb[7].mxu1  ;;  %10499 = vmatmul.mubr.msk.f32.gmra.mrb[52].mxu1 %vm54_vm0, %v12862_v30 }
 0x115   :  { %v11912_v11 = vadd.f32 %v13291_v36, %v353_v54  ;;  %v13441_v13 = vpop.f32.mrb[25].mxu0  ;;  %10608 = vmatmul.mubr.msk.f32.gmra.mrb[70].mxu0 %vm54_vm0, %v13433_v3  ;;  %1361 = vmatprep.mubr.f32.mxu1 %v17079_v5 }
 0x116   :  { %v13447_v14 = vadd.f32 %v11911_v9, %v13240_v6  ;;  %3158 = vmatprep.mubr.f32.mxu0 %v17079_v5 }
 0x117   :  { %v689_v30 = vadd.f32 %v11912_v11, %v13243_v8  ;;  %v357_v17 = vpop.f32.mrb[8].mxu1 }
 0x118   :  { %v718_v18 = vmax.f32 %v13447_v14, 0.0  ;;  %v11913_v19 = vadd.f32 %v13303_v39, %v357_v17  ;;  %v13458_v21 = vpop.f32.mrb[26].mxu0  ;;  %v359_v22 = vpop.f32.mrb[9].mxu1  ;;  %10500 = vmatmul.mubr.msk.f32.gmra.mrb[54].mxu1 %vm54_vm0, %v12874_v31 }
 0x119   :  { %v719_v24 = vmax.f32 %v689_v30, 0.0  ;;  %v11914_v25 = vadd.f32 %v13307_v40, %v359_v22  ;;  %v13463_v2 = vpop.f32.mrb[27].mxu0  ;;  %10609 = vmatmul.mubr.msk.f32.gmra.mrb[72].mxu0 %vm54_vm0, %v13453_v16  ;;  %1367 = vmatprep.mubr.f32.mxu1 %v17079_v5 }
 0x11a   :  { %v690_v26 = vadd.f32 %v11913_v19, %v13240_v6  ;;  %3164 = vmatprep.mubr.f32.mxu0 %v17079_v5 }
 0x11b   :  { %750 = vst.msk [vmem:[#allocation2 + $0x38] sm:$0xff] %vm743_vm1, %v719_v24  ;;  %v691_v31 = vadd.f32 %v11914_v25, %v13243_v8  ;;  %v363_v34 = vpop.f32.mrb[10].mxu1 }
 0x11c   :  { %v720_v36 = vmax.f32 %v690_v26, 0.0  ;;  %v11915_v37 = vadd.f32 %v13318_v42, %v363_v34  ;;  %v13478_v39 = vpop.f32.mrb[28].mxu0  ;;  %v365_v40 = vpop.f32.mrb[11].mxu1  ;;  %10501 = vmatmul.mubr.msk.f32.gmra.mrb[56].mxu1 %vm54_vm0, %v12886_v32  ;;  %v13493_v42 = vld [vmem:[%s17065_s0 + $0x240] sm:$0xff] }
 0x11d   :  { %v721_v7 = vmax.f32 %v691_v31, 0.0  ;;  %v11916_v9 = vadd.f32 %v13322_v43, %v365_v40  ;;  %v13483_v54 = vpop.f32.mrb[29].mxu0  ;;  %10610 = vmatmul.mubr.msk.f32.gmra.mrb[74].mxu0 %vm54_vm0, %v13473_v29  ;;  %1373 = vmatprep.mubr.f32.mxu1 %v17079_v5 }
 0x11e   :  { %v692_v11 = vadd.f32 %v11915_v37, %v13240_v6  ;;  %3170 = vmatprep.mubr.f32.mxu0 %v17079_v5  ;;  %v5970_v32 = vmax.f32 %v712_v15, %v720_v36  ;;  %v13511_v15 = vld [vmem:[%s17065_s0 + $0x248] sm:$0xff] }
 0x11f   :  { %752 = vst.msk [vmem:[#allocation2 + $0x48] sm:$0xff] %vm743_vm1, %v721_v7  ;;  %v693_v43 = vadd.f32 %v11916_v9, %v13243_v8  ;;  %v369_v30 = vpop.f32.mrb[12].mxu1 }
 0x120   :  { %v722_v17 = vmax.f32 %v692_v11, 0.0  ;;  %v11917_v19 = vadd.f32 %v13333_v45, %v369_v30  ;;  %v371_v22 = vpop.f32.mrb[13].mxu1  ;;  %10502 = vmatmul.mubr.msk.f32.gmra.mrb[58].mxu1 %vm54_vm0, %v12897_v33 }
 0x121   :  { %v723_v24 = vmax.f32 %v693_v43, 0.0  ;;  %v11918_v25 = vadd.f32 %v13337_v46, %v371_v22  ;;  %10611 = vmatmul.mubr.msk.f32.gmra.mrb[76].mxu0 %vm54_vm0, %v13493_v42  ;;  %2383 = vmatprep.mubr.f32.mxu1 %v17079_v5 }
 0x122   :  { %v694_v12 = vadd.f32 %v11917_v19, %v13240_v6  ;;  %3176 = vmatprep.mubr.f32.mxu0 %v17079_v5  ;;  %v13515_v33 = vmax.f32 %v714_v23, %v722_v17  ;;  %v13532_v23 = vld [vmem:[%s17065_s0 + $0x250] sm:$0xff] }
 0x123   :  { %754 = vst.msk [vmem:[#allocation2 + $0x58] sm:$0xff] %vm743_vm1, %v723_v24  ;;  %v695_v45 = vadd.f32 %v11918_v25, %v13243_v8  ;;  %v375_v46 = vpop.f32.mrb[14].mxu1 }
 0x124   :  { %v724_v26 = vmax.f32 %v694_v12, 0.0  ;;  %v11919_v31 = vadd.f32 %v13353_v51, %v375_v46  ;;  %v377_v34 = vpop.f32.mrb[15].mxu1  ;;  %10554 = vmatmul.mubr.msk.f32.vlgmr.msra.gmra.mrb[60].mxu1 %vm54_vm0, %v13279_v27 }
 0x125   :  { %v725_v36 = vmax.f32 %v695_v45, 0.0  ;;  %v11920_v37 = vadd.f32 %v13362_v56, %v377_v34  ;;  %10612 = vmatmul.mubr.msk.f32.gmra.mrb[78].mxu0 %vm54_vm0, %v13511_v15  ;;  %2389 = vmatprep.mubr.f32.mxu1 %v17079_v5  ;;  %v13608_v34 = vld [vmem:[%s17065_s0 + $0x268] sm:$0xff] }
 0x126   :  { %v696_v20 = vadd.f32 %v11919_v31, %v13240_v6  ;;  %2487 = vmatpush1.msra.mxu1 %v13351_v49  ;;  %3182 = vmatprep.mubr.f32.mxu0 %v17079_v5  ;;  %v13536_v51 = vmax.f32 %v716_v35, %v724_v26  ;;  %v13555_v35 = vld [vmem:[%s17065_s0 + $0x258] sm:$0xff] }
 0x127   :  { %756 = vst.msk [vmem:[#allocation2 + $0x68] sm:$0xff] %vm743_vm1, %v725_v36  ;;  %v697_v56 = vadd.f32 %v11920_v37, %v13243_v8  ;;  %v381_v40 = vpop.f32.mrb[16].mxu1  ;;  %2703 = vmatprep.subr.mxu1 %v13360_v53 }
 0x128   :  { %v726_v7 = vmax.f32 %v696_v20, 0.0  ;;  %v11921_v49 = vadd.f32 %v13375_v55, %v381_v40  ;;  %v383_v9 = vpop.f32.mrb[17].mxu1  ;;  %10555 = vmatmul.mubr.msk.f32.gmra.mrb[62].mxu1 %vm54_vm0, %v13300_v38 }
 0x129   :  { %v727_v11 = vmax.f32 %v697_v56, 0.0  ;;  %v11922_v43 = vadd.f32 %v13379_v58, %v383_v9  ;;  %10613 = vmatmul.mubr.msk.f32.gmra.mrb[80].mxu0 %vm54_vm0, %v13532_v23  ;;  %2395 = vmatprep.mubr.f32.mxu1 %v17079_v5 }
 0x12a   :  { %v13549_v28 = vadd.f32 %v11921_v49, %v13240_v6  ;;  %3188 = vmatprep.mubr.f32.mxu0 %v17079_v5  ;;  %v13559_v53 = vmax.f32 %v718_v18, %v726_v7  ;;  %v5947_v49 = vld [vmem:[#allocation2 + $0x8] sm:$0xff] }
 0x12b   :  { %758 = vst.msk [vmem:[#allocation2 + $0x78] sm:$0xff] %vm743_vm1, %v727_v11  ;;  %v699_v55 = vadd.f32 %v11922_v43, %v13243_v8  ;;  %v387_v58 = vpop.f32.mrb[18].mxu1 }
 0x12c   :  { %v728_v30 = vmax.f32 %v13549_v28, 0.0  ;;  %v11923_v17 = vadd.f32 %v13390_v60, %v387_v58  ;;  %v389_v19 = vpop.f32.mrb[19].mxu1  ;;  %10556 = vmatmul.mubr.msk.f32.gmra.mrb[64].mxu1 %vm54_vm0, %v13316_v41  ;;  %v13578_v60 = vld [vmem:[%s17065_s0 + $0x260] sm:$0xff] }
 0x12d   :  { %v729_v22 = vmax.f32 %v699_v55, 0.0  ;;  %v11924_v24 = vadd.f32 %v13394_v48, %v389_v19  ;;  %10614 = vmatmul.mubr.msk.f32.gmra.mrb[82].mxu0 %vm54_vm0, %v13555_v35  ;;  %2401 = vmatprep.mubr.f32.mxu1 %v17079_v5 }
 0x12e   :  { %v13572_v14 = vadd.f32 %v11923_v17, %v13240_v6  ;;  %3194 = vmatprep.mubr.f32.mxu0 %v17079_v5  ;;  %v13582_v18 = vmax.f32 %v5970_v32, %v728_v30 }
 0x12f   :  { %760 = vst.msk [vmem:[#allocation2 + $0x88] sm:$0xff] %vm743_vm1, %v729_v22  ;;  %v701_v48 = vadd.f32 %v11924_v24, %v13243_v8  ;;  %v393_v25 = vpop.f32.mrb[20].mxu1 }
 0x130   :  { %v730_v12 = vmax.f32 %v13572_v14, 0.0  ;;  %v11925_v45 = vadd.f32 %v13405_v62, %v393_v25  ;;  %v395_v46 = vpop.f32.mrb[21].mxu1  ;;  %10557 = vmatmul.mubr.msk.f32.gmra.mrb[66].mxu1 %vm54_vm0, %v13331_v44  ;;  %5990 = vrot.lane.b32.xlu0 %v13582_v18, %s12552_s25  ;;  %v13599_v62 = vld [vmem:[%s17065_s0 + $0x1a8] sm:$0xff] }
 0x131   :  { %v731_v26 = vmax.f32 %v701_v48, 0.0  ;;  %v11926_v32 = vadd.f32 %v13409_v50, %v395_v46  ;;  %10615 = vmatmul.mubr.msk.f32.gmra.mrb[84].mxu0 %vm54_vm0, %v13578_v60  ;;  %2407 = vmatprep.mubr.f32.mxu1 %v17079_v5  ;;  %v5955_v50 = vld [vmem:[#allocation2 + $0x48] sm:$0xff]  ;;  %v13664_v46 = vld [vmem:[%s17065_s0 + $0x1b8] sm:$0xff] }
 0x132   :  { %v13602_v31 = vadd.f32 %v11925_v45, %v13240_v6  ;;  %3200 = vmatprep.mubr.f32.mxu0 %v17079_v5  ;;  %v13613_v36 = vmax.f32 %v13515_v33, %v730_v12  ;;  %v5971_v11 = vmax.f32 %v5947_v49, %v5955_v50 }
 0x133   :  { %762 = vst.msk [vmem:[#allocation2 + $0x98] sm:$0xff] %vm743_vm1, %v731_v26  ;;  %v703_v37 = vadd.f32 %v11926_v32, %v13243_v8  ;;  %v399_v20 = vpop.f32.mrb[22].mxu1  ;;  %v5957_v26 = vld [vmem:[#allocation2 + $0x58] sm:$0xff] }
 0x134   :  { %v732_v56 = vmax.f32 %v13602_v31, 0.0  ;;  %v11927_v40 = vadd.f32 %v13420_v1, %v399_v20  ;;  %v401_v7 = vpop.f32.mrb[23].mxu1  ;;  %10558 = vmatmul.mubr.msk.f32.gmra.mrb[68].mxu1 %vm54_vm0, %v13599_v62  ;;  %6006 = vrot.lane.b32.xlu0 %v13582_v18, %s12553_s30  ;;  %v13630_v1 = vld [vmem:[%s17065_s0 + $0x1b0] sm:$0xff] }
 0x135   :  { %v733_v33 = vmax.f32 %v703_v37, 0.0  ;;  %v11928_v9 = vadd.f32 %v13424_v52, %v401_v7  ;;  %10616 = vmatmul.mubr.msk.f32.gmra.mrb[86].mxu0 %vm54_vm0, %v13608_v34  ;;  %2413 = vmatprep.mubr.f32.mxu1 %v17079_v5  ;;  %v13639_v52 = vld [vmem:[%s17065_s0 + $0x270] sm:$0xff]  ;;  %v5949_v7 = vld [vmem:[#allocation2 + $0x18] sm:$0xff] }
 0x136   :  { %v13633_v43 = vadd.f32 %v11927_v40, %v13240_v6  ;;  %3206 = vmatprep.mubr.f32.mxu0 %v17079_v5  ;;  %v13641_v55 = vld [vmem:[#allocation2 + $0x88] sm:$0xff]  ;;  %v13646_v58 = vmax.f32 %v13536_v51, %v732_v56 }
 0x137   :  { %764 = vst.msk [vmem:[#allocation2 + $0xa8] sm:$0xff] %vm743_vm1, %v733_v33  ;;  %v705_v17 = vadd.f32 %v11928_v9, %v13243_v8  ;;  %v405_v19 = vpop.f32.mrb[24].mxu1  ;;  %v5979_v22 = vmax.f32 %v5971_v11, %v13641_v55  ;;  %v13686_v33 = vld [vmem:[%s17066_s1 + $0x20] sm:$0xff] }
 0x138   :  { %v17076_v24 = vmax.f32 %v13633_v43, 0.0  ;;  %v11929_v48 = vadd.f32 %v13436_v10, %v405_v19  ;;  %v407_v25 = vpop.f32.mrb[25].mxu1  ;;  %10559 = vmatmul.mubr.msk.f32.gmra.mrb[70].mxu1 %vm54_vm0, %v13630_v1  ;;  %5992 = vrot.lane.b32.xlu0 %v13613_v36, %s12552_s25  ;;  %v5959_v19 = vld [vmem:[#allocation2 + $0x68] sm:$0xff] }
 0x139   :  { %v735_v51 = vmax.f32 %v705_v17, 0.0  ;;  %v11930_v45 = vadd.f32 %v13441_v13, %v407_v25  ;;  %10617 = vmatmul.mubr.msk.f32.gmra.mrb[88].mxu0 %vm54_vm0, %v13639_v52  ;;  %6026 = vrot.lane.b32.xlu1 %v5979_v22, %s12553_s30  ;;  %v13672_v13 = vld [vmem:[%s17065_s0 + $0x1e0] sm:$0xff]  ;;  %v5973_v17 = vmax.f32 %v5949_v7, %v5957_v26 }
 0x13a   :  { %v706_v10 = vadd.f32 %v11929_v48, %v13240_v6  ;;  %2419 = vmatprep.mubr.f32.mxu1 %v17079_v5  ;;  %3289 = vmatprep.mubr.f32.mxu0 %v17079_v5  ;;  %v13679_v49 = vld [vmem:[#allocation2 + $0x98] sm:$0xff] }
 0x13b   :  { %766 = vst.msk [vmem:[#allocation2 + $0xb8] sm:$0xff] %vm743_vm1, %v735_v51  ;;  %v707_v32 = vadd.f32 %v11930_v45, %v13243_v8  ;;  %v411_v50 = vpop.f32.mrb[26].mxu1  ;;  %v5981_v45 = vmax.f32 %v5973_v17, %v13679_v49 }
 0x13c   :  { %v736_v37 = vmax.f32 %v706_v10, 0.0  ;;  %v11931_v20 = vadd.f32 %v13458_v21, %v411_v50  ;;  %v413_v40 = vpop.f32.mrb[27].mxu1  ;;  %10560 = vmatmul.mubr.msk.f32.gmra.mrb[72].mxu1 %vm54_vm0, %v13664_v46  ;;  %5994 = vrot.lane.b32.xlu0 %v13646_v58, %s12552_s25  ;;  %v13696_v21 = vld [vmem:[%s17065_s0 + $0x1c0] sm:$0xff]  ;;  %v5951_v10 = vld [vmem:[#allocation2 + $0x28] sm:$0xff] }
 0x13d   :  { %v737_v9 = vmax.f32 %v707_v32, 0.0  ;;  %v11932_v11 = vadd.f32 %v13463_v2, %v413_v40  ;;  %10618 = vmatmul.mubr.msk.f32.vlgmr.msra.gmra.mrb[60].mxu0 %vm54_vm0, %v13672_v13  ;;  %6008 = vrot.lane.b32.xlu1 %v13613_v36, %s12553_s30  ;;  %v13704_v2 = vld [vmem:[%s17065_s0 + $0x1e8] sm:$0xff]  ;;  %v5975_v28 = vmax.f32 %v5951_v10, %v5959_v19  ;;  %v13783_v10 = vld [vmem:[%s17065_s0 + $0x1d8] sm:$0xff] }
 0x13e   :  { %v708_v22 = vadd.f32 %v11931_v20, %v13240_v6  ;;  %2425 = vmatprep.mubr.f32.mxu1 %v17079_v5  ;;  %3295 = vmatprep.mubr.f32.mxu0 %v17079_v5  ;;  %v13708_v48 = vmax.f32 %v728_v30, %v736_v37  ;;  %v5967_v26 = vld [vmem:[#allocation2 + $0xa8] sm:$0xff]  ;;  %v13722_v30 = vld [vmem:[%s17066_s1 + $0x18] sm:$0xff] }
 0x13f   :  { %768 = vst.msk [vmem:[#allocation2 + $0xc8] sm:$0xff] %vm743_vm1, %v737_v9  ;;  %v709_v25 = vadd.f32 %v11932_v11, %v13243_v8  ;;  %v417_v51 = vpop.f32.mrb[28].mxu1  ;;  %3443 = vmatpush1.msra.mxu0 %v13686_v33  ;;  %v5961_v9 = vld [vmem:[#allocation2 + $0x78] sm:$0xff]  ;;  %v5983_v11 = vmax.f32 %v5975_v28, %v5967_v26 }
 0x140   :  { %v738_v32 = vmax.f32 %v708_v22, 0.0  ;;  %v11933_v50 = vadd.f32 %v13478_v39, %v417_v51  ;;  %v419_v20 = vpop.f32.mrb[29].mxu1  ;;  %10561 = vmatmul.mubr.msk.f32.gmra.mrb[74].mxu1 %vm54_vm0, %v13696_v21  ;;  %6010 = vrot.lane.b32.xlu0 %v13646_v58, %s12553_s30  ;;  %v13731_v39 = vld [vmem:[%s17065_s0 + $0x1c8] sm:$0xff] }
 0x141   :  { %v739_v37 = vmax.f32 %v709_v25, 0.0  ;;  %v11934_v40 = vadd.f32 %v13483_v54, %v419_v20  ;;  %10619 = vmatmul.mubr.msk.f32.gmra.mrb[62].mxu0 %vm54_vm0, %v13704_v2  ;;  %6028 = vrot.lane.b32.xlu1 %v5981_v45, %s12553_s30  ;;  %v13739_v54 = vld [vmem:[%s17065_s0 + $0x1f0] sm:$0xff]  ;;  %v5953_v25 = vld [vmem:[#allocation2 + $0x38] sm:$0xff] }
 0x142   :  { %v710_v7 = vadd.f32 %v11933_v50, %v13240_v6  ;;  %2431 = vmatprep.mubr.f32.mxu1 %v17079_v5  ;;  %3301 = vmatprep.mubr.f32.mxu0 %v17079_v5  ;;  %v13743_v17 = vmax.f32 %v730_v12, %v738_v32  ;;  %v13750_v6 = vmax.f32 %v13559_v53, %v17076_v24  ;;  %v5969_v51 = vld [vmem:[#allocation2 + $0xb8] sm:$0xff] }
 0x143   :  { %770 = vst.msk [vmem:[#allocation2 + $0xd8] sm:$0xff] %vm743_vm1, %v739_v37  ;;  %v711_v19 = vadd.f32 %v11934_v40, %v13243_v8  ;;  %4536 = vmatprep.subr.mxu0 %v13722_v30  ;;  %v13763_v8 = vld [vmem:[%s17065_s0 + $0x1d0] sm:$0xff]  ;;  %v5977_v53 = vmax.f32 %v5953_v25, %v5961_v9  ;;  %v13770_v12 = vld [vmem:[%s17065_s0 + $0x1f8] sm:$0xff] }
 0x144   :  { %v740_v22 = vmax.f32 %v710_v7, 0.0  ;;  %10562 = vmatmul.mubr.msk.f32.gmra.mrb[76].mxu1 %vm54_vm0, %v13731_v39  ;;  %6030 = vrot.lane.b32.xlu0 %v5983_v11, %s12553_s30 }
 0x145   :  { %v741_v14 = vmax.f32 %v711_v19, 0.0  ;;  %10620 = vmatmul.mubr.msk.f32.gmra.mrb[64].mxu0 %vm54_vm0, %v13739_v54  ;;  %5996 = vrot.lane.b32.xlu1 %v13750_v6, %s12552_s25  ;;  %v5985_v45 = vmax.f32 %v5977_v53, %v5969_v51 }
 0x146   :  { %771 = vst [vmem:[#allocation2 + $0xe0] sm:$0xff] %v740_v22  ;;  %2437 = vmatprep.mubr.f32.mxu1 %v17079_v5  ;;  %3307 = vmatprep.mubr.f32.mxu0 %v17079_v5 }
 0x147   :  { %772 = vst.msk [vmem:[#allocation2 + $0xe8] sm:$0xff] %vm743_vm1, %v741_v14 }
 0x148   :  { %10563 = vmatmul.mubr.msk.f32.gmra.mrb[78].mxu1 %vm54_vm0, %v13763_v8  ;;  %6012 = vrot.lane.b32.xlu0 %v13750_v6, %s12553_s30 }
 0x149   :  { %10621 = vmatmul.mubr.msk.f32.gmra.mrb[66].mxu0 %vm54_vm0, %v13770_v12  ;;  %6032 = vrot.lane.b32.xlu1 %v5985_v45, %s12553_s30 }
 0x14a   :  { %2443 = vmatprep.mubr.f32.mxu1 %v17079_v5  ;;  %3313 = vmatprep.mubr.f32.mxu0 %v17079_v5 }
 0x14c   :  { %10564 = vmatmul.mubr.msk.f32.gmra.mrb[80].mxu1 %vm54_vm0, %v13783_v10 }
 0x14d   :  { %10622 = vmatmul.mubr.msk.f32.gmra.mrb[68].mxu0 %vm54_vm0, %v13346_v47  ;;  %2449 = vmatprep.mubr.f32.mxu1 %v17079_v5  ;;  %v2251_v47 = vld [vmem:[%s17065_s0 + $0x168] sm:$0xff] }
 0x14e   :  { %3319 = vmatprep.mubr.f32.mxu0 %v17079_v5 }
 0x150   :  { %10565 = vmatmul.mubr.msk.f32.gmra.mrb[82].mxu1 %vm54_vm0, %v13672_v13 }
 0x151   :  { %10623 = vmatmul.mubr.msk.f32.gmra.mrb[70].mxu0 %vm54_vm0, %v13371_v57  ;;  %2455 = vmatprep.mubr.f32.mxu1 %v17079_v5  ;;  %v2252_v57 = vld [vmem:[%s17065_s0 + $0x170] sm:$0xff] }
 0x152   :  { %3325 = vmatprep.mubr.f32.mxu0 %v17079_v5 }
 0x154   :  { %10566 = vmatmul.mubr.msk.f32.gmra.mrb[84].mxu1 %vm54_vm0, %v13704_v2 }
 0x155   :  { %10624 = vmatmul.mubr.msk.f32.gmra.mrb[72].mxu0 %vm54_vm0, %v13388_v59  ;;  %2461 = vmatprep.mubr.f32.mxu1 %v17079_v5  ;;  %v2253_v59 = vld [vmem:[%s17065_s0 + $0x178] sm:$0xff] }
 0x156   :  { %3331 = vmatprep.mubr.f32.mxu0 %v17079_v5 }
 0x158   :  { %10567 = vmatmul.mubr.msk.f32.gmra.mrb[86].mxu1 %vm54_vm0, %v13739_v54 }
 0x159   :  { %10625 = vmatmul.mubr.msk.f32.gmra.mrb[74].mxu0 %vm54_vm0, %v13403_v61  ;;  %2467 = vmatprep.mubr.f32.mxu1 %v17079_v5  ;;  %v2254_v61 = vld [vmem:[%s17065_s0 + $0x180] sm:$0xff] }
 0x15a   :  { %3337 = vmatprep.mubr.f32.mxu0 %v17079_v5 }
 0x15c   :  { %10568 = vmatmul.mubr.msk.f32.gmra.mrb[88].mxu1 %vm54_vm0, %v13770_v12 }
 0x15d   :  { %10626 = vmatmul.mubr.msk.f32.gmra.mrb[76].mxu0 %vm54_vm0, %v13418_v63  ;;  %2550 = vmatprep.mubr.f32.mxu1 %v17079_v5 }
 0x15e   :  { %3343 = vmatprep.mubr.f32.mxu0 %v17079_v5 }
 0x160   :  { %10569 = vmatmul.mubr.msk.f32.vlgmr.msra.gmra.mrb[60].mxu1 %vm54_vm0, %v2251_v47 }
 0x161   :  { %10627 = vmatmul.mubr.msk.f32.gmra.mrb[78].mxu0 %vm54_vm0, %v13433_v3  ;;  %2556 = vmatprep.mubr.f32.mxu1 %v17079_v5 }
 0x162   :  { %2704 = vmatpush1.msra.mxu1 %v13686_v33  ;;  %3349 = vmatprep.mubr.f32.mxu0 %v17079_v5  ;;  %v3745_v33 = vld [vmem:[%s17066_s1 + $0x8] sm:$0xff] }
 0x163   :  { %3797 = vmatprep.subr.mxu1 %v13722_v30 }
 0x164   :  { %10570 = vmatmul.mubr.msk.f32.gmra.mrb[62].mxu1 %vm54_vm0, %v2252_v57 }
 0x165   :  { %10628 = vmatmul.mubr.msk.f32.gmra.mrb[80].mxu0 %vm54_vm0, %v13453_v16  ;;  %2562 = vmatprep.mubr.f32.mxu1 %v17079_v5 }
 0x166   :  { %3355 = vmatprep.mubr.f32.mxu0 %v17079_v5 }
 0x168   :  { %10571 = vmatmul.mubr.msk.f32.gmra.mrb[64].mxu1 %vm54_vm0, %v2253_v59 }
 0x169   :  { %10629 = vmatmul.mubr.msk.f32.gmra.mrb[82].mxu0 %vm54_vm0, %v13473_v29  ;;  %2568 = vmatprep.mubr.f32.mxu1 %v17079_v5 }
 0x16a   :  { %3361 = vmatprep.mubr.f32.mxu0 %v17079_v5 }
 0x16c   :  { %10572 = vmatmul.mubr.msk.f32.gmra.mrb[66].mxu1 %vm54_vm0, %v2254_v61 }
 0x16d   :  { %10630 = vmatmul.mubr.msk.f32.gmra.mrb[84].mxu0 %vm54_vm0, %v13493_v42  ;;  %2574 = vmatprep.mubr.f32.mxu1 %v17079_v5 }
 0x16e   :  { %3367 = vmatprep.mubr.f32.mxu0 %v17079_v5 }
 0x170   :  { %10573 = vmatmul.mubr.msk.f32.gmra.mrb[68].mxu1 %vm54_vm0, %v13279_v27  ;;  %v10650_v27 = vld [vmem:[%s17066_s1 + $0x10] sm:$0xff] }
 0x171   :  { %10631 = vmatmul.mubr.msk.f32.gmra.mrb[86].mxu0 %vm54_vm0, %v13511_v15  ;;  %2580 = vmatprep.mubr.f32.mxu1 %v17079_v5 }
 0x172   :  { %3373 = vmatprep.mubr.f32.mxu0 %v17079_v5 }
 0x174   :  { %10574 = vmatmul.mubr.msk.f32.gmra.mrb[70].mxu1 %vm54_vm0, %v13300_v38  ;;  %v2149_v38 = vld [vmem:[%s17067_s2] sm:$0x3] }
 0x175   :  { %10632 = vmatmul.mubr.msk.f32.gmra.mrb[88].mxu0 %vm54_vm0, %v13532_v23  ;;  %2586 = vmatprep.mubr.f32.mxu1 %v17079_v5 }
 0x176   :  { %3506 = vmatprep.mubr.f32.mxu0 %v17079_v5 }
 0x178   :  { %10575 = vmatmul.mubr.msk.f32.gmra.mrb[72].mxu1 %vm54_vm0, %v13316_v41  ;;  %v13919_v41 = vrot.slane %v2149_v38, %v13226_v0 }
 0x179   :  { %10635 = vmatmul.mubr.msk.f32.vlgmr.msra.gmra.mrb[60].mxu0 %vm54_vm0, %v13418_v63  ;;  %2592 = vmatprep.mubr.f32.mxu1 %v17079_v5 }
 0x17a   :  { %3512 = vmatprep.mubr.f32.mxu0 %v17079_v5  ;;  %4537 = vmatpush1.msra.mxu0 %v10650_v27 }
 0x17b   :  { %4703 = vmatprep.subr.mxu0 %v3745_v33 }
 0x17c   :  { %10576 = vmatmul.mubr.msk.f32.gmra.mrb[74].mxu1 %vm54_vm0, %v13331_v44  ;;  %v13924_v44 = vrot.slane %v2149_v38, %v13233_v4 }
 0x17d   :  { %10636 = vmatmul.mubr.msk.f32.gmra.mrb[62].mxu0 %vm54_vm0, %v13433_v3  ;;  %2598 = vmatprep.mubr.f32.mxu1 %v17079_v5 }
 0x17e   :  { %3518 = vmatprep.mubr.f32.mxu0 %v17079_v5 }
 0x180   :  { %10577 = vmatmul.mubr.msk.f32.gmra.mrb[76].mxu1 %vm54_vm0, %v13599_v62 }
 0x181   :  { %10637 = vmatmul.mubr.msk.f32.gmra.mrb[64].mxu0 %vm54_vm0, %v13453_v16  ;;  %2604 = vmatprep.mubr.f32.mxu1 %v17079_v5 }
 0x182   :  { %3524 = vmatprep.mubr.f32.mxu0 %v17079_v5 }
 0x184   :  { %10578 = vmatmul.mubr.msk.f32.gmra.mrb[78].mxu1 %vm54_vm0, %v13630_v1 }
 0x185   :  { %10638 = vmatmul.mubr.msk.f32.gmra.mrb[66].mxu0 %vm54_vm0, %v13473_v29  ;;  %2610 = vmatprep.mubr.f32.mxu1 %v17079_v5 }
 0x186   :  { %3530 = vmatprep.mubr.f32.mxu0 %v17079_v5 }
 0x188   :  { %10579 = vmatmul.mubr.msk.f32.gmra.mrb[80].mxu1 %vm54_vm0, %v13664_v46 }
 0x189   :  { %10639 = vmatmul.mubr.msk.f32.gmra.mrb[68].mxu0 %vm54_vm0, %v13493_v42  ;;  %2616 = vmatprep.mubr.f32.mxu1 %v17079_v5 }
 0x18a   :  { %3536 = vmatprep.mubr.f32.mxu0 %v17079_v5 }
 0x18c   :  { %10580 = vmatmul.mubr.msk.f32.gmra.mrb[82].mxu1 %vm54_vm0, %v13696_v21 }
 0x18d   :  { %10640 = vmatmul.mubr.msk.f32.gmra.mrb[70].mxu0 %vm54_vm0, %v13511_v15  ;;  %2622 = vmatprep.mubr.f32.mxu1 %v17079_v5 }
 0x18e   :  { %3542 = vmatprep.mubr.f32.mxu0 %v17079_v5 }
 0x190   :  { %10581 = vmatmul.mubr.msk.f32.gmra.mrb[84].mxu1 %vm54_vm0, %v13731_v39 }
 0x191   :  { %10641 = vmatmul.mubr.msk.f32.gmra.mrb[72].mxu0 %vm54_vm0, %v13532_v23  ;;  %2628 = vmatprep.mubr.f32.mxu1 %v17079_v5 }
 0x192   :  { %3548 = vmatprep.mubr.f32.mxu0 %v17079_v5 }
 0x194   :  { %10582 = vmatmul.mubr.msk.f32.gmra.mrb[86].mxu1 %vm54_vm0, %v13763_v8 }
 0x195   :  { %10642 = vmatmul.mubr.msk.f32.gmra.mrb[74].mxu0 %vm54_vm0, %v13555_v35  ;;  %2634 = vmatprep.mubr.f32.mxu1 %v17079_v5 }
 0x196   :  { %3554 = vmatprep.mubr.f32.mxu0 %v17079_v5 }
 0x198   :  { %v2030_v63 = vpop.f32.mrb[30].mxu0  ;;  %10583 = vmatmul.mubr.msk.f32.gmra.mrb[88].mxu1 %vm54_vm0, %v13783_v10 }
 0x199   :  { %v2161_v3 = vadd.f32 %v13919_v41, %v2030_v63  ;;  %v2032_v16 = vpop.f32.mrb[31].mxu0  ;;  %10643 = vmatmul.mubr.msk.f32.gmra.mrb[76].mxu0 %vm54_vm0, %v13578_v60  ;;  %2767 = vmatprep.mubr.f32.mxu1 %v17079_v5 }
 0x19a   :  { %v2162_v29 = vadd.f32 %v13924_v44, %v2032_v16  ;;  %3560 = vmatprep.mubr.f32.mxu0 %v17079_v5 }
 0x19b   :  { %v2191_v42 = vmax.f32 %v2161_v3, 0.0 }
 0x19c   :  { %v2192_v15 = vmax.f32 %v2162_v29, 0.0  ;;  %v2036_v23 = vpop.f32.mrb[32].mxu0  ;;  %10586 = vmatmul.mubr.msk.f32.vlgmr.msra.gmra.mrb[60].mxu1 %vm54_vm0, %v13599_v62 }
 0x19d   :  { %2221 = vst [vmem:[#allocation2 + $0x1e0] sm:$0xff] %v2191_v42  ;;  %v2163_v35 = vadd.f32 %v13919_v41, %v2036_v23  ;;  %v2038_v26 = vpop.f32.mrb[33].mxu0  ;;  %10644 = vmatmul.mubr.msk.f32.gmra.mrb[78].mxu0 %vm54_vm0, %v13608_v34  ;;  %2773 = vmatprep.mubr.f32.mxu1 %v17079_v5 }
 0x19e   :  { %2222 = vst.msk [vmem:[#allocation2 + $0x1e8] sm:$0xff] %vm743_vm1, %v2192_v15  ;;  %v2164_v60 = vadd.f32 %v13924_v44, %v2038_v26  ;;  %3566 = vmatprep.mubr.f32.mxu0 %v17079_v5  ;;  %3798 = vmatpush1.msra.mxu1 %v10650_v27 }
 0x19f   :  { %v2193_v32 = vmax.f32 %v2163_v35, 0.0  ;;  %3964 = vmatprep.subr.mxu1 %v3745_v33 }
 0x1a0   :  { %v2194_v50 = vmax.f32 %v2164_v60, 0.0  ;;  %v2042_v62 = vpop.f32.mrb[34].mxu0  ;;  %10587 = vmatmul.mubr.msk.f32.gmra.mrb[62].mxu1 %vm54_vm0, %v13630_v1  ;;  %v13957_v1 = vld [vmem:[%s17065_s0 + $0x278] sm:$0xff] }
 0x1a1   :  { %2223 = vst [vmem:[#allocation2 + $0x1f0] sm:$0xff] %v2193_v32  ;;  %v13946_v20 = vadd.f32 %v13919_v41, %v2042_v62  ;;  %v2044_v34 = vpop.f32.mrb[35].mxu0  ;;  %10645 = vmatmul.mubr.msk.f32.gmra.mrb[80].mxu0 %vm54_vm0, %v13639_v52  ;;  %2779 = vmatprep.mubr.f32.mxu1 %v17079_v5 }
 0x1a2   :  { %2224 = vst.msk [vmem:[#allocation2 + $0x1f8] sm:$0xff] %vm743_vm1, %v2194_v50  ;;  %v2166_v28 = vadd.f32 %v13924_v44, %v2044_v34  ;;  %3572 = vmatprep.mubr.f32.mxu0 %v17079_v5  ;;  %v5991_v30 = vpop.permute.xlu0 %5990 }
 0x1a3   :  { %v2195_v37 = vmax.f32 %v13946_v20, 0.0  ;;  %v13994_v47 = vmax.f32 %v13582_v18, %v5991_v30 }
 0x1a4   :  { %v2196_v40 = vmax.f32 %v2166_v28, 0.0  ;;  %v2048_v7 = vpop.f32.mrb[36].mxu0  ;;  %10588 = vmatmul.mubr.msk.f32.gmra.mrb[64].mxu1 %vm54_vm0, %v13664_v46  ;;  %v13976_v46 = vld [vmem:[%s17065_s0 + $0x280] sm:$0xff] }
 0x1a5   :  { %2225 = vst [vmem:[#allocation2 + $0x200] sm:$0xff] %v2195_v37  ;;  %v13965_v52 = vadd.f32 %v13919_v41, %v2048_v7  ;;  %v2050_v9 = vpop.f32.mrb[37].mxu0  ;;  %10646 = vmatmul.mubr.msk.f32.gmra.mrb[82].mxu0 %vm54_vm0, %v13957_v1  ;;  %2785 = vmatprep.mubr.f32.mxu1 %v17079_v5  ;;  %17124 = vst [vmem:[#allocation7_spill] sm:$0xff] %v13994_v47 }
 0x1a6   :  { %2226 = vst.msk [vmem:[#allocation2 + $0x208] sm:$0xff] %vm743_vm1, %v2196_v40  ;;  %v2168_v11 = vadd.f32 %v13924_v44, %v2050_v9  ;;  %3578 = vmatprep.mubr.f32.mxu0 %v17079_v5  ;;  %v13978_v19 = vpop.permute.xlu0 %6006 }
 0x1a7   :  { %17123 = vst [vmem:[#allocation6_spill] sm:$0xff] %v13978_v19  ;;  %v2197_v22 = vmax.f32 %v13965_v52, 0.0 }
 0x1a8   :  { %v2198_v25 = vmax.f32 %v2168_v11, 0.0  ;;  %v2054_v51 = vpop.f32.mrb[38].mxu0  ;;  %10589 = vmatmul.mubr.msk.f32.gmra.mrb[66].mxu1 %vm54_vm0, %v13696_v21  ;;  %v14000_v21 = vld [vmem:[%s17065_s0 + $0x288] sm:$0xff] }
 0x1a9   :  { %2227 = vst [vmem:[#allocation2 + $0x210] sm:$0xff] %v2197_v22  ;;  %v13986_v14 = vadd.f32 %v13919_v41, %v2054_v51  ;;  %v2056_v53 = vpop.f32.mrb[39].mxu0  ;;  %10647 = vmatmul.mubr.msk.f32.gmra.mrb[84].mxu0 %vm54_vm0, %v13976_v46  ;;  %2791 = vmatprep.mubr.f32.mxu1 %v17079_v5 }
 0x1aa   :  { %2228 = vst.msk [vmem:[#allocation2 + $0x218] sm:$0xff] %vm743_vm1, %v2198_v25  ;;  %v2170_v45 = vadd.f32 %v13924_v44, %v2056_v53  ;;  %3584 = vmatprep.mubr.f32.mxu0 %v17079_v5  ;;  %v5993_v57 = vpop.permute.xlu0 %5992  ;;  %v14069_v25 = vld [vmem:[%s17066_s1 + $0x28] sm:$0xff] }
 0x1ab   :  { %v6027_v61 = vpop.permute.xlu1 %6026  ;;  %v14035_v32 = vmax.f32 %v13613_v36, %v5993_v57  ;;  %v14052_v36 = vld [vmem:[%s17066_s1] sm:$0xff] }
 0x1ac   :  { %v2200_v27 = vmax.f32 %v2170_v45, 0.0  ;;  %v6038_v33 = vmax.f32 %v13994_v47, %v6027_v61  ;;  %v2060_v38 = vpop.f32.mrb[40].mxu0  ;;  %10590 = vmatmul.mubr.msk.f32.gmra.mrb[68].mxu1 %vm54_vm0, %v13731_v39  ;;  %v14019_v39 = vld [vmem:[%s17065_s0 + $0x290] sm:$0xff] }
 0x1ad   :  { %v14007_v18 = vadd.f32 %v13919_v41, %v2060_v38  ;;  %v2062_v63 = vpop.f32.mrb[41].mxu0  ;;  %10648 = vmatmul.mubr.msk.f32.gmra.mrb[86].mxu0 %vm54_vm0, %v14000_v21  ;;  %2797 = vmatprep.mubr.f32.mxu1 %v17079_v5  ;;  %17126 = vst [vmem:[#allocation9_spill] sm:$0xff] %v14035_v32 }
 0x1ae   :  { %2230 = vst.msk [vmem:[#allocation2 + $0x228] sm:$0xff] %vm743_vm1, %v2200_v27  ;;  %v2172_v3 = vadd.f32 %v13924_v44, %v2062_v63  ;;  %3590 = vmatprep.mubr.f32.mxu0 %v17079_v5  ;;  %6054 = vrot.lane.b32.xlu0 %v6038_v33, %s12553_s30  ;;  %v5995_v16 = vpop.permute.xlu0 %5994 }
 0x1af   :  { %v14022_v42 = vpop.permute.xlu1 %6008  ;;  %v14060_v11 = vmax.f32 %v13646_v58, %v5995_v16  ;;  %v14078_v58 = vld [vmem:[%s17065_s0 + $0x2f8] sm:$0xff] }
 0x1b0   :  { %17125 = vst [vmem:[#allocation8_spill] sm:$0xff] %v14022_v42  ;;  %v2202_v15 = vmax.f32 %v2172_v3, 0.0  ;;  %v2066_v23 = vpop.f32.mrb[42].mxu0  ;;  %10591 = vmatmul.mubr.msk.f32.gmra.mrb[70].mxu1 %vm54_vm0, %v13763_v8  ;;  %v14041_v8 = vld [vmem:[%s17065_s0 + $0x2f0] sm:$0xff] }
 0x1b1   :  { %v14027_v35 = vadd.f32 %v13919_v41, %v2066_v23  ;;  %v2068_v26 = vpop.f32.mrb[43].mxu0  ;;  %10649 = vmatmul.mubr.msk.f32.gmra.mrb[88].mxu0 %vm54_vm0, %v14019_v39  ;;  %2803 = vmatprep.mubr.f32.mxu1 %v17079_v5  ;;  %17128 = vst [vmem:[#allocation11_spill] sm:$0xff] %v14060_v11  ;;  %v14107_v23 = vld [vmem:[%s17065_s0 + $0x300] sm:$0xff] }
 0x1b2   :  { %2232 = vst.msk [vmem:[#allocation2 + $0x238] sm:$0xff] %vm743_vm1, %v2202_v15  ;;  %v2174_v60 = vadd.f32 %v13924_v44, %v2068_v26  ;;  %4600 = vmatprep.mubr.f32.mxu0 %v17079_v5  ;;  %v14043_v50 = vpop.permute.xlu0 %6010 }
 0x1b3   :  { %17127 = vst [vmem:[#allocation10_spill] sm:$0xff] %v14043_v50  ;;  %v2203_v62 = vmax.f32 %v14027_v35, 0.0  ;;  %v6029_v34 = vpop.permute.xlu1 %6028 }
 0x1b4   :  { %v2204_v28 = vmax.f32 %v2174_v60, 0.0  ;;  %v6039_v30 = vmax.f32 %v14035_v32, %v6029_v34  ;;  %v2072_v40 = vpop.f32.mrb[44].mxu0  ;;  %10592 = vmatmul.mubr.msk.f32.gmra.mrb[72].mxu1 %vm54_vm0, %v13783_v10  ;;  %v1410_v10 = vld [vmem:[%s17067_s2] sm:$0x3] }
 0x1b5   :  { %v14055_v7 = vadd.f32 %v13919_v41, %v2072_v40  ;;  %v2074_v9 = vpop.f32.mrb[45].mxu0  ;;  %10701 = vmatmul.mubr.msk.f32.vlgmr.msra.gmra.mrb[90].mxu0 %vm54_vm0, %v14041_v8  ;;  %2809 = vmatprep.mubr.f32.mxu1 %v17079_v5  ;;  %v14086_v38 = vrot.slane %v1410_v10, %v13226_v0  ;;  %v14096_v16 = vrot.slane %v1410_v10, %v13233_v4 }
 0x1b6   :  { %2234 = vst.msk [vmem:[#allocation2 + $0x248] sm:$0xff] %vm743_vm1, %v2204_v28  ;;  %v2176_v51 = vadd.f32 %v13924_v44, %v2074_v9  ;;  %4606 = vmatprep.mubr.f32.mxu0 %v17079_v5  ;;  %6056 = vrot.lane.b32.xlu0 %v6039_v30, %s12553_s30  ;;  %v6031_v53 = vpop.permute.xlu0 %6030 }
 0x1b7   :  { %v2205_v45 = vmax.f32 %v14055_v7, 0.0  ;;  %v5997_v57 = vpop.permute.xlu1 %5996  ;;  %v6040_v61 = vmax.f32 %v14060_v11, %v6031_v53  ;;  %4704 = vmatpush1.msra.mxu0 %v14052_v36  ;;  %v2654_v7 = vld [vmem:[%s17065_s0 + $0x210] sm:$0xff] }
 0x1b8   :  { %v2206_v27 = vmax.f32 %v2176_v51, 0.0  ;;  %v2078_v33 = vpop.f32.mrb[46].mxu0  ;;  %10593 = vmatmul.mubr.msk.f32.gmra.mrb[74].mxu1 %vm54_vm0, %v13672_v13  ;;  %4920 = vmatprep.subr.mxu0 %v14069_v25  ;;  %v14100_v13 = vmax.f32 %v13750_v6, %v5997_v57 }
 0x1b9   :  { %v14090_v63 = vadd.f32 %v13919_v41, %v2078_v33  ;;  %v2080_v3 = vpop.f32.mrb[47].mxu0  ;;  %10702 = vmatmul.mubr.msk.f32.gmra.mrb[92].mxu0 %vm54_vm0, %v14078_v58  ;;  %2815 = vmatprep.mubr.f32.mxu1 %v17079_v5 }
 0x1ba   :  { %2236 = vst.msk [vmem:[#allocation2 + $0x258] sm:$0xff] %vm743_vm1, %v2206_v27  ;;  %17129 = vst [vmem:[#allocation12_spill] sm:$0xff] %v14100_v13  ;;  %v2178_v15 = vadd.f32 %v13924_v44, %v2080_v3  ;;  %4612 = vmatprep.mubr.f32.mxu0 %v17079_v5  ;;  %6058 = vrot.lane.b32.xlu0 %v6040_v61, %s12553_s30 }
 0x1bb   :  { %v1291_v60 = vpop.f32.mrb[30].mxu1  ;;  %v6033_v34 = vpop.permute.xlu1 %6032 }
 0x1bc   :  { %v2208_v28 = vmax.f32 %v2178_v15, 0.0  ;;  %v14112_v30 = vadd.f32 %v14086_v38, %v1291_v60  ;;  %v6041_v6 = vmax.f32 %v14100_v13, %v6033_v34  ;;  %v2084_v40 = vpop.f32.mrb[48].mxu0  ;;  %v1293_v9 = vpop.f32.mrb[31].mxu1  ;;  %10594 = vmatmul.mubr.msk.f32.gmra.mrb[76].mxu1 %vm54_vm0, %v13704_v2  ;;  %v14132_v2 = vld [vmem:[%s17065_s0 + $0x308] sm:$0xff] }
 0x1bd   :  { %v14118_v10 = vadd.f32 %v13919_v41, %v2084_v40  ;;  %v1423_v51 = vadd.f32 %v14096_v16, %v1293_v9  ;;  %v2086_v53 = vpop.f32.mrb[49].mxu0  ;;  %10703 = vmatmul.mubr.msk.f32.gmra.mrb[94].mxu0 %vm54_vm0, %v14107_v23  ;;  %2821 = vmatprep.mubr.f32.mxu1 %v17079_v5 }
 0x1be   :  { %2238 = vst.msk [vmem:[#allocation2 + $0x268] sm:$0xff] %vm743_vm1, %v2208_v28  ;;  %v1452_v57 = vmax.f32 %v14112_v30, 0.0  ;;  %v2180_v61 = vadd.f32 %v13924_v44, %v2086_v53  ;;  %6060 = vrot.lane.b32.xlu1 %v6041_v6, %s12553_s30  ;;  %4618 = vmatprep.mubr.f32.mxu0 %v17079_v5 }
 0x1bf   :  { %v1453_v33 = vmax.f32 %v1423_v51, 0.0  ;;  %v1297_v3 = vpop.f32.mrb[32].mxu1 }
 0x1c0   :  { %v2210_v15 = vmax.f32 %v2180_v61, 0.0  ;;  %v14136_v60 = vadd.f32 %v14086_v38, %v1297_v3  ;;  %v2090_v34 = vpop.f32.mrb[50].mxu0  ;;  %v1299_v28 = vpop.f32.mrb[33].mxu1  ;;  %10595 = vmatmul.mubr.msk.f32.gmra.mrb[78].mxu1 %vm54_vm0, %v13739_v54  ;;  %v14153_v54 = vld [vmem:[%s17065_s0 + $0x310] sm:$0xff] }
 0x1c1   :  { %1483 = vst.msk [vmem:[#allocation2 + $0xf8] sm:$0xff] %vm743_vm1, %v1453_v33  ;;  %v2181_v6 = vadd.f32 %v13919_v41, %v2090_v34  ;;  %v1425_v40 = vadd.f32 %v14096_v16, %v1299_v28  ;;  %v2092_v9 = vpop.f32.mrb[51].mxu0  ;;  %10704 = vmatmul.mubr.msk.f32.gmra.mrb[96].mxu0 %vm54_vm0, %v14132_v2  ;;  %2827 = vmatprep.mubr.f32.mxu1 %v17079_v5 }
 0x1c2   :  { %2240 = vst.msk [vmem:[#allocation2 + $0x278] sm:$0xff] %vm743_vm1, %v2210_v15  ;;  %v17075_v51 = vmax.f32 %v14136_v60, 0.0  ;;  %v2182_v53 = vadd.f32 %v13924_v44, %v2092_v9  ;;  %4624 = vmatprep.mubr.f32.mxu0 %v17079_v5  ;;  %v7193_v34 = vmax.f32 %v2195_v37, %v2203_v62 }
 0x1c3   :  { %v2211_v61 = vmax.f32 %v2181_v6, 0.0  ;;  %v1455_v33 = vmax.f32 %v1425_v40, 0.0  ;;  %v1303_v3 = vpop.f32.mrb[34].mxu1 }
 0x1c4   :  { %v2212_v15 = vmax.f32 %v2182_v53, 0.0  ;;  %v14160_v28 = vadd.f32 %v14086_v38, %v1303_v3  ;;  %v2096_v9 = vpop.f32.mrb[52].mxu0  ;;  %v1305_v29 = vpop.f32.mrb[35].mxu1  ;;  %10596 = vmatmul.mubr.msk.f32.gmra.mrb[80].mxu1 %vm54_vm0, %v13770_v12  ;;  %v14167_v6 = vmax.f32 %v13708_v48, %v17075_v51  ;;  %v2652_v12 = vld [vmem:[%s17065_s0 + $0x200] sm:$0xff] }
 0x1c5   :  { %2241 = vst [vmem:[#allocation2 + $0x280] sm:$0xff] %v2211_v61  ;;  %1485 = vst.msk [vmem:[#allocation2 + $0x108] sm:$0xff] %vm743_vm1, %v1455_v33  ;;  %v2183_v20 = vadd.f32 %v13919_v41, %v2096_v9  ;;  %v1427_v37 = vadd.f32 %v14096_v16, %v1305_v29  ;;  %v2098_v35 = vpop.f32.mrb[53].mxu0  ;;  %10705 = vmatmul.mubr.msk.f32.gmra.mrb[98].mxu0 %vm54_vm0, %v14153_v54  ;;  %2833 = vmatprep.mubr.f32.mxu1 %v17079_v5  ;;  %v14187_v29 = vld [vmem:[%s17065_s0 + $0x318] sm:$0xff]  ;;  %v6257_v3 = vld [vmem:[#allocation2 + $0xe0] sm:$0xff] }
 0x1c6   :  { %v14178_v62 = vmax.f32 %v7193_v34, %v2211_v61  ;;  %2242 = vst.msk [vmem:[#allocation2 + $0x288] sm:$0xff] %vm743_vm1, %v2212_v15  ;;  %v17074_v48 = vmax.f32 %v14160_v28, 0.0  ;;  %v2184_v40 = vadd.f32 %v13924_v44, %v2098_v35  ;;  %4630 = vmatprep.mubr.f32.mxu0 %v17079_v5  ;;  %6289 = vrot.lane.b32.xlu0 %v14167_v6, %s12552_s25 }
 0x1c7   :  { %v2213_v53 = vmax.f32 %v2183_v20, 0.0  ;;  %v1457_v33 = vmax.f32 %v1427_v37, 0.0  ;;  %v1309_v61 = vpop.f32.mrb[36].mxu1 }
 0x1c8   :  { %7213 = vrot.lane.b32.xlu1 %v14178_v62, %s12552_s25  ;;  %v2214_v34 = vmax.f32 %v2184_v40, 0.0  ;;  %v14194_v15 = vadd.f32 %v14086_v38, %v1309_v61  ;;  %v2102_v9 = vpop.f32.mrb[54].mxu0  ;;  %v1311_v35 = vpop.f32.mrb[37].mxu1  ;;  %10597 = vmatmul.mubr.msk.f32.gmra.mrb[82].mxu1 %vm54_vm0, %v2652_v12  ;;  %v14200_v27 = vmax.f32 %v13743_v17, %v17074_v48  ;;  %v2653_v12 = vld [vmem:[%s17065_s0 + $0x208] sm:$0xff]  ;;  %v14220_v61 = vld [vmem:[%s17065_s0 + $0x320] sm:$0xff] }
 0x1c9   :  { %2243 = vst [vmem:[#allocation2 + $0x290] sm:$0xff] %v2213_v53  ;;  %1487 = vst.msk [vmem:[#allocation2 + $0x118] sm:$0xff] %vm743_vm1, %v1457_v33  ;;  %v14204_v20 = vadd.f32 %v13919_v41, %v2102_v9  ;;  %v1429_v37 = vadd.f32 %v14096_v16, %v1311_v35  ;;  %v2104_v40 = vpop.f32.mrb[55].mxu0  ;;  %10706 = vmatmul.mubr.msk.f32.gmra.mrb[100].mxu0 %vm54_vm0, %v14187_v29  ;;  %2839 = vmatprep.mubr.f32.mxu1 %v17079_v5  ;;  %v6254_v35 = vld [vmem:[#allocation2 + $0xc8] sm:$0xff] }
 0x1ca   :  { %2244 = vst.msk [vmem:[#allocation2 + $0x298] sm:$0xff] %vm743_vm1, %v2214_v34  ;;  %v17077_v17 = vmax.f32 %v14194_v15, 0.0  ;;  %v2186_v33 = vadd.f32 %v13924_v44, %v2104_v40  ;;  %4636 = vmatprep.mubr.f32.mxu0 %v17079_v5  ;;  %6305 = vrot.lane.b32.xlu0 %v14167_v6, %s12553_s30  ;;  %v6273_v9 = vmax.f32 %v732_v56, %v6257_v3  ;;  %v6256_v56 = vld [vmem:[#allocation2 + $0xd8] sm:$0xff] }
 0x1cb   :  { %v17078_v34 = vmax.f32 %v14204_v20, 0.0  ;;  %v1459_v48 = vmax.f32 %v1429_v37, 0.0  ;;  %v1315_v59 = vpop.f32.mrb[38].mxu1  ;;  %v7195_v40 = vmax.f32 %v2197_v22, %v2205_v45 }
 0x1cc   :  { %6291 = vrot.lane.b32.xlu1 %v14200_v27, %s12552_s25  ;;  %v2216_v26 = vmax.f32 %v2186_v33, 0.0  ;;  %v14234_v51 = vadd.f32 %v14086_v38, %v1315_v59  ;;  %v2108_v24 = vpop.f32.mrb[56].mxu0  ;;  %v1317_v31 = vpop.f32.mrb[39].mxu1  ;;  %10598 = vmatmul.mubr.msk.f32.gmra.mrb[84].mxu1 %vm54_vm0, %v2653_v12  ;;  %v14239_v3 = vmax.f32 %v6273_v9, %v17077_v17  ;;  %v14256_v37 = vld [vmem:[#allocation2 + $0x108] sm:$0xff] }
 0x1cd   :  { %2245 = vst [vmem:[#allocation2 + $0x2a0] sm:$0xff] %v17078_v34  ;;  %1489 = vst.msk [vmem:[#allocation2 + $0x128] sm:$0xff] %vm743_vm1, %v1459_v48  ;;  %v14245_v52 = vadd.f32 %v13919_v41, %v2108_v24  ;;  %v1431_v22 = vadd.f32 %v14096_v16, %v1317_v31  ;;  %v2110_v59 = vpop.f32.mrb[57].mxu0  ;;  %10707 = vmatmul.mubr.msk.f32.gmra.mrb[102].mxu0 %vm54_vm0, %v14220_v61  ;;  %2845 = vmatprep.mubr.f32.mxu1 %v17079_v5  ;;  %v14266_v33 = vld [vmem:[%s17065_s0 + $0x328] sm:$0xff] }
 0x1ce   :  { %v14254_v45 = vmax.f32 %v7195_v40, %v2213_v53  ;;  %v6270_v48 = vmax.f32 %v13641_v55, %v6254_v35  ;;  %2246 = vst.msk [vmem:[#allocation2 + $0x2a8] sm:$0xff] %vm743_vm1, %v2216_v26  ;;  %v17082_v24 = vmax.f32 %v14234_v51, 0.0  ;;  %v2188_v12 = vadd.f32 %v13924_v44, %v2110_v59  ;;  %4642 = vmatprep.mubr.f32.mxu0 %v17079_v5  ;;  %v7178_v31 = vld [vmem:[#allocation2 + $0x248] sm:$0xff] }
 0x1cf   :  { %7229 = vrot.lane.b32.xlu0 %v14178_v62, %s12553_s30  ;;  %v17130_v55 = vmax.f32 %v13633_v43, 0.0  ;;  %v17081_v26 = vmax.f32 %v14245_v52, 0.0  ;;  %v1461_v9 = vmax.f32 %v1431_v22, 0.0  ;;  %v1321_v35 = vpop.f32.mrb[40].mxu1  ;;  %v6272_v40 = vmax.f32 %v13679_v49, %v6256_v56 }
 0x1d0   :  { %7215 = vrot.lane.b32.xlu1 %v14254_v45, %s12552_s25  ;;  %v2218_v59 = vmax.f32 %v2188_v12, 0.0  ;;  %v1432_v17 = vadd.f32 %v14086_v38, %v1321_v35  ;;  %v2114_v34 = vpop.f32.mrb[58].mxu0  ;;  %v1323_v5 = vpop.f32.mrb[41].mxu1  ;;  %10599 = vmatmul.mubr.msk.f32.gmra.mrb[86].mxu1 %vm54_vm0, %v2654_v7  ;;  %v6278_v43 = vmax.f32 %v6270_v48, %v14256_v37  ;;  %v14281_v30 = vld [vmem:[#allocation2 + $0x118] sm:$0xff]  ;;  %v17132_v7 = vmov 0.0   ;;  %v7186_v35 = vld [vmem:[#allocation2 + $0x288] sm:$0xff] }
 0x1d1   :  { %v6275_v53 = vmax.f32 %v17130_v55, %v1452_v57  ;;  %v7180_v57 = vld [vmem:[#allocation2 + $0x258] sm:$0xff]  ;;  %2247 = vst [vmem:[#allocation2 + $0x2b0] sm:$0xff] %v17081_v26  ;;  %1491 = vst.msk [vmem:[#allocation2 + $0x138] sm:$0xff] %vm743_vm1, %v1461_v9  ;;  %v2189_v49 = vadd.f32 %v13919_v41, %v2114_v34  ;;  %v1433_v56 = vadd.f32 %v14096_v16, %v1323_v5  ;;  %v2116_v12 = vpop.f32.mrb[59].mxu0  ;;  %10708 = vmatmul.mubr.msk.f32.gmra.mrb[104].mxu0 %vm54_vm0, %v14266_v33  ;;  %v14307_v34 = vld [vmem:[%s17065_s0 + $0x330] sm:$0xff] }
 0x1d2   :  { %2851 = vmatprep.mubr.f32.mxu1 %v17132_v7  ;;  %v2655_v48 = vld [vmem:[%s17065_s0 + $0x218] sm:$0xff]  ;;  %v6280_v55 = vmax.f32 %v6272_v40, %v14281_v30  ;;  %2248 = vst.msk [vmem:[#allocation2 + $0x2b8] sm:$0xff] %vm743_vm1, %v2218_v59  ;;  %v1462_v41 = vmax.f32 %v1432_v17, 0.0  ;;  %v2190_v5 = vadd.f32 %v13924_v44, %v2116_v12  ;;  %4648 = vmatprep.mubr.f32.mxu0 %v17132_v7 }
 0x1d3   :  { %v14285_v22 = vmax.f32 %v6275_v53, %v17082_v24  ;;  %v14299_v53 = vld [vmem:[#allocation2 + $0x208] sm:$0xff]  ;;  %6325 = vrot.lane.b32.xlu0 %v6278_v43, %s12553_s30  ;;  %v14311_v40 = vld [vmem:[#allocation2 + $0x218] sm:$0xff]  ;;  %v2219_v24 = vmax.f32 %v2189_v49, 0.0  ;;  %v1463_v13 = vmax.f32 %v1433_v56, 0.0  ;;  %v1327_v59 = vpop.f32.mrb[42].mxu1  ;;  %v17133_v43 = vmax.f32 %v14136_v60, 0.0 }
 0x1d4   :  { %v7194_v9 = vmax.f32 %v14299_v53, %v7178_v31  ;;  %v7188_v26 = vld [vmem:[#allocation2 + $0x298] sm:$0xff]  ;;  %6327 = vrot.lane.b32.xlu1 %v6280_v55, %s12553_s30  ;;  %v7196_v44 = vmax.f32 %v14311_v40, %v7180_v57  ;;  %v2220_v17 = vmax.f32 %v2190_v5, 0.0  ;;  %v1434_v12 = vadd.f32 %v14086_v38, %v1327_v59  ;;  %v1329_v11 = vpop.f32.mrb[43].mxu1  ;;  %10600 = vmatmul.mubr.msk.f32.gmra.mrb[88].mxu1 %vm54_vm0, %v2655_v48 }
 0x1d5   :  { %17131 = vst [vmem:[#allocation13_spill] sm:$0xff] %v14285_v22  ;;  %v14319_v31 = vmax.f32 %v17133_v43, %v1462_v41  ;;  %2249 = vst [vmem:[#allocation2 + $0x2c0] sm:$0xff] %v2219_v24  ;;  %v1435_v49 = vadd.f32 %v14096_v16, %v1329_v11  ;;  %10709 = vmatmul.mubr.msk.f32.gmra.mrb[106].mxu0 %vm54_vm0, %v14307_v34  ;;  %3861 = vmatprep.mubr.f32.mxu1 %v17132_v7  ;;  %v14331_v60 = vld [vmem:[%s17065_s0 + $0x338] sm:$0xff]  ;;  %v17134_v24 = vmax.f32 %v14090_v63, 0.0 }
 0x1d6   :  { %v7202_v50 = vmax.f32 %v7194_v9, %v7186_v35  ;;  %1493 = vst.msk [vmem:[#allocation2 + $0x148] sm:$0xff] %vm743_vm1, %v1463_v13  ;;  %v7204_v57 = vmax.f32 %v7196_v44, %v7188_v26  ;;  %2250 = vst.msk [vmem:[#allocation2 + $0x2c8] sm:$0xff] %vm743_vm1, %v2220_v17  ;;  %v1464_v56 = vmax.f32 %v1434_v12, 0.0  ;;  %4654 = vmatprep.mubr.f32.mxu0 %v17132_v7  ;;  %v17135_v26 = vmax.f32 %v13986_v14, 0.0 }
 0x1d7   :  { %v1465_v13 = vmax.f32 %v1435_v49, 0.0  ;;  %v1333_v11 = vpop.f32.mrb[44].mxu1  ;;  %v17136_v41 = vmax.f32 %v14160_v28, 0.0  ;;  %v17137_v63 = vmax.f32 %v14204_v20, 0.0 }
 0x1d8   :  { %7249 = vrot.lane.b32.xlu0 %v7202_v50, %s12553_s30  ;;  %7251 = vrot.lane.b32.xlu1 %v7204_v57, %s12553_s30  ;;  %v7197_v48 = vmax.f32 %v17135_v26, %v17134_v24  ;;  %v1436_v55 = vadd.f32 %v14086_v38, %v1333_v11  ;;  %v1335_v35 = vpop.f32.mrb[45].mxu1  ;;  %v17142_v26 = vmax.f32 %v14234_v51, 0.0 }
 0x1d9   :  { %10652 = vmatmul.mubr.msk.f32.vlgmr.msra.gmra.mrb[90].mxu1 %vm54_vm0, %v13957_v1  ;;  %v14344_v5 = vmax.f32 %v17136_v41, %v1464_v56  ;;  %1495 = vst.msk [vmem:[#allocation2 + $0x158] sm:$0xff] %vm743_vm1, %v1465_v13  ;;  %v1437_v50 = vadd.f32 %v14096_v16, %v1335_v35  ;;  %10710 = vmatmul.mubr.msk.f32.gmra.mrb[108].mxu0 %vm54_vm0, %v14331_v60  ;;  %v14360_v1 = vld [vmem:[%s17065_s0 + $0x340] sm:$0xff]  ;;  %v17141_v56 = vmax.f32 %v14007_v18, 0.0  ;;  %v7192_v32 = vld [vmem:[#allocation2 + $0x2b8] sm:$0xff] }
 0x1da   :  { %3867 = vmatprep.mubr.f32.mxu1 %v17132_v7  ;;  %v14353_v9 = vmax.f32 %v7197_v48, %v17137_v63  ;;  %v1466_v59 = vmax.f32 %v1436_v55, 0.0  ;;  %3965 = vmatpush1.msra.mxu1 %v14052_v36  ;;  %v17139_v36 = vmax.f32 %v14194_v15, 0.0 }
 0x1db   :  { %4660 = vmatprep.mubr.f32.mxu0 %v17132_v7  ;;  %v1467_v28 = vmax.f32 %v1437_v50, 0.0  ;;  %v1339_v44 = vpop.f32.mrb[46].mxu1  ;;  %4181 = vmatprep.subr.mxu1 %v14069_v25  ;;  %v17140_v25 = vmax.f32 %v14118_v10, 0.0  ;;  %v17143_v10 = vmax.f32 %v14245_v52, 0.0 }
 0x1dc   :  { %17138 = vst [vmem:[#allocation14_spill] sm:$0xff] %v14353_v9  ;;  %6307 = vrot.lane.b32.xlu0 %v14200_v27, %s12553_s30  ;;  %7217 = vrot.lane.b32.xlu1 %v14353_v9, %s12552_s25  ;;  %v1438_v20 = vadd.f32 %v14086_v38, %v1339_v44  ;;  %v1341_v17 = vpop.f32.mrb[47].mxu1  ;;  %v14371_v12 = vmax.f32 %v17139_v36, %v1466_v59  ;;  %v14440_v44 = vld [vmem:[%s17065_s0 + $0x298] sm:$0xff] }
 0x1dd   :  { %10653 = vmatmul.mubr.msk.f32.gmra.mrb[92].mxu1 %vm54_vm0, %v13976_v46  ;;  %1497 = vst.msk [vmem:[#allocation2 + $0x168] sm:$0xff] %vm743_vm1, %v1467_v28  ;;  %v1439_v43 = vadd.f32 %v14096_v16, %v1341_v17  ;;  %10711 = vmatmul.mubr.msk.f32.gmra.mrb[110].mxu0 %vm54_vm0, %v14360_v1  ;;  %v14383_v46 = vld [vmem:[%s17065_s0 + $0x348] sm:$0xff]  ;;  %v7199_v13 = vmax.f32 %v17141_v56, %v17140_v25  ;;  %v14471_v56 = vld [vmem:[%s17065_s0 + $0x2a0] sm:$0xff] }
 0x1de   :  { %3873 = vmatprep.mubr.f32.mxu1 %v17132_v7  ;;  %v1468_v49 = vmax.f32 %v1438_v20, 0.0  ;;  %4666 = vmatprep.mubr.f32.mxu0 %v17132_v7 }
 0x1df   :  { %v1469_v15 = vmax.f32 %v1439_v43, 0.0  ;;  %v1345_v57 = vpop.f32.mrb[48].mxu1  ;;  %v14409_v35 = vmax.f32 %v7199_v13, %v17143_v10 }
 0x1e0   :  { %7231 = vrot.lane.b32.xlu0 %v14254_v45, %s12553_s30  ;;  %6295 = vrot.lane.b32.xlu1 %v14285_v22, %s12552_s25  ;;  %v14394_v11 = vadd.f32 %v14086_v38, %v1345_v57  ;;  %v1347_v24 = vpop.f32.mrb[49].mxu1  ;;  %v14400_v48 = vmax.f32 %v17142_v26, %v1468_v49  ;;  %v6260_v49 = vld [vmem:[#allocation2 + $0xf8] sm:$0xff]  ;;  %v14482_v26 = vld [vmem:[#allocation2 + $0x128] sm:$0xff] }
 0x1e1   :  { %10654 = vmatmul.mubr.msk.f32.gmra.mrb[94].mxu1 %vm54_vm0, %v14000_v21  ;;  %1499 = vst.msk [vmem:[#allocation2 + $0x178] sm:$0xff] %vm743_vm1, %v1469_v15  ;;  %v1441_v55 = vadd.f32 %v14096_v16, %v1347_v24  ;;  %10712 = vmatmul.mubr.msk.f32.gmra.mrb[112].mxu0 %vm54_vm0, %v14383_v46  ;;  %17144 = vst [vmem:[#allocation15_spill] sm:$0xff] %v14409_v35  ;;  %v14416_v21 = vld [vmem:[%s17065_s0 + $0x350] sm:$0xff]  ;;  %v6258_v15 = vld [vmem:[#allocation2 + $0xe8] sm:$0xff] }
 0x1e2   :  { %3879 = vmatprep.mubr.f32.mxu1 %v17132_v7  ;;  %v17086_v41 = vmax.f32 %v14394_v11, 0.0  ;;  %4672 = vmatprep.mubr.f32.mxu0 %v17132_v7  ;;  %v14480_v24 = vld [vmem:[#allocation2 + $0x138] sm:$0xff] }
 0x1e3   :  { %v1471_v51 = vmax.f32 %v1441_v55, 0.0  ;;  %v1351_v50 = vpop.f32.mrb[50].mxu1 }
 0x1e4   :  { %6293 = vrot.lane.b32.xlu0 %v14239_v3, %s12552_s25  ;;  %7219 = vrot.lane.b32.xlu1 %v14409_v35, %s12552_s25  ;;  %v14423_v52 = vadd.f32 %v14086_v38, %v1351_v50  ;;  %v1353_v63 = vpop.f32.mrb[51].mxu1  ;;  %v14430_v59 = vmax.f32 %v14319_v31, %v17086_v41  ;;  %v14447_v31 = vld [vmem:[%s17065_s0 + $0x358] sm:$0xff]  ;;  %v7182_v41 = vld [vmem:[#allocation2 + $0x268] sm:$0xff] }
 0x1e5   :  { %10655 = vmatmul.mubr.msk.f32.gmra.mrb[96].mxu1 %vm54_vm0, %v14019_v39  ;;  %1501 = vst.msk [vmem:[#allocation2 + $0x188] sm:$0xff] %vm743_vm1, %v1471_v51  ;;  %v1443_v28 = vadd.f32 %v14096_v16, %v1353_v63  ;;  %10713 = vmatmul.mubr.msk.f32.gmra.mrb[114].mxu0 %vm54_vm0, %v14416_v21  ;;  %v14487_v51 = vld [vmem:[%s17065_s0 + $0x2a8] sm:$0xff]  ;;  %v12499_v50 = vld [vmem:[#allocation2 + $0xb8] sm:$0xff] }
 0x1e6   :  { %3885 = vmatprep.mubr.f32.mxu1 %v17132_v7  ;;  %v17085_v39 = vmax.f32 %v14423_v52, 0.0  ;;  %4678 = vmatprep.mubr.f32.mxu0 %v17132_v7  ;;  %v6276_v63 = vmax.f32 %v12499_v50, %v6260_v49 }
 0x1e7   :  { %v1473_v20 = vmax.f32 %v1443_v28, 0.0  ;;  %v1357_v17 = vpop.f32.mrb[52].mxu1  ;;  %v12500_v28 = vld [vmem:[#allocation2 + $0xa8] sm:$0xff] }
 0x1e8   :  { %6309 = vrot.lane.b32.xlu0 %v14239_v3, %s12553_s30  ;;  %6311 = vrot.lane.b32.xlu1 %v14285_v22, %s12553_s30  ;;  %v14454_v36 = vadd.f32 %v14086_v38, %v1357_v17  ;;  %v1359_v43 = vpop.f32.mrb[53].mxu1  ;;  %v14461_v57 = vmax.f32 %v14344_v5, %v17085_v39  ;;  %v14478_v5 = vld [vmem:[%s17065_s0 + $0x360] sm:$0xff]  ;;  %v7184_v39 = vld [vmem:[#allocation2 + $0x278] sm:$0xff] }
 0x1e9   :  { %10656 = vmatmul.mubr.msk.f32.gmra.mrb[98].mxu1 %vm54_vm0, %v14440_v44  ;;  %1503 = vst.msk [vmem:[#allocation2 + $0x198] sm:$0xff] %vm743_vm1, %v1473_v20  ;;  %v1445_v25 = vadd.f32 %v14096_v16, %v1359_v43  ;;  %10714 = vmatmul.mubr.msk.f32.gmra.mrb[116].mxu0 %vm54_vm0, %v14447_v31  ;;  %v6274_v20 = vmax.f32 %v12500_v28, %v6258_v15  ;;  %v14515_v28 = vld [vmem:[#allocation2 + $0x228] sm:$0xff] }
 0x1ea   :  { %3891 = vmatprep.mubr.f32.mxu1 %v17132_v7  ;;  %v17087_v13 = vmax.f32 %v14454_v36, 0.0  ;;  %4684 = vmatprep.mubr.f32.mxu0 %v17132_v7  ;;  %v7198_v47 = vmax.f32 %v14515_v28, %v7182_v41 }
 0x1eb   :  { %v1475_v55 = vmax.f32 %v1445_v25, 0.0  ;;  %v1363_v10 = vpop.f32.mrb[54].mxu1  ;;  %v14501_v25 = vld [vmem:[%s17065_s0 + $0x2d0] sm:$0xff]  ;;  %v6282_v50 = vmax.f32 %v6274_v20, %v14482_v26 }
 0x1ec   :  { %7233 = vrot.lane.b32.xlu0 %v14353_v9, %s12553_s30  ;;  %7235 = vrot.lane.b32.xlu1 %v14409_v35, %s12553_s30  ;;  %v14494_v17 = vadd.f32 %v14086_v38, %v1363_v10  ;;  %v1365_v43 = vpop.f32.mrb[55].mxu1  ;;  %v14506_v49 = vmax.f32 %v14371_v12, %v17087_v13  ;;  %v6284_v10 = vmax.f32 %v6276_v63, %v14480_v24  ;;  %v6046_v12 = vld [vmem:[%s17069_s4] sm:$0xff]  ;;  %v14525_v13 = vld [vmem:[#allocation2 + $0x238] sm:$0xff]  ;;  %v7190_v63 = vld [vmem:[#allocation2 + $0x2a8] sm:$0xff] }
 0x1ed   :  { %10657 = vmatmul.mubr.msk.f32.gmra.mrb[100].mxu1 %vm54_vm0, %v14471_v56  ;;  %1505 = vst.msk [vmem:[#allocation2 + $0x1a8] sm:$0xff] %vm743_vm1, %v1475_v55  ;;  %v1447_v15 = vadd.f32 %v14096_v16, %v1365_v43  ;;  %10715 = vmatmul.mubr.msk.f32.gmra.mrb[118].mxu0 %vm54_vm0, %v14478_v5  ;;  %v6047_v55 = vld [vmem:[%s17069_s4 + $0x8] sm:$0xff]  ;;  %v7200_v35 = vmax.f32 %v14525_v13, %v7184_v39  ;;  %v14534_v43 = vld [vmem:[%s17066_s1 + $0x20] sm:$0xff]  ;;  %v14554_v39 = vld [vmem:[%s17065_s0 + $0x2b0] sm:$0xff] }
 0x1ee   :  { %3897 = vmatprep.mubr.f32.mxu1 %v17132_v7  ;;  %4767 = vmatprep.mubr.f32.mxu0 %v17132_v7  ;;  %v7206_v9 = vmax.f32 %v7198_v47, %v7190_v63  ;;  %v17146_v47 = vmax.f32 %v14394_v11, 0.0  ;;  %v14587_v11 = vld [vmem:[%s17065_s0 + $0x2e0] sm:$0xff] }
 0x1ef   :  { %v1477_v42 = vmax.f32 %v1447_v15, 0.0  ;;  %v1369_v20 = vpop.f32.mrb[56].mxu1  ;;  %v17145_v15 = vmax.f32 %v14494_v17, 0.0 }
 0x1f0   :  { %6331 = vrot.lane.b32.xlu1 %v6284_v10, %s12553_s30  ;;  %6329 = vrot.lane.b32.xlu0 %v6282_v50, %s12553_s30  ;;  %v1448_v19 = vadd.f32 %v14086_v38, %v1369_v20  ;;  %v1371_v22 = vpop.f32.mrb[57].mxu1  ;;  %v14544_v50 = vpack.c.bf16 %v6047_v55, %v6046_v12  ;;  %v7208_v20 = vmax.f32 %v7200_v35, %v7192_v32 }
 0x1f1   :  { %10658 = vmatmul.mubr.msk.f32.gmra.mrb[102].mxu1 %vm54_vm0, %v14487_v51  ;;  %v14542_v10 = vmax.f32 %v14400_v48, %v17145_v15  ;;  %1507 = vst.msk [vmem:[#allocation2 + $0x1b8] sm:$0xff] %vm743_vm1, %v1477_v42  ;;  %v1449_v41 = vadd.f32 %v14096_v16, %v1371_v22  ;;  %10716 = vmatmul.mubr.msk.f32.vlgmr.msra.gmra.mrb[90].mxu0 %vm54_vm0, %v14501_v25  ;;  %v14560_v42 = vld [vmem:[%s17065_s0 + $0x2d8] sm:$0xff] }
 0x1f2   :  { %3903 = vmatprep.mubr.f32.mxu1 %v17132_v7  ;;  %v1478_v48 = vmax.f32 %v1448_v19, 0.0  ;;  %4773 = vmatprep.mubr.f32.mxu0 %v17132_v7  ;;  %v6564_v19 = vld [vmem:[#allocation2 + $0x158] sm:$0xff] }
 0x1f3   :  { %4921 = vmatpush1.msra.mxu0 %v14534_v43  ;;  %v1479_v22 = vmax.f32 %v1449_v41, 0.0  ;;  %v1375_v12 = vpop.f32.mrb[58].mxu1  ;;  %v14589_v15 = vld [vmem:[#allocation2 + $0x198] sm:$0xff] }
 0x1f4   :  { %7255 = vrot.lane.b32.xlu1 %v7208_v20, %s12553_s30  ;;  %7253 = vrot.lane.b32.xlu0 %v7206_v9, %s12553_s30  ;;  %v1450_v55 = vadd.f32 %v14086_v38, %v1375_v12  ;;  %v1377_v32 = vpop.f32.mrb[59].mxu1  ;;  %v14570_v35 = vmax.f32 %v17146_v47, %v1478_v48  ;;  %v14581_v38 = vld [vmem:[%s17065_s0 + $0x2b8] sm:$0xff]  ;;  %v6580_v20 = vmax.f32 %v14281_v30, %v6564_v19  ;;  %v6874_v48 = vld [vmem:[#allocation2 + $0x1e8] sm:$0xff]  ;;  %v17147_v12 = vmax.f32 %v14423_v52, 0.0  ;;  %v14609_v30 = vld [vmem:[%s17065_s0 + $0x2c0] sm:$0xff] }
 0x1f5   :  { %10659 = vmatmul.mubr.msk.f32.gmra.mrb[104].mxu1 %vm54_vm0, %v14554_v39  ;;  %11668 = vmatprep.subr.bf16.mxu0 %v14544_v50  ;;  %1509 = vst.msk [vmem:[#allocation2 + $0x1c8] sm:$0xff] %vm743_vm1, %v1479_v22  ;;  %v1451_v63 = vadd.f32 %v14096_v16, %v1377_v32  ;;  %v6574_v16 = vld [vmem:[#allocation2 + $0x1a8] sm:$0xff] }
 0x1f6   :  { %10717 = vmatmul.mubr.msk.f32.gmra.mrb[92].mxu0 %vm54_vm0, %v14560_v42  ;;  %3909 = vmatprep.mubr.f32.mxu1 %v17132_v7  ;;  %v1480_v9 = vmax.f32 %v1450_v55, 0.0  ;;  %v6562_v22 = vld [vmem:[#allocation2 + $0x148] sm:$0xff]  ;;  %v6588_v32 = vmax.f32 %v6580_v20, %v14589_v15  ;;  %v6890_v19 = vmax.f32 %v6574_v16, %v6874_v48  ;;  %v6875_v48 = vld [vmem:[#allocation2 + $0x1f0] sm:$0xff] }
 0x1f7   :  { %4779 = vmatprep.mubr.f32.mxu0 %v17132_v7  ;;  %v1481_v41 = vmax.f32 %v1451_v63, 0.0  ;;  %v14616_v52 = vld [vmem:[%s17065_s0 + $0x2e8] sm:$0xff]  ;;  %v6578_v63 = vmax.f32 %v14256_v37, %v6562_v22  ;;  %v6568_v37 = vld [vmem:[#allocation2 + $0x178] sm:$0xff] }
 0x1f8   :  { %6599 = vrot.lane.b32.xlu1 %v14461_v57, %s12552_s25  ;;  %6597 = vrot.lane.b32.xlu0 %v14430_v59, %s12552_s25  ;;  %v14600_v55 = vmax.f32 %v17147_v12, %v1480_v9  ;;  %v14618_v47 = vld [vmem:[#allocation2 + $0x188] sm:$0xff]  ;;  %v17148_v12 = vmax.f32 %v14494_v17, 0.0 }
 0x1f9   :  { %10660 = vmatmul.mubr.msk.f32.gmra.mrb[106].mxu1 %vm54_vm0, %v14581_v38  ;;  %1511 = vst.msk [vmem:[#allocation2 + $0x1d8] sm:$0xff] %vm743_vm1, %v1481_v41  ;;  %v14632_v9 = vld [vmem:[%s17065_s0 + $0x2c8] sm:$0xff]  ;;  %v6898_v41 = vmax.f32 %v6890_v19, %v14515_v28  ;;  %v6586_v20 = vmax.f32 %v6578_v63, %v14618_v47  ;;  %v6584_v28 = vmax.f32 %v14480_v24, %v6568_v37  ;;  %v6873_v19 = vld [vmem:[#allocation2 + $0x1e0] sm:$0xff] }
 0x1fa   :  { %10718 = vmatmul.mubr.msk.f32.gmra.mrb[94].mxu0 %vm54_vm0, %v14587_v11  ;;  %3915 = vmatprep.mubr.f32.mxu1 %v17132_v7  ;;  %v6566_v22 = vld [vmem:[#allocation2 + $0x168] sm:$0xff] }
 0x1fb   :  { %4785 = vmatprep.mubr.f32.mxu0 %v17132_v7  ;;  %v6582_v24 = vmax.f32 %v14482_v26, %v6566_v22  ;;  %v12502_v22 = vld [vmem:[#allocation2 + $0x200] sm:$0xff] }
 0x1fc   :  { %6635 = vrot.lane.b32.xlu1 %v6588_v32, %s12553_s30  ;;  %6613 = vrot.lane.b32.xlu0 %v14430_v59, %s12553_s30  ;;  %v6891_v32 = vmax.f32 %v17148_v12, %v6875_v48 }
 0x1fd   :  { %10661 = vmatmul.mubr.msk.f32.gmra.mrb[108].mxu1 %vm54_vm0, %v14609_v30  ;;  %v6590_v63 = vmax.f32 %v6582_v24, %v6574_v16 }
 0x1fe   :  { %10719 = vmatmul.mubr.msk.f32.gmra.mrb[96].mxu0 %vm54_vm0, %v14616_v52  ;;  %3921 = vmatprep.mubr.f32.mxu1 %v17132_v7 }
 0x1ff   :  { %4791 = vmatprep.mubr.f32.mxu0 %v17132_v7 }
 0x200   :  { %6945 = vrot.lane.b32.xlu1 %v6898_v41, %s12553_s30  ;;  %6633 = vrot.lane.b32.xlu0 %v6586_v20, %s12553_s30  ;;  %v17150_v41 = vmax.f32 %v14454_v36, 0.0  ;;  %v17151_v36 = vmax.f32 %v13986_v14, 0.0  ;;  %v3730_v14 = vld [vmem:[%s17065_s0 + $0x260] sm:$0xff] }
 0x201   :  { %10662 = vmatmul.mubr.msk.f32.gmra.mrb[110].mxu1 %vm54_vm0, %v14632_v9 }
 0x202   :  { %10720 = vmatmul.mubr.msk.f32.gmra.mrb[98].mxu0 %vm54_vm0, %v14041_v8  ;;  %3927 = vmatprep.mubr.f32.mxu1 %v17132_v7  ;;  %v6576_v8 = vld [vmem:[#allocation2 + $0x1b8] sm:$0xff]  ;;  %v6889_v20 = vmax.f32 %v17150_v41, %v6873_v19  ;;  %v6048_v19 = vld [vmem:[%s17069_s4 + $0x10] sm:$0xff] }
 0x203   :  { %4797 = vmatprep.mubr.f32.mxu0 %v17132_v7 }
 0x204   :  { %6603 = vrot.lane.b32.xlu1 %v14542_v10, %s12552_s25  ;;  %6615 = vrot.lane.b32.xlu0 %v14461_v57, %s12553_s30  ;;  %v14697_v26 = vmax.f32 %v6889_v20, %v17151_v36  ;;  %v12505_v20 = vld [vmem:[%s17065_s0 + $0x288] sm:$0xff] }
 0x205   :  { %10663 = vmatmul.mubr.msk.f32.gmra.mrb[112].mxu1 %vm54_vm0, %v14501_v25 }
 0x206   :  { %10721 = vmatmul.mubr.msk.f32.gmra.mrb[100].mxu0 %vm54_vm0, %v14078_v58  ;;  %3933 = vmatprep.mubr.f32.mxu1 %v17132_v7  ;;  %v6592_v58 = vmax.f32 %v6584_v28, %v6576_v8  ;;  %v6872_v28 = vld [vmem:[#allocation2 + $0x1d8] sm:$0xff] }
 0x207   :  { %4803 = vmatprep.mubr.f32.mxu0 %v17132_v7  ;;  %v6888_v12 = vmax.f32 %v14589_v15, %v6872_v28 }
 0x208   :  { %6619 = vrot.lane.b32.xlu1 %v14542_v10, %s12553_s30  ;;  %6601 = vrot.lane.b32.xlu0 %v14506_v49, %s12552_s25 }
 0x209   :  { %10664 = vmatmul.mubr.msk.f32.gmra.mrb[114].mxu1 %vm54_vm0, %v14560_v42  ;;  %v6896_v15 = vmax.f32 %v6888_v12, %v14311_v40  ;;  %v12503_v40 = vld [vmem:[%s17065_s0 + $0x278] sm:$0xff] }
 0x20a   :  { %10722 = vmatmul.mubr.msk.f32.gmra.mrb[102].mxu0 %vm54_vm0, %v14107_v23  ;;  %3939 = vmatprep.mubr.f32.mxu1 %v17132_v7  ;;  %v17149_v23 = vmax.f32 %v14007_v18, 0.0  ;;  %v3729_v18 = vld [vmem:[%s17065_s0 + $0x258] sm:$0xff] }
 0x20b   :  { %4809 = vmatprep.mubr.f32.mxu0 %v17132_v7 }
 0x20c   :  { %6639 = vrot.lane.b32.xlu1 %v6592_v58, %s12553_s30  ;;  %6617 = vrot.lane.b32.xlu0 %v14506_v49, %s12553_s30  ;;  %v14679_v17 = vmax.f32 %v6891_v32, %v17149_v23  ;;  %v14731_v58 = vmax.f32 %v14570_v35, %v12502_v22  ;;  %v6870_v32 = vld [vmem:[#allocation2 + $0x1c8] sm:$0xff]  ;;  %v3732_v35 = vld [vmem:[%s17065_s0 + $0x270] sm:$0xff]  ;;  %v6049_v23 = vld [vmem:[%s17069_s4 + $0x18] sm:$0xff] }
 0x20d   :  { %10665 = vmatmul.mubr.msk.f32.gmra.mrb[116].mxu1 %vm54_vm0, %v14587_v11  ;;  %v11671_v41 = vpack.c.bf16 %v6049_v23, %v6048_v19 }
 0x20e   :  { %10723 = vmatmul.mubr.msk.f32.gmra.mrb[104].mxu0 %vm54_vm0, %v14132_v2  ;;  %3945 = vmatprep.mubr.f32.mxu1 %v17132_v7  ;;  %v6876_v2 = vld [vmem:[#allocation2 + $0x1f8] sm:$0xff] }
 0x20f   :  { %4815 = vmatprep.mubr.f32.mxu0 %v17132_v7  ;;  %v6892_v16 = vmax.f32 %v6576_v8, %v6876_v2  ;;  %v10749_v8 = vld [vmem:[%s17066_s1 + $0x18] sm:$0xff]  ;;  %v6042_v2 = vld [vmem:[%s17068_s3] sm:$0xff] }
 0x210   :  { %6911 = vrot.lane.b32.xlu1 %v14679_v17, %s12552_s25  ;;  %6637 = vrot.lane.b32.xlu0 %v6590_v63, %s12553_s30 }
 0x211   :  { %10666 = vmatmul.mubr.msk.f32.gmra.mrb[118].mxu1 %vm54_vm0, %v14616_v52  ;;  %v6900_v37 = vmax.f32 %v6892_v16, %v14525_v13  ;;  %v3731_v13 = vld [vmem:[%s17065_s0 + $0x268] sm:$0xff] }
 0x212   :  { %10724 = vmatmul.mubr.msk.f32.gmra.mrb[106].mxu0 %vm54_vm0, %v14153_v54  ;;  %4028 = vmatprep.mubr.f32.mxu1 %v17132_v7 }
 0x213   :  { %4821 = vmatprep.mubr.f32.mxu0 %v17132_v7 }
 0x214   :  { %6927 = vrot.lane.b32.xlu1 %v14679_v17, %s12553_s30  ;;  %6909 = vrot.lane.b32.xlu0 %v14697_v26, %s12552_s25 }
 0x215   :  { %10667 = vmatmul.mubr.msk.f32.vlgmr.msra.gmra.mrb[90].mxu1 %vm54_vm0, %v3729_v18  ;;  %v6043_v18 = vld [vmem:[%s17068_s3 + $0x8] sm:$0xff] }
 0x216   :  { %10725 = vmatmul.mubr.msk.f32.gmra.mrb[108].mxu0 %vm54_vm0, %v14187_v29  ;;  %4034 = vmatprep.mubr.f32.mxu1 %v17132_v7  ;;  %v14804_v16 = vpack.c.bf16 %v6043_v18, %v6042_v2 }
 0x217   :  { %4182 = vmatpush1.msra.mxu1 %v14534_v43  ;;  %4827 = vmatprep.mubr.f32.mxu0 %v17132_v7  ;;  %v12501_v43 = vld [vmem:[#allocation2 + $0x210] sm:$0xff] }
 0x218   :  { %6947 = vrot.lane.b32.xlu1 %v6900_v37, %s12553_s30  ;;  %6925 = vrot.lane.b32.xlu0 %v14697_v26, %s12553_s30  ;;  %v14728_v48 = vmax.f32 %v14600_v55, %v12501_v43  ;;  %v6886_v55 = vmax.f32 %v14618_v47, %v6870_v32  ;;  %v14766_v47 = vpop.permute.xlu0 %6012 }
 0x219   :  { %10668 = vmatmul.mubr.msk.f32.gmra.mrb[92].mxu1 %vm54_vm0, %v3730_v14  ;;  %5275 = vmatprep.subr.mxu1 %v10749_v8  ;;  %v12506_v14 = vld [vmem:[%s17065_s0 + $0x290] sm:$0xff] }
 0x21a   :  { %10726 = vmatmul.mubr.msk.f32.gmra.mrb[110].mxu0 %vm54_vm0, %v14220_v61  ;;  %4040 = vmatprep.mubr.f32.mxu1 %v17132_v7  ;;  %v6894_v24 = vmax.f32 %v6886_v55, %v14299_v53  ;;  %v12504_v53 = vld [vmem:[%s17065_s0 + $0x280] sm:$0xff] }
 0x21b   :  { %4833 = vmatprep.mubr.f32.mxu0 %v17132_v7 }
 0x21c   :  { %6907 = vrot.lane.b32.xlu1 %v14728_v48, %s12552_s25  ;;  %6905 = vrot.lane.b32.xlu0 %v14731_v58, %s12552_s25 }
 0x21d   :  { %10669 = vmatmul.mubr.msk.f32.gmra.mrb[94].mxu1 %vm54_vm0, %v3731_v13 }
 0x21e   :  { %10727 = vmatmul.mubr.msk.f32.gmra.mrb[112].mxu0 %vm54_vm0, %v14266_v33  ;;  %4046 = vmatprep.mubr.f32.mxu1 %v17132_v7 }
 0x21f   :  { %4839 = vmatprep.mubr.f32.mxu0 %v17132_v7 }
 0x220   :  { %6943 = vrot.lane.b32.xlu1 %v6896_v15, %s12553_s30  ;;  %6921 = vrot.lane.b32.xlu0 %v14731_v58, %s12553_s30  ;;  %v14784_v63 = vpop.permute.xlu0 %6054 }
 0x221   :  { %10670 = vmatmul.mubr.msk.f32.gmra.mrb[96].mxu1 %vm54_vm0, %v3732_v35 }
 0x222   :  { %10728 = vmatmul.mubr.msk.f32.gmra.mrb[114].mxu0 %vm54_vm0, %v14307_v34  ;;  %4052 = vmatprep.mubr.f32.mxu1 %v17132_v7 }
 0x223   :  { %4845 = vmatprep.mubr.f32.mxu0 %v17132_v7 }
 0x224   :  { %6941 = vrot.lane.b32.xlu0 %v6894_v24, %s12553_s30 }
 0x225   :  { %10671 = vmatmul.mubr.msk.f32.gmra.mrb[98].mxu1 %vm54_vm0, %v12503_v40 }
 0x226   :  { %10729 = vmatmul.mubr.msk.f32.gmra.mrb[116].mxu0 %vm54_vm0, %v14331_v60  ;;  %4058 = vmatprep.mubr.f32.mxu1 %v17132_v7 }
 0x227   :  { %4851 = vmatprep.mubr.f32.mxu0 %v17132_v7 }
 0x228   :  { %6923 = vrot.lane.b32.xlu0 %v14728_v48, %s12553_s30  ;;  %v14800_v36 = vpop.permute.xlu0 %6056 }
 0x229   :  { %10672 = vmatmul.mubr.msk.f32.gmra.mrb[100].mxu1 %vm54_vm0, %v12504_v53 }
 0x22a   :  { %10730 = vmatmul.mubr.msk.f32.gmra.mrb[118].mxu0 %vm54_vm0, %v14360_v1  ;;  %4064 = vmatprep.mubr.f32.mxu1 %v17132_v7 }
 0x22b   :  { %4984 = vmatprep.mubr.f32.mxu0 %v17132_v7 }
 0x22d   :  { %10673 = vmatmul.mubr.msk.f32.gmra.mrb[102].mxu1 %vm54_vm0, %v12505_v20  ;;  %v10748_v20 = vld [vmem:[%s17066_s1 + $0x10] sm:$0xff] }
 0x22e   :  { %10733 = vmatmul.mubr.msk.f32.vlgmr.msra.gmra.mrb[90].mxu0 %vm54_vm0, %v14153_v54  ;;  %4070 = vmatprep.mubr.f32.mxu1 %v17132_v7  ;;  %v14815_v54 = vpop.permute.xlu0 %6058 }
 0x22f   :  { %4990 = vmatprep.mubr.f32.mxu0 %v17132_v7  ;;  %11670 = vmatpush3.bf16.msra.mxu0 %v14544_v50 }
 0x230   :  { %11672 = vmatprep.subr.bf16.mxu0 %v11671_v41  ;;  %v14819_v50 = vpop.permute.xlu1 %6060 }
 0x231   :  { %10674 = vmatmul.mubr.msk.f32.gmra.mrb[104].mxu1 %vm54_vm0, %v12506_v14 }
 0x232   :  { %10734 = vmatmul.mubr.msk.f32.gmra.mrb[92].mxu0 %vm54_vm0, %v14187_v29  ;;  %4076 = vmatprep.mubr.f32.mxu1 %v17132_v7 }
 0x233   :  { %4996 = vmatprep.mubr.f32.mxu0 %v17132_v7  ;;  %11674 = vmatpush3.bf16.msra.mxu0 %v11671_v41 }
 0x234   :  { %11676 = vmatprep.subr.bf16.mxu0 %v14804_v16 }
 0x235   :  { %10675 = vmatmul.mubr.msk.f32.gmra.mrb[106].mxu1 %vm54_vm0, %v14440_v44 }
 0x236   :  { %10735 = vmatmul.mubr.msk.f32.gmra.mrb[94].mxu0 %vm54_vm0, %v14220_v61  ;;  %4082 = vmatprep.mubr.f32.mxu1 %v17132_v7 }
 0x237   :  { %5002 = vmatprep.mubr.f32.mxu0 %v17132_v7 }
 0x238   :  { %v6290_v29 = vpop.permute.xlu0 %6289 }
 0x239   :  { %10676 = vmatmul.mubr.msk.f32.gmra.mrb[108].mxu1 %vm54_vm0, %v14471_v56 }
 0x23a   :  { %10736 = vmatmul.mubr.msk.f32.gmra.mrb[96].mxu0 %vm54_vm0, %v14266_v33  ;;  %4088 = vmatprep.mubr.f32.mxu1 %v17132_v7  ;;  %v7214_v37 = vpop.permute.xlu1 %7213 }
 0x23b   :  { %5008 = vmatprep.mubr.f32.mxu0 %v17132_v7 }
 0x23c   :  { %v14833_v61 = vpop.permute.xlu0 %6305 }
 0x23d   :  { %10677 = vmatmul.mubr.msk.f32.gmra.mrb[110].mxu1 %vm54_vm0, %v14487_v51 }
 0x23e   :  { %10737 = vmatmul.mubr.msk.f32.gmra.mrb[98].mxu0 %vm54_vm0, %v14307_v34  ;;  %4094 = vmatprep.mubr.f32.mxu1 %v17132_v7  ;;  %v6292_v8 = vpop.permute.xlu1 %6291  ;;  %v14848_v34 = vmax.f32 %v14167_v6, %v6290_v29  ;;  %v3627_v6 = vld [vmem:[%s17067_s2] sm:$0x3] }
 0x23f   :  { %5014 = vmatprep.mubr.f32.mxu0 %v17132_v7  ;;  %v14853_v13 = vmax.f32 %v14200_v27, %v6292_v8  ;;  %v14865_v27 = vmax.f32 %v14178_v62, %v7214_v37  ;;  %v14877_v35 = vrot.slane %v3627_v6, %v13226_v0  ;;  %v14883_v55 = vrot.slane %v3627_v6, %v13233_v4 }
 0x241   :  { %10678 = vmatmul.mubr.msk.f32.gmra.mrb[112].mxu1 %vm54_vm0, %v14554_v39  ;;  %v14841_v33 = vpop.permute.xlu0 %7229 }
 0x242   :  { %10738 = vmatmul.mubr.msk.f32.gmra.mrb[100].mxu0 %vm54_vm0, %v14331_v60  ;;  %4100 = vmatprep.mubr.f32.mxu1 %v17132_v7  ;;  %v7216_v28 = vpop.permute.xlu1 %7215 }
 0x243   :  { %5020 = vmatprep.mubr.f32.mxu0 %v17132_v7 }
 0x245   :  { %10679 = vmatmul.mubr.msk.f32.gmra.mrb[114].mxu1 %vm54_vm0, %v14581_v38  ;;  %v6326_v43 = vpop.permute.xlu0 %6325 }
 0x246   :  { %10739 = vmatmul.mubr.msk.f32.gmra.mrb[102].mxu0 %vm54_vm0, %v14360_v1  ;;  %4106 = vmatprep.mubr.f32.mxu1 %v17132_v7  ;;  %v6337_v60 = vmax.f32 %v14848_v34, %v6326_v43  ;;  %v6328_v22 = vpop.permute.xlu1 %6327  ;;  %v14871_v1 = vmax.f32 %v14254_v45, %v7216_v28 }
 0x247   :  { %5026 = vmatprep.mubr.f32.mxu0 %v17132_v7  ;;  %v6338_v12 = vmax.f32 %v14853_v13, %v6328_v22 }
 0x248   :  { %6456 = vrot.lane.b32.xlu0 %v6337_v60, %s12553_s30  ;;  %17152 = vst [vmem:[#allocation16_spill] sm:$0xff] %v14871_v1 }
 0x249   :  { %10680 = vmatmul.mubr.msk.f32.gmra.mrb[116].mxu1 %vm54_vm0, %v14609_v30  ;;  %6458 = vrot.lane.b32.xlu1 %v6338_v12, %s12553_s30 }
 0x24a   :  { %v7250_v32 = vpop.permute.xlu0 %7249  ;;  %10740 = vmatmul.mubr.msk.f32.gmra.mrb[104].mxu0 %vm54_vm0, %v14383_v46  ;;  %4112 = vmatprep.mubr.f32.mxu1 %v17132_v7  ;;  %v7252_v15 = vpop.permute.xlu1 %7251 }
 0x24b   :  { %v7261_v62 = vmax.f32 %v14865_v27, %v7250_v32  ;;  %5032 = vmatprep.mubr.f32.mxu0 %v17132_v7  ;;  %v7262_v45 = vmax.f32 %v14871_v1, %v7252_v15 }
 0x24c   :  { %v3508_v24 = vpop.f32.mrb[60].mxu0 }
 0x24d   :  { %7380 = vrot.lane.b32.xlu0 %v7261_v62, %s12553_s30  ;;  %10681 = vmatmul.mubr.msk.f32.gmra.mrb[118].mxu1 %vm54_vm0, %v14632_v9  ;;  %v3639_v46 = vadd.f32 %v14877_v35, %v3508_v24  ;;  %v3510_v40 = vpop.f32.mrb[61].mxu0 }
 0x24e   :  { %7382 = vrot.lane.b32.xlu1 %v7262_v45, %s12553_s30  ;;  %10741 = vmatmul.mubr.msk.f32.gmra.mrb[106].mxu0 %vm54_vm0, %v14416_v21  ;;  %v14894_v53 = vpop.permute.xlu0 %6307  ;;  %v3640_v19 = vadd.f32 %v14883_v55, %v3510_v40  ;;  %v14898_v23 = vpop.permute.xlu1 %7217  ;;  %v5223_v21 = vld [vmem:[%s17066_s1 + $0x8] sm:$0xff] }
 0x24f   :  { %4245 = vmatprep.mubr.f32.mxu1 %v17132_v7  ;;  %5038 = vmatprep.mubr.f32.mxu0 %v17132_v7  ;;  %v3669_v41 = vmax.f32 %v3639_v46, 0.0 }
 0x250   :  { %v3670_v2 = vmax.f32 %v3640_v19, 0.0  ;;  %v3514_v18 = vpop.f32.mrb[62].mxu0 }
 0x251   :  { %10684 = vmatmul.mubr.msk.f32.vlgmr.msra.gmra.mrb[90].mxu1 %vm54_vm0, %v14440_v44  ;;  %3699 = vst [vmem:[#allocation2 + $0x3c0] sm:$0xff] %v3669_v41  ;;  %v3641_v14 = vadd.f32 %v14877_v35, %v3514_v18  ;;  %v3516_v29 = vpop.f32.mrb[63].mxu0 }
 0x252   :  { %10742 = vmatmul.mubr.msk.f32.gmra.mrb[108].mxu0 %vm54_vm0, %v14447_v31  ;;  %4251 = vmatprep.mubr.f32.mxu1 %v17132_v7  ;;  %v14912_v37 = vpop.permute.xlu0 %7231  ;;  %3700 = vst.msk [vmem:[#allocation2 + $0x3c8] sm:$0xff] %vm743_vm1, %v3670_v2  ;;  %v3642_v8 = vadd.f32 %v14883_v55, %v3516_v29  ;;  %v14917_v44 = vpop.permute.xlu1 %6295 }
 0x253   :  { %5044 = vmatprep.mubr.f32.mxu0 %v17132_v7  ;;  %5276 = vmatpush1.msra.mxu1 %v10748_v20  ;;  %v3671_v28 = vmax.f32 %v3641_v14, 0.0 }
 0x254   :  { %5442 = vmatprep.subr.mxu1 %v5223_v21  ;;  %v3672_v43 = vmax.f32 %v3642_v8, 0.0  ;;  %v3520_v60 = vpop.f32.mrb[64].mxu0 }
 0x255   :  { %10685 = vmatmul.mubr.msk.f32.gmra.mrb[92].mxu1 %vm54_vm0, %v14471_v56  ;;  %3701 = vst [vmem:[#allocation2 + $0x3d0] sm:$0xff] %v3671_v28  ;;  %v3643_v31 = vadd.f32 %v14877_v35, %v3520_v60  ;;  %v3522_v22 = vpop.f32.mrb[65].mxu0  ;;  %v14931_v56 = vld [vmem:[%s17065_s0 + $0x368] sm:$0xff] }
 0x256   :  { %10743 = vmatmul.mubr.msk.f32.gmra.mrb[110].mxu0 %vm54_vm0, %v14478_v5  ;;  %4257 = vmatprep.mubr.f32.mxu1 %v17132_v7  ;;  %v6294_v6 = vpop.permute.xlu0 %6293  ;;  %3702 = vst.msk [vmem:[#allocation2 + $0x3d8] sm:$0xff] %vm743_vm1, %v3672_v43  ;;  %v3644_v12 = vadd.f32 %v14883_v55, %v3522_v22  ;;  %v14933_v32 = vpop.permute.xlu1 %7219 }
 0x257   :  { %5050 = vmatprep.mubr.f32.mxu0 %v17132_v7  ;;  %v3673_v62 = vmax.f32 %v3643_v31, 0.0  ;;  %v14975_v43 = vmax.f32 %v14239_v3, %v6294_v6 }
 0x258   :  { %v3674_v15 = vmax.f32 %v3644_v12, 0.0  ;;  %v3526_v5 = vpop.f32.mrb[66].mxu0 }
 0x259   :  { %10686 = vmatmul.mubr.msk.f32.gmra.mrb[94].mxu1 %vm54_vm0, %v14487_v51  ;;  %3703 = vst [vmem:[#allocation2 + $0x3e0] sm:$0xff] %v3673_v62  ;;  %v3645_v45 = vadd.f32 %v14877_v35, %v3526_v5  ;;  %v3528_v24 = vpop.f32.mrb[67].mxu0  ;;  %v14949_v51 = vld [vmem:[%s17065_s0 + $0x370] sm:$0xff]  ;;  %v17160_v5 = vld [vmem:[#allocation15_spill] sm:$0xff] }
 0x25a   :  { %10744 = vmatmul.mubr.msk.f32.gmra.mrb[112].mxu0 %vm54_vm0, %v14931_v56  ;;  %4263 = vmatprep.mubr.f32.mxu1 %v17132_v7  ;;  %v14941_v46 = vpop.permute.xlu0 %6309  ;;  %3704 = vst.msk [vmem:[#allocation2 + $0x3e8] sm:$0xff] %vm743_vm1, %v3674_v15  ;;  %v3646_v40 = vadd.f32 %v14883_v55, %v3528_v24  ;;  %v14951_v19 = vpop.permute.xlu1 %6311  ;;  %v15050_v28 = vmax.f32 %v17160_v5, %v14933_v32 }
 0x25b   :  { %5056 = vmatprep.mubr.f32.mxu0 %v17132_v7  ;;  %v3675_v41 = vmax.f32 %v3645_v45, 0.0  ;;  %v17155_v45 = vld [vmem:[#allocation14_spill] sm:$0xff] }
 0x25c   :  { %v3676_v20 = vmax.f32 %v3646_v40, 0.0  ;;  %v3532_v2 = vpop.f32.mrb[68].mxu0  ;;  %v14997_v24 = vmax.f32 %v17155_v45, %v14898_v23 }
 0x25d   :  { %10687 = vmatmul.mubr.msk.f32.gmra.mrb[96].mxu1 %vm54_vm0, %v14554_v39  ;;  %3705 = vst [vmem:[#allocation2 + $0x3f0] sm:$0xff] %v3675_v41  ;;  %v14956_v18 = vadd.f32 %v14877_v35, %v3532_v2  ;;  %v3534_v21 = vpop.f32.mrb[69].mxu0  ;;  %v14969_v39 = vld [vmem:[%s17065_s0 + $0x378] sm:$0xff] }
 0x25e   :  { %10745 = vmatmul.mubr.msk.f32.gmra.mrb[114].mxu0 %vm54_vm0, %v14949_v51  ;;  %4269 = vmatprep.mubr.f32.mxu1 %v17132_v7  ;;  %v14961_v14 = vpop.permute.xlu0 %7233  ;;  %3706 = vst.msk [vmem:[#allocation2 + $0x3f8] sm:$0xff] %vm743_vm1, %v3676_v20  ;;  %v3648_v29 = vadd.f32 %v14883_v55, %v3534_v21  ;;  %v14971_v8 = vpop.permute.xlu1 %7235  ;;  %17156 = vst [vmem:[#allocation14_spill] sm:$0xff] %v14997_v24  ;;  %v6044_v20 = vld [vmem:[%s17068_s3 + $0x10] sm:$0xff]  ;;  %v6045_v2 = vld [vmem:[%s17068_s3 + $0x18] sm:$0xff] }
 0x25f   :  { %17153 = vst [vmem:[#allocation17_spill] sm:$0xff] %v14961_v14  ;;  %5062 = vmatprep.mubr.f32.mxu0 %v17132_v7  ;;  %17154 = vst [vmem:[#allocation18_spill] sm:$0xff] %v14971_v8 }
 0x260   :  { %v3678_v60 = vmax.f32 %v3648_v29, 0.0  ;;  %v3538_v31 = vpop.f32.mrb[70].mxu0 }
 0x261   :  { %10688 = vmatmul.mubr.msk.f32.gmra.mrb[98].mxu1 %vm54_vm0, %v14581_v38  ;;  %v14980_v22 = vadd.f32 %v14877_v35, %v3538_v31  ;;  %v3540_v12 = vpop.f32.mrb[71].mxu0  ;;  %v14991_v38 = vld [vmem:[%s17065_s0 + $0x380] sm:$0xff] }
 0x262   :  { %10746 = vmatmul.mubr.msk.f32.gmra.mrb[116].mxu0 %vm54_vm0, %v14969_v39  ;;  %4275 = vmatprep.mubr.f32.mxu1 %v17132_v7  ;;  %v6330_v62 = vpop.permute.xlu0 %6329  ;;  %3708 = vst.msk [vmem:[#allocation2 + $0x408] sm:$0xff] %vm743_vm1, %v3678_v60  ;;  %v3650_v3 = vadd.f32 %v14883_v55, %v3540_v12  ;;  %v6332_v6 = vpop.permute.xlu1 %6331 }
 0x263   :  { %5068 = vmatprep.mubr.f32.mxu0 %v17132_v7  ;;  %v6339_v15 = vmax.f32 %v14975_v43, %v6330_v62  ;;  %v11679_v62 = vpack.c.bf16 %v6045_v2, %v6044_v20 }
 0x264   :  { %v3680_v40 = vmax.f32 %v3650_v3, 0.0  ;;  %v3544_v41 = vpop.f32.mrb[72].mxu0  ;;  %v17157_v3 = vld [vmem:[#allocation13_spill] sm:$0xff] }
 0x265   :  { %10689 = vmatmul.mubr.msk.f32.gmra.mrb[100].mxu1 %vm54_vm0, %v14609_v30  ;;  %6460 = vrot.lane.b32.xlu0 %v6339_v15, %s12553_s30  ;;  %v15009_v21 = vadd.f32 %v14877_v35, %v3544_v41  ;;  %v3546_v23 = vpop.f32.mrb[73].mxu0  ;;  %v15022_v15 = vmax.f32 %v17157_v3, %v14917_v44  ;;  %v17158_v3 = vld [vmem:[#allocation6_spill] sm:$0xff]  ;;  %17161 = vst [vmem:[#allocation13_spill] sm:$0xff] %v15050_v28 }
 0x266   :  { %10747 = vmatmul.mubr.msk.f32.gmra.mrb[118].mxu0 %vm54_vm0, %v14991_v38  ;;  %4281 = vmatprep.mubr.f32.mxu1 %v17132_v7  ;;  %v7254_v30 = vpop.permute.xlu0 %7253  ;;  %3710 = vst.msk [vmem:[#allocation2 + $0x418] sm:$0xff] %vm743_vm1, %v3680_v40  ;;  %v3652_v29 = vadd.f32 %v14883_v55, %v3546_v23  ;;  %v7256_v60 = vpop.permute.xlu1 %7255  ;;  %v10806_v40 = vld [vmem:[%s17068_s3 + $0x28] sm:$0xff] }
 0x267   :  { %11263 = vmatprep.mubr.msk.f32.mxu0 %vm6062_vm2, %v14784_v63  ;;  %v7263_v31 = vmax.f32 %v14997_v24, %v7254_v30  ;;  %v10805_v63 = vld [vmem:[%s17068_s3 + $0x20] sm:$0xff]  ;;  %v6340_v23 = vmax.f32 %v15022_v15, %v6332_v6 }
 0x268   :  { %v3682_v45 = vmax.f32 %v3652_v29, 0.0  ;;  %v3550_v41 = vpop.f32.mrb[74].mxu0 }
 0x269   :  { %10690 = vmatmul.mubr.msk.f32.gmra.mrb[102].mxu1 %vm54_vm0, %v14632_v9  ;;  %7384 = vrot.lane.b32.xlu0 %v7263_v31, %s12553_s30  ;;  %v3653_v20 = vadd.f32 %v14877_v35, %v3550_v41  ;;  %v3552_v44 = vpop.f32.mrb[75].mxu0  ;;  %v2888_v9 = vld [vmem:[%s17067_s2] sm:$0x3]  ;;  %v11683_v31 = vpack.c.bf16 %v10806_v40, %v10805_v63  ;;  %v17159_v41 = vld [vmem:[#allocation7_spill] sm:$0xff]  ;;  %v10808_v63 = vld [vmem:[%s17068_s3 + $0x38] sm:$0xff] }
 0x26a   :  { %11264 = vmatmul.mubr.msk.f32.vlgmr.msra.gmra.mrb[120].mxu0 %vm6062_vm2, %v14800_v36  ;;  %4287 = vmatprep.mubr.f32.mxu1 %v17132_v7  ;;  %v6598_v2 = vpop.permute.xlu0 %6597  ;;  %3712 = vst.msk [vmem:[#allocation2 + $0x428] sm:$0xff] %vm743_vm1, %v3682_v45  ;;  %v3654_v30 = vadd.f32 %v14883_v55, %v3552_v44  ;;  %v6600_v36 = vpop.permute.xlu1 %6599  ;;  %v6018_v12 = vmax.f32 %v17159_v41, %v17158_v3 }
 0x26b   :  { %11266 = vmatprep.mubr.msk.f32.mxu0 %vm6062_vm2, %v14815_v54  ;;  %11678 = vmatpush3.bf16.msra.mxu0 %v14804_v16  ;;  %v3683_v29 = vmax.f32 %v3653_v20, 0.0  ;;  %v15055_v54 = vrot.slane %v2888_v9, %v13226_v0  ;;  %v10807_v16 = vld [vmem:[%s17068_s3 + $0x30] sm:$0xff]  ;;  %v15071_v5 = vrot.slane %v2888_v9, %v13233_v4  ;;  %v15074_v40 = vmax.f32 %v14461_v57, %v6600_v36 }
 0x26c   :  { %11680 = vmatprep.subr.bf16.mxu0 %v11679_v62  ;;  %v3684_v45 = vmax.f32 %v3654_v30, 0.0  ;;  %v3556_v6 = vpop.f32.mrb[76].mxu0  ;;  %v7264_v44 = vmax.f32 %v15050_v28, %v7256_v60  ;;  %v17162_v30 = vld [vmem:[#allocation8_spill] sm:$0xff]  ;;  %v11687_v57 = vpack.c.bf16 %v10808_v63, %v10807_v16  ;;  %v10813_v16 = vld [vmem:[%s17069_s4 + $0x20] sm:$0xff]  ;;  %v10814_v63 = vld [vmem:[%s17069_s4 + $0x28] sm:$0xff] }
 0x26d   :  { %10691 = vmatmul.mubr.msk.f32.gmra.mrb[104].mxu1 %vm54_vm0, %v14501_v25  ;;  %6462 = vrot.lane.b32.xlu0 %v6340_v23, %s12553_s30  ;;  %3713 = vst [vmem:[#allocation2 + $0x430] sm:$0xff] %v3683_v29  ;;  %v15065_v32 = vadd.f32 %v14877_v35, %v3556_v6  ;;  %v3558_v25 = vpop.f32.mrb[77].mxu0  ;;  %v17163_v29 = vld [vmem:[#allocation9_spill] sm:$0xff]  ;;  %v17164_v6 = vld [vmem:[#allocation10_spill] sm:$0xff] }
 0x26e   :  { %11267 = vmatmul.mubr.msk.f32.gmra.mrb[122].mxu0 %vm6062_vm2, %v14819_v50  ;;  %4293 = vmatprep.mubr.f32.mxu1 %v17132_v7  ;;  %v15076_v20 = vpop.permute.xlu0 %6613  ;;  %3714 = vst.msk [vmem:[#allocation2 + $0x438] sm:$0xff] %vm743_vm1, %v3684_v45  ;;  %v3656_v23 = vadd.f32 %v14883_v55, %v3558_v25  ;;  %v6636_v50 = vpop.permute.xlu1 %6635  ;;  %v6019_v3 = vmax.f32 %v17163_v29, %v17162_v30  ;;  %v17165_v45 = vld [vmem:[#allocation11_spill] sm:$0xff] }
 0x26f   :  { %11682 = vmatpush3.bf16.msra.mxu0 %v11679_v62  ;;  %11277 = vmatprep.mubr.msk.f32.mxu0 %vm6062_vm2, %v6018_v12  ;;  %v2769_v41 = vpop.f32.mrb[60].mxu1  ;;  %v6646_v36 = vmax.f32 %v15074_v40, %v6636_v50  ;;  %v6020_v8 = vmax.f32 %v17165_v45, %v17164_v6  ;;  %v15094_v30 = vmax.f32 %v14430_v59, %v6598_v2  ;;  %v17166_v6 = vld [vmem:[#allocation12_spill] sm:$0xff] }
 0x270   :  { %11684 = vmatprep.subr.bf16.mxu0 %v11683_v31  ;;  %v3686_v60 = vmax.f32 %v3656_v23, 0.0  ;;  %v15089_v25 = vadd.f32 %v15055_v54, %v2769_v41  ;;  %v3562_v62 = vpop.f32.mrb[78].mxu0  ;;  %v2771_v12 = vpop.f32.mrb[61].mxu1 }
 0x271   :  { %10692 = vmatmul.mubr.msk.f32.gmra.mrb[106].mxu1 %vm54_vm0, %v14560_v42  ;;  %7386 = vrot.lane.b32.xlu0 %v7264_v44, %s12553_s30  ;;  %v15104_v23 = vadd.f32 %v14877_v35, %v3562_v62  ;;  %v2901_v50 = vadd.f32 %v15071_v5, %v2771_v12  ;;  %v3564_v42 = vpop.f32.mrb[79].mxu0 }
 0x272   :  { %11278 = vmatmul.mubr.msk.f32.vlgmr.msra.gmra.mrb[120].mxu0 %vm6062_vm2, %v6019_v3  ;;  %4299 = vmatprep.mubr.f32.mxu1 %v17132_v7  ;;  %v6634_v59 = vpop.permute.xlu0 %6633  ;;  %3716 = vst.msk [vmem:[#allocation2 + $0x448] sm:$0xff] %vm743_vm1, %v3686_v60  ;;  %v2930_v2 = vmax.f32 %v15089_v25, 0.0  ;;  %v3658_v44 = vadd.f32 %v14883_v55, %v3564_v42  ;;  %v15113_v29 = vpop.permute.xlu1 %6945  ;;  %v6021_v3 = vmax.f32 %v17166_v6, %v14766_v47  ;;  %v10815_v47 = vld [vmem:[%s17069_s4 + $0x30] sm:$0xff] }
 0x273   :  { %11280 = vmatprep.mubr.msk.f32.mxu0 %vm6062_vm2, %v6020_v8  ;;  %11686 = vmatpush3.bf16.msra.mxu0 %v11683_v31  ;;  %v6645_v41 = vmax.f32 %v15094_v30, %v6634_v59  ;;  %v2931_v62 = vmax.f32 %v2901_v50, 0.0  ;;  %v2775_v12 = vpop.f32.mrb[62].mxu1  ;;  %v11691_v60 = vpack.c.bf16 %v10814_v63, %v10813_v16  ;;  %v6317_v42 = vmax.f32 %v14848_v34, %v14833_v61 }
 0x274   :  { %11688 = vmatprep.subr.bf16.mxu0 %v11687_v57  ;;  %6766 = vrot.lane.b32.xlu1 %v6646_v36, %s12553_s30  ;;  %v3688_v8 = vmax.f32 %v3658_v44, 0.0  ;;  %v15123_v31 = vadd.f32 %v15055_v54, %v2775_v12  ;;  %v3568_v9 = vpop.f32.mrb[80].mxu0  ;;  %v2777_v59 = vpop.f32.mrb[63].mxu1  ;;  %v10816_v36 = vld [vmem:[%s17069_s4 + $0x38] sm:$0xff]  ;;  %v6318_v44 = vmax.f32 %v14853_v13, %v14894_v53  ;;  %v6319_v12 = vmax.f32 %v14975_v43, %v14941_v46  ;;  %v10821_v13 = vld [vmem:[%s17068_s3 + $0x40] sm:$0xff]  ;;  %v10822_v53 = vld [vmem:[%s17068_s3 + $0x48] sm:$0xff] }
 0x275   :  { %10693 = vmatmul.mubr.msk.f32.gmra.mrb[108].mxu1 %vm54_vm0, %v14587_v11  ;;  %6764 = vrot.lane.b32.xlu0 %v6645_v41, %s12553_s30  ;;  %2961 = vst.msk [vmem:[#allocation2 + $0x2d8] sm:$0xff] %vm743_vm1, %v2931_v62  ;;  %v15136_v61 = vadd.f32 %v14877_v35, %v3568_v9  ;;  %v2903_v34 = vadd.f32 %v15071_v5, %v2777_v59  ;;  %v3570_v11 = vpop.f32.mrb[81].mxu0 }
 0x276   :  { %11281 = vmatmul.mubr.msk.f32.gmra.mrb[122].mxu0 %vm6062_vm2, %v6021_v3  ;;  %4305 = vmatprep.mubr.f32.mxu1 %v17132_v7  ;;  %v15141_v16 = vpop.permute.xlu0 %6615  ;;  %3718 = vst.msk [vmem:[#allocation2 + $0x458] sm:$0xff] %vm743_vm1, %v3688_v8  ;;  %v3660_v50 = vadd.f32 %v14883_v55, %v3570_v11  ;;  %v15147_v9 = vpop.permute.xlu1 %6603  ;;  %v11695_v62 = vpack.c.bf16 %v10816_v36, %v10815_v47 }
 0x277   :  { %11690 = vmatpush3.bf16.msra.mxu0 %v11687_v57  ;;  %11291 = vmatprep.mubr.msk.f32.mxu0 %vm6062_vm2, %v6317_v42  ;;  %v2933_v6 = vmax.f32 %v2903_v34, 0.0  ;;  %v2781_v3 = vpop.f32.mrb[64].mxu1  ;;  %v15181_v41 = vpack.c.bf16 %v10822_v53, %v10821_v13 }
 0x278   :  { %11692 = vmatprep.subr.bf16.mxu0 %v11691_v60  ;;  %v3690_v8 = vmax.f32 %v3660_v50, 0.0  ;;  %v15155_v59 = vadd.f32 %v15055_v54, %v2781_v3  ;;  %v3574_v57 = vpop.f32.mrb[82].mxu0  ;;  %v2783_v42 = vpop.f32.mrb[65].mxu1 }
 0x279   :  { %10694 = vmatmul.mubr.msk.f32.gmra.mrb[110].mxu1 %vm54_vm0, %v14616_v52  ;;  %2963 = vst.msk [vmem:[#allocation2 + $0x2e8] sm:$0xff] %vm743_vm1, %v2933_v6  ;;  %v3661_v46 = vadd.f32 %v14877_v35, %v3574_v57  ;;  %v2905_v43 = vadd.f32 %v15071_v5, %v2783_v42  ;;  %v3576_v47 = vpop.f32.mrb[83].mxu0  ;;  %v4130_v52 = vld [vmem:[%s17065_s0 + $0x2f0] sm:$0xff]  ;;  %v7485_v42 = vld [vmem:[#allocation2 + $0x2c0] sm:$0xff] }
 0x27a   :  { %11292 = vmatmul.mubr.msk.f32.vlgmr.msra.gmra.mrb[120].mxu0 %vm6062_vm2, %v6318_v44  ;;  %4311 = vmatprep.mubr.f32.mxu1 %v17132_v7  ;;  %v6602_v36 = vpop.permute.xlu0 %6601  ;;  %3720 = vst.msk [vmem:[#allocation2 + $0x468] sm:$0xff] %vm743_vm1, %v3690_v8  ;;  %v3662_v11 = vadd.f32 %v14883_v55, %v3576_v47  ;;  %v15177_v50 = vpop.permute.xlu1 %6619  ;;  %v6320_v44 = vmax.f32 %v15022_v15, %v14951_v19 }
 0x27b   :  { %11294 = vmatprep.mubr.msk.f32.mxu0 %vm6062_vm2, %v6319_v12  ;;  %11694 = vmatpush3.bf16.msra.mxu0 %v11691_v60  ;;  %v3691_v6 = vmax.f32 %v3661_v46, 0.0  ;;  %v2935_v3 = vmax.f32 %v2905_v43, 0.0  ;;  %v2787_v57 = vpop.f32.mrb[66].mxu1  ;;  %v4131_v12 = vld [vmem:[%s17065_s0 + $0x2f8] sm:$0xff] }
 0x27c   :  { %11696 = vmatprep.subr.bf16.mxu0 %v11695_v62  ;;  %v3692_v8 = vmax.f32 %v3662_v11, 0.0  ;;  %v15184_v45 = vadd.f32 %v15055_v54, %v2787_v57  ;;  %v3580_v47 = vpop.f32.mrb[84].mxu0  ;;  %v2789_v34 = vpop.f32.mrb[67].mxu1 }
 0x27d   :  { %10695 = vmatmul.mubr.msk.f32.gmra.mrb[112].mxu1 %vm54_vm0, %v4130_v52  ;;  %3721 = vst [vmem:[#allocation2 + $0x470] sm:$0xff] %v3691_v6  ;;  %2965 = vst.msk [vmem:[#allocation2 + $0x2f8] sm:$0xff] %vm743_vm1, %v2935_v3  ;;  %v15189_v19 = vadd.f32 %v14877_v35, %v3580_v47  ;;  %v2907_v15 = vadd.f32 %v15071_v5, %v2789_v34  ;;  %v3582_v60 = vpop.f32.mrb[85].mxu0  ;;  %v12507_v52 = vld [vmem:[#allocation2 + $0x280] sm:$0xff] }
 0x27e   :  { %11295 = vmatmul.mubr.msk.f32.gmra.mrb[122].mxu0 %vm6062_vm2, %v6320_v44  ;;  %4317 = vmatprep.mubr.f32.mxu1 %v17132_v7  ;;  %v15197_v13 = vpop.permute.xlu0 %6617  ;;  %3722 = vst.msk [vmem:[#allocation2 + $0x478] sm:$0xff] %vm743_vm1, %v3692_v8  ;;  %v17094_v53 = vmax.f32 %v15184_v45, 0.0  ;;  %v3664_v46 = vadd.f32 %v14883_v55, %v3582_v60  ;;  %v15202_v43 = vpop.permute.xlu1 %6639  ;;  %v7501_v34 = vmax.f32 %v12507_v52, %v7485_v42 }
 0x27f   :  { %11698 = vmatpush3.bf16.msra.mxu0 %v11695_v62  ;;  %v17093_v11 = vmax.f32 %v15189_v19, 0.0  ;;  %v2937_v44 = vmax.f32 %v2907_v15, 0.0  ;;  %v2793_v6 = vpop.f32.mrb[68].mxu1  ;;  %v15211_v60 = vmax.f32 %v14506_v49, %v6602_v36  ;;  %v4132_v49 = vld [vmem:[%s17065_s0 + $0x300] sm:$0xff] }
 0x280   :  { %11700 = vmatprep.subr.bf16.mxu0 %v15181_v41  ;;  %v3694_v3 = vmax.f32 %v3664_v46, 0.0  ;;  %v15207_v57 = vadd.f32 %v15055_v54, %v2793_v6  ;;  %v3586_v8 = vpop.f32.mrb[86].mxu0  ;;  %v2795_v47 = vpop.f32.mrb[69].mxu1  ;;  %v15215_v62 = vmax.f32 %v7501_v34, %v17094_v53  ;;  %v12508_v6 = vld [vmem:[#allocation2 + $0x290] sm:$0xff] }
 0x281   :  { %10696 = vmatmul.mubr.msk.f32.gmra.mrb[114].mxu1 %vm54_vm0, %v4131_v12  ;;  %3723 = vst [vmem:[#allocation2 + $0x480] sm:$0xff] %v17093_v11  ;;  %2967 = vst.msk [vmem:[#allocation2 + $0x308] sm:$0xff] %vm743_vm1, %v2937_v44  ;;  %v15221_v42 = vadd.f32 %v14877_v35, %v3586_v8  ;;  %v2909_v15 = vadd.f32 %v15071_v5, %v2795_v47  ;;  %v3588_v46 = vpop.f32.mrb[87].mxu0  ;;  %v7503_v8 = vmax.f32 %v12508_v6, %v2930_v2 }
 0x282   :  { %4323 = vmatprep.mubr.f32.mxu1 %v17132_v7  ;;  %v6638_v36 = vpop.permute.xlu0 %6637  ;;  %3724 = vst.msk [vmem:[#allocation2 + $0x488] sm:$0xff] %vm743_vm1, %v3694_v3  ;;  %v3666_v52 = vadd.f32 %v14883_v55, %v3588_v46  ;;  %v15231_v34 = vpop.permute.xlu1 %6911  ;;  %v17167_v46 = vmax.f32 %v15207_v57, 0.0  ;;  %v17169_v6 = vmax.f32 %v15123_v31, 0.0 }
 0x283   :  { %v6647_v44 = vmax.f32 %v15211_v60, %v6638_v36  ;;  %v17096_v47 = vmax.f32 %v15221_v42, 0.0  ;;  %v2939_v11 = vmax.f32 %v2909_v15, 0.0  ;;  %v2799_v53 = vpop.f32.mrb[70].mxu1  ;;  %v4133_v15 = vld [vmem:[%s17065_s0 + $0x308] sm:$0xff] }
 0x284   :  { %v3696_v63 = vmax.f32 %v3666_v52, 0.0  ;;  %v15238_v28 = vadd.f32 %v15055_v54, %v2799_v53  ;;  %v3592_v3 = vpop.f32.mrb[88].mxu0  ;;  %v2801_v12 = vpop.f32.mrb[71].mxu1  ;;  %v15244_v36 = vmax.f32 %v7503_v8, %v17167_v46 }
 0x285   :  { %10697 = vmatmul.mubr.msk.f32.gmra.mrb[116].mxu1 %vm54_vm0, %v4132_v49  ;;  %6768 = vrot.lane.b32.xlu0 %v6647_v44, %s12553_s30  ;;  %3725 = vst [vmem:[#allocation2 + $0x490] sm:$0xff] %v17096_v47  ;;  %2969 = vst.msk [vmem:[#allocation2 + $0x318] sm:$0xff] %vm743_vm1, %v2939_v11  ;;  %v15250_v25 = vadd.f32 %v14877_v35, %v3592_v3  ;;  %v2911_v2 = vadd.f32 %v15071_v5, %v2801_v12  ;;  %v3594_v53 = vpop.f32.mrb[89].mxu0  ;;  %v12509_v12 = vld [vmem:[#allocation2 + $0x2a0] sm:$0xff] }
 0x286   :  { %17168 = vst [vmem:[#allocation6_spill] sm:$0xff] %v15244_v36  ;;  %4329 = vmatprep.mubr.f32.mxu1 %v17132_v7  ;;  %v6910_v49 = vpop.permute.xlu0 %6909  ;;  %3726 = vst.msk [vmem:[#allocation2 + $0x498] sm:$0xff] %vm743_vm1, %v3696_v63  ;;  %v3668_v44 = vadd.f32 %v14883_v55, %v3594_v53  ;;  %v15260_v11 = vpop.permute.xlu1 %6927  ;;  %v7505_v8 = vmax.f32 %v12509_v12, %v17169_v6 }
 0x287   :  { %v15263_v35 = vmax.f32 %v14697_v26, %v6910_v49  ;;  %v17100_v3 = vmax.f32 %v15250_v25, 0.0  ;;  %v2941_v46 = vmax.f32 %v2911_v2, 0.0  ;;  %v2805_v47 = vpop.f32.mrb[72].mxu1  ;;  %v17170_v26 = vmax.f32 %v15238_v28, 0.0 }
 0x288   :  { %v3698_v24 = vmax.f32 %v3668_v44, 0.0  ;;  %v15269_v63 = vadd.f32 %v15055_v54, %v2805_v47  ;;  %v2807_v52 = vpop.f32.mrb[73].mxu1  ;;  %v15287_v2 = vmax.f32 %v14542_v10, %v15147_v9  ;;  %v17172_v44 = vmax.f32 %v15155_v59, 0.0  ;;  %v10781_v10 = vld [vmem:[%s17066_s1 + $0x28] sm:$0xff] }
 0x289   :  { %10698 = vmatmul.mubr.msk.f32.gmra.mrb[118].mxu1 %vm54_vm0, %v4133_v15  ;;  %v6955_v55 = vmax.f32 %v15263_v35, %v15113_v29  ;;  %v15276_v53 = vmax.f32 %v7505_v8, %v17170_v26  ;;  %3727 = vst [vmem:[#allocation2 + $0x4a0] sm:$0xff] %v17100_v3  ;;  %2971 = vst.msk [vmem:[#allocation2 + $0x328] sm:$0xff] %vm743_vm1, %v2941_v46  ;;  %v2913_v31 = vadd.f32 %v15071_v5, %v2807_v52  ;;  %v5222_v15 = vld [vmem:[%s17066_s1] sm:$0xff]  ;;  %v12510_v52 = vld [vmem:[#allocation2 + $0x2b0] sm:$0xff] }
 0x28a   :  { %5339 = vmatprep.mubr.f32.mxu1 %v17132_v7  ;;  %v15283_v47 = vpop.permute.xlu0 %6925  ;;  %3728 = vst.msk [vmem:[#allocation2 + $0x4a8] sm:$0xff] %vm743_vm1, %v3698_v24  ;;  %v2942_v29 = vmax.f32 %v15269_v63, 0.0  ;;  %v6948_v49 = vpop.permute.xlu1 %6947  ;;  %v7507_v12 = vmax.f32 %v12510_v52, %v17172_v44  ;;  %v6648_v24 = vmax.f32 %v15287_v2, %v15202_v43  ;;  %v15314_v43 = vmax.f32 %v14679_v17, %v15231_v34 }
 0x28b   :  { %17171 = vst [vmem:[#allocation7_spill] sm:$0xff] %v15276_v53  ;;  %7076 = vrot.lane.b32.xlu0 %v6955_v55, %s12553_s30  ;;  %v2943_v6 = vmax.f32 %v2913_v31, 0.0  ;;  %v2811_v8 = vpop.f32.mrb[74].mxu1 }
 0x28c   :  { %v2914_v9 = vadd.f32 %v15055_v54, %v2811_v8  ;;  %v2813_v46 = vpop.f32.mrb[75].mxu1  ;;  %v15307_v55 = vmax.f32 %v7507_v12, %v2942_v29  ;;  %v17173_v8 = vmax.f32 %v15184_v45, 0.0 }
 0x28d   :  { %10750 = vmatmul.mubr.msk.f32.vlgmr.msra.gmra.mrb[120].mxu1 %vm54_vm0, %v14931_v56  ;;  %2973 = vst.msk [vmem:[#allocation2 + $0x338] sm:$0xff] %vm743_vm1, %v2943_v6  ;;  %v2915_v59 = vadd.f32 %v15071_v5, %v2813_v46 }
 0x28e   :  { %5345 = vmatprep.mubr.f32.mxu1 %v17132_v7  ;;  %5443 = vmatpush1.msra.mxu1 %v5222_v15  ;;  %v6906_v26 = vpop.permute.xlu0 %6905  ;;  %v2944_v31 = vmax.f32 %v2914_v9, 0.0  ;;  %v6908_v52 = vpop.permute.xlu1 %6907  ;;  %v6956_v15 = vmax.f32 %v15314_v43, %v6948_v49 }
 0x28f   :  { %6770 = vrot.lane.b32.xlu0 %v6648_v24, %s12553_s30  ;;  %5659 = vmatprep.subr.mxu1 %v10781_v10  ;;  %v2945_v56 = vmax.f32 %v2915_v59, 0.0  ;;  %v2817_v44 = vpop.f32.mrb[76].mxu1  ;;  %v15329_v34 = vmax.f32 %v14728_v48, %v6908_v52  ;;  %v15339_v48 = vmax.f32 %v14731_v58, %v6906_v26  ;;  %v15341_v52 = vld [vmem:[#allocation2 + $0x308] sm:$0xff] }
 0x290   :  { %v2916_v12 = vadd.f32 %v15055_v54, %v2817_v44  ;;  %v2819_v6 = vpop.f32.mrb[77].mxu1  ;;  %v15323_v46 = vmax.f32 %v17173_v8, %v2944_v31  ;;  %v17174_v44 = vmax.f32 %v15207_v57, 0.0  ;;  %v12511_v8 = vld [vmem:[#allocation2 + $0x288] sm:$0xff] }
 0x291   :  { %10751 = vmatmul.mubr.msk.f32.gmra.mrb[122].mxu1 %vm54_vm0, %v14949_v51  ;;  %2975 = vst.msk [vmem:[#allocation2 + $0x348] sm:$0xff] %vm743_vm1, %v2945_v56  ;;  %v2917_v17 = vadd.f32 %v15071_v5, %v2819_v6  ;;  %v7486_v51 = vld [vmem:[#allocation2 + $0x2c8] sm:$0xff] }
 0x292   :  { %5351 = vmatprep.mubr.f32.mxu1 %v17132_v7  ;;  %v15331_v10 = vpop.permute.xlu0 %6921  ;;  %v2946_v24 = vmax.f32 %v2916_v12, 0.0  ;;  %v6944_v9 = vpop.permute.xlu1 %6943  ;;  %v8410_v26 = vld [vmem:[#allocation2 + $0x448] sm:$0xff] }
 0x293   :  { %7078 = vrot.lane.b32.xlu0 %v6956_v15, %s12553_s30  ;;  %v2947_v49 = vmax.f32 %v2917_v17, 0.0  ;;  %v2823_v45 = vpop.f32.mrb[78].mxu1  ;;  %v6954_v59 = vmax.f32 %v15329_v34, %v6944_v9 }
 0x294   :  { %v2918_v31 = vadd.f32 %v15055_v54, %v2823_v45  ;;  %v2825_v56 = vpop.f32.mrb[79].mxu1  ;;  %v15345_v12 = vmax.f32 %v17174_v44, %v2946_v24 }
 0x295   :  { %10752 = vmatmul.mubr.msk.f32.gmra.mrb[124].mxu1 %vm54_vm0, %v14969_v39  ;;  %2977 = vst.msk [vmem:[#allocation2 + $0x358] sm:$0xff] %vm743_vm1, %v2947_v49  ;;  %v2919_v6 = vadd.f32 %v15071_v5, %v2825_v56  ;;  %7074 = vrot.lane.b32.xlu1 %v6954_v59, %s12553_s30  ;;  %v7502_v39 = vmax.f32 %v12511_v8, %v7486_v51  ;;  %v15357_v59 = vld [vmem:[#allocation2 + $0x408] sm:$0xff]  ;;  %v17175_v51 = vmax.f32 %v15238_v28, 0.0 }
 0x296   :  { %5357 = vmatprep.mubr.f32.mxu1 %v17132_v7  ;;  %v6942_v15 = vpop.permute.xlu0 %6941  ;;  %v2948_v17 = vmax.f32 %v2918_v31, 0.0  ;;  %v8418_v56 = vld [vmem:[#allocation2 + $0x488] sm:$0xff] }
 0x297   :  { %v6953_v58 = vmax.f32 %v15339_v48, %v6942_v15  ;;  %v2949_v9 = vmax.f32 %v2919_v6, 0.0  ;;  %v2829_v45 = vpop.f32.mrb[80].mxu1  ;;  %v7510_v57 = vmax.f32 %v7502_v39, %v15341_v52  ;;  %v15369_v6 = vld [vmem:[%s17065_s0 + $0x388] sm:$0xff] }
 0x298   :  { %v2920_v24 = vadd.f32 %v15055_v54, %v2829_v45  ;;  %v2831_v49 = vpop.f32.mrb[81].mxu1  ;;  %v15361_v31 = vmax.f32 %v17175_v51, %v2948_v17  ;;  %v17177_v45 = vmax.f32 %v14956_v18, 0.0 }
 0x299   :  { %10753 = vmatmul.mubr.msk.f32.gmra.mrb[126].mxu1 %vm54_vm0, %v14991_v38  ;;  %7072 = vrot.lane.b32.xlu0 %v6953_v58, %s12553_s30  ;;  %2979 = vst.msk [vmem:[#allocation2 + $0x368] sm:$0xff] %vm743_vm1, %v2949_v9  ;;  %v2921_v44 = vadd.f32 %v15071_v5, %v2831_v49  ;;  %v8426_v38 = vmax.f32 %v15357_v59, %v8410_v26  ;;  %v17176_v9 = vmax.f32 %v15065_v32, 0.0  ;;  %v15392_v49 = vld [vmem:[%s17065_s0 + $0x390] sm:$0xff] }
 0x29a   :  { %5363 = vmatprep.mubr.f32.mxu1 %v17132_v7  ;;  %7557 = vrot.lane.b32.xlu1 %v7510_v57, %s12553_s30  ;;  %v2950_v15 = vmax.f32 %v2920_v24, 0.0 }
 0x29b   :  { %v2951_v8 = vmax.f32 %v2921_v44, 0.0  ;;  %v2835_v28 = vpop.f32.mrb[82].mxu1  ;;  %v8434_v39 = vmax.f32 %v8426_v38, %v8418_v56  ;;  %v8425_v57 = vmax.f32 %v17177_v45, %v17176_v9  ;;  %v17178_v56 = vmax.f32 %v15189_v19, 0.0  ;;  %v7488_v9 = vld [vmem:[#allocation2 + $0x2d8] sm:$0xff] }
 0x29c   :  { %v15374_v17 = vadd.f32 %v15055_v54, %v2835_v28  ;;  %v2837_v58 = vpop.f32.mrb[83].mxu1  ;;  %v7815_v26 = vmax.f32 %v2942_v29, %v2950_v15  ;;  %v17180_v28 = vmax.f32 %v15104_v23, 0.0  ;;  %v15438_v23 = vld [vmem:[#allocation2 + $0x318] sm:$0xff] }
 0x29d   :  { %10754 = vmatmul.mubr.msk.f32.gmra.mrb[128].mxu1 %vm54_vm0, %v15369_v6  ;;  %7521 = vrot.lane.b32.xlu0 %v15215_v62, %s12552_s25  ;;  %2981 = vst.msk [vmem:[#allocation2 + $0x378] sm:$0xff] %vm743_vm1, %v2951_v8  ;;  %v2923_v24 = vadd.f32 %v15071_v5, %v2837_v58  ;;  %v15398_v51 = vmax.f32 %v8425_v57, %v17178_v56  ;;  %v15418_v8 = vld [vmem:[%s17065_s0 + $0x398] sm:$0xff] }
 0x29e   :  { %5369 = vmatprep.mubr.f32.mxu1 %v17132_v7  ;;  %8481 = vrot.lane.b32.xlu1 %v8434_v39, %s12553_s30  ;;  %v17099_v32 = vmax.f32 %v15374_v17, 0.0  ;;  %v17181_v39 = vmax.f32 %v14980_v22, 0.0 }
 0x29f   :  { %17179 = vst [vmem:[#allocation15_spill] sm:$0xff] %v15398_v51  ;;  %v2953_v63 = vmax.f32 %v2923_v24, 0.0  ;;  %v2841_v29 = vpop.f32.mrb[84].mxu1  ;;  %v17182_v24 = vmax.f32 %v15221_v42, 0.0 }
 0x2a0   :  { %v15401_v44 = vadd.f32 %v15055_v54, %v2841_v29  ;;  %v2843_v38 = vpop.f32.mrb[85].mxu1  ;;  %v15410_v15 = vmax.f32 %v15323_v46, %v17099_v32  ;;  %v8427_v46 = vmax.f32 %v17181_v39, %v17180_v28  ;;  %v12512_v28 = vld [vmem:[#allocation2 + $0x298] sm:$0xff] }
 0x2a1   :  { %10755 = vmatmul.mubr.msk.f32.gmra.mrb[130].mxu1 %vm54_vm0, %v15392_v49  ;;  %8445 = vrot.lane.b32.xlu0 %v15398_v51, %s12552_s25  ;;  %2983 = vst.msk [vmem:[#allocation2 + $0x388] sm:$0xff] %vm743_vm1, %v2953_v63  ;;  %v2925_v19 = vadd.f32 %v15071_v5, %v2843_v38  ;;  %v7504_v39 = vmax.f32 %v12512_v28, %v7488_v9  ;;  %v15464_v32 = vld [vmem:[#allocation2 + $0x418] sm:$0xff]  ;;  %v15477_v28 = vld [vmem:[%s17065_s0 + $0x3a8] sm:$0xff] }
 0x2a2   :  { %5375 = vmatprep.mubr.f32.mxu1 %v17132_v7  ;;  %7523 = vrot.lane.b32.xlu1 %v15244_v36, %s12552_s25  ;;  %v17098_v58 = vmax.f32 %v15401_v44, 0.0  ;;  %v15429_v56 = vmax.f32 %v8427_v46, %v17182_v24  ;;  %v8420_v9 = vld [vmem:[#allocation2 + $0x498] sm:$0xff] }
 0x2a3   :  { %v2955_v45 = vmax.f32 %v2925_v19, 0.0  ;;  %v2847_v57 = vpop.f32.mrb[86].mxu1  ;;  %v15451_v19 = vld [vmem:[%s17065_s0 + $0x3a0] sm:$0xff] }
 0x2a4   :  { %17183 = vst [vmem:[#allocation8_spill] sm:$0xff] %v15429_v56  ;;  %v15432_v63 = vadd.f32 %v15055_v54, %v2847_v57  ;;  %v2849_v29 = vpop.f32.mrb[87].mxu1  ;;  %v15443_v38 = vmax.f32 %v15345_v12, %v17098_v58  ;;  %v8412_v12 = vld [vmem:[#allocation2 + $0x458] sm:$0xff] }
 0x2a5   :  { %10756 = vmatmul.mubr.msk.f32.gmra.mrb[132].mxu1 %vm54_vm0, %v15418_v8  ;;  %7537 = vrot.lane.b32.xlu0 %v15215_v62, %s12553_s30  ;;  %2985 = vst.msk [vmem:[#allocation2 + $0x398] sm:$0xff] %vm743_vm1, %v2955_v45  ;;  %v2927_v42 = vadd.f32 %v15071_v5, %v2849_v29  ;;  %v7512_v45 = vmax.f32 %v7504_v39, %v15438_v23 }
 0x2a6   :  { %5381 = vmatprep.mubr.f32.mxu1 %v17132_v7  ;;  %8447 = vrot.lane.b32.xlu1 %v15429_v56, %s12552_s25  ;;  %v17102_v46 = vmax.f32 %v15432_v63, 0.0  ;;  %v8428_v39 = vmax.f32 %v15464_v32, %v8412_v12  ;;  %v17185_v12 = vmax.f32 %v15009_v21, 0.0 }
 0x2a7   :  { %v2957_v57 = vmax.f32 %v2927_v42, 0.0  ;;  %v2853_v24 = vpop.f32.mrb[88].mxu1 }
 0x2a8   :  { %v15458_v29 = vadd.f32 %v15055_v54, %v2853_v24  ;;  %v2855_v58 = vpop.f32.mrb[89].mxu1  ;;  %v15469_v42 = vmax.f32 %v15361_v31, %v17102_v46  ;;  %v8436_v31 = vmax.f32 %v8428_v39, %v8420_v9  ;;  %v15532_v39 = vld [vmem:[#allocation2 + $0x328] sm:$0xff] }
 0x2a9   :  { %10757 = vmatmul.mubr.msk.f32.gmra.mrb[134].mxu1 %vm54_vm0, %v15451_v19  ;;  %8461 = vrot.lane.b32.xlu0 %v15398_v51, %s12553_s30  ;;  %2987 = vst.msk [vmem:[#allocation2 + $0x3a8] sm:$0xff] %vm743_vm1, %v2957_v57  ;;  %v2929_v54 = vadd.f32 %v15071_v5, %v2855_v58  ;;  %v15495_v58 = vld [vmem:[%s17065_s0 + $0x3b0] sm:$0xff]  ;;  %v7802_v1 = vld [vmem:[#allocation2 + $0x388] sm:$0xff] }
 0x2aa   :  { %5387 = vmatprep.mubr.f32.mxu1 %v17132_v7  ;;  %7559 = vrot.lane.b32.xlu1 %v7512_v45, %s12553_s30  ;;  %v17101_v24 = vmax.f32 %v15458_v29, 0.0  ;;  %v17186_v45 = vmax.f32 %v15250_v25, 0.0  ;;  %v7490_v25 = vld [vmem:[#allocation2 + $0x2e8] sm:$0xff] }
 0x2ab   :  { %v2959_v3 = vmax.f32 %v2929_v54, 0.0  ;;  %v15522_v54 = vpop.permute.xlu0 %6923 }
 0x2ac   :  { %v15488_v5 = vmax.f32 %v7815_v26, %v17101_v24  ;;  %v17184_v26 = vmax.f32 %v15136_v61, 0.0  ;;  %v15528_v61 = vld [vmem:[%s17065_s0 + $0x3c0] sm:$0xff] }
 0x2ad   :  { %10758 = vmatmul.mubr.msk.f32.gmra.mrb[136].mxu1 %vm54_vm0, %v15477_v28  ;;  %7539 = vrot.lane.b32.xlu0 %v15244_v36, %s12553_s30  ;;  %2989 = vst.msk [vmem:[#allocation2 + $0x3b8] sm:$0xff] %vm743_vm1, %v2959_v3  ;;  %v15506_v3 = vld [vmem:[%s17065_s0 + $0x3b8] sm:$0xff]  ;;  %17188 = vst [vmem:[#allocation10_spill] sm:$0xff] %v15528_v61 }
 0x2ae   :  { %5393 = vmatprep.mubr.f32.mxu1 %v17132_v7  ;;  %8483 = vrot.lane.b32.xlu1 %v8436_v31, %s12553_s30  ;;  %v8429_v57 = vmax.f32 %v17185_v12, %v17184_v26  ;;  %v12513_v31 = vld [vmem:[#allocation2 + $0x2a8] sm:$0xff]  ;;  %v10823_v12 = vld [vmem:[%s17068_s3 + $0x50] sm:$0xff]  ;;  %v15560_v36 = vld [vmem:[#allocation2 + $0x338] sm:$0xff] }
 0x2af   :  { %v7506_v26 = vmax.f32 %v12513_v31, %v7490_v25  ;;  %v8414_v25 = vld [vmem:[#allocation2 + $0x468] sm:$0xff] }
 0x2b0   :  { %v15516_v9 = vmax.f32 %v8429_v57, %v17186_v45  ;;  %v10824_v57 = vld [vmem:[%s17068_s3 + $0x58] sm:$0xff]  ;;  %v15548_v45 = vld [vmem:[%s17065_s0 + $0x3c8] sm:$0xff] }
 0x2b1   :  { %10759 = vmatmul.mubr.msk.f32.gmra.mrb[138].mxu1 %vm54_vm0, %v15495_v58  ;;  %8463 = vrot.lane.b32.xlu0 %v15429_v56, %s12553_s30  ;;  %17189 = vst [vmem:[#allocation11_spill] sm:$0xff] %v15548_v45  ;;  %v7514_v46 = vmax.f32 %v7506_v26, %v15532_v39  ;;  %v11703_v56 = vpack.c.bf16 %v10824_v57, %v10823_v12  ;;  %v10830_v26 = vld [vmem:[%s17069_s4 + $0x48] sm:$0xff]  ;;  %v15573_v12 = vld [vmem:[%s17065_s0 + $0x3d0] sm:$0xff] }
 0x2b2   :  { %5399 = vmatprep.mubr.f32.mxu1 %v17132_v7  ;;  %7525 = vrot.lane.b32.xlu1 %v15276_v53, %s12552_s25  ;;  %17187 = vst [vmem:[#allocation9_spill] sm:$0xff] %v15516_v9 }
 0x2b5   :  { %10760 = vmatmul.mubr.msk.f32.gmra.mrb[140].mxu1 %vm54_vm0, %v15506_v3  ;;  %7541 = vrot.lane.b32.xlu0 %v15276_v53, %s12553_s30  ;;  %v15555_v53 = vld [vmem:[#allocation2 + $0x428] sm:$0xff] }
 0x2b6   :  { %5405 = vmatprep.mubr.f32.mxu1 %v17132_v7  ;;  %8449 = vrot.lane.b32.xlu1 %v15516_v9, %s12552_s25  ;;  %v8430_v14 = vmax.f32 %v15555_v53, %v8414_v25 }
 0x2b9   :  { %10761 = vmatmul.mubr.msk.f32.gmra.mrb[142].mxu1 %vm54_vm0, %v15528_v61  ;;  %8465 = vrot.lane.b32.xlu0 %v15516_v9, %s12553_s30  ;;  %v7492_v9 = vld [vmem:[#allocation2 + $0x2f8] sm:$0xff]  ;;  %v8422_v61 = vld [vmem:[#allocation2 + $0x4a8] sm:$0xff] }
 0x2ba   :  { %5411 = vmatprep.mubr.f32.mxu1 %v17132_v7  ;;  %7527 = vrot.lane.b32.xlu1 %v15307_v55, %s12552_s25  ;;  %v6457_v24 = vpop.permute.xlu0 %6456  ;;  %v8438_v25 = vmax.f32 %v8430_v14, %v8422_v61  ;;  %v15588_v14 = vld [vmem:[%s17065_s0 + $0x3d8] sm:$0xff]  ;;  %v8102_v61 = vld [vmem:[#allocation2 + $0x3c8] sm:$0xff] }
 0x2bb   :  { %v6459_v31 = vpop.permute.xlu1 %6458  ;;  %11305 = vmatprep.mubr.msk.f32.mxu0 %vm6062_vm2, %v6457_v24  ;;  %v10829_v24 = vld [vmem:[%s17069_s4 + $0x40] sm:$0xff] }
 0x2bc   :  { %11306 = vmatmul.mubr.msk.f32.vlgmr.msra.gmra.mrb[120].mxu0 %vm6062_vm2, %v6459_v31  ;;  %v7794_v31 = vld [vmem:[#allocation2 + $0x348] sm:$0xff]  ;;  %v15579_v51 = vpack.c.bf16 %v10830_v26, %v10829_v24  ;;  %v8118_v24 = vmax.f32 %v7802_v1, %v8102_v61  ;;  %v17190_v26 = vmax.f32 %v15374_v17, 0.0 }
 0x2bd   :  { %10762 = vmatmul.mubr.msk.f32.gmra.mrb[144].mxu1 %vm54_vm0, %v15548_v45  ;;  %7561 = vrot.lane.b32.xlu0 %v7514_v46, %s12553_s30  ;;  %v12514_v46 = vld [vmem:[#allocation2 + $0x2b8] sm:$0xff] }
 0x2be   :  { %5417 = vmatprep.mubr.f32.mxu1 %v17132_v7  ;;  %7543 = vrot.lane.b32.xlu1 %v15307_v55, %s12553_s30  ;;  %v7508_v57 = vmax.f32 %v12514_v46, %v7492_v9 }
 0x2bf   :  { %11702 = vmatpush3.bf16.msra.mxu0 %v15181_v41  ;;  %v7810_v41 = vmax.f32 %v15341_v52, %v7794_v31  ;;  %v8101_v52 = vld [vmem:[#allocation2 + $0x3c0] sm:$0xff]  ;;  %v7796_v31 = vld [vmem:[#allocation2 + $0x358] sm:$0xff] }
 0x2c0   :  { %v7516_v45 = vmax.f32 %v7508_v57, %v15560_v36  ;;  %11704 = vmatprep.subr.bf16.mxu0 %v11703_v56  ;;  %v8117_v46 = vmax.f32 %v17190_v26, %v8101_v52  ;;  %v5208_v57 = vld [vmem:[%s17065_s0 + $0x350] sm:$0xff]  ;;  %v5210_v52 = vld [vmem:[%s17065_s0 + $0x360] sm:$0xff] }
 0x2c1   :  { %10763 = vmatmul.mubr.msk.f32.gmra.mrb[146].mxu1 %vm54_vm0, %v15573_v12  ;;  %8485 = vrot.lane.b32.xlu0 %v8438_v25, %s12553_s30  ;;  %v7818_v9 = vmax.f32 %v7810_v41, %v7802_v1  ;;  %v8126_v1 = vmax.f32 %v8118_v24, %v15357_v59  ;;  %v17191_v25 = vmax.f32 %v14956_v18, 0.0  ;;  %v5209_v59 = vld [vmem:[%s17065_s0 + $0x358] sm:$0xff]  ;;  %v7812_v18 = vmax.f32 %v15438_v23, %v7796_v31 }
 0x2c2   :  { %5423 = vmatprep.mubr.f32.mxu1 %v17132_v7  ;;  %7563 = vrot.lane.b32.xlu1 %v7516_v45, %s12553_s30  ;;  %v5207_v45 = vld [vmem:[%s17065_s0 + $0x348] sm:$0xff]  ;;  %v7804_v41 = vld [vmem:[#allocation2 + $0x398] sm:$0xff]  ;;  %v17192_v24 = vmax.f32 %v15401_v44, 0.0 }
 0x2c3   :  { %11706 = vmatpush3.bf16.msra.mxu0 %v11703_v56  ;;  %v10780_v56 = vld [vmem:[%s17066_s1 + $0x20] sm:$0xff]  ;;  %v15618_v17 = vmax.f32 %v8117_v46, %v17191_v25  ;;  %v7820_v61 = vmax.f32 %v7812_v18, %v7804_v41  ;;  %v8104_v23 = vld [vmem:[#allocation2 + $0x3d8] sm:$0xff]  ;;  %v17193_v46 = vmax.f32 %v14980_v22, 0.0  ;;  %v7798_v25 = vld [vmem:[#allocation2 + $0x368] sm:$0xff] }
 0x2c4   :  { %11708 = vmatprep.subr.bf16.mxu0 %v15579_v51  ;;  %v8120_v26 = vmax.f32 %v7804_v41, %v8104_v23  ;;  %v7806_v41 = vld [vmem:[#allocation2 + $0x3a8] sm:$0xff]  ;;  %v12516_v18 = vld [vmem:[%s17065_s0 + $0x370] sm:$0xff]  ;;  %v12517_v23 = vld [vmem:[%s17065_s0 + $0x378] sm:$0xff] }
 0x2c5   :  { %10764 = vmatmul.mubr.msk.f32.gmra.mrb[148].mxu1 %vm54_vm0, %v15588_v14  ;;  %7829 = vrot.lane.b32.xlu0 %v15410_v15, %s12552_s25 }
 0x2c6   :  { %5506 = vmatprep.mubr.f32.mxu1 %v17132_v7  ;;  %7865 = vrot.lane.b32.xlu1 %v7818_v9, %s12553_s30  ;;  %v8103_v9 = vld [vmem:[#allocation2 + $0x3d0] sm:$0xff]  ;;  %v8128_v22 = vmax.f32 %v8120_v26, %v15464_v32  ;;  %v17194_v32 = vmax.f32 %v15432_v63, 0.0  ;;  %v17195_v63 = vmax.f32 %v15009_v21, 0.0  ;;  %v8106_v21 = vld [vmem:[#allocation2 + $0x3e8] sm:$0xff] }
 0x2c7   :  { %v10831_v26 = vld [vmem:[%s17069_s4 + $0x50] sm:$0xff] }
 0x2c9   :  { %10765 = vmatmul.mubr.msk.f32.vlgmr.msra.gmra.mrb[120].mxu1 %vm54_vm0, %v5207_v45  ;;  %7845 = vrot.lane.b32.xlu0 %v15410_v15, %s12553_s30  ;;  %v8119_v45 = vmax.f32 %v17192_v24, %v8103_v9 }
 0x2ca   :  { %5512 = vmatprep.mubr.f32.mxu1 %v17132_v7  ;;  %5660 = vmatpush1.msra.mxu1 %v10780_v56  ;;  %v15639_v56 = vpop.permute.xlu0 %7380 }
 0x2cb   :  { %8173 = vrot.lane.b32.xlu1 %v8126_v1, %s12553_s30  ;;  %v15645_v1 = vmax.f32 %v8119_v45, %v17193_v46 }
 0x2cd   :  { %10766 = vmatmul.mubr.msk.f32.gmra.mrb[122].mxu1 %vm54_vm0, %v5208_v57  ;;  %8137 = vrot.lane.b32.xlu0 %v15618_v17, %s12552_s25  ;;  %v12515_v57 = vld [vmem:[%s17065_s0 + $0x368] sm:$0xff] }
 0x2ce   :  { %5518 = vmatprep.mubr.f32.mxu1 %v17132_v7 }
 0x2cf   :  { %7831 = vrot.lane.b32.xlu1 %v15443_v38, %s12552_s25 }
 0x2d1   :  { %10767 = vmatmul.mubr.msk.f32.gmra.mrb[124].mxu1 %vm54_vm0, %v5209_v59  ;;  %8153 = vrot.lane.b32.xlu0 %v15618_v17, %s12553_s30  ;;  %v8105_v59 = vld [vmem:[#allocation2 + $0x3e0] sm:$0xff] }
 0x2d2   :  { %5524 = vmatprep.mubr.f32.mxu1 %v17132_v7  ;;  %v8121_v9 = vmax.f32 %v17194_v32, %v8105_v59  ;;  %v15726_v32 = vpop.permute.xlu1 %7382 }
 0x2d3   :  { %7867 = vrot.lane.b32.xlu1 %v7820_v61, %s12553_s30  ;;  %v7814_v61 = vmax.f32 %v15532_v39, %v7798_v25 }
 0x2d4   :  { %v15685_v39 = vmax.f32 %v8121_v9, %v17195_v63  ;;  %v8107_v9 = vld [vmem:[#allocation2 + $0x3f0] sm:$0xff]  ;;  %v10845_v63 = vld [vmem:[%s17069_s4 + $0x60] sm:$0xff] }
 0x2d5   :  { %10768 = vmatmul.mubr.msk.f32.gmra.mrb[126].mxu1 %vm54_vm0, %v5210_v52  ;;  %7847 = vrot.lane.b32.xlu0 %v15443_v38, %s12553_s30  ;;  %v7822_v45 = vmax.f32 %v7814_v61, %v7806_v41  ;;  %v6625_v52 = vmax.f32 %v15094_v30, %v15076_v20  ;;  %v10832_v20 = vld [vmem:[%s17069_s4 + $0x58] sm:$0xff]  ;;  %v6626_v30 = vmax.f32 %v15074_v40, %v15141_v16  ;;  %v12518_v40 = vld [vmem:[%s17065_s0 + $0x380] sm:$0xff] }
 0x2d6   :  { %5530 = vmatprep.mubr.f32.mxu1 %v17132_v7  ;;  %v10837_v16 = vld [vmem:[%s17068_s3 + $0x60] sm:$0xff] }
 0x2d7   :  { %8139 = vrot.lane.b32.xlu1 %v15645_v1, %s12552_s25  ;;  %v6461_v44 = vpop.permute.xlu0 %6460 }
 0x2d8   :  { %11308 = vmatprep.mubr.msk.f32.mxu0 %vm6062_vm2, %v6461_v44  ;;  %v8122_v44 = vmax.f32 %v7806_v41, %v8106_v21  ;;  %v7800_v41 = vld [vmem:[#allocation2 + $0x378] sm:$0xff] }
 0x2d9   :  { %10769 = vmatmul.mubr.msk.f32.gmra.mrb[128].mxu1 %vm54_vm0, %v12515_v57  ;;  %8155 = vrot.lane.b32.xlu0 %v15645_v1, %s12553_s30  ;;  %v6627_v57 = vmax.f32 %v15211_v60, %v15197_v13  ;;  %v10838_v13 = vld [vmem:[%s17068_s3 + $0x68] sm:$0xff]  ;;  %v6628_v60 = vmax.f32 %v15287_v2, %v15177_v50  ;;  %v10839_v50 = vld [vmem:[%s17068_s3 + $0x70] sm:$0xff]  ;;  %v7808_v2 = vld [vmem:[#allocation2 + $0x3b8] sm:$0xff] }
 0x2da   :  { %5536 = vmatprep.mubr.f32.mxu1 %v17132_v7  ;;  %v8130_v59 = vmax.f32 %v8122_v44, %v15555_v53  ;;  %v10840_v53 = vld [vmem:[%s17068_s3 + $0x78] sm:$0xff] }
 0x2db   :  { %8175 = vrot.lane.b32.xlu1 %v8128_v22, %s12553_s30  ;;  %v15662_v31 = vpop.permute.xlu0 %7384  ;;  %v11711_v22 = vpack.c.bf16 %v10832_v20, %v10831_v26  ;;  %v11719_v61 = vpack.c.bf16 %v10840_v53, %v10839_v50  ;;  %v15755_v26 = vld [vmem:[#allocation2 + $0x430] sm:$0xff]  ;;  %v10848_v50 = vld [vmem:[%s17069_s4 + $0x78] sm:$0xff] }
 0x2dd   :  { %10770 = vmatmul.mubr.msk.f32.gmra.mrb[130].mxu1 %vm54_vm0, %v12516_v18  ;;  %7849 = vrot.lane.b32.xlu0 %v15469_v42, %s12553_s30  ;;  %v11715_v18 = vpack.c.bf16 %v10838_v13, %v10837_v16 }
 0x2de   :  { %5542 = vmatprep.mubr.f32.mxu1 %v17132_v7 }
 0x2df   :  { %7833 = vrot.lane.b32.xlu1 %v15469_v42, %s12552_s25  ;;  %v6463_v24 = vpop.permute.xlu0 %6462 }
 0x2e0   :  { %11309 = vmatmul.mubr.msk.f32.gmra.mrb[122].mxu0 %vm6062_vm2, %v6463_v24 }
 0x2e1   :  { %10771 = vmatmul.mubr.msk.f32.gmra.mrb[132].mxu1 %vm54_vm0, %v12517_v23  ;;  %7869 = vrot.lane.b32.xlu0 %v7822_v45, %s12553_s30 }
 0x2e2   :  { %5548 = vmatprep.mubr.f32.mxu1 %v17132_v7  ;;  %11319 = vmatprep.mubr.msk.f32.mxu0 %vm6062_vm2, %v6625_v52  ;;  %v17196_v52 = vmax.f32 %v15458_v29, 0.0 }
 0x2e3   :  { %8141 = vrot.lane.b32.xlu1 %v15685_v39, %s12552_s25  ;;  %v15700_v46 = vpop.permute.xlu0 %7386 }
 0x2e4   :  { %11320 = vmatmul.mubr.msk.f32.vlgmr.msra.gmra.mrb[120].mxu0 %vm6062_vm2, %v6626_v30  ;;  %v8123_v23 = vmax.f32 %v17196_v52, %v8107_v9  ;;  %v8108_v30 = vld [vmem:[#allocation2 + $0x3f8] sm:$0xff]  ;;  %v10853_v52 = vld [vmem:[%s17068_s3 + $0x80] sm:$0xff] }
 0x2e5   :  { %10772 = vmatmul.mubr.msk.f32.gmra.mrb[134].mxu1 %vm54_vm0, %v12518_v40  ;;  %8157 = vrot.lane.b32.xlu0 %v15685_v39, %s12553_s30  ;;  %v8124_v21 = vmax.f32 %v7808_v2, %v8108_v30  ;;  %v5105_v40 = vld [vmem:[%s17067_s2] sm:$0x3] }
 0x2e6   :  { %5554 = vmatprep.mubr.f32.mxu1 %v17132_v7  ;;  %11322 = vmatprep.mubr.msk.f32.mxu0 %vm6062_vm2, %v6627_v57  ;;  %v6767_v24 = vpop.permute.xlu1 %6766  ;;  %v15760_v20 = vmax.f32 %v8123_v23, %v15755_v26  ;;  %v15771_v57 = vld [vmem:[#allocation2 + $0x438] sm:$0xff]  ;;  %v15786_v13 = vrot.slane %v5105_v40, %v13226_v0  ;;  %v10854_v23 = vld [vmem:[%s17068_s3 + $0x88] sm:$0xff] }
 0x2e7   :  { %7835 = vrot.lane.b32.xlu1 %v15488_v5, %s12552_s25  ;;  %11710 = vmatpush3.bf16.msra.mxu0 %v15579_v51  ;;  %v6765_v25 = vpop.permute.xlu0 %6764  ;;  %v7816_v51 = vmax.f32 %v15560_v36, %v7800_v41  ;;  %v10846_v36 = vld [vmem:[%s17069_s4 + $0x68] sm:$0xff]  ;;  %v11731_v30 = vpack.c.bf16 %v10854_v23, %v10853_v52 }
 0x2e8   :  { %11323 = vmatmul.mubr.msk.f32.gmra.mrb[122].mxu0 %vm6062_vm2, %v6628_v60  ;;  %11712 = vmatprep.subr.bf16.mxu0 %v11711_v22  ;;  %v11723_v29 = vpack.c.bf16 %v10846_v36, %v10845_v63  ;;  %v15790_v60 = vrot.slane %v5105_v40, %v13233_v4 }
 0x2e9   :  { %10773 = vmatmul.mubr.msk.f32.gmra.mrb[136].mxu1 %vm54_vm0, %v15369_v6  ;;  %8177 = vrot.lane.b32.xlu0 %v8130_v59, %s12553_s30  ;;  %v7824_v45 = vmax.f32 %v7816_v51, %v7808_v2 }
 0x2ea   :  { %5560 = vmatprep.mubr.f32.mxu1 %v17132_v7  ;;  %11333 = vmatprep.mubr.msk.f32.mxu0 %vm6062_vm2, %v6765_v25  ;;  %v6933_v25 = vmax.f32 %v15339_v48, %v15331_v10  ;;  %v6934_v48 = vmax.f32 %v15329_v34, %v15522_v54  ;;  %v6936_v54 = vmax.f32 %v15314_v43, %v15260_v11 }
 0x2eb   :  { %7851 = vrot.lane.b32.xlu1 %v15488_v5, %s12553_s30  ;;  %11714 = vmatpush3.bf16.msra.mxu0 %v11711_v22  ;;  %v8132_v22 = vmax.f32 %v8124_v21, %v15771_v57 }
 0x2ec   :  { %11716 = vmatprep.subr.bf16.mxu0 %v11715_v18 }
 0x2ed   :  { %10774 = vmatmul.mubr.msk.f32.gmra.mrb[138].mxu1 %vm54_vm0, %v15392_v49 }
 0x2ee   :  { %5566 = vmatprep.mubr.f32.mxu1 %v17132_v7  ;;  %11334 = vmatmul.mubr.msk.f32.vlgmr.msra.gmra.mrb[120].mxu0 %vm6062_vm2, %v6767_v24 }
 0x2ef   :  { %7871 = vrot.lane.b32.xlu1 %v7824_v45, %s12553_s30  ;;  %11718 = vmatpush3.bf16.msra.mxu0 %v11715_v18  ;;  %v10847_v18 = vld [vmem:[%s17069_s4 + $0x70] sm:$0xff] }
 0x2f0   :  { %11720 = vmatprep.subr.bf16.mxu0 %v11719_v61  ;;  %v11727_v9 = vpack.c.bf16 %v10848_v50, %v10847_v18 }
 0x2f1   :  { %10775 = vmatmul.mubr.msk.f32.gmra.mrb[140].mxu1 %vm54_vm0, %v15418_v8 }
 0x2f2   :  { %5572 = vmatprep.mubr.f32.mxu1 %v17132_v7 }
 0x2f3   :  { %8143 = vrot.lane.b32.xlu1 %v15760_v20, %s12552_s25  ;;  %11722 = vmatpush3.bf16.msra.mxu0 %v11719_v61  ;;  %v6935_v61 = vmax.f32 %v15263_v35, %v15283_v47 }
 0x2f4   :  { %11724 = vmatprep.subr.bf16.mxu0 %v11723_v29 }
 0x2f5   :  { %10776 = vmatmul.mubr.msk.f32.gmra.mrb[142].mxu1 %vm54_vm0, %v15451_v19 }
 0x2f6   :  { %5578 = vmatprep.mubr.f32.mxu1 %v17132_v7 }
 0x2f7   :  { %8159 = vrot.lane.b32.xlu1 %v15760_v20, %s12553_s30  ;;  %v6769_v44 = vpop.permute.xlu0 %6768 }
 0x2f8   :  { %11336 = vmatprep.mubr.msk.f32.mxu0 %vm6062_vm2, %v6769_v44 }
 0x2f9   :  { %10777 = vmatmul.mubr.msk.f32.gmra.mrb[144].mxu1 %vm54_vm0, %v15477_v28 }
 0x2fa   :  { %5584 = vmatprep.mubr.f32.mxu1 %v17132_v7 }
 0x2fb   :  { %8179 = vrot.lane.b32.xlu1 %v8132_v22, %s12553_s30  ;;  %v10855_v22 = vld [vmem:[%s17068_s3 + $0x90] sm:$0xff] }
 0x2fd   :  { %10778 = vmatmul.mubr.msk.f32.gmra.mrb[146].mxu1 %vm54_vm0, %v15495_v58  ;;  %v15783_v16 = vpop.permute.xlu0 %7076 }
 0x2fe   :  { %5590 = vmatprep.mubr.f32.mxu1 %v17132_v7 }
 0x301   :  { %v4986_v59 = vpop.f32.mrb[90].mxu0  ;;  %10779 = vmatmul.mubr.msk.f32.gmra.mrb[148].mxu1 %vm54_vm0, %v15506_v3  ;;  %v6771_v41 = vpop.permute.xlu0 %6770 }
 0x302   :  { %v15803_v53 = vadd.f32 %v15786_v13, %v4986_v59  ;;  %v4988_v2 = vpop.f32.mrb[91].mxu0  ;;  %5723 = vmatprep.mubr.f32.mxu1 %v17132_v7  ;;  %11337 = vmatmul.mubr.msk.f32.gmra.mrb[122].mxu0 %vm6062_vm2, %v6771_v41 }
 0x303   :  { %v5118_v10 = vadd.f32 %v15790_v60, %v4988_v2  ;;  %11347 = vmatprep.mubr.msk.f32.mxu0 %vm6062_vm2, %v6933_v25  ;;  %v10861_v2 = vld [vmem:[%s17069_s4 + $0x80] sm:$0xff] }
 0x304   :  { %v5147_v51 = vmax.f32 %v15803_v53, 0.0 }
 0x305   :  { %v5148_v24 = vmax.f32 %v5118_v10, 0.0  ;;  %v4992_v45 = vpop.f32.mrb[92].mxu0  ;;  %10782 = vmatmul.mubr.msk.f32.vlgmr.msra.gmra.mrb[120].mxu1 %vm54_vm0, %v15369_v6  ;;  %v7079_v6 = vpop.permute.xlu0 %7078  ;;  %v10862_v10 = vld [vmem:[%s17069_s4 + $0x88] sm:$0xff] }
 0x306   :  { %5177 = vst [vmem:[#allocation2 + $0x5a0] sm:$0xff] %v5147_v51  ;;  %v15825_v34 = vadd.f32 %v15786_v13, %v4992_v45  ;;  %v4994_v35 = vpop.f32.mrb[93].mxu0  ;;  %5729 = vmatprep.mubr.f32.mxu1 %v17132_v7  ;;  %11348 = vmatmul.mubr.msk.f32.vlgmr.msra.gmra.mrb[120].mxu0 %vm6062_vm2, %v6934_v48  ;;  %v11739_v23 = vpack.c.bf16 %v10862_v10, %v10861_v2 }
 0x307   :  { %5178 = vst.msk [vmem:[#allocation2 + $0x5a8] sm:$0xff] %vm743_vm1, %v5148_v24  ;;  %v5120_v47 = vadd.f32 %v15790_v60, %v4994_v35  ;;  %11350 = vmatprep.mubr.msk.f32.mxu0 %vm6062_vm2, %v6935_v61  ;;  %11726 = vmatpush3.bf16.msra.mxu0 %v11723_v29  ;;  %v7075_v36 = vpop.permute.xlu1 %7074  ;;  %v10856_v29 = vld [vmem:[%s17068_s3 + $0x98] sm:$0xff]  ;;  %v7241_v35 = vmax.f32 %v14865_v27, %v14841_v33 }
 0x308   :  { %v17116_v63 = vmax.f32 %v15825_v34, 0.0  ;;  %11728 = vmatprep.subr.bf16.mxu0 %v11727_v9  ;;  %v11735_v41 = vpack.c.bf16 %v10856_v29, %v10855_v22 }
 0x309   :  { %v5150_v21 = vmax.f32 %v5120_v47, 0.0  ;;  %v4998_v44 = vpop.f32.mrb[94].mxu0  ;;  %10783 = vmatmul.mubr.msk.f32.gmra.mrb[122].mxu1 %vm54_vm0, %v15392_v49 }
 0x30a   :  { %v5121_v11 = vadd.f32 %v15786_v13, %v4998_v44  ;;  %v5000_v43 = vpop.f32.mrb[95].mxu0  ;;  %5735 = vmatprep.mubr.f32.mxu1 %v17132_v7  ;;  %11351 = vmatmul.mubr.msk.f32.gmra.mrb[122].mxu0 %vm6062_vm2, %v6936_v54 }
 0x30b   :  { %5180 = vst.msk [vmem:[#allocation2 + $0x5b8] sm:$0xff] %vm743_vm1, %v5150_v21  ;;  %v5122_v40 = vadd.f32 %v15790_v60, %v5000_v43  ;;  %11730 = vmatpush3.bf16.msra.mxu0 %v11727_v9  ;;  %v7073_v49 = vpop.permute.xlu0 %7072  ;;  %v17197_v21 = vld [vmem:[#allocation16_spill] sm:$0xff] }
 0x30c   :  { %v5151_v25 = vmax.f32 %v5121_v11, 0.0  ;;  %v7558_v59 = vpop.permute.xlu1 %7557  ;;  %11361 = vmatprep.mubr.msk.f32.mxu0 %vm6062_vm2, %v7073_v49  ;;  %11732 = vmatprep.subr.bf16.mxu0 %v11731_v30  ;;  %v7242_v44 = vmax.f32 %v17197_v21, %v14912_v37  ;;  %v17198_v11 = vld [vmem:[#allocation15_spill] sm:$0xff]  ;;  %v17200_v49 = vld [vmem:[#allocation14_spill] sm:$0xff] }
 0x30d   :  { %v5152_v18 = vmax.f32 %v5122_v40, 0.0  ;;  %v5004_v50 = vpop.f32.mrb[96].mxu0  ;;  %10784 = vmatmul.mubr.msk.f32.gmra.mrb[124].mxu1 %vm54_vm0, %v15418_v8  ;;  %v17199_v40 = vld [vmem:[#allocation17_spill] sm:$0xff]  ;;  %v10869_v37 = vld [vmem:[%s17068_s3 + $0xa0] sm:$0xff] }
 0x30e   :  { %5181 = vst [vmem:[#allocation2 + $0x5c0] sm:$0xff] %v5151_v25  ;;  %v5123_v48 = vadd.f32 %v15786_v13, %v5004_v50  ;;  %v5006_v9 = vpop.f32.mrb[97].mxu0  ;;  %5741 = vmatprep.mubr.f32.mxu1 %v17132_v7  ;;  %11362 = vmatmul.mubr.msk.f32.vlgmr.msra.gmra.mrb[120].mxu0 %vm6062_vm2, %v7075_v36  ;;  %v10864_v36 = vld [vmem:[%s17069_s4 + $0x98] sm:$0xff]  ;;  %v7243_v25 = vmax.f32 %v17200_v49, %v17199_v40  ;;  %v9038_v21 = vld [vmem:[#allocation2 + $0x5a8] sm:$0xff] }
 0x30f   :  { %5182 = vst.msk [vmem:[#allocation2 + $0x5c8] sm:$0xff] %vm743_vm1, %v5152_v18  ;;  %v5124_v8 = vadd.f32 %v15790_v60, %v5006_v9  ;;  %11364 = vmatprep.mubr.msk.f32.mxu0 %vm6062_vm2, %v15783_v16  ;;  %11734 = vmatpush3.bf16.msra.mxu0 %v11731_v30  ;;  %v7522_v61 = vpop.permute.xlu0 %7521  ;;  %v10863_v16 = vld [vmem:[%s17069_s4 + $0x90] sm:$0xff]  ;;  %v10870_v18 = vld [vmem:[%s17068_s3 + $0xa8] sm:$0xff]  ;;  %v17201_v9 = vld [vmem:[#allocation18_spill] sm:$0xff] }
 0x310   :  { %v5153_v24 = vmax.f32 %v5123_v48, 0.0  ;;  %v8482_v45 = vpop.permute.xlu1 %8481  ;;  %v15865_v52 = vmax.f32 %v15215_v62, %v7522_v61  ;;  %11736 = vmatprep.subr.bf16.mxu0 %v11735_v41 }
 0x311   :  { %v5154_v47 = vmax.f32 %v5124_v8, 0.0  ;;  %v5010_v54 = vpop.f32.mrb[98].mxu0  ;;  %10785 = vmatmul.mubr.msk.f32.gmra.mrb[126].mxu1 %vm54_vm0, %v15451_v19  ;;  %v17202_v8 = vld [vmem:[#allocation13_spill] sm:$0xff] }
 0x312   :  { %5183 = vst [vmem:[#allocation2 + $0x5d0] sm:$0xff] %v5153_v24  ;;  %v15878_v62 = vadd.f32 %v15786_v13, %v5010_v54  ;;  %v5012_v30 = vpop.f32.mrb[99].mxu0  ;;  %5747 = vmatprep.mubr.f32.mxu1 %v17132_v7  ;;  %v7569_v33 = vmax.f32 %v15865_v52, %v7558_v59  ;;  %11365 = vmatmul.mubr.msk.f32.gmra.mrb[122].mxu0 %vm6062_vm2, %v7079_v6 }
 0x313   :  { %5184 = vst.msk [vmem:[#allocation2 + $0x5d8] sm:$0xff] %vm743_vm1, %v5154_v47  ;;  %v5126_v27 = vadd.f32 %v15790_v60, %v5012_v30  ;;  %11738 = vmatpush3.bf16.msra.mxu0 %v11735_v41  ;;  %11375 = vmatprep.mubr.msk.f32.mxu0 %vm6062_vm2, %v7241_v35  ;;  %v8446_v19 = vpop.permute.xlu0 %8445  ;;  %v11743_v6 = vpack.c.bf16 %v10864_v36, %v10863_v16  ;;  %v10871_v36 = vld [vmem:[%s17068_s3 + $0xb0] sm:$0xff]  ;;  %v10872_v30 = vld [vmem:[%s17068_s3 + $0xb8] sm:$0xff] }
 0x314   :  { %v5155_v22 = vmax.f32 %v15878_v62, 0.0  ;;  %v7524_v29 = vpop.permute.xlu1 %7523  ;;  %v15890_v43 = vmax.f32 %v17198_v11, %v8446_v19  ;;  %7688 = vrot.lane.b32.xlu0 %v7569_v33, %s12553_s30  ;;  %11740 = vmatprep.subr.bf16.mxu0 %v11739_v23  ;;  %v7244_v61 = vmax.f32 %v17202_v8, %v17201_v9  ;;  %v17203_v33 = vld [vmem:[#allocation6_spill] sm:$0xff] }
 0x315   :  { %v5156_v59 = vmax.f32 %v5126_v27, 0.0  ;;  %v5016_v41 = vpop.f32.mrb[100].mxu0  ;;  %10786 = vmatmul.mubr.msk.f32.gmra.mrb[128].mxu1 %vm54_vm0, %v15477_v28  ;;  %v15934_v27 = vmax.f32 %v17203_v33, %v7524_v29  ;;  %v4366_v29 = vld [vmem:[%s17067_s2] sm:$0x3] }
 0x316   :  { %v15904_v50 = vadd.f32 %v15786_v13, %v5016_v41  ;;  %v5018_v2 = vpop.f32.mrb[101].mxu0  ;;  %5753 = vmatprep.mubr.f32.mxu1 %v17132_v7  ;;  %v8493_v10 = vmax.f32 %v15890_v43, %v8482_v45  ;;  %11376 = vmatmul.mubr.msk.f32.vlgmr.msra.gmra.mrb[120].mxu0 %vm6062_vm2, %v7242_v44  ;;  %v11747_v45 = vpack.c.bf16 %v10870_v18, %v10869_v37  ;;  %v17204_v37 = vld [vmem:[#allocation8_spill] sm:$0xff] }
 0x317   :  { %5186 = vst.msk [vmem:[#allocation2 + $0x5e8] sm:$0xff] %vm743_vm1, %v5156_v59  ;;  %v5128_v28 = vadd.f32 %v15790_v60, %v5018_v2  ;;  %11378 = vmatprep.mubr.msk.f32.mxu0 %vm6062_vm2, %v7243_v25  ;;  %11742 = vmatpush3.bf16.msra.mxu0 %v11739_v23  ;;  %v15912_v48 = vpop.permute.xlu0 %7537  ;;  %v10878_v59 = vld [vmem:[%s17069_s4 + $0xa8] sm:$0xff] }
 0x318   :  { %v5157_v24 = vmax.f32 %v15904_v50, 0.0  ;;  %v8448_v35 = vpop.permute.xlu1 %8447  ;;  %8612 = vrot.lane.b32.xlu0 %v8493_v10, %s12553_s30  ;;  %11744 = vmatprep.subr.bf16.mxu0 %v11743_v6  ;;  %v15969_v10 = vrot.slane %v4366_v29, %v13226_v0  ;;  %v7549_v8 = vmax.f32 %v15865_v52, %v15912_v48 }
 0x319   :  { %v5158_v47 = vmax.f32 %v5128_v28, 0.0  ;;  %v5022_v54 = vpop.f32.mrb[102].mxu0  ;;  %10787 = vmatmul.mubr.msk.f32.gmra.mrb[130].mxu1 %vm54_vm0, %v15495_v58  ;;  %v15962_v18 = vmax.f32 %v17204_v37, %v8448_v35  ;;  %v17205_v35 = vld [vmem:[#allocation10_spill] sm:$0xff]  ;;  %v17207_v37 = vld [vmem:[#allocation7_spill] sm:$0xff] }
 0x31a   :  { %v15921_v16 = vadd.f32 %v15786_v13, %v5022_v54  ;;  %v5024_v23 = vpop.f32.mrb[103].mxu0  ;;  %5759 = vmatprep.mubr.f32.mxu1 %v17132_v7  ;;  %11379 = vmatmul.mubr.msk.f32.gmra.mrb[122].mxu0 %vm6062_vm2, %v7244_v61  ;;  %v10879_v54 = vld [vmem:[%s17069_s4 + $0xb0] sm:$0xff] }
 0x31b   :  { %5188 = vst.msk [vmem:[#allocation2 + $0x5f8] sm:$0xff] %vm743_vm1, %v5158_v47  ;;  %v5130_v58 = vadd.f32 %v15790_v60, %v5024_v23  ;;  %11746 = vmatpush3.bf16.msra.mxu0 %v11743_v6  ;;  %11389 = vmatprep.mubr.msk.f32.mxu0 %vm6062_vm2, %v15639_v56  ;;  %v15938_v19 = vpop.permute.xlu0 %8461  ;;  %v11751_v6 = vpack.c.bf16 %v10872_v30, %v10871_v36 }
 0x31c   :  { %v7560_v44 = vpop.permute.xlu1 %7559  ;;  %11748 = vmatprep.subr.bf16.mxu0 %v11747_v45  ;;  %v15989_v23 = vrot.slane %v4366_v29, %v13233_v4 }
 0x31d   :  { %v5160_v11 = vmax.f32 %v5130_v58, 0.0  ;;  %v5028_v40 = vpop.f32.mrb[104].mxu0  ;;  %10788 = vmatmul.mubr.msk.f32.gmra.mrb[132].mxu1 %vm54_vm0, %v15506_v3  ;;  %v7570_v49 = vmax.f32 %v15934_v27, %v7560_v44  ;;  %v10877_v3 = vld [vmem:[%s17069_s4 + $0xa0] sm:$0xff] }
 0x31e   :  { %v15948_v56 = vadd.f32 %v15786_v13, %v5028_v40  ;;  %v5030_v25 = vpop.f32.mrb[105].mxu0  ;;  %5765 = vmatprep.mubr.f32.mxu1 %v17132_v7  ;;  %11390 = vmatmul.mubr.msk.f32.vlgmr.msra.gmra.mrb[120].mxu0 %vm6062_vm2, %v15726_v32 }
 0x31f   :  { %5190 = vst.msk [vmem:[#allocation2 + $0x608] sm:$0xff] %vm743_vm1, %v5160_v11  ;;  %v5132_v41 = vadd.f32 %v15790_v60, %v5030_v25  ;;  %7690 = vrot.lane.b32.xlu1 %v7570_v49, %s12553_s30  ;;  %11392 = vmatprep.mubr.msk.f32.mxu0 %vm6062_vm2, %v15662_v31  ;;  %v7540_v32 = vpop.permute.xlu0 %7539  ;;  %v11755_v31 = vpack.c.bf16 %v10878_v59, %v10877_v3  ;;  %v8415_v11 = vld [vmem:[#allocation2 + $0x470] sm:$0xff]  ;;  %v17206_v59 = vld [vmem:[#allocation11_spill] sm:$0xff] }
 0x320   :  { %v17113_v2 = vmax.f32 %v15948_v56, 0.0  ;;  %v8484_v28 = vpop.permute.xlu1 %8483  ;;  %11750 = vmatpush3.bf16.msra.mxu0 %v11747_v45  ;;  %v10880_v45 = vld [vmem:[%s17069_s4 + $0xb8] sm:$0xff] }
 0x321   :  { %v5162_v9 = vmax.f32 %v5132_v41, 0.0  ;;  %v5034_v61 = vpop.f32.mrb[106].mxu0  ;;  %10789 = vmatmul.mubr.msk.f32.gmra.mrb[134].mxu1 %vm54_vm0, %v17205_v35  ;;  %v8494_v47 = vmax.f32 %v15962_v18, %v8484_v28  ;;  %11752 = vmatprep.subr.bf16.mxu0 %v11751_v6  ;;  %v11759_v40 = vpack.c.bf16 %v10880_v45, %v10879_v54  ;;  %v7550_v41 = vmax.f32 %v15934_v27, %v7540_v32  ;;  %v10885_v27 = vld [vmem:[%s17068_s3 + $0xc0] sm:$0xff]  ;;  %v10886_v32 = vld [vmem:[%s17068_s3 + $0xc8] sm:$0xff] }
 0x322   :  { %5191 = vst [vmem:[#allocation2 + $0x610] sm:$0xff] %v17113_v2  ;;  %v15985_v52 = vadd.f32 %v15786_v13, %v5034_v61  ;;  %v5036_v48 = vpop.f32.mrb[107].mxu0  ;;  %5771 = vmatprep.mubr.f32.mxu1 %v17132_v7  ;;  %11393 = vmatmul.mubr.msk.f32.gmra.mrb[122].mxu0 %vm6062_vm2, %v15700_v46  ;;  %v9353_v46 = vmax.f32 %v5147_v51, %v5155_v22 }
 0x323   :  { %5192 = vst.msk [vmem:[#allocation2 + $0x618] sm:$0xff] %vm743_vm1, %v5162_v9  ;;  %v5134_v36 = vadd.f32 %v15790_v60, %v5036_v48  ;;  %8614 = vrot.lane.b32.xlu1 %v8494_v47, %s12553_s30  ;;  %11403 = vmatprep.mubr.msk.f32.mxu0 %vm6062_vm2, %v7549_v8  ;;  %v15997_v30 = vpop.permute.xlu0 %8463  ;;  %v8431_v61 = vmax.f32 %v15755_v26, %v8415_v11 }
 0x324   :  { %v17112_v58 = vmax.f32 %v15985_v52, 0.0  ;;  %v4247_v33 = vpop.f32.mrb[90].mxu1  ;;  %v7526_v44 = vpop.permute.xlu1 %7525  ;;  %11754 = vmatpush3.bf16.msra.mxu0 %v11751_v6 }
 0x325   :  { %v5164_v49 = vmax.f32 %v5134_v36, 0.0  ;;  %v16005_v29 = vadd.f32 %v15969_v10, %v4247_v33  ;;  %v5040_v25 = vpop.f32.mrb[108].mxu0  ;;  %v4249_v3 = vpop.f32.mrb[91].mxu1  ;;  %10790 = vmatmul.mubr.msk.f32.gmra.mrb[136].mxu1 %vm54_vm0, %v17206_v59  ;;  %v16011_v6 = vmax.f32 %v17207_v37, %v7526_v44  ;;  %11756 = vmatprep.subr.bf16.mxu0 %v11755_v31  ;;  %v9355_v36 = vmax.f32 %v17116_v63, %v5157_v24  ;;  %v9338_v63 = vld [vmem:[#allocation2 + $0x5e8] sm:$0xff] }
 0x326   :  { %v16014_v53 = vadd.f32 %v15786_v13, %v5040_v25  ;;  %v4379_v51 = vadd.f32 %v15989_v23, %v4249_v3  ;;  %v5042_v62 = vpop.f32.mrb[109].mxu0  ;;  %5777 = vmatprep.mubr.f32.mxu1 %v17132_v7  ;;  %v16020_v22 = vmax.f32 %v9353_v46, %v17112_v58 }
 0x327   :  { %5194 = vst.msk [vmem:[#allocation2 + $0x628] sm:$0xff] %vm743_vm1, %v5164_v49  ;;  %v4408_v28 = vmax.f32 %v16005_v29, 0.0  ;;  %v5136_v9 = vadd.f32 %v15790_v60, %v5042_v62  ;;  %11404 = vmatmul.mubr.msk.f32.vlgmr.msra.gmra.mrb[120].mxu0 %vm6062_vm2, %v7550_v41  ;;  %v7542_v8 = vpop.permute.xlu0 %7541  ;;  %v16050_v49 = vpack.c.bf16 %v10886_v32, %v10885_v27 }
 0x328   :  { %17208 = vst [vmem:[#allocation12_spill] sm:$0xff] %v16020_v22  ;;  %v17111_v35 = vmax.f32 %v16014_v53, 0.0  ;;  %v4409_v47 = vmax.f32 %v4379_v51, 0.0  ;;  %v4253_v54 = vpop.f32.mrb[92].mxu1  ;;  %v16034_v45 = vpop.permute.xlu1 %8449  ;;  %v7551_v48 = vmax.f32 %v16011_v6, %v7542_v8  ;;  %11758 = vmatpush3.bf16.msra.mxu0 %v11755_v31 }
 0x329   :  { %v5166_v33 = vmax.f32 %v5136_v9, 0.0  ;;  %v16042_v44 = vadd.f32 %v15969_v10, %v4253_v54  ;;  %v5046_v46 = vpop.f32.mrb[110].mxu0  ;;  %v4255_v26 = vpop.f32.mrb[93].mxu1  ;;  %10791 = vmatmul.mubr.msk.f32.gmra.mrb[138].mxu1 %vm54_vm0, %v15573_v12  ;;  %v16048_v11 = vmax.f32 %v8431_v61, %v4408_v28  ;;  %11760 = vmatprep.subr.bf16.mxu0 %v11759_v40 }
 0x32a   :  { %4439 = vst.msk [vmem:[#allocation2 + $0x4b8] sm:$0xff] %vm743_vm1, %v4409_v47  ;;  %v16054_v50 = vadd.f32 %v15786_v13, %v5046_v46  ;;  %v4381_v24 = vadd.f32 %v15989_v23, %v4255_v26  ;;  %v5048_v31 = vpop.f32.mrb[111].mxu0  ;;  %5783 = vmatprep.mubr.f32.mxu1 %v17132_v7  ;;  %11406 = vmatprep.mubr.msk.f32.mxu0 %vm6062_vm2, %v7551_v48 }
 0x32b   :  { %v16061_v12 = vmax.f32 %v9355_v36, %v17111_v35  ;;  %5196 = vst.msk [vmem:[#allocation2 + $0x638] sm:$0xff] %vm743_vm1, %v5166_v33  ;;  %v4410_v25 = vmax.f32 %v16042_v44, 0.0  ;;  %v5138_v3 = vadd.f32 %v15790_v60, %v5048_v31  ;;  %v16066_v59 = vpop.permute.xlu0 %8465 }
 0x32c   :  { %17210 = vst [vmem:[#allocation15_spill] sm:$0xff] %v16066_v59  ;;  %v4411_v37 = vmax.f32 %v4381_v24, 0.0  ;;  %v4259_v51 = vpop.f32.mrb[94].mxu1  ;;  %v7528_v62 = vpop.permute.xlu1 %7527  ;;  %11762 = vmatpush3.bf16.msra.mxu0 %v11759_v40  ;;  %v5608_v40 = vld [vmem:[%s17065_s0 + $0x3e0] sm:$0xff] }
 0x32d   :  { %17209 = vst [vmem:[#allocation16_spill] sm:$0xff] %v16061_v12  ;;  %v5168_v27 = vmax.f32 %v5138_v3, 0.0  ;;  %v16070_v32 = vadd.f32 %v15969_v10, %v4259_v51  ;;  %v5052_v9 = vpop.f32.mrb[112].mxu0  ;;  %v4261_v8 = vpop.f32.mrb[95].mxu1  ;;  %10792 = vmatmul.mubr.msk.f32.gmra.mrb[140].mxu1 %vm54_vm0, %v15588_v14  ;;  %11764 = vmatprep.subr.bf16.mxu0 %v16050_v49  ;;  %v7536_v36 = vmax.f32 %v15307_v55, %v7528_v62 }
 0x32e   :  { %4441 = vst.msk [vmem:[#allocation2 + $0x4c8] sm:$0xff] %vm743_vm1, %v4411_v37  ;;  %v5139_v61 = vadd.f32 %v15786_v13, %v5052_v9  ;;  %v4383_v47 = vadd.f32 %v15989_v23, %v4261_v8  ;;  %v5054_v54 = vpop.f32.mrb[113].mxu0  ;;  %5789 = vmatprep.mubr.f32.mxu1 %v17132_v7 }
 0x32f   :  { %5198 = vst.msk [vmem:[#allocation2 + $0x648] sm:$0xff] %vm743_vm1, %v5168_v27  ;;  %v4412_v48 = vmax.f32 %v16070_v32, 0.0  ;;  %v5140_v14 = vadd.f32 %v15790_v60, %v5054_v54  ;;  %v7562_v33 = vpop.permute.xlu0 %7561 }
 0x330   :  { %v5169_v46 = vmax.f32 %v5139_v61, 0.0  ;;  %v4413_v26 = vmax.f32 %v4383_v47, 0.0  ;;  %v4265_v24 = vpop.f32.mrb[96].mxu1  ;;  %v7544_v31 = vpop.permute.xlu1 %7543  ;;  %v7571_v3 = vmax.f32 %v16011_v6, %v7562_v33  ;;  %v5609_v6 = vld [vmem:[%s17065_s0 + $0x3e8] sm:$0xff] }
 0x331   :  { %v5170_v37 = vmax.f32 %v5140_v14, 0.0  ;;  %v16088_v51 = vadd.f32 %v15969_v10, %v4265_v24  ;;  %v5058_v9 = vpop.f32.mrb[114].mxu0  ;;  %v4267_v8 = vpop.f32.mrb[97].mxu1  ;;  %10793 = vmatmul.mubr.msk.f32.gmra.mrb[142].mxu1 %vm54_vm0, %v5608_v40  ;;  %v7552_v27 = vmax.f32 %v7536_v36, %v7544_v31 }
 0x332   :  { %5199 = vst [vmem:[#allocation2 + $0x650] sm:$0xff] %v5169_v46  ;;  %4443 = vst.msk [vmem:[#allocation2 + $0x4d8] sm:$0xff] %vm743_vm1, %v4413_v26  ;;  %v5141_v55 = vadd.f32 %v15786_v13, %v5058_v9  ;;  %v4385_v62 = vadd.f32 %v15989_v23, %v4267_v8  ;;  %v5060_v61 = vpop.f32.mrb[115].mxu0  ;;  %5795 = vmatprep.mubr.f32.mxu1 %v17132_v7  ;;  %7692 = vrot.lane.b32.xlu0 %v7571_v3, %s12553_s30 }
 0x333   :  { %5200 = vst.msk [vmem:[#allocation2 + $0x658] sm:$0xff] %vm743_vm1, %v5170_v37  ;;  %v4414_v47 = vmax.f32 %v16088_v51, 0.0  ;;  %v5142_v54 = vadd.f32 %v15790_v60, %v5060_v61  ;;  %11407 = vmatmul.mubr.msk.f32.gmra.mrb[122].mxu0 %vm6062_vm2, %v7552_v27  ;;  %v16103_v40 = vpop.permute.xlu0 %8485 }
 0x334   :  { %v5171_v14 = vmax.f32 %v5141_v55, 0.0  ;;  %v4415_v33 = vmax.f32 %v4385_v62, 0.0  ;;  %v4271_v46 = vpop.f32.mrb[98].mxu1  ;;  %v7564_v26 = vpop.permute.xlu1 %7563  ;;  %v5610_v55 = vld [vmem:[%s17065_s0 + $0x3f0] sm:$0xff] }
 0x335   :  { %v5172_v24 = vmax.f32 %v5142_v54, 0.0  ;;  %v4386_v31 = vadd.f32 %v15969_v10, %v4271_v46  ;;  %v5064_v9 = vpop.f32.mrb[116].mxu0  ;;  %v4273_v8 = vpop.f32.mrb[99].mxu1  ;;  %10794 = vmatmul.mubr.msk.f32.gmra.mrb[144].mxu1 %vm54_vm0, %v5609_v6  ;;  %v7572_v3 = vmax.f32 %v7536_v36, %v7564_v26 }
 0x336   :  { %5201 = vst [vmem:[#allocation2 + $0x660] sm:$0xff] %v5171_v14  ;;  %4445 = vst.msk [vmem:[#allocation2 + $0x4e8] sm:$0xff] %vm743_vm1, %v4415_v33  ;;  %v5143_v37 = vadd.f32 %v15786_v13, %v5064_v9  ;;  %v4387_v27 = vadd.f32 %v15989_v23, %v4273_v8  ;;  %v5066_v61 = vpop.f32.mrb[117].mxu0  ;;  %5801 = vmatprep.mubr.f32.mxu1 %v17132_v7 }
 0x337   :  { %5202 = vst.msk [vmem:[#allocation2 + $0x668] sm:$0xff] %vm743_vm1, %v5172_v24  ;;  %v4416_v62 = vmax.f32 %v4386_v31, 0.0  ;;  %v5144_v6 = vadd.f32 %v15790_v60, %v5066_v61  ;;  %7694 = vrot.lane.b32.xlu0 %v7572_v3, %s12553_s30  ;;  %v7830_v36 = vpop.permute.xlu0 %7829 }
 0x338   :  { %v5173_v54 = vmax.f32 %v5143_v37, 0.0  ;;  %v4417_v14 = vmax.f32 %v4387_v27, 0.0  ;;  %v4277_v33 = vpop.f32.mrb[100].mxu1  ;;  %v7866_v46 = vpop.permute.xlu1 %7865  ;;  %v16118_v26 = vmax.f32 %v15410_v15, %v7830_v36  ;;  %v5611_v37 = vld [vmem:[%s17065_s0 + $0x3f8] sm:$0xff] }
 0x339   :  { %v5174_v9 = vmax.f32 %v5144_v6, 0.0  ;;  %v16121_v8 = vadd.f32 %v15969_v10, %v4277_v33  ;;  %v5070_v35 = vpop.f32.mrb[118].mxu0  ;;  %v4279_v58 = vpop.f32.mrb[101].mxu1  ;;  %10795 = vmatmul.mubr.msk.f32.gmra.mrb[146].mxu1 %vm54_vm0, %v5610_v55  ;;  %v16126_v24 = vmax.f32 %v4408_v28, %v4416_v62  ;;  %v12520_v33 = vld [vmem:[#allocation2 + $0x490] sm:$0xff] }
 0x33a   :  { %5203 = vst [vmem:[#allocation2 + $0x670] sm:$0xff] %v5173_v54  ;;  %4447 = vst.msk [vmem:[#allocation2 + $0x4f8] sm:$0xff] %vm743_vm1, %v4417_v14  ;;  %v16130_v31 = vadd.f32 %v15786_v13, %v5070_v35  ;;  %v4389_v15 = vadd.f32 %v15989_v23, %v4279_v58  ;;  %v5072_v3 = vpop.f32.mrb[119].mxu0  ;;  %5807 = vmatprep.mubr.f32.mxu1 %v17132_v7  ;;  %v7877_v27 = vmax.f32 %v16118_v26, %v7866_v46  ;;  %v12519_v13 = vld [vmem:[#allocation2 + $0x480] sm:$0xff] }
 0x33b   :  { %5204 = vst.msk [vmem:[#allocation2 + $0x678] sm:$0xff] %vm743_vm1, %v5174_v9  ;;  %v4418_v29 = vmax.f32 %v16121_v8, 0.0  ;;  %v5146_v28 = vadd.f32 %v15790_v60, %v5072_v3  ;;  %v16141_v61 = vpop.permute.xlu0 %7845  ;;  %v8733_v58 = vmax.f32 %v12519_v13, %v4410_v25  ;;  %v8735_v46 = vmax.f32 %v12520_v33, %v4412_v48 }
 0x33c   :  { %v4419_v35 = vmax.f32 %v4389_v15, 0.0  ;;  %v4283_v55 = vpop.f32.mrb[102].mxu1  ;;  %7996 = vrot.lane.b32.xlu0 %v7877_v27, %s12553_s30 }
 0x33d   :  { %v5176_v62 = vmax.f32 %v5146_v28, 0.0  ;;  %v16148_v6 = vadd.f32 %v15969_v10, %v4283_v55  ;;  %v4285_v36 = vpop.f32.mrb[103].mxu1  ;;  %10796 = vmatmul.mubr.msk.f32.gmra.mrb[148].mxu1 %vm54_vm0, %v5611_v37  ;;  %v8174_v60 = vpop.permute.xlu1 %8173  ;;  %v16153_v54 = vmax.f32 %v8733_v58, %v4418_v29  ;;  %v12521_v55 = vld [vmem:[#allocation2 + $0x4a0] sm:$0xff] }
 0x33e   :  { %4449 = vst.msk [vmem:[#allocation2 + $0x508] sm:$0xff] %vm743_vm1, %v4419_v35  ;;  %v4391_v44 = vadd.f32 %v15989_v23, %v4285_v36 }
 0x33f   :  { %5206 = vst.msk [vmem:[#allocation2 + $0x688] sm:$0xff] %vm743_vm1, %v5176_v62  ;;  %v4420_v25 = vmax.f32 %v16148_v6, 0.0  ;;  %v8138_v14 = vpop.permute.xlu0 %8137 }
 0x340   :  { %v4421_v9 = vmax.f32 %v4391_v44, 0.0  ;;  %v4289_v15 = vpop.f32.mrb[104].mxu1  ;;  %v16162_v3 = vmax.f32 %v15618_v17, %v8138_v14  ;;  %v8737_v17 = vmax.f32 %v12521_v55, %v4414_v47 }
 0x341   :  { %v16165_v37 = vadd.f32 %v15969_v10, %v4289_v15  ;;  %v4291_v27 = vpop.f32.mrb[105].mxu1  ;;  %v7832_v28 = vpop.permute.xlu1 %7831  ;;  %v16167_v13 = vmax.f32 %v8735_v46, %v4420_v25 }
 0x342   :  { %4451 = vst.msk [vmem:[#allocation2 + $0x518] sm:$0xff] %vm743_vm1, %v4421_v9  ;;  %v4393_v58 = vadd.f32 %v15989_v23, %v4291_v27  ;;  %v8185_v35 = vmax.f32 %v16162_v3, %v8174_v60  ;;  %v16178_v36 = vmax.f32 %v15443_v38, %v7832_v28 }
 0x343   :  { %v4422_v32 = vmax.f32 %v16165_v37, 0.0  ;;  %v16173_v48 = vpop.permute.xlu0 %8153 }
 0x344   :  { %v4423_v62 = vmax.f32 %v4393_v58, 0.0  ;;  %v4295_v6 = vpop.f32.mrb[106].mxu1  ;;  %8304 = vrot.lane.b32.xlu0 %v8185_v35, %s12553_s30 }
 0x345   :  { %v16182_v44 = vadd.f32 %v15969_v10, %v4295_v6  ;;  %v4297_v14 = vpop.f32.mrb[107].mxu1  ;;  %v7868_v60 = vpop.permute.xlu1 %7867  ;;  %v16184_v33 = vmax.f32 %v8737_v17, %v4422_v32 }
 0x346   :  { %4453 = vst.msk [vmem:[#allocation2 + $0x528] sm:$0xff] %vm743_vm1, %v4423_v62  ;;  %v4395_v46 = vadd.f32 %v15989_v23, %v4297_v14  ;;  %v7878_v51 = vmax.f32 %v16178_v36, %v7868_v60  ;;  %v16310_v41 = vld [vmem:[#allocation2 + $0x688] sm:$0xff] }
 0x347   :  { %v4424_v47 = vmax.f32 %v16182_v44, 0.0  ;;  %v16190_v9 = vpop.permute.xlu0 %7847 }
 0x348   :  { %v4425_v38 = vmax.f32 %v4395_v46, 0.0  ;;  %v4301_v15 = vpop.f32.mrb[108].mxu1  ;;  %7998 = vrot.lane.b32.xlu1 %v7878_v51, %s12553_s30 }
 0x349   :  { %v4396_v37 = vadd.f32 %v15969_v10, %v4301_v15  ;;  %v4303_v27 = vpop.f32.mrb[109].mxu1  ;;  %v8140_v28 = vpop.permute.xlu1 %8139  ;;  %v16195_v58 = vmax.f32 %v16126_v24, %v4424_v47  ;;  %v16297_v7 = vld [vmem:[#allocation2 + $0x518] sm:$0xff] }
 0x34a   :  { %4455 = vst.msk [vmem:[#allocation2 + $0x538] sm:$0xff] %vm743_vm1, %v4425_v38  ;;  %v4397_v35 = vadd.f32 %v15989_v23, %v4303_v27  ;;  %v16202_v44 = vmax.f32 %v15645_v1, %v8140_v28 }
 0x34b   :  { %v4426_v55 = vmax.f32 %v4396_v37, 0.0  ;;  %v16199_v17 = vpop.permute.xlu0 %8155 }
 0x34c   :  { %v4427_v62 = vmax.f32 %v4397_v35, 0.0  ;;  %v4307_v6 = vpop.f32.mrb[110].mxu1 }
 0x34d   :  { %v4398_v14 = vadd.f32 %v15969_v10, %v4307_v6  ;;  %v4309_v60 = vpop.f32.mrb[111].mxu1  ;;  %v8176_v46 = vpop.permute.xlu1 %8175  ;;  %v9041_v24 = vmax.f32 %v4418_v29, %v4426_v55 }
 0x34e   :  { %4457 = vst.msk [vmem:[#allocation2 + $0x548] sm:$0xff] %vm743_vm1, %v4427_v62  ;;  %v4399_v51 = vadd.f32 %v15989_v23, %v4309_v60  ;;  %v8186_v38 = vmax.f32 %v16202_v44, %v8176_v46 }
 0x34f   :  { %v4428_v15 = vmax.f32 %v4398_v14, 0.0  ;;  %v16210_v37 = vpop.permute.xlu0 %7849 }
 0x350   :  { %v4429_v27 = vmax.f32 %v4399_v51, 0.0  ;;  %v4313_v35 = vpop.f32.mrb[112].mxu1  ;;  %8306 = vrot.lane.b32.xlu1 %v8186_v38, %s12553_s30 }
 0x351   :  { %v4400_v1 = vadd.f32 %v15969_v10, %v4313_v35  ;;  %v4315_v28 = vpop.f32.mrb[113].mxu1  ;;  %v7834_v6 = vpop.permute.xlu1 %7833  ;;  %v9043_v2 = vmax.f32 %v4420_v25, %v4428_v15 }
 0x352   :  { %4459 = vst.msk [vmem:[#allocation2 + $0x558] sm:$0xff] %vm743_vm1, %v4429_v27  ;;  %v4401_v8 = vadd.f32 %v15989_v23, %v4315_v28  ;;  %v16217_v29 = vmax.f32 %v15469_v42, %v7834_v6 }
 0x353   :  { %v4430_v55 = vmax.f32 %v4400_v1, 0.0  ;;  %v7870_v62 = vpop.permute.xlu0 %7869 }
 0x354   :  { %v4431_v14 = vmax.f32 %v4401_v8, 0.0  ;;  %v4319_v60 = vpop.f32.mrb[114].mxu1  ;;  %9373 = vrot.lane.b32.xlu1 %v16020_v22, %s12552_s25  ;;  %v7879_v51 = vmax.f32 %v16217_v29, %v7870_v62  ;;  %v12524_v22 = vld [vmem:[#allocation2 + $0x4a8] sm:$0xff] }
 0x355   :  { %v4402_v25 = vadd.f32 %v15969_v10, %v4319_v60  ;;  %v4321_v38 = vpop.f32.mrb[115].mxu1  ;;  %v8142_v15 = vpop.permute.xlu1 %8141  ;;  %v16225_v27 = vmax.f32 %v4422_v32, %v4430_v55 }
 0x356   :  { %4461 = vst.msk [vmem:[#allocation2 + $0x568] sm:$0xff] %vm743_vm1, %v4431_v14  ;;  %v4403_v42 = vadd.f32 %v15989_v23, %v4321_v38  ;;  %v16230_v35 = vmax.f32 %v15685_v39, %v8142_v15  ;;  %8000 = vrot.lane.b32.xlu0 %v7879_v51, %s12553_s30 }
 0x357   :  { %v4432_v1 = vmax.f32 %v4402_v25, 0.0  ;;  %v16233_v28 = vpop.permute.xlu0 %8157 }
 0x358   :  { %v4433_v6 = vmax.f32 %v4403_v42, 0.0  ;;  %v4325_v8 = vpop.f32.mrb[116].mxu1  ;;  %8451 = vrot.lane.b32.xlu1 %v16048_v11, %s12552_s25 }
 0x359   :  { %v16240_v55 = vadd.f32 %v15969_v10, %v4325_v8  ;;  %v4327_v62 = vpop.f32.mrb[117].mxu1  ;;  %v7836_v14 = vpop.permute.xlu1 %7835  ;;  %v16242_v39 = vmax.f32 %v4424_v47, %v4432_v1  ;;  %v8416_v1 = vld [vmem:[#allocation2 + $0x478] sm:$0xff] }
 0x35a   :  { %4463 = vst.msk [vmem:[#allocation2 + $0x578] sm:$0xff] %vm743_vm1, %v4433_v6  ;;  %v4405_v60 = vadd.f32 %v15989_v23, %v4327_v62 }
 0x35b   :  { %v17114_v51 = vmax.f32 %v16240_v55, 0.0  ;;  %v8178_v25 = vpop.permute.xlu0 %8177 }
 0x35c   :  { %v4435_v38 = vmax.f32 %v4405_v60, 0.0  ;;  %v4331_v15 = vpop.f32.mrb[118].mxu1  ;;  %9375 = vrot.lane.b32.xlu1 %v16061_v12, %s12552_s25  ;;  %v8187_v42 = vmax.f32 %v16230_v35, %v8178_v25  ;;  %v16263_v25 = vld [vmem:[#allocation2 + $0x4b8] sm:$0xff]  ;;  %v8730_v12 = vld [vmem:[#allocation2 + $0x528] sm:$0xff] }
 0x35d   :  { %v16251_v8 = vadd.f32 %v15969_v10, %v4331_v15  ;;  %v4333_v32 = vpop.f32.mrb[119].mxu1  ;;  %v16253_v47 = vpop.permute.xlu1 %7851  ;;  %v16257_v6 = vmax.f32 %v9041_v24, %v17114_v51  ;;  %v16266_v15 = vmax.f32 %v15488_v5, %v7836_v14  ;;  %v8432_v24 = vmax.f32 %v15771_v57, %v8416_v1  ;;  %v9340_v51 = vld [vmem:[#allocation2 + $0x5f8] sm:$0xff]  ;;  %v8718_v1 = vld [vmem:[#allocation2 + $0x4c8] sm:$0xff] }
 0x35e   :  { %4465 = vst.msk [vmem:[#allocation2 + $0x588] sm:$0xff] %vm743_vm1, %v4435_v38  ;;  %v4407_v62 = vadd.f32 %v15989_v23, %v4333_v32  ;;  %8308 = vrot.lane.b32.xlu0 %v8187_v42, %s12553_s30  ;;  %v16278_v42 = vld [vmem:[#allocation2 + $0x5b8] sm:$0xff]  ;;  %v9030_v59 = vld [vmem:[#allocation2 + $0x568] sm:$0xff] }
 0x35f   :  { %v17115_v60 = vmax.f32 %v16251_v8, 0.0  ;;  %v8440_v38 = vmax.f32 %v8432_v24, %v16263_v25  ;;  %v16280_v5 = vld [vmem:[#allocation2 + $0x638] sm:$0xff]  ;;  %v9356_v57 = vmax.f32 %v16278_v42, %v9340_v51 }
 0x360   :  { %v4437_v10 = vmax.f32 %v4407_v62, 0.0  ;;  %8467 = vrot.lane.b32.xlu1 %v16048_v11, %s12553_s30  ;;  %17211 = vst [vmem:[#allocation17_spill] sm:$0xff] %v16280_v5  ;;  %v16286_v62 = vld [vmem:[#allocation2 + $0x508] sm:$0xff] }
 0x361   :  { %v7872_v46 = vpop.permute.xlu1 %7871  ;;  %v16273_v23 = vmax.f32 %v9043_v2, %v17115_v60  ;;  %v9364_v2 = vmax.f32 %v9356_v57, %v16280_v5  ;;  %v8724_v5 = vld [vmem:[#allocation2 + $0x4f8] sm:$0xff] }
 0x362   :  { %4467 = vst.msk [vmem:[#allocation2 + $0x598] sm:$0xff] %vm743_vm1, %v4437_v10  ;;  %v7880_v32 = vmax.f32 %v16266_v15, %v7872_v46  ;;  %v12522_v46 = vld [vmem:[#allocation2 + $0x488] sm:$0xff] }
 0x363   :  { %v8734_v10 = vmax.f32 %v12522_v46, %v8718_v1  ;;  %v12523_v1 = vld [vmem:[#allocation2 + $0x498] sm:$0xff] }
 0x364   :  { %8487 = vrot.lane.b32.xlu1 %v8440_v38, %s12553_s30  ;;  %8002 = vrot.lane.b32.xlu0 %v7880_v32, %s12553_s30  ;;  %v8720_v32 = vld [vmem:[#allocation2 + $0x4d8] sm:$0xff] }
 0x365   :  { %v8144_v14 = vpop.permute.xlu1 %8143  ;;  %v8742_v60 = vmax.f32 %v8734_v10, %v16286_v62  ;;  %v9642_v10 = vld [vmem:[#allocation2 + $0x648] sm:$0xff] }
 0x366   :  { %v16293_v38 = vmax.f32 %v15760_v20, %v8144_v14  ;;  %v8736_v20 = vmax.f32 %v12523_v1, %v8720_v32  ;;  %v9354_v14 = vmax.f32 %v9038_v21, %v9338_v63  ;;  %v17213_v32 = vmax.f32 %v16054_v50, 0.0 }
 0x368   :  { %9411 = vrot.lane.b32.xlu1 %v9364_v2, %s12553_s30  ;;  %v16299_v2 = vld [vmem:[#allocation2 + $0x628] sm:$0xff] }
 0x369   :  { %v16289_v24 = vpop.permute.xlu1 %8159  ;;  %17212 = vst [vmem:[#allocation14_spill] sm:$0xff] %v16299_v2  ;;  %v9362_v46 = vmax.f32 %v9354_v14, %v16299_v2  ;;  %v8732_v2 = vld [vmem:[#allocation2 + $0x538] sm:$0xff] }
 0x36c   :  { %8789 = vrot.lane.b32.xlu1 %v8742_v60, %s12553_s30  ;;  %v8744_v60 = vmax.f32 %v8736_v20, %v16297_v7  ;;  %v8722_v20 = vld [vmem:[#allocation2 + $0x4e8] sm:$0xff] }
 0x36d   :  { %v8180_v51 = vpop.permute.xlu1 %8179 }
 0x36e   :  { %v8188_v57 = vmax.f32 %v16293_v38, %v8180_v51  ;;  %v16308_v51 = vld [vmem:[#allocation2 + $0x608] sm:$0xff] }
 0x36f   :  { %v9658_v63 = vmax.f32 %v16308_v51, %v9642_v10  ;;  %v8738_v10 = vmax.f32 %v12524_v22, %v8722_v20  ;;  %v9046_v22 = vmax.f32 %v8730_v12, %v9030_v59  ;;  %v12525_v20 = vld [vmem:[#allocation2 + $0x5a0] sm:$0xff] }
 0x370   :  { %8755 = vrot.lane.b32.xlu1 %v16167_v13, %s12552_s25  ;;  %8310 = vrot.lane.b32.xlu0 %v8188_v57, %s12553_s30  ;;  %v17214_v57 = vmax.f32 %v15921_v16, 0.0 }
 0x371   :  { %v9666_v14 = vmax.f32 %v9658_v63, %v16310_v41  ;;  %v8746_v50 = vmax.f32 %v8738_v10, %v8730_v12  ;;  %v8740_v63 = vmax.f32 %v16263_v25, %v8724_v5  ;;  %v17217_v12 = vmax.f32 %v15825_v34, 0.0  ;;  %v10888_v34 = vld [vmem:[%s17068_s3 + $0xd8] sm:$0xff]  ;;  %v9026_v25 = vld [vmem:[#allocation2 + $0x548] sm:$0xff] }
 0x372   :  { %v9657_v1 = vmax.f32 %v17214_v57, %v17213_v32  ;;  %v17216_v32 = vld [vmem:[#allocation9_spill] sm:$0xff] }
 0x373   :  { %v16331_v57 = vmax.f32 %v17216_v32, %v16034_v45  ;;  %v16342_v45 = vmax.f32 %v16225_v27, %v12525_v20  ;;  %v16351_v59 = vmax.f32 %v16242_v39, %v17217_v12  ;;  %v10887_v27 = vld [vmem:[%s17068_s3 + $0xd0] sm:$0xff]  ;;  %v9034_v32 = vld [vmem:[#allocation2 + $0x588] sm:$0xff] }
 0x374   :  { %8791 = vrot.lane.b32.xlu1 %v8744_v60, %s12553_s30  ;;  %9409 = vrot.lane.b32.xlu0 %v9362_v46, %s12553_s30  ;;  %v17215_v60 = vmax.f32 %v16130_v31, 0.0  ;;  %v11767_v5 = vpack.c.bf16 %v10888_v34, %v10887_v27  ;;  %v9335_v34 = vld [vmem:[#allocation2 + $0x5d0] sm:$0xff] }
 0x376   :  { %v16324_v46 = vmax.f32 %v9657_v1, %v17215_v60  ;;  %v8495_v1 = vmax.f32 %v16331_v57, %v16103_v40  ;;  %v9054_v60 = vmax.f32 %v9046_v22, %v9038_v21 }
 0x378   :  { %8757 = vrot.lane.b32.xlu1 %v16184_v33, %s12552_s25  ;;  %8753 = vrot.lane.b32.xlu0 %v16153_v54, %s12552_s25 }
 0x37c   :  { %9713 = vrot.lane.b32.xlu1 %v9666_v14, %s12553_s30  ;;  %9677 = vrot.lane.b32.xlu0 %v16324_v46, %s12552_s25  ;;  %v8748_v14 = vmax.f32 %v8740_v63, %v8732_v2  ;;  %v9042_v63 = vmax.f32 %v16286_v62, %v9026_v25  ;;  %v17219_v62 = vmax.f32 %v15921_v16, 0.0  ;;  %v17220_v16 = vmax.f32 %v16251_v8, 0.0  ;;  %v16410_v8 = vld [vmem:[#allocation2 + $0x618] sm:$0xff] }
 0x37e   :  { %v9050_v20 = vmax.f32 %v9042_v63, %v9034_v32 }
 0x380   :  { %8759 = vrot.lane.b32.xlu1 %v16195_v58, %s12552_s25  ;;  %8793 = vrot.lane.b32.xlu0 %v8746_v50, %s12553_s30  ;;  %v9032_v50 = vld [vmem:[#allocation2 + $0x578] sm:$0xff] }
 0x381   :  { %v9048_v40 = vmax.f32 %v8732_v2, %v9032_v50  ;;  %v10894_v2 = vld [vmem:[%s17069_s4 + $0xc8] sm:$0xff] }
 0x383   :  { %v9056_v21 = vmax.f32 %v9048_v40, %v16278_v42  ;;  %v10893_v42 = vld [vmem:[%s17069_s4 + $0xc0] sm:$0xff]  ;;  %v9036_v40 = vld [vmem:[#allocation2 + $0x598] sm:$0xff] }
 0x384   :  { %8795 = vrot.lane.b32.xlu1 %v8748_v14, %s12553_s30  ;;  %8616 = vrot.lane.b32.xlu0 %v8495_v1, %s12553_s30  ;;  %v9334_v1 = vld [vmem:[#allocation2 + $0x5c8] sm:$0xff]  ;;  %v9333_v14 = vld [vmem:[#allocation2 + $0x5c0] sm:$0xff]  ;;  %v11771_v22 = vpack.c.bf16 %v10894_v2, %v10893_v42  ;;  %v17221_v42 = vmax.f32 %v15948_v56, 0.0  ;;  %v10896_v56 = vld [vmem:[%s17069_s4 + $0xd8] sm:$0xff] }
 0x386   :  { %v7689_v10 = vpop.permute.xlu0 %7688 }
 0x387   :  { %11417 = vmatprep.mubr.msk.f32.mxu0 %vm6062_vm2, %v7689_v10  ;;  %v17218_v10 = vmax.f32 %v16240_v55, 0.0  ;;  %v9028_v55 = vld [vmem:[#allocation2 + $0x558] sm:$0xff] }
 0x388   :  { %9065 = vrot.lane.b32.xlu1 %v16342_v45, %s12552_s25  ;;  %9101 = vrot.lane.b32.xlu0 %v9054_v60, %s12553_s30  ;;  %v9350_v60 = vmax.f32 %v9034_v32, %v9334_v1  ;;  %v9044_v27 = vmax.f32 %v16297_v7, %v9028_v55  ;;  %v7857_v7 = vmax.f32 %v16118_v26, %v16141_v61  ;;  %v10895_v1 = vld [vmem:[%s17069_s4 + $0xd0] sm:$0xff] }
 0x389   :  { %v9349_v50 = vmax.f32 %v17218_v10, %v9333_v14  ;;  %v7858_v26 = vmax.f32 %v16178_v36, %v16190_v9  ;;  %v11775_v61 = vpack.c.bf16 %v10896_v56, %v10895_v1  ;;  %v17222_v10 = vmax.f32 %v16217_v29, %v16210_v37  ;;  %v10903_v37 = vld [vmem:[%s17068_s3 + $0xf0] sm:$0xff]  ;;  %v10904_v29 = vld [vmem:[%s17068_s3 + $0xf8] sm:$0xff] }
 0x38a   :  { %v7860_v36 = vmax.f32 %v16266_v15, %v16253_v47  ;;  %v11783_v47 = vpack.c.bf16 %v10904_v29, %v10903_v37  ;;  %v17223_v37 = vmax.f32 %v16230_v35, %v16233_v28  ;;  %v9645_v29 = vld [vmem:[#allocation2 + $0x660] sm:$0xff]  ;;  %v10919_v35 = vld [vmem:[%s17068_s3 + $0x110] sm:$0xff]  ;;  %v10920_v28 = vld [vmem:[%s17068_s3 + $0x118] sm:$0xff] }
 0x38b   :  { %v16388_v12 = vmax.f32 %v9349_v50, %v17219_v62  ;;  %v10910_v62 = vld [vmem:[%s17069_s4 + $0xe8] sm:$0xff] }
 0x38c   :  { %9067 = vrot.lane.b32.xlu1 %v16351_v59, %s12552_s25  ;;  %9061 = vrot.lane.b32.xlu0 %v16257_v6, %s12552_s25 }
 0x390   :  { %9103 = vrot.lane.b32.xlu1 %v9056_v21, %s12553_s30  ;;  %8769 = vrot.lane.b32.xlu0 %v16153_v54, %s12553_s30  ;;  %v16393_v21 = vpop.permute.xlu0 %8612 }
 0x391   :  { %v7691_v39 = vpop.permute.xlu1 %7690 }
 0x392   :  { %11418 = vmatmul.mubr.msk.f32.vlgmr.msra.gmra.mrb[120].mxu0 %vm6062_vm2, %v7691_v39  ;;  %v9351_v39 = vmax.f32 %v17220_v16, %v9335_v34 }
 0x393   :  { %11766 = vmatpush3.bf16.msra.mxu0 %v16050_v49  ;;  %v9358_v49 = vmax.f32 %v9350_v60, %v16308_v51  ;;  %v9052_v51 = vmax.f32 %v9044_v27, %v9036_v40  ;;  %v10902_v60 = vld [vmem:[%s17068_s3 + $0xe8] sm:$0xff] }
 0x394   :  { %8775 = vrot.lane.b32.xlu1 %v16195_v58, %s12553_s30  ;;  %8771 = vrot.lane.b32.xlu0 %v16167_v13, %s12553_s30  ;;  %v16404_v2 = vmax.f32 %v9351_v39, %v17221_v42  ;;  %v5844_v42 = vld [vmem:[%s17067_s2] sm:$0x3] }
 0x395   :  { %11768 = vmatprep.subr.bf16.mxu0 %v11767_v5  ;;  %v16477_v1 = vrot.slane %v5844_v42, %v13233_v4  ;;  %v8166_v4 = vmax.f32 %v16202_v44, %v16199_v17 }
 0x397   :  { %11770 = vmatpush3.bf16.msra.mxu0 %v11767_v5  ;;  %v9336_v5 = vld [vmem:[#allocation2 + $0x5d8] sm:$0xff] }
 0x398   :  { %9097 = vrot.lane.b32.xlu1 %v9050_v20, %s12553_s30  ;;  %8773 = vrot.lane.b32.xlu0 %v16184_v33, %s12553_s30  ;;  %v9352_v32 = vmax.f32 %v9036_v40, %v9336_v5  ;;  %v10901_v20 = vld [vmem:[%s17068_s3 + $0xe0] sm:$0xff] }
 0x399   :  { %11772 = vmatprep.subr.bf16.mxu0 %v11771_v22  ;;  %v11779_v9 = vpack.c.bf16 %v10902_v60, %v10901_v20 }
 0x39a   :  { %v9360_v14 = vmax.f32 %v9352_v32, %v16410_v8 }
 0x39c   :  { %9405 = vrot.lane.b32.xlu1 %v9358_v49, %s12553_s30  ;;  %9369 = vrot.lane.b32.xlu0 %v16388_v12, %s12552_s25  ;;  %v16439_v49 = vpop.permute.xlu1 %8614 }
 0x3a0   :  { %9063 = vrot.lane.b32.xlu1 %v16273_v23, %s12552_s25 }
 0x3a4   :  { %9099 = vrot.lane.b32.xlu1 %v9052_v51, %s12553_s30  ;;  %v7693_v25 = vpop.permute.xlu0 %7692 }
 0x3a5   :  { %11420 = vmatprep.mubr.msk.f32.mxu0 %vm6062_vm2, %v7693_v25 }
 0x3a8   :  { %9371 = vrot.lane.b32.xlu1 %v16404_v2, %s12552_s25 }
 0x3a9   :  { %v7695_v63 = vpop.permute.xlu0 %7694 }
 0x3aa   :  { %11421 = vmatmul.mubr.msk.f32.gmra.mrb[122].mxu0 %vm6062_vm2, %v7695_v63  ;;  %v8165_v63 = vmax.f32 %v16162_v3, %v16173_v48 }
 0x3ab   :  { %11431 = vmatprep.mubr.msk.f32.mxu0 %vm6062_vm2, %v7857_v7  ;;  %v16472_v7 = vrot.slane %v5844_v42, %v13226_v0 }
 0x3ac   :  { %9407 = vrot.lane.b32.xlu1 %v9360_v14, %s12553_s30 }
 0x3ae   :  { %11432 = vmatmul.mubr.msk.f32.vlgmr.msra.gmra.mrb[120].mxu0 %vm6062_vm2, %v7858_v26  ;;  %v7997_v50 = vpop.permute.xlu0 %7996  ;;  %v10911_v26 = vld [vmem:[%s17069_s4 + $0xf0] sm:$0xff] }
 0x3af   :  { %11434 = vmatprep.mubr.msk.f32.mxu0 %vm6062_vm2, %v17222_v10  ;;  %11774 = vmatpush3.bf16.msra.mxu0 %v11771_v22  ;;  %v10909_v22 = vld [vmem:[%s17069_s4 + $0xe0] sm:$0xff] }
 0x3b0   :  { %11776 = vmatprep.subr.bf16.mxu0 %v11775_v61  ;;  %v11787_v55 = vpack.c.bf16 %v10910_v62, %v10909_v22 }
 0x3b2   :  { %11435 = vmatmul.mubr.msk.f32.gmra.mrb[122].mxu0 %vm6062_vm2, %v7860_v36  ;;  %v10917_v36 = vld [vmem:[%s17068_s3 + $0x100] sm:$0xff] }
 0x3b3   :  { %11445 = vmatprep.mubr.msk.f32.mxu0 %vm6062_vm2, %v7997_v50  ;;  %11778 = vmatpush3.bf16.msra.mxu0 %v11775_v61 }
 0x3b4   :  { %11780 = vmatprep.subr.bf16.mxu0 %v11779_v9 }
 0x3b6   :  { %v8305_v27 = vpop.permute.xlu0 %8304 }
 0x3ba   :  { %v7999_v15 = vpop.permute.xlu1 %7998 }
 0x3bb   :  { %11446 = vmatmul.mubr.msk.f32.vlgmr.msra.gmra.mrb[120].mxu0 %vm6062_vm2, %v7999_v15 }
 0x3bc   :  { %11782 = vmatpush3.bf16.msra.mxu0 %v11779_v9  ;;  %v10918_v9 = vld [vmem:[%s17068_s3 + $0x108] sm:$0xff] }
 0x3bd   :  { %11784 = vmatprep.subr.bf16.mxu0 %v11783_v47  ;;  %v11795_v62 = vpack.c.bf16 %v10918_v9, %v10917_v36 }
 0x3c0   :  { %11786 = vmatpush3.bf16.msra.mxu0 %v11783_v47  ;;  %v8168_v47 = vmax.f32 %v16293_v38, %v16289_v24  ;;  %v17224_v38 = vmax.f32 %v15985_v52, 0.0 }
 0x3c1   :  { %11788 = vmatprep.subr.bf16.mxu0 %v11787_v55 }
 0x3c2   :  { %v16454_v40 = vpop.permute.xlu1 %8306 }
 0x3c6   :  { %v16456_v34 = vpop.permute.xlu1 %9373 }
 0x3c8   :  { %v8001_v51 = vpop.permute.xlu0 %8000 }
 0x3c9   :  { %11448 = vmatprep.mubr.msk.f32.mxu0 %vm6062_vm2, %v8001_v51 }
 0x3ca   :  { %v8452_v16 = vpop.permute.xlu1 %8451 }
 0x3cb   :  { %v16469_v32 = vmax.f32 %v16048_v11, %v8452_v16  ;;  %v10912_v11 = vld [vmem:[%s17069_s4 + $0xf8] sm:$0xff] }
 0x3cc   :  { %v11791_v20 = vpack.c.bf16 %v10912_v11, %v10911_v26  ;;  %v11799_v11 = vpack.c.bf16 %v10920_v28, %v10919_v35  ;;  %v10928_v35 = vld [vmem:[%s17069_s4 + $0x118] sm:$0xff] }
 0x3ce   :  { %v16459_v39 = vpop.permute.xlu1 %9375 }
 0x3d0   :  { %v16461_v25 = vpop.permute.xlu0 %8308 }
 0x3d2   :  { %v16463_v5 = vpop.permute.xlu1 %8467 }
 0x3d6   :  { %v8488_v56 = vpop.permute.xlu1 %8487  ;;  %v8003_v14 = vpop.permute.xlu0 %8002 }
 0x3d7   :  { %v8496_v61 = vmax.f32 %v16469_v32, %v8488_v56  ;;  %11449 = vmatmul.mubr.msk.f32.gmra.mrb[122].mxu0 %vm6062_vm2, %v8003_v14  ;;  %v9647_v56 = vld [vmem:[#allocation2 + $0x670] sm:$0xff] }
 0x3d8   :  { %v5725_v0 = vpop.f32.mrb[120].mxu1  ;;  %11459 = vmatprep.mubr.msk.f32.mxu0 %vm6062_vm2, %v8165_v63 }
 0x3d9   :  { %v16491_v3 = vadd.f32 %v16472_v7, %v5725_v0  ;;  %v5727_v48 = vpop.f32.mrb[121].mxu1  ;;  %8618 = vrot.lane.b32.xlu0 %v8496_v61, %s12553_s30 }
 0x3da   :  { %v5857_v60 = vadd.f32 %v16477_v1, %v5727_v48  ;;  %v16495_v10 = vpop.permute.xlu1 %9411  ;;  %v10926_v48 = vld [vmem:[%s17069_s4 + $0x108] sm:$0xff] }
 0x3db   :  { %v5886_v17 = vmax.f32 %v16491_v3, 0.0  ;;  %11460 = vmatmul.mubr.msk.f32.vlgmr.msra.gmra.mrb[120].mxu0 %vm6062_vm2, %v8166_v4  ;;  %v10935_v3 = vld [vmem:[%s17068_s3 + $0x130] sm:$0xff] }
 0x3dc   :  { %v5887_v44 = vmax.f32 %v5857_v60, 0.0  ;;  %v5731_v50 = vpop.f32.mrb[122].mxu1  ;;  %11462 = vmatprep.mubr.msk.f32.mxu0 %vm6062_vm2, %v17223_v37  ;;  %11790 = vmatpush3.bf16.msra.mxu0 %v11787_v55  ;;  %v9661_v55 = vmax.f32 %v17224_v38, %v9645_v29  ;;  %v17225_v60 = vmax.f32 %v16014_v53, 0.0  ;;  %v8473_v53 = vmax.f32 %v15890_v43, %v15938_v19 }
 0x3dd   :  { %v16512_v15 = vadd.f32 %v16472_v7, %v5731_v50  ;;  %v5733_v22 = vpop.f32.mrb[123].mxu1  ;;  %11792 = vmatprep.subr.bf16.mxu0 %v11791_v20  ;;  %v8474_v19 = vmax.f32 %v15962_v18, %v15997_v30  ;;  %v10934_v18 = vld [vmem:[%s17068_s3 + $0x128] sm:$0xff] }
 0x3de   :  { %5917 = vst.msk [vmem:[#allocation2 + $0x698] sm:$0xff] %vm743_vm1, %v5887_v44  ;;  %v5859_v51 = vadd.f32 %v16477_v1, %v5733_v22  ;;  %v16516_v16 = vpop.permute.xlu1 %8789  ;;  %v9663_v36 = vmax.f32 %v17225_v60, %v9647_v56  ;;  %v12526_v56 = vld [vmem:[#allocation2 + $0x610] sm:$0xff]  ;;  %v17226_v30 = vld [vmem:[#allocation15_spill] sm:$0xff] }
 0x3df   :  { %v5888_v24 = vmax.f32 %v16512_v15, 0.0  ;;  %11463 = vmatmul.mubr.msk.f32.gmra.mrb[122].mxu0 %vm6062_vm2, %v8168_v47  ;;  %v10941_v15 = vld [vmem:[%s17069_s4 + $0x120] sm:$0xff] }
 0x3e0   :  { %v5889_v42 = vmax.f32 %v5859_v51, 0.0  ;;  %v5737_v63 = vpop.f32.mrb[124].mxu1  ;;  %11794 = vmatpush3.bf16.msra.mxu0 %v11791_v20  ;;  %11473 = vmatprep.mubr.msk.f32.mxu0 %vm6062_vm2, %v8305_v27  ;;  %v10925_v27 = vld [vmem:[%s17069_s4 + $0x100] sm:$0xff]  ;;  %v9643_v51 = vld [vmem:[#allocation2 + $0x650] sm:$0xff] }
 0x3e1   :  { %v16530_v14 = vadd.f32 %v16472_v7, %v5737_v63  ;;  %v5739_v26 = vpop.f32.mrb[125].mxu1  ;;  %11796 = vmatprep.subr.bf16.mxu0 %v11795_v62  ;;  %v16534_v61 = vmax.f32 %v9661_v55, %v5888_v24  ;;  %v11803_v47 = vpack.c.bf16 %v10926_v48, %v10925_v27 }
 0x3e2   :  { %5919 = vst.msk [vmem:[#allocation2 + $0x6a8] sm:$0xff] %vm743_vm1, %v5889_v42  ;;  %v5861_v52 = vadd.f32 %v16477_v1, %v5739_v26  ;;  %v8756_v0 = vpop.permute.xlu1 %8755  ;;  %v8311_v4 = vpop.permute.xlu0 %8310  ;;  %v9659_v26 = vmax.f32 %v12526_v56, %v9643_v51 }
 0x3e3   :  { %v5890_v20 = vmax.f32 %v16530_v14, 0.0  ;;  %11474 = vmatmul.mubr.msk.f32.vlgmr.msra.gmra.mrb[120].mxu0 %vm6062_vm2, %v16454_v40  ;;  %v16555_v29 = vmax.f32 %v16167_v13, %v8756_v0  ;;  %v10927_v13 = vld [vmem:[%s17069_s4 + $0x110] sm:$0xff]  ;;  %v9644_v0 = vld [vmem:[#allocation2 + $0x658] sm:$0xff]  ;;  %v17227_v14 = vmax.f32 %v16130_v31, 0.0 }
 0x3e4   :  { %v5891_v9 = vmax.f32 %v5861_v52, 0.0  ;;  %v5743_v44 = vpop.f32.mrb[126].mxu1  ;;  %11476 = vmatprep.mubr.msk.f32.mxu0 %vm6062_vm2, %v16461_v25  ;;  %11798 = vmatpush3.bf16.msra.mxu0 %v11795_v62  ;;  %v11807_v52 = vpack.c.bf16 %v10928_v35, %v10927_v13 }
 0x3e5   :  { %v16552_v50 = vadd.f32 %v16472_v7, %v5743_v44  ;;  %v5745_v37 = vpop.f32.mrb[127].mxu1  ;;  %11800 = vmatprep.subr.bf16.mxu0 %v11799_v11  ;;  %v16559_v40 = vmax.f32 %v9663_v36, %v5890_v20  ;;  %v16597_v44 = vmax.f32 %v9659_v26, %v5886_v17 }
 0x3e6   :  { %5921 = vst.msk [vmem:[#allocation2 + $0x6b8] sm:$0xff] %vm743_vm1, %v5891_v9  ;;  %v5863_v25 = vadd.f32 %v16477_v1, %v5745_v37  ;;  %v8792_v22 = vpop.permute.xlu1 %8791  ;;  %v16565_v62 = vpop.permute.xlu0 %9409  ;;  %v8476_v37 = vmax.f32 %v16469_v32, %v16463_v5 }
 0x3e7   :  { %v5892_v28 = vmax.f32 %v16552_v50, 0.0  ;;  %v8802_v43 = vmax.f32 %v16555_v29, %v8792_v22  ;;  %11477 = vmatmul.mubr.msk.f32.gmra.mrb[122].mxu0 %vm6062_vm2, %v8311_v4  ;;  %v10933_v4 = vld [vmem:[%s17068_s3 + $0x120] sm:$0xff]  ;;  %v9660_v22 = vmax.f32 %v16410_v8, %v9644_v0  ;;  %v17229_v50 = vld [vmem:[#allocation17_spill] sm:$0xff] }
 0x3e8   :  { %v5893_v38 = vmax.f32 %v5863_v25, 0.0  ;;  %v5749_v55 = vpop.f32.mrb[128].mxu1  ;;  %11802 = vmatpush3.bf16.msra.mxu0 %v11799_v11  ;;  %11487 = vmatprep.mubr.msk.f32.mxu0 %vm6062_vm2, %v8473_v53  ;;  %v8475_v11 = vmax.f32 %v16331_v57, %v17226_v30  ;;  %v16602_v25 = vld [vmem:[#allocation2 + $0x698] sm:$0xff] }
 0x3e9   :  { %v5864_v42 = vadd.f32 %v16472_v7, %v5749_v55  ;;  %v5751_v63 = vpop.f32.mrb[129].mxu1  ;;  %8922 = vrot.lane.b32.xlu1 %v8802_v43, %s12553_s30  ;;  %11804 = vmatprep.subr.bf16.mxu0 %v11803_v47 }
 0x3ea   :  { %5923 = vst.msk [vmem:[#allocation2 + $0x6c8] sm:$0xff] %vm743_vm1, %v5893_v38  ;;  %v5865_v27 = vadd.f32 %v16477_v1, %v5751_v63  ;;  %v8758_v48 = vpop.permute.xlu1 %8757  ;;  %v8754_v60 = vpop.permute.xlu0 %8753 }
 0x3eb   :  { %v5894_v36 = vmax.f32 %v5864_v42, 0.0  ;;  %v16592_v9 = vmax.f32 %v16153_v54, %v8754_v60  ;;  %11488 = vmatmul.mubr.msk.f32.vlgmr.msra.gmra.mrb[120].mxu0 %vm6062_vm2, %v8474_v19  ;;  %v11811_v54 = vpack.c.bf16 %v10934_v18, %v10933_v4  ;;  %v16632_v55 = vmax.f32 %v16184_v33, %v8758_v48 }
 0x3ec   :  { %v5895_v57 = vmax.f32 %v5865_v27, 0.0  ;;  %v5755_v53 = vpop.f32.mrb[130].mxu1  ;;  %11490 = vmatprep.mubr.msk.f32.mxu0 %vm6062_vm2, %v8475_v11  ;;  %11806 = vmatpush3.bf16.msra.mxu0 %v11803_v47 }
 0x3ed   :  { %v5866_v51 = vadd.f32 %v16472_v7, %v5755_v53  ;;  %v5757_v13 = vpop.f32.mrb[131].mxu1  ;;  %v8801_v35 = vmax.f32 %v16592_v9, %v16516_v16  ;;  %9679 = vrot.lane.b32.xlu1 %v16597_v44, %s12552_s25  ;;  %11808 = vmatprep.subr.bf16.mxu0 %v11807_v52  ;;  %v16612_v5 = vmax.f32 %v5886_v17, %v5894_v36  ;;  %v10936_v17 = vld [vmem:[%s17068_s3 + $0x138] sm:$0xff] }
 0x3ee   :  { %5925 = vst.msk [vmem:[#allocation2 + $0x6d8] sm:$0xff] %vm743_vm1, %v5895_v57  ;;  %v5867_v32 = vadd.f32 %v16477_v1, %v5757_v13  ;;  %v16616_v8 = vpop.permute.xlu1 %9713  ;;  %v16618_v47 = vpop.permute.xlu0 %9677  ;;  %v9668_v16 = vmax.f32 %v9660_v22, %v16602_v25  ;;  %v9648_v53 = vld [vmem:[#allocation2 + $0x678] sm:$0xff] }
 0x3ef   :  { %v5896_v43 = vmax.f32 %v5866_v51, 0.0  ;;  %11491 = vmatmul.mubr.msk.f32.gmra.mrb[122].mxu0 %vm6062_vm2, %v8476_v37  ;;  %8920 = vrot.lane.b32.xlu0 %v8801_v35, %s12553_s30  ;;  %v16672_v35 = vld [vmem:[#allocation2 + $0x6b8] sm:$0xff]  ;;  %v9664_v31 = vmax.f32 %v17229_v50, %v9648_v53 }
 0x3f0   :  { %v5897_v19 = vmax.f32 %v5867_v32, 0.0  ;;  %v5761_v38 = vpop.f32.mrb[132].mxu1  ;;  %11810 = vmatpush3.bf16.msra.mxu0 %v11807_v52  ;;  %11501 = vmatprep.mubr.msk.f32.mxu0 %vm6062_vm2, %v16393_v21  ;;  %v11815_v21 = vpack.c.bf16 %v10936_v17, %v10935_v3  ;;  %v16674_v32 = vld [vmem:[#allocation2 + $0x6a8] sm:$0xff] }
 0x3f1   :  { %v5868_v42 = vadd.f32 %v16472_v7, %v5761_v38  ;;  %v5763_v63 = vpop.f32.mrb[133].mxu1  ;;  %9715 = vrot.lane.b32.xlu1 %v9668_v16, %s12553_s30  ;;  %v16638_v56 = vmax.f32 %v5888_v24, %v5896_v43  ;;  %11812 = vmatprep.subr.bf16.mxu0 %v11811_v54  ;;  %v10942_v24 = vld [vmem:[%s17069_s4 + $0x128] sm:$0xff]  ;;  %v17228_v43 = vld [vmem:[#allocation14_spill] sm:$0xff] }
 0x3f2   :  { %5927 = vst.msk [vmem:[#allocation2 + $0x6e8] sm:$0xff] %vm743_vm1, %v5897_v19  ;;  %v5869_v26 = vadd.f32 %v16477_v1, %v5763_v63  ;;  %v8760_v52 = vpop.permute.xlu1 %8759  ;;  %v8794_v0 = vpop.permute.xlu0 %8793  ;;  %v9672_v63 = vmax.f32 %v9664_v31, %v16672_v35 }
 0x3f3   :  { %v5898_v4 = vmax.f32 %v5868_v42, 0.0  ;;  %v8803_v33 = vmax.f32 %v16632_v55, %v8794_v0  ;;  %11502 = vmatmul.mubr.msk.f32.vlgmr.msra.gmra.mrb[120].mxu0 %vm6062_vm2, %v16439_v49  ;;  %v16653_v48 = vmax.f32 %v16195_v58, %v8760_v52  ;;  %v9646_v49 = vld [vmem:[#allocation2 + $0x668] sm:$0xff]  ;;  %v16664_v58 = vpack.c.bf16 %v10942_v24, %v10941_v15 }
 0x3f4   :  { %v5899_v18 = vmax.f32 %v5869_v26, 0.0  ;;  %v5767_v30 = vpop.f32.mrb[134].mxu1  ;;  %11814 = vmatpush3.bf16.msra.mxu0 %v11811_v54  ;;  %v9662_v16 = vmax.f32 %v17228_v43, %v9646_v49 }
 0x3f5   :  { %v5870_v11 = vadd.f32 %v16472_v7, %v5767_v30  ;;  %v5769_v27 = vpop.f32.mrb[135].mxu1  ;;  %9681 = vrot.lane.b32.xlu1 %v16534_v61, %s12552_s25  ;;  %8924 = vrot.lane.b32.xlu0 %v8803_v33, %s12553_s30  ;;  %v16660_v60 = vmax.f32 %v5890_v20, %v5898_v4  ;;  %v9965_v20 = vmax.f32 %v17227_v14, %v5892_v28  ;;  %v9950_v33 = vld [vmem:[#allocation2 + $0x6c8] sm:$0xff]  ;;  %v9952_v43 = vld [vmem:[#allocation2 + $0x6d8] sm:$0xff] }
 0x3f6   :  { %5929 = vst.msk [vmem:[#allocation2 + $0x6f8] sm:$0xff] %vm743_vm1, %v5899_v18  ;;  %v5871_v36 = vadd.f32 %v16477_v1, %v5769_v27  ;;  %v8796_v37 = vpop.permute.xlu1 %8795  ;;  %v8617_v57 = vpop.permute.xlu0 %8616  ;;  %11816 = vmatprep.subr.bf16.mxu0 %v11815_v21  ;;  %v9670_v26 = vmax.f32 %v9662_v16, %v16674_v32  ;;  %v9968_v31 = vmax.f32 %v16602_v25, %v9952_v43  ;;  %v17231_v43 = vld [vmem:[#allocation16_spill] sm:$0xff] }
 0x3f7   :  { %v5900_v22 = vmax.f32 %v5870_v11, 0.0  ;;  %v8804_v54 = vmax.f32 %v16653_v48, %v8796_v37  ;;  %11504 = vmatprep.mubr.msk.f32.mxu0 %vm6062_vm2, %v8617_v57 }
 0x3f8   :  { %v5901_v51 = vmax.f32 %v5871_v36, 0.0  ;;  %v5773_v13 = vpop.f32.mrb[136].mxu1  ;;  %11818 = vmatpush3.bf16.msra.mxu0 %v11815_v21  ;;  %v9966_v36 = vmax.f32 %v16310_v41, %v9950_v33 }
 0x3f9   :  { %v5872_v3 = vadd.f32 %v16472_v7, %v5773_v13  ;;  %v5775_v17 = vpop.f32.mrb[137].mxu1  ;;  %9683 = vrot.lane.b32.xlu1 %v16559_v40, %s12552_s25  ;;  %8926 = vrot.lane.b32.xlu0 %v8804_v54, %s12553_s30  ;;  %v16682_v28 = vmax.f32 %v9965_v20, %v5900_v22  ;;  %v9954_v16 = vld [vmem:[#allocation2 + $0x6e8] sm:$0xff] }
 0x3fa   :  { %5931 = vst.msk [vmem:[#allocation2 + $0x708] sm:$0xff] %vm743_vm1, %v5901_v51  ;;  %v5873_v19 = vadd.f32 %v16477_v1, %v5775_v17  ;;  %v16686_v38 = vpop.permute.xlu1 %9065  ;;  %11820 = vmatprep.subr.bf16.mxu0 %v16664_v58  ;;  %v16699_v18 = vpop.permute.xlu0 %9101 }
 0x3fb   :  { %v5902_v42 = vmax.f32 %v5872_v3, 0.0 }
 0x3fc   :  { %v5903_v52 = vmax.f32 %v5873_v19, 0.0  ;;  %v5779_v0 = vpop.f32.mrb[138].mxu1  ;;  %v9970_v19 = vmax.f32 %v16674_v32, %v9954_v16  ;;  %v16800_v16 = vmax.f32 %v17231_v43, %v16459_v39 }
 0x3fd   :  { %v5874_v21 = vadd.f32 %v16472_v7, %v5779_v0  ;;  %v5781_v4 = vpop.f32.mrb[139].mxu1  ;;  %9719 = vrot.lane.b32.xlu1 %v9672_v63, %s12553_s30  ;;  %9717 = vrot.lane.b32.xlu0 %v9670_v26, %s12553_s30  ;;  %v16695_v15 = vmax.f32 %v16612_v5, %v5902_v42 }
 0x3fe   :  { %5933 = vst.msk [vmem:[#allocation2 + $0x718] sm:$0xff] %vm743_vm1, %v5903_v52  ;;  %v5875_v24 = vadd.f32 %v16477_v1, %v5781_v4  ;;  %v16701_v30 = vpop.permute.xlu1 %9067  ;;  %v9062_v13 = vpop.permute.xlu0 %9061 }
 0x3ff   :  { %v5904_v11 = vmax.f32 %v5874_v21, 0.0 }
 0x400   :  { %v5905_v27 = vmax.f32 %v5875_v24, 0.0  ;;  %v5785_v49 = vpop.f32.mrb[140].mxu1  ;;  %v16738_v24 = vmax.f32 %v16257_v6, %v9062_v13 }
 0x401   :  { %v5876_v37 = vadd.f32 %v16472_v7, %v5785_v49  ;;  %v5787_v57 = vpop.f32.mrb[141].mxu1  ;;  %v9958_v53 = vld [vmem:[#allocation2 + $0x708] sm:$0xff]  ;;  %9077 = vrot.lane.b32.xlu0 %v16257_v6, %s12553_s30  ;;  %v16708_v5 = vmax.f32 %v16638_v56, %v5904_v11  ;;  %v16744_v49 = vmax.f32 %v16342_v45, %v16686_v38 }
 0x402   :  { %5935 = vst.msk [vmem:[#allocation2 + $0x728] sm:$0xff] %vm743_vm1, %v5905_v27  ;;  %v5877_v22 = vadd.f32 %v16477_v1, %v5787_v57  ;;  %v9974_v54 = vmax.f32 %v9966_v36, %v9958_v53  ;;  %v9104_v14 = vpop.permute.xlu1 %9103  ;;  %v16729_v63 = vpop.permute.xlu0 %8769  ;;  %v9956_v27 = vld [vmem:[#allocation2 + $0x6f8] sm:$0xff] }
 0x403   :  { %v5906_v20 = vmax.f32 %v5876_v37, 0.0  ;;  %v9972_v57 = vmax.f32 %v16672_v35, %v9956_v27 }
 0x404   :  { %v5907_v51 = vmax.f32 %v5877_v22, 0.0  ;;  %v5791_v41 = vpop.f32.mrb[142].mxu1  ;;  %10021 = vrot.lane.b32.xlu1 %v9974_v54, %s12553_s30  ;;  %v9111_v54 = vmax.f32 %v16744_v49, %v16699_v18  ;;  %v16768_v18 = vmax.f32 %v16351_v59, %v16701_v30 }
 0x405   :  { %v5793_v7 = vpop.f32.mrb[143].mxu1  ;;  %9079 = vrot.lane.b32.xlu0 %v16273_v23, %s12553_s30  ;;  %v16716_v56 = vmax.f32 %v16660_v60, %v5906_v20  ;;  %v9960_v17 = vld [vmem:[#allocation2 + $0x718] sm:$0xff] }
 0x406   :  { %5937 = vst.msk [vmem:[#allocation2 + $0x738] sm:$0xff] %vm743_vm1, %v5907_v51  ;;  %v16719_v1 = vpop.permute.xlu1 %8775  ;;  %v9976_v26 = vmax.f32 %v9968_v31, %v9960_v17  ;;  %v16733_v25 = vpop.permute.xlu0 %8771  ;;  %v9112_v13 = vmax.f32 %v16768_v18, %v9104_v14 }
 0x407   :  { %v8784_v3 = vmax.f32 %v16653_v48, %v16719_v1  ;;  %v10957_v48 = vld [vmem:[%s17069_s4 + $0x140] sm:$0xff]  ;;  %v10958_v1 = vld [vmem:[%s17069_s4 + $0x148] sm:$0xff] }
 0x408   :  { %v5797_v50 = vpop.f32.mrb[144].mxu1  ;;  %9987 = vrot.lane.b32.xlu1 %v16695_v15, %s12552_s25 }
 0x409   :  { %v5799_v42 = vpop.f32.mrb[145].mxu1  ;;  %9985 = vrot.lane.b32.xlu0 %v16682_v28, %s12552_s25  ;;  %v9962_v60 = vld [vmem:[#allocation2 + $0x728] sm:$0xff] }
 0x40a   :  { %v9098_v52 = vpop.permute.xlu1 %9097  ;;  %v9978_v0 = vmax.f32 %v9970_v19, %v9962_v60  ;;  %v8774_v6 = vpop.permute.xlu0 %8773  ;;  %v10950_v19 = vld [vmem:[%s17068_s3 + $0x148] sm:$0xff]  ;;  %v10952_v60 = vld [vmem:[%s17068_s3 + $0x158] sm:$0xff] }
 0x40b   :  { %v9109_v36 = vmax.f32 %v16738_v24, %v9098_v52  ;;  %v8783_v31 = vmax.f32 %v16632_v55, %v8774_v6  ;;  %v10951_v55 = vld [vmem:[%s17068_s3 + $0x150] sm:$0xff] }
 0x40c   :  { %v5803_v21 = vpop.f32.mrb[146].mxu1  ;;  %10023 = vrot.lane.b32.xlu1 %v9976_v26, %s12553_s30  ;;  %v11831_v26 = vpack.c.bf16 %v10952_v60, %v10951_v55 }
 0x40d   :  { %v5805_v4 = vpop.f32.mrb[147].mxu1  ;;  %10025 = vrot.lane.b32.xlu0 %v9978_v0, %s12553_s30  ;;  %v9964_v37 = vld [vmem:[#allocation2 + $0x738] sm:$0xff]  ;;  %v11835_v21 = vpack.c.bf16 %v10958_v1, %v10957_v48 }
 0x40e   :  { %v9406_v33 = vpop.permute.xlu1 %9405  ;;  %v9980_v22 = vmax.f32 %v9972_v57, %v9964_v37  ;;  %v9370_v38 = vpop.permute.xlu0 %9369 }
 0x40f   :  { %v16764_v51 = vmax.f32 %v16388_v12, %v9370_v38 }
 0x410   :  { %v5809_v32 = vpop.f32.mrb[148].mxu1  ;;  %9989 = vrot.lane.b32.xlu1 %v16708_v5, %s12552_s25 }
 0x411   :  { %v5811_v11 = vpop.f32.mrb[149].mxu1  ;;  %9081 = vrot.lane.b32.xlu0 %v16342_v45, %s12553_s30  ;;  %v9417_v41 = vmax.f32 %v16764_v51, %v9406_v33 }
 0x412   :  { %v9064_v53 = vpop.permute.xlu1 %9063 }
 0x413   :  { %v16756_v20 = vmax.f32 %v16273_v23, %v9064_v53  ;;  %v17230_v23 = vld [vmem:[#allocation12_spill] sm:$0xff] }
 0x414   :  { %9991 = vrot.lane.b32.xlu1 %v16716_v56, %s12552_s25  ;;  %v16778_v7 = vmax.f32 %v17230_v23, %v16456_v34 }
 0x415   :  { %9228 = vrot.lane.b32.xlu0 %v9109_v36, %s12553_s30 }
 0x416   :  { %v9100_v45 = vpop.permute.xlu1 %9099 }
 0x417   :  { %v9110_v35 = vmax.f32 %v16756_v20, %v9100_v45 }
 0x418   :  { %10027 = vrot.lane.b32.xlu1 %v9980_v22, %s12553_s30 }
 0x419   :  { %9232 = vrot.lane.b32.xlu0 %v9111_v54, %s12553_s30 }
 0x41c   :  { %9083 = vrot.lane.b32.xlu1 %v16351_v59, %s12553_s30  ;;  %v9419_v59 = vmax.f32 %v16778_v7, %v16565_v62  ;;  %v16796_v62 = vmax.f32 %v16324_v46, %v16618_v47  ;;  %v8782_v47 = vmax.f32 %v16555_v29, %v16733_v25 }
 0x41d   :  { %9385 = vrot.lane.b32.xlu0 %v16388_v12, %s12553_s30  ;;  %v9372_v12 = vpop.permute.xlu1 %9371 }
 0x41e   :  { %v16787_v14 = vmax.f32 %v16404_v2, %v9372_v12  ;;  %v9725_v17 = vmax.f32 %v16796_v62, %v16616_v8  ;;  %v10944_v8 = vld [vmem:[%s17069_s4 + $0x138] sm:$0xff] }
 0x420   :  { %9230 = vrot.lane.b32.xlu1 %v9110_v35, %s12553_s30  ;;  %v10965_v35 = vld [vmem:[%s17068_s3 + $0x160] sm:$0xff] }
 0x421   :  { %9389 = vrot.lane.b32.xlu0 %v17230_v23, %s12553_s30  ;;  %v9408_v30 = vpop.permute.xlu1 %9407  ;;  %v10966_v23 = vld [vmem:[%s17068_s3 + $0x168] sm:$0xff] }
 0x422   :  { %v9418_v34 = vmax.f32 %v16787_v14, %v9408_v30  ;;  %v11843_v12 = vpack.c.bf16 %v10966_v23, %v10965_v35 }
 0x424   :  { %9234 = vrot.lane.b32.xlu1 %v9112_v13, %s12553_s30 }
 0x425   :  { %9536 = vrot.lane.b32.xlu0 %v9417_v41, %s12553_s30 }
 0x428   :  { %9387 = vrot.lane.b32.xlu1 %v16404_v2, %s12553_s30  ;;  %v9420_v2 = vmax.f32 %v16800_v16, %v16495_v10  ;;  %v10943_v10 = vld [vmem:[%s17069_s4 + $0x130] sm:$0xff] }
 0x429   :  { %9540 = vrot.lane.b32.xlu0 %v9419_v59, %s12553_s30  ;;  %v11823_v50 = vpack.c.bf16 %v10944_v8, %v10943_v10  ;;  %v10272_v8 = vld [vmem:[%s17071_s6 + $0x20] sm:$0xff] }
 0x42c   :  { %9391 = vrot.lane.b32.xlu1 %v17231_v43, %s12553_s30 }
 0x42d   :  { %9693 = vrot.lane.b32.xlu0 %v16324_v46, %s12553_s30  ;;  %v8781_v46 = vmax.f32 %v16592_v9, %v16729_v63  ;;  %v10949_v9 = vld [vmem:[%s17068_s3 + $0x140] sm:$0xff] }
 0x42e   :  { %v11827_v42 = vpack.c.bf16 %v10950_v19, %v10949_v9 }
 0x430   :  { %9538 = vrot.lane.b32.xlu1 %v9418_v34, %s12553_s30 }
 0x431   :  { %9697 = vrot.lane.b32.xlu0 %v16534_v61, %s12553_s30 }
 0x434   :  { %9542 = vrot.lane.b32.xlu1 %v9420_v2, %s12553_s30  ;;  %v10270_v2 = vld [vmem:[%s17071_s6 + $0x10] sm:$0xff] }
 0x435   :  { %9844 = vrot.lane.b32.xlu0 %v9725_v17, %s12553_s30 }
 0x438   :  { %9695 = vrot.lane.b32.xlu1 %v16597_v44, %s12553_s30 }
 0x43c   :  { %9699 = vrot.lane.b32.xlu1 %v16559_v40, %s12553_s30 }
 0x44b   :  { %v8619_v39 = vpop.permute.xlu0 %8618 }
 0x44c   :  { %11505 = vmatmul.mubr.msk.f32.gmra.mrb[122].mxu0 %vm6062_vm2, %v8619_v39 }
 0x44d   :  { %11515 = vmatprep.mubr.msk.f32.mxu0 %vm6062_vm2, %v8781_v46  ;;  %v10271_v46 = vld [vmem:[%s17071_s6 + $0x18] sm:$0xff] }
 0x44e   :  { %v11895_v10 = vpack.c.bf16 %v10271_v46, %v10270_v2 }
 0x450   :  { %11516 = vmatmul.mubr.msk.f32.vlgmr.msra.gmra.mrb[120].mxu0 %vm6062_vm2, %v8782_v47  ;;  %v10273_v47 = vld [vmem:[%s17071_s6 + $0x28] sm:$0xff] }
 0x451   :  { %11518 = vmatprep.mubr.msk.f32.mxu0 %vm6062_vm2, %v8783_v31  ;;  %11822 = vmatpush3.bf16.msra.mxu0 %v16664_v58 }
 0x452   :  { %11824 = vmatprep.subr.bf16.mxu0 %v11823_v50 }
 0x454   :  { %11519 = vmatmul.mubr.msk.f32.gmra.mrb[122].mxu0 %vm6062_vm2, %v8784_v3 }
 0x455   :  { %11826 = vmatpush3.bf16.msra.mxu0 %v11823_v50 }
 0x456   :  { %11828 = vmatprep.subr.bf16.mxu0 %v11827_v42 }
 0x45b   :  { %v8923_v29 = vpop.permute.xlu1 %8922 }
 0x45f   :  { %v9680_v63 = vpop.permute.xlu1 %9679 }
 0x460   :  { %v16848_v52 = vmax.f32 %v16597_v44, %v9680_v63 }
 0x461   :  { %v8921_v58 = vpop.permute.xlu0 %8920 }
 0x462   :  { %11529 = vmatprep.mubr.msk.f32.mxu0 %vm6062_vm2, %v8921_v58 }
 0x463   :  { %v9716_v3 = vpop.permute.xlu1 %9715  ;;  %11530 = vmatmul.mubr.msk.f32.vlgmr.msra.gmra.mrb[120].mxu0 %vm6062_vm2, %v8923_v29 }
 0x464   :  { %v9726_v0 = vmax.f32 %v16848_v52, %v9716_v3  ;;  %11830 = vmatpush3.bf16.msra.mxu0 %v11827_v42  ;;  %v11899_v42 = vpack.c.bf16 %v10273_v47, %v10272_v8  ;;  %v10968_v3 = vld [vmem:[%s17068_s3 + $0x178] sm:$0xff] }
 0x465   :  { %11832 = vmatprep.subr.bf16.mxu0 %v11831_v26 }
 0x466   :  { %9846 = vrot.lane.b32.xlu1 %v9726_v0, %s12553_s30 }
 0x467   :  { %v9682_v44 = vpop.permute.xlu1 %9681  ;;  %v8925_v4 = vpop.permute.xlu0 %8924 }
 0x468   :  { %11532 = vmatprep.mubr.msk.f32.mxu0 %vm6062_vm2, %v8925_v4  ;;  %11834 = vmatpush3.bf16.msra.mxu0 %v11831_v26  ;;  %v16863_v32 = vmax.f32 %v16534_v61, %v9682_v44  ;;  %v10959_v61 = vld [vmem:[%s17069_s4 + $0x150] sm:$0xff]  ;;  %v10974_v4 = vld [vmem:[%s17069_s4 + $0x168] sm:$0xff] }
 0x469   :  { %11836 = vmatprep.subr.bf16.mxu0 %v11835_v21 }
 0x46b   :  { %v9684_v33 = vpop.permute.xlu1 %9683  ;;  %v8927_v25 = vpop.permute.xlu0 %8926 }
 0x46c   :  { %11533 = vmatmul.mubr.msk.f32.gmra.mrb[122].mxu0 %vm6062_vm2, %v8927_v25  ;;  %v16866_v11 = vmax.f32 %v16559_v40, %v9684_v33  ;;  %v10960_v40 = vld [vmem:[%s17069_s4 + $0x158] sm:$0xff] }
 0x46d   :  { %v11839_v45 = vpack.c.bf16 %v10960_v40, %v10959_v61  ;;  %v10981_v61 = vld [vmem:[%s17068_s3 + $0x180] sm:$0xff]  ;;  %v10982_v40 = vld [vmem:[%s17068_s3 + $0x188] sm:$0xff] }
 0x46f   :  { %v9720_v27 = vpop.permute.xlu1 %9719  ;;  %v9718_v36 = vpop.permute.xlu0 %9717 }
 0x470   :  { %v9728_v37 = vmax.f32 %v16866_v11, %v9720_v27  ;;  %v9727_v57 = vmax.f32 %v16863_v32, %v9718_v36 }
 0x472   :  { %9850 = vrot.lane.b32.xlu1 %v9728_v37, %s12553_s30  ;;  %9848 = vrot.lane.b32.xlu0 %v9727_v57, %s12553_s30  ;;  %v10975_v37 = vld [vmem:[%s17069_s4 + $0x170] sm:$0xff]  ;;  %v10976_v57 = vld [vmem:[%s17069_s4 + $0x178] sm:$0xff] }
 0x473   :  { %v9078_v53 = vpop.permute.xlu0 %9077 }
 0x474   :  { %v9089_v6 = vmax.f32 %v16738_v24, %v9078_v53 }
 0x476   :  { %v10022_v22 = vpop.permute.xlu1 %10021  ;;  %10003 = vrot.lane.b32.xlu1 %v16695_v15, %s12553_s30  ;;  %10001 = vrot.lane.b32.xlu0 %v16682_v28, %s12553_s30 }
 0x477   :  { %11543 = vmatprep.mubr.msk.f32.mxu0 %vm6062_vm2, %v9089_v6  ;;  %v9080_v54 = vpop.permute.xlu0 %9079 }
 0x478   :  { %v9090_v24 = vmax.f32 %v16756_v20, %v9080_v54 }
 0x47a   :  { %v9988_v38 = vpop.permute.xlu1 %9987  ;;  %10007 = vrot.lane.b32.xlu1 %v16716_v56, %s12553_s30  ;;  %10005 = vrot.lane.b32.xlu0 %v16708_v5, %s12553_s30 }
 0x47b   :  { %11544 = vmatmul.mubr.msk.f32.vlgmr.msra.gmra.mrb[120].mxu0 %vm6062_vm2, %v9090_v24  ;;  %v9986_v13 = vpop.permute.xlu0 %9985  ;;  %v16900_v41 = vmax.f32 %v16695_v15, %v9988_v38  ;;  %v10269_v15 = vld [vmem:[%s17071_s6 + $0x8] sm:$0xff]  ;;  %v10984_v38 = vld [vmem:[%s17068_s3 + $0x198] sm:$0xff] }
 0x47c   :  { %v16897_v20 = vmax.f32 %v16682_v28, %v9986_v13  ;;  %11838 = vmatpush3.bf16.msra.mxu0 %v11835_v21  ;;  %v10268_v28 = vld [vmem:[%s17071_s6] sm:$0xff] }
 0x47d   :  { %11840 = vmatprep.subr.bf16.mxu0 %v11839_v45  ;;  %v11891_v17 = vpack.c.bf16 %v10269_v15, %v10268_v28  ;;  %v10992_v28 = vld [vmem:[%s17069_s4 + $0x198] sm:$0xff] }
 0x47e   :  { %v10024_v59 = vpop.permute.xlu1 %10023  ;;  %v10033_v30 = vmax.f32 %v16897_v20, %v10022_v22  ;;  %v11855_v22 = vpack.c.bf16 %v10976_v57, %v10975_v37 }
 0x47f   :  { %v10034_v43 = vmax.f32 %v16900_v41, %v10024_v59  ;;  %v10026_v34 = vpop.permute.xlu0 %10025  ;;  %11892 = vmatprep.subr.bf16.mxu1 %v11891_v17 }
 0x480   :  { %10152 = vrot.lane.b32.xlu0 %v10033_v30, %s12553_s30  ;;  %11842 = vmatpush3.bf16.msra.mxu0 %v11839_v45  ;;  %v11859_v45 = vpack.c.bf16 %v10982_v40, %v10981_v61 }
 0x481   :  { %10154 = vrot.lane.b32.xlu1 %v10034_v43, %s12553_s30  ;;  %11844 = vmatprep.subr.bf16.mxu0 %v11843_v12 }
 0x482   :  { %v9990_v39 = vpop.permute.xlu1 %9989  ;;  %11894 = vmatpush3.bf16.msra.mxu1 %v11891_v17 }
 0x483   :  { %v16925_v50 = vmax.f32 %v16708_v5, %v9990_v39  ;;  %v9082_v31 = vpop.permute.xlu0 %9081  ;;  %11896 = vmatprep.subr.bf16.mxu1 %v11895_v10  ;;  %v10997_v39 = vld [vmem:[%s17068_s3 + $0x1a0] sm:$0xff] }
 0x484   :  { %v9091_v9 = vmax.f32 %v16744_v49, %v9082_v31  ;;  %v10274_v49 = vld [vmem:[%s17071_s6 + $0x30] sm:$0x3] }
 0x485   :  { %v10035_v19 = vmax.f32 %v16925_v50, %v10026_v34  ;;  %v10991_v34 = vld [vmem:[%s17069_s4 + $0x190] sm:$0xff] }
 0x486   :  { %v9992_v29 = vpop.permute.xlu1 %9991  ;;  %11546 = vmatprep.mubr.msk.f32.mxu0 %vm6062_vm2, %v9091_v9  ;;  %11898 = vmatpush3.bf16.msra.mxu1 %v11895_v10  ;;  %v11871_v46 = vpack.c.bf16 %v10992_v28, %v10991_v34  ;;  %v10998_v10 = vld [vmem:[%s17068_s3 + $0x1a8] sm:$0xff]  ;;  %v11000_v9 = vld [vmem:[%s17068_s3 + $0x1b8] sm:$0xff] }
 0x487   :  { %10156 = vrot.lane.b32.xlu0 %v10035_v19, %s12553_s30  ;;  %v9229_v55 = vpop.permute.xlu0 %9228  ;;  %v16932_v60 = vmax.f32 %v16716_v56, %v9992_v29  ;;  %11900 = vmatprep.subr.bf16.mxu1 %v11899_v42  ;;  %v10967_v56 = vld [vmem:[%s17068_s3 + $0x170] sm:$0xff]  ;;  %v11875_v47 = vpack.c.bf16 %v10998_v10, %v10997_v39  ;;  %v11006_v29 = vld [vmem:[%s17069_s4 + $0x1a8] sm:$0xff] }
 0x488   :  { %v11847_v44 = vpack.c.bf16 %v10968_v3, %v10967_v56 }
 0x48a   :  { %v10028_v5 = vpop.permute.xlu1 %10027  ;;  %11902 = vmatpush3.bf16.msra.mxu1 %v11899_v42 }
 0x48b   :  { %v10036_v63 = vmax.f32 %v16932_v60, %v10028_v5  ;;  %v9233_v58 = vpop.permute.xlu0 %9232  ;;  %11659 = vmatprep.subr.msk.mxu1 %vm10295_vm3, %v10274_v49 }
 0x48d   :  { %10158 = vrot.lane.b32.xlu1 %v10036_v63, %s12553_s30  ;;  %v11007_v63 = vld [vmem:[%s17069_s4 + $0x1b0] sm:$0xff] }
 0x48e   :  { %v9084_v26 = vpop.permute.xlu1 %9083  ;;  %11660 = vmatpush3.msk.msra.mxu1 %vm10295_vm3, %v10274_v49 }
 0x48f   :  { %v9092_v48 = vmax.f32 %v16768_v18, %v9084_v26  ;;  %v9386_v1 = vpop.permute.xlu0 %9385  ;;  %v10973_v18 = vld [vmem:[%s17069_s4 + $0x160] sm:$0xff] }
 0x490   :  { %v11851_v27 = vpack.c.bf16 %v10974_v4, %v10973_v18  ;;  %v9397_v36 = vmax.f32 %v16764_v51, %v9386_v1 }
 0x491   :  { %11547 = vmatmul.mubr.msk.f32.gmra.mrb[122].mxu0 %vm6062_vm2, %v9092_v48 }
 0x492   :  { %v9231_v0 = vpop.permute.xlu1 %9230  ;;  %11557 = vmatprep.mubr.msk.f32.mxu0 %vm6062_vm2, %v9229_v55 }
 0x493   :  { %v9390_v21 = vpop.permute.xlu0 %9389 }
 0x494   :  { %v9399_v51 = vmax.f32 %v16778_v7, %v9390_v21  ;;  %v10983_v7 = vld [vmem:[%s17068_s3 + $0x190] sm:$0xff] }
 0x495   :  { %11558 = vmatmul.mubr.msk.f32.vlgmr.msra.gmra.mrb[120].mxu0 %vm6062_vm2, %v9231_v0  ;;  %v11863_v13 = vpack.c.bf16 %v10984_v38, %v10983_v7 }
 0x496   :  { %v9235_v33 = vpop.permute.xlu1 %9234  ;;  %11560 = vmatprep.mubr.msk.f32.mxu0 %vm6062_vm2, %v9233_v58  ;;  %11846 = vmatpush3.bf16.msra.mxu0 %v11843_v12  ;;  %v10990_v12 = vld [vmem:[%s17069_s4 + $0x188] sm:$0xff]  ;;  %v11008_v58 = vld [vmem:[%s17069_s4 + $0x1b8] sm:$0xff] }
 0x497   :  { %11848 = vmatprep.subr.bf16.mxu0 %v11847_v44  ;;  %v9537_v25 = vpop.permute.xlu0 %9536  ;;  %v11887_v3 = vpack.c.bf16 %v11008_v58, %v11007_v63 }
 0x499   :  { %11561 = vmatmul.mubr.msk.f32.gmra.mrb[122].mxu0 %vm6062_vm2, %v9235_v33 }
 0x49a   :  { %v9388_v53 = vpop.permute.xlu1 %9387  ;;  %11850 = vmatpush3.bf16.msra.mxu0 %v11847_v44  ;;  %11571 = vmatprep.mubr.msk.f32.mxu0 %vm6062_vm2, %v9397_v36 }
 0x49b   :  { %v9398_v6 = vmax.f32 %v16787_v14, %v9388_v53  ;;  %11852 = vmatprep.subr.bf16.mxu0 %v11851_v27  ;;  %v9541_v54 = vpop.permute.xlu0 %9540 }
 0x49d   :  { %11572 = vmatmul.mubr.msk.f32.vlgmr.msra.gmra.mrb[120].mxu0 %vm6062_vm2, %v9398_v6 }
 0x49e   :  { %v9392_v24 = vpop.permute.xlu1 %9391  ;;  %11574 = vmatprep.mubr.msk.f32.mxu0 %vm6062_vm2, %v9399_v51  ;;  %11854 = vmatpush3.bf16.msra.mxu0 %v11851_v27 }
 0x49f   :  { %v9400_v14 = vmax.f32 %v16800_v16, %v9392_v24  ;;  %11856 = vmatprep.subr.bf16.mxu0 %v11855_v22  ;;  %v9694_v23 = vpop.permute.xlu0 %9693  ;;  %v10989_v16 = vld [vmem:[%s17069_s4 + $0x180] sm:$0xff] }
 0x4a0   :  { %v11867_v30 = vpack.c.bf16 %v10990_v12, %v10989_v16  ;;  %v9705_v43 = vmax.f32 %v16796_v62, %v9694_v23 }
 0x4a1   :  { %11575 = vmatmul.mubr.msk.f32.gmra.mrb[122].mxu0 %vm6062_vm2, %v9400_v14 }
 0x4a2   :  { %v9539_v35 = vpop.permute.xlu1 %9538  ;;  %11858 = vmatpush3.bf16.msra.mxu0 %v11855_v22  ;;  %11585 = vmatprep.mubr.msk.f32.mxu0 %vm6062_vm2, %v9537_v25  ;;  %v11014_v22 = vld [vmem:[%s17072_s7] ss:$0 sm:$0xff] }
 0x4a3   :  { %11860 = vmatprep.subr.bf16.mxu0 %v11859_v45  ;;  %v9698_v15 = vpop.permute.xlu0 %9697 }
 0x4a4   :  { %v9707_v62 = vmax.f32 %v16863_v32, %v9698_v15  ;;  %v10999_v32 = vld [vmem:[%s17068_s3 + $0x1b0] sm:$0xff] }
 0x4a5   :  { %11586 = vmatmul.mubr.msk.f32.vlgmr.msra.gmra.mrb[120].mxu0 %vm6062_vm2, %v9539_v35  ;;  %v11879_v19 = vpack.c.bf16 %v11000_v9, %v10999_v32 }
 0x4a6   :  { %v9543_v59 = vpop.permute.xlu1 %9542  ;;  %11588 = vmatprep.mubr.msk.f32.mxu0 %vm6062_vm2, %v9541_v54  ;;  %11862 = vmatpush3.bf16.msra.mxu0 %v11859_v45 }
 0x4a7   :  { %11864 = vmatprep.subr.bf16.mxu0 %v11863_v13  ;;  %v9845_v31 = vpop.permute.xlu0 %9844 }
 0x4a9   :  { %11589 = vmatmul.mubr.msk.f32.gmra.mrb[122].mxu0 %vm6062_vm2, %v9543_v59 }
 0x4aa   :  { %v9696_v2 = vpop.permute.xlu1 %9695  ;;  %11866 = vmatpush3.bf16.msra.mxu0 %v11863_v13  ;;  %11599 = vmatprep.mubr.msk.f32.mxu0 %vm6062_vm2, %v9705_v43 }
 0x4ab   :  { %v9706_v17 = vmax.f32 %v16848_v52, %v9696_v2  ;;  %11868 = vmatprep.subr.bf16.mxu0 %v11867_v30 }
 0x4ad   :  { %11600 = vmatmul.mubr.msk.f32.vlgmr.msra.gmra.mrb[120].mxu0 %vm6062_vm2, %v9706_v17 }
 0x4ae   :  { %v9700_v8 = vpop.permute.xlu1 %9699  ;;  %11602 = vmatprep.mubr.msk.f32.mxu0 %vm6062_vm2, %v9707_v62  ;;  %11870 = vmatpush3.bf16.msra.mxu0 %v11867_v30 }
 0x4af   :  { %v9708_v52 = vmax.f32 %v16866_v11, %v9700_v8  ;;  %11872 = vmatprep.subr.bf16.mxu0 %v11871_v46  ;;  %v11005_v11 = vld [vmem:[%s17069_s4 + $0x1a0] sm:$0xff] }
 0x4b0   :  { %v11883_v55 = vpack.c.bf16 %v11006_v29, %v11005_v11 }
 0x4b1   :  { %11603 = vmatmul.mubr.msk.f32.gmra.mrb[122].mxu0 %vm6062_vm2, %v9708_v52 }
 0x4b2   :  { %11613 = vmatprep.mubr.msk.f32.mxu0 %vm6062_vm2, %v9845_v31  ;;  %11874 = vmatpush3.bf16.msra.mxu0 %v11871_v46 }
 0x4b3   :  { %11876 = vmatprep.subr.bf16.mxu0 %v11875_v47 }
 0x4d8   :  { %v9847_v42 = vpop.permute.xlu1 %9846 }
 0x4d9   :  { %11614 = vmatmul.mubr.msk.f32.vlgmr.msra.gmra.mrb[120].mxu0 %vm6062_vm2, %v9847_v42 }
 0x4da   :  { %11878 = vmatpush3.bf16.msra.mxu0 %v11875_v47 }
 0x4db   :  { %11880 = vmatprep.subr.bf16.mxu0 %v11879_v19 }
 0x4de   :  { %11882 = vmatpush3.bf16.msra.mxu0 %v11879_v19 }
 0x4df   :  { %11884 = vmatprep.subr.bf16.mxu0 %v11883_v55 }
 0x4e4   :  { %v9851_v5 = vpop.permute.xlu1 %9850  ;;  %v9849_v49 = vpop.permute.xlu0 %9848 }
 0x4e5   :  { %11616 = vmatprep.mubr.msk.f32.mxu0 %vm6062_vm2, %v9849_v49 }
 0x4e6   :  { %11617 = vmatmul.mubr.msk.f32.gmra.mrb[122].mxu0 %vm6062_vm2, %v9851_v5 }
 0x4e8   :  { %v10004_v26 = vpop.permute.xlu1 %10003  ;;  %v10002_v48 = vpop.permute.xlu0 %10001 }
 0x4e9   :  { %v10014_v1 = vmax.f32 %v16900_v41, %v10004_v26  ;;  %v10013_v56 = vmax.f32 %v16897_v20, %v10002_v48 }
 0x4eb   :  { %11627 = vmatprep.mubr.msk.f32.mxu0 %vm6062_vm2, %v10013_v56 }
 0x4ec   :  { %v10008_v0 = vpop.permute.xlu1 %10007  ;;  %11628 = vmatmul.mubr.msk.f32.vlgmr.msra.gmra.mrb[120].mxu0 %vm6062_vm2, %v10014_v1  ;;  %v10006_v21 = vpop.permute.xlu0 %10005 }
 0x4ed   :  { %v10016_v44 = vmax.f32 %v16932_v60, %v10008_v0  ;;  %v10015_v18 = vmax.f32 %v16925_v50, %v10006_v21  ;;  %11886 = vmatpush3.bf16.msra.mxu0 %v11883_v55  ;;  %v11013_v50 = vld [vmem:[%s17070_s5] ss:$0 sm:$0xff]  ;;  %s12554_s5 = smov [#allocation3]  }
 0x4ee   :  { %11888 = vmatprep.subr.bf16.mxu0 %v11887_v3  ;;  %s10394_s16 = sshll.u32 %s12554_s5, 4  ;;  %s10395_s16 = int_to_ptr.vmem [resolvable:$true] %s10394_s16 }
 0x4ef   :  { %11630 = vmatprep.mubr.msk.f32.mxu0 %vm6062_vm2, %v10015_v18  ;;  %s12527_s17 = scalar_lea.vmem %s10395_s16, 512  ;;  %p12532_p1 = scmp.lt.s32.totalorder %s10395_s16, %s10395_s16 }
 0x4f0   :  { %11631 = vmatmul.mubr.msk.f32.gmra.mrb[122].mxu0 %vm6062_vm2, %v10016_v44  ;;  %p12528_p0 = scmp.ne.s32.totalorder %s10395_s16, %s12527_s17  ;;  %p12533_p2 = scmp.lt.s32.totalorder %s12527_s17, %s12527_s17 }
 0x4f1   :  { %11890 = vmatpush3.bf16.msra.mxu0 %v11887_v3 }
 0x4f2   :  { %v10153_v41 = vpop.permute.xlu0 %10152  ;;  %p12534_p3 = por %p12533_p2, %p12532_p1 }
 0x4f3   :  { %v10155_v20 = vpop.permute.xlu1 %10154  ;;  %11641 = vmatprep.mubr.msk.f32.mxu0 %vm6062_vm2, %v10153_v41 }
 0x4f4   :  { %11642 = vmatmul.mubr.msk.f32.vlgmr.msra.gmra.mrb[120].mxu0 %vm6062_vm2, %v10155_v20  ;;  %p12535_p4 = pnand %p12534_p3, %p12528_p0 }
 0x4f9   :  { %v10157_v4 = vpop.permute.xlu0 %10156 }
 0x4fa   :  { %11644 = vmatprep.mubr.msk.f32.mxu0 %vm6062_vm2, %v10157_v4 }
 0x4ff   :  { %v10159_v33 = vpop.permute.xlu1 %10158 }
 0x500   :  { %11645 = vmatmul.mubr.msk.f32.gmra.mrb[122].mxu0 %vm6062_vm2, %v10159_v33 }
 0x5c7   :  { %v11643_v60 = vpop.f32.mrb[120].mxu0 }
 0x5c8   :  { %v10234_v25 = vpop.f32.mrb[121].mxu0  ;;  %v10265_v36 = vadd.f32 %v11643_v60, %v11013_v50 }
 0x5c9   :  { %v10264_v27 = vadd.f32 %v11013_v50, %v10234_v25 }
 0x5cb   :  { %11661 = vmatprep.mubr.msk.f32.mxu1 %vm10282_vm4, %v10264_v27 }
 0x5cc   :  { %11662 = vmatmul.mubr.msk.f32.vlgmr.msra.gmra.mrb[150].mxu1 %vm10282_vm4, %v10265_v36 }
 0x5d3   :  { %v11646_v37 = vpop.f32.mrb[122].mxu0 }
 0x5d4   :  { %v10244_v57 = vpop.f32.mrb[123].mxu0  ;;  %v10267_v6 = vadd.f32 %v11646_v37, %v11013_v50 }
 0x5d5   :  { %v10266_v53 = vadd.f32 %v11013_v50, %v10244_v57 }
 0x5d7   :  { %11664 = vmatprep.mubr.msk.f32.mxu1 %vm10282_vm4, %v10266_v53 }
 0x5d8   :  { %11665 = vmatmul.mubr.msk.f32.gmra.mrb[152].mxu1 %vm10282_vm4, %v10267_v6 }
 0x69f   :  { %v11663_v51 = vpop.f32.mrb[150].mxu1 }
 0x6a0   :  { %v10371_v61 = vadd.f32 %v11663_v51, %v11014_v22  ;;  %v10365_v40 = vpop.f32.mrb[151].mxu1 }
 0x6a1   :  { %v10366_v54 = vadd.f32 %v11014_v22, %v10365_v40 }
 0x6a2   :  { %10386 = vst.msk [vmem:[#allocation3 + $0x8] sm:$0xff] %vm10384_vm5, %v10371_v61 }
 0x6a3   :  { %10385 = vst.msk [vmem:[#allocation3] sm:$0xff] %vm10384_vm5, %v10366_v54 }
 0x6ab   :  { %v11666_v24 = vpop.f32.mrb[152].mxu1 }
 0x6ac   :  { %v10381_v14 = vadd.f32 %v11666_v24, %v11014_v22  ;;  %v10375_v45 = vpop.f32.mrb[153].mxu1 }
 0x6ad   :  { %v10376_v7 = vadd.f32 %v11014_v22, %v10375_v45 }
 0x6ae   :  { %10388 = vst.msk [vmem:[#allocation3 + $0x18] sm:$0xff] %vm10384_vm5, %v10381_v14 }
 0x6af   :  { %10387 = vst.msk [vmem:[#allocation3 + $0x10] sm:$0xff] %vm10384_vm5, %v10376_v7 }
 0x6b0   :  { %12538 = shalt.err (!%p12535_p4)
}
 0x6b1   :  { %s12539_s0 = scalar_lea.hbm %s17073_s8, 512 }
 0x6b2   :  { %p12540_p5 = scmp.ne.s32.totalorder %s17073_s8, %s12539_s0  ;;  %p12543_p6 = scmp.lt.u32.totalorder %s12539_s0, %s17073_s8 }
 0x6b4   :  { %p12545_p7 = pnand %p12543_p6, %p12540_p5 }
 0x6b6   :  { %12548 = shalt.err (!%p12545_p7)
}
 0x6b7   :  { %s12555_s1 = smov 128   ;;  %s12556_s23 = smov 8  }
 0x6b8   :  { %10400 = dma.vmem_to_hbm [thread:$0]  %s10395_s16, 512, %s17073_s8, [#allocation4], %s12555_s1, %s12555_s1, %s12556_s23  }
 0x6b9   :  { %12549 = dma.done.wait [#allocation4], 512  }
 0x6ba   :  { %12550 = vsyncadd [#allocation4], 4294966784 }
 0x6bb   :  { %10404 = vsyncpa [#allocation4], 1 }

</bundles_post_ra>
